<compile_context>
chip_gen: v5e
topology: v5e:2x2
jax: 0.10.0
libtpu: 0.0.40
codegen_flags: <defaults>
</compile_context>

<pallas_src>
import functools
from collections import namedtuple

import jax
import jax.numpy as jnp
from jax.experimental import pallas as pl
from jax.experimental.pallas import tpu as pltpu

CombinedOutput = namedtuple("CombinedOutput", ["loss", "out"])

# ----------------------------- small config ---------------------------------
SEQ_LEN = 256          # seq_len
PATCH = 32             # patch_size
LEADS = 4              # num_leads
EMBED = 64             # embed_dim / encoder width
DEPTH = 2              # encoder depth
HEADS = 2              # encoder heads
DIM_HEAD = 64          # fixed default in ST_MEM_ViT
DH_PAD = 128           # per-head q/k/v padded to a full 128-lane chunk
MLP_RATIO = 4
DEC_EMBED = 32         # decoder_embed_dim
DEC_DEPTH = 1
DEC_HEADS = 2
DEC_DIM_HEAD = 64      # fixed default in decoder TransformerBlock
BATCH = 2
N_PATCHES = SEQ_LEN // PATCH
MASK_RATIO = 0.75

# --------------------------- in-kernel helpers -------------------------------


def _ln(x, g, b, eps=1e-5):
    """LayerNorm over the last axis (torch eps=1e-5). g, b broadcast as (1, D)."""
    mean = jnp.mean(x, axis=-1, keepdims=True)
    xc = x - mean
    var = jnp.mean(xc * xc, axis=-1, keepdims=True)
    return xc * jax.lax.rsqrt(var + eps) * g + b


_ERF_P = 0.3275911
_ERF_A = (0.254829592, -0.284496736, 1.421413741, -1.453152027, 1.061405429)


def _erf_approx(x):
    # Abramowitz & Stegun 7.1.26 (|err| < 1.5e-7): keeps torch's exact-erf
    # nn.GELU() semantics using only exp/mul/recip (VPU+EUP friendly).
    a1, a2, a3, a4, a5 = _ERF_A
    ax = jnp.abs(x)
    t = pl.reciprocal(1.0 + _ERF_P * ax, approx=True)   # divide moved to EUP
    poly = ((((a5 * t + a4) * t + a3) * t + a2) * t + a1) * t
    y = 1.0 - poly * jnp.exp(-ax * ax)
    return jnp.where(x >= 0, y, -y)


def _gelu(x):
    return 0.5 * x * (1.0 + _erf_approx(x * 0.7071067811865476))


# ------------------------------ Pallas kernels ------------------------------


def _patch_embed_kernel(x_ref, g1, b1, w, bw, g2, b2, o_ref):
    # fused LN(patch) -> Linear(patch, E) -> LN(E)
    h = _ln(x_ref[...].astype(jnp.float32), g1[...], b1[...])
    h = jnp.dot(h, w[...], preferred_element_type=jnp.float32) + bw[...]
    o_ref[...] = _ln(h, g2[...], b2[...]).astype(o_ref.dtype)


def pallas_patch_embed(x2d, params):
    T, Pdim = x2d.shape
    E = params["pe_w"].shape[1]
    args = [x2d,
            params["pe_ln1_g"].reshape(1, Pdim), params["pe_ln1_b"].reshape(1, Pdim),
            params["pe_w"], params["pe_b"].reshape(1, E),
            params["pe_ln2_g"].reshape(1, E), params["pe_ln2_b"].reshape(1, E)]
    in_specs = [pl.BlockSpec(a.shape, lambda i: (0, 0)) for a in args]
    return pl.pallas_call(
        _patch_embed_kernel,
        out_shape=jax.ShapeDtypeStruct((T, E), jnp.float32),
        grid=(1,),
        in_specs=in_specs,
        out_specs=pl.BlockSpec((T, E), lambda i: (0, 0)),
    )(*args)


def _stack_layers(x, ln1_g, ln1_b, wqkv, bqkv, wout, bout, ln2_g, ln2_b,
                  wff1, bff1, wff2, bff2, *, depth, heads, dhp, scale, groups):
    """depth x [PreNorm-attn + res, PreNorm-FF(GELU) + res] on a (N, D) tensor.

    `groups` independent attention groups along the row axis (1 for the encoder,
    LEADS for the decoder -> block-diagonal attention).  Per-head q/k/v slices
    are 128-lane aligned (weights zero-padded to dhp=128 per head at init time).
    """
    N, D = x.shape
    ng = N // groups
    inner = heads * dhp
    for layer in range(depth):                       # static unroll over depth
        # ---- attention branch (PreNorm) ----
        h = _ln(x, ln1_g[layer], ln1_b[layer])
        qkv = jnp.dot(h, wqkv[layer], preferred_element_type=jnp.float32) + bqkv[layer]
        q = qkv[:, :inner] * scale                   # fold scale into q once
        k = qkv[:, inner:2 * inner]
        v = qkv[:, 2 * inner:]
        wo = wout[layer]
        pieces = []
        for g in range(groups):                      # static unroll over leads
            r0 = g * ng
            acc = None
            for hd in range(heads):                  # static unroll over heads
                c0 = hd * dhp                        # 128-lane aligned slice
                qg = q[r0:r0 + ng, c0:c0 + dhp]
                kg = k[r0:r0 + ng, c0:c0 + dhp]
                vg = v[r0:r0 + ng, c0:c0 + dhp]
                s = jax.lax.dot_general(qg, kg, (((1,), (1,)), ((), ())),
                                        preferred_element_type=jnp.float32)
                s = s - jnp.max(s, axis=-1, keepdims=True)     # stable softmax
                p = jnp.exp(s)
                p = p * pl.reciprocal(jnp.sum(p, axis=-1, keepdims=True), approx=True)
                oh = jnp.dot(p, vg, preferred_element_type=jnp.float32)
                # out-projection folded per head (== concat-then-matmul)
                contrib = jnp.dot(oh, wo[c0:c0 + dhp, :],
                                  preferred_element_type=jnp.float32)
                acc = contrib if acc is None else acc + contrib
            pieces.append(acc)
        attn = pieces[0] if groups == 1 else jnp.concatenate(pieces, axis=0)
        x = x + attn + bout[layer]

        # ---- feed-forward branch (PreNorm), GELU fused in-kernel ----
        h = _ln(x, ln2_g[layer], ln2_b[layer])
        h = jnp.dot(h, wff1[layer], preferred_element_type=jnp.float32) + bff1[layer]
        h = _gelu(h)
        h = jnp.dot(h, wff2[layer], preferred_element_type=jnp.float32) + bff2[layer]
        x = x + h
    return x


def _encoder_stack_kernel(x_ref, ln1_g, ln1_b, wqkv, bqkv, wout, bout,
                          ln2_g, ln2_b, wff1, bff1, wff2, bff2,
                          norm_g, norm_b, wdec, bdec, o_ref,
                          *, depth, heads, dhp, scale, groups):
    x = _stack_layers(x_ref[0].astype(jnp.float32),
                      ln1_g, ln1_b, wqkv, bqkv, wout, bout,
                      ln2_g, ln2_b, wff1, bff1, wff2, bff2,
                      depth=depth, heads=heads, dhp=dhp, scale=scale, groups=groups)
    # fused epilogue: encoder final LayerNorm + to_decoder_embedding Linear
    h = _ln(x, norm_g[0], norm_b[0])
    o_ref[0] = (jnp.dot(h, wdec[0], preferred_element_type=jnp.float32)
                + bdec[0]).astype(o_ref.dtype)


def _decoder_stack_kernel(x_ref, ln1_g, ln1_b, wqkv, bqkv, wout, bout,
                          ln2_g, ln2_b, wff1, bff1, wff2, bff2,
                          norm_g, norm_b, whead, bhead, lat_ref, pred_ref,
                          *, depth, heads, dhp, scale, groups):
    x = _stack_layers(x_ref[0].astype(jnp.float32),
                      ln1_g, ln1_b, wqkv, bqkv, wout, bout,
                      ln2_g, ln2_b, wff1, bff1, wff2, bff2,
                      depth=depth, heads=heads, dhp=dhp, scale=scale, groups=groups)
    lat_ref[0] = x.astype(lat_ref.dtype)             # x_latents (pre-norm)
    # fused epilogue: decoder LayerNorm + decoder head Linear
    h = _ln(x, norm_g[0], norm_b[0])
    pred_ref[0] = (jnp.dot(h, whead[0], preferred_element_type=jnp.float32)
                   + bhead[0]).astype(pred_ref.dtype)


def _stack_weight_args(stk, D, epi_g, epi_b, epi_w, epi_bw):
    """All weight operands as 3-D arrays (leading depth axis) for the stack kernels."""
    depth = stk["w_qkv"].shape[0]
    inner = stk["w_qkv"].shape[-1] // 3
    mlp = stk["w_ff1"].shape[-1]
    d_out = epi_w.shape[-1]
    return [
        stk["ln1_g"].reshape(depth, 1, D), stk["ln1_b"].reshape(depth, 1, D),
        stk["w_qkv"], stk["b_qkv"].reshape(depth, 1, 3 * inner),
        stk["w_out"], stk["b_out"].reshape(depth, 1, D),
        stk["ln2_g"].reshape(depth, 1, D), stk["ln2_b"].reshape(depth, 1, D),
        stk["w_ff1"], stk["b_ff1"].reshape(depth, 1, mlp),
        stk["w_ff2"], stk["b_ff2"].reshape(depth, 1, D),
        epi_g.reshape(1, 1, D), epi_b.reshape(1, 1, D),
        epi_w.reshape(1, D, d_out), epi_bw.reshape(1, 1, d_out),
    ]


def pallas_encoder_stack(x, stk, norm_g, norm_b, w_dec, b_dec, heads, dim_head):
    """x: (B, N, D) -> fused(stack + enc_norm + dec_embed): (B, N, DEC)."""
    B, N, D = x.shape
    depth = stk["w_qkv"].shape[0]
    d_out = w_dec.shape[-1]
    args = [x] + _stack_weight_args(stk, D, norm_g, norm_b, w_dec, b_dec)
    in_specs = [pl.BlockSpec((1, N, D), lambda b: (b, 0, 0))]
    in_specs += [pl.BlockSpec(a.shape, lambda b: (0, 0, 0)) for a in args[1:]]
    kern = functools.partial(_encoder_stack_kernel, depth=depth, heads=heads,
                             dhp=DH_PAD, scale=dim_head ** -0.5, groups=1)
    return pl.pallas_call(
        kern,
        out_shape=jax.ShapeDtypeStruct((B, N, d_out), jnp.float32),
        grid=(B,),
        in_specs=in_specs,
        out_specs=pl.BlockSpec((1, N, d_out), lambda b: (b, 0, 0)),
        compiler_params=pltpu.CompilerParams(dimension_semantics=("parallel",)),
    )(*args)


def pallas_decoder_stack(x, stk, norm_g, norm_b, w_head, b_head, heads, dim_head,
                         groups):
    """x: (B, LEADS*(n+2), D). Block-diagonal attention over `groups` leads.

    Returns (x_latents, pred_full) both (B, LEADS*(n+2), D_out)."""
    B, N, D = x.shape
    depth = stk["w_qkv"].shape[0]
    d_out = w_head.shape[-1]
    args = [x] + _stack_weight_args(stk, D, norm_g, norm_b, w_head, b_head)
    in_specs = [pl.BlockSpec((1, N, D), lambda b: (b, 0, 0))]
    in_specs += [pl.BlockSpec(a.shape, lambda b: (0, 0, 0)) for a in args[1:]]
    kern = functools.partial(_decoder_stack_kernel, depth=depth, heads=heads,
                             dhp=DH_PAD, scale=dim_head ** -0.5, groups=groups)
    return pl.pallas_call(
        kern,
        out_shape=(jax.ShapeDtypeStruct((B, N, D), jnp.float32),
                   jax.ShapeDtypeStruct((B, N, d_out), jnp.float32)),
        grid=(B,),
        in_specs=in_specs,
        out_specs=(pl.BlockSpec((1, N, D), lambda b: (b, 0, 0)),
                   pl.BlockSpec((1, N, d_out), lambda b: (b, 0, 0))),
        compiler_params=pltpu.CompilerParams(dimension_semantics=("parallel",)),
    )(*args)


# ----------------------------- model components -----------------------------


def get_1d_sincos_pos_embed(embed_dim, grid_size, temperature=10000.0, sep_embed=False):
    assert embed_dim % 2 == 0
    grid = jnp.arange(grid_size, dtype=jnp.float32)
    omega = jnp.arange(embed_dim // 2, dtype=jnp.float32) / (embed_dim / 2.0)
    omega = 1.0 / (temperature ** omega)
    out = grid[:, None] * omega[None, :]
    pe = jnp.concatenate([jnp.sin(out), jnp.cos(out)], axis=1)
    if sep_embed:
        pe = jnp.concatenate([jnp.zeros((1, embed_dim), jnp.float32), pe,
                              jnp.zeros((1, embed_dim), jnp.float32)], axis=0)
    return pe


def forward_encoder(series, params, mask_key, mask_ratio):
    b, L, _ = series.shape
    flat = series.reshape(b * L * N_PATCHES, PATCH)            # 'b c (n p) -> b c n p'
    x = pallas_patch_embed(flat, params).reshape(b, L, N_PATCHES, EMBED)
    n = N_PATCHES
    pos = params["pos_embed"]                                  # (n+2, E)
    x = x + pos[1:n + 1][None, None]

    # TODO(synk): random masking (argsort + per-sample gather) stays in plain JAX;
    #             a scalar-prefetch in-kernel gather would merge this with the
    #             encoder stack but is not worth the refactor at this size.
    if mask_ratio > 0:
        len_keep = int(n * (1 - mask_ratio))
        noise = jax.random.uniform(mask_key, (b, L, n))
        ids_shuffle = jnp.argsort(noise, axis=2)
        ids_restore = jnp.argsort(ids_shuffle, axis=2)
        ids_keep = ids_shuffle[:, :, :len_keep]
        gather_idx = jnp.broadcast_to(ids_keep[..., None], (b, L, len_keep, EMBED))
        x = jnp.take_along_axis(x, gather_idx, axis=2)
        mask = jnp.ones((b, L, n), jnp.float32).at[:, :, :len_keep].set(0.0)
        mask = jnp.take_along_axis(mask, ids_restore, axis=2)
    else:
        mask = jnp.zeros((b, L, n), jnp.float32)
        ids_restore = jnp.broadcast_to(jnp.arange(n, dtype=jnp.int32)[None, None], (b, L, n))

    sep = params["sep_embed"]
    left = jnp.broadcast_to(sep[None, None, None, :], (b, L, 1, EMBED)) + pos[:1][None, None]
    right = jnp.broadcast_to(sep[None, None, None, :], (b, L, 1, EMBED)) + pos[-1:][None, None]
    x = jnp.concatenate([left, x, right], axis=2)              # (b, L, nk+2, E)
    nms = x.shape[2]
    x = x + params["lead_embeds"][None, :, None, :]
    x = x.reshape(b, L * nms, EMBED)                           # 'b c n p -> b (c n) p'

    # fused: depth x transformer blocks + enc_norm + to_decoder_embedding
    dec_x = pallas_encoder_stack(x, params["enc_blocks"],
                                 params["enc_norm_g"], params["enc_norm_b"],
                                 params["dec_embed_w"], params["dec_embed_b"],
                                 HEADS, DIM_HEAD)
    return dec_x, mask, ids_restore


def forward_decoder(dec_x, ids_restore, params):
    b = dec_x.shape[0]
    d = DEC_EMBED
    x = dec_x.reshape(b, LEADS, -1, d)                         # already dec-embedded
    nms = x.shape[2]
    n = ids_restore.shape[2]

    mask_tok = jnp.broadcast_to(params["mask_embed"].reshape(1, 1, 1, d),
                                (b, LEADS, n + 2 - nms, d))
    x_wo_sep = jnp.concatenate([x[:, :, 1:-1, :], mask_tok], axis=2)
    gather_idx = jnp.broadcast_to(ids_restore[..., None], (b, LEADS, n, d))
    x_wo_sep = jnp.take_along_axis(x_wo_sep, gather_idx, axis=2)

    dpos = params["dec_pos_embed"]                              # (n+2, d)
    x_wo_sep = x_wo_sep + dpos[1:n + 1][None, None]
    left = x[:, :, :1, :] + dpos[:1][None, None]
    right = x[:, :, -1:, :] + dpos[-1:][None, None]
    x = jnp.concatenate([left, x_wo_sep, right], axis=2)        # (b, L, n+2, d)

    # The per-lead loop in PyTorch shares weights across leads -> fold leads
    # into the ROW dimension (40 rows, block-diagonal attention per lead).
    xl = x.reshape(b, LEADS * (n + 2), d)
    lat, pred_full = pallas_decoder_stack(xl, params["dec_blocks"],
                                          params["dec_norm_g"], params["dec_norm_b"],
                                          params["dec_head_w"], params["dec_head_b"],
                                          DEC_HEADS, DEC_DIM_HEAD, groups=LEADS)
    x_latents = lat.reshape(b, LEADS, n + 2, d)
    pred = pred_full.reshape(b, LEADS, n + 2, PATCH)[:, :, 1:-1, :]
    return pred, x_latents


def forward_loss(series, pred, mask):
    b, L, S = series.shape
    target = series.reshape(b, L, S // PATCH, PATCH)            # patchify
    loss = jnp.mean((pred - target) ** 2, axis=-1)
    denom = jnp.sum(mask)
    # guard against mask_ratio == 0 (0/0 -> NaN); identical when any token is masked
    return jnp.sum(loss * mask) / jnp.maximum(denom, 1.0)


def st_mem_forward(series, params, mask_key, mask_ratio=MASK_RATIO):
    dec_x, mask, ids_restore = forward_encoder(series, params, mask_key, mask_ratio)
    pred, x_latents = forward_decoder(dec_x, ids_restore, params)
    loss = forward_loss(series, pred, mask)
    return CombinedOutput(loss=loss, out=x_latents)


# ------------------------------- parameters ---------------------------------


def xavier_uniform(key, fan_in, fan_out):
    limit = (6.0 / (fan_in + fan_out)) ** 0.5
    return jax.random.uniform(key, (fan_in, fan_out), minval=-limit, maxval=limit,
                              dtype=jnp.float32)


def init_block(key, dim, heads, dim_head, mlp_dim):
    inner = heads * dim_head
    ks = jax.random.split(key, 4)
    return dict(
        ln1_g=jnp.ones((dim,), jnp.float32), ln1_b=jnp.zeros((dim,), jnp.float32),
        w_qkv=xavier_uniform(ks[0], dim, 3 * inner), b_qkv=jnp.zeros((3 * inner,), jnp.float32),
        w_out=xavier_uniform(ks[1], inner, dim), b_out=jnp.zeros((dim,), jnp.float32),
        ln2_g=jnp.ones((dim,), jnp.float32), ln2_b=jnp.zeros((dim,), jnp.float32),
        w_ff1=xavier_uniform(ks[2], dim, mlp_dim), b_ff1=jnp.zeros((mlp_dim,), jnp.float32),
        w_ff2=xavier_uniform(ks[3], mlp_dim, dim), b_ff2=jnp.zeros((dim,), jnp.float32),
    )


def stack_and_pad_blocks(blocks, dim, heads, dh, dhp):
    """Stack per-layer params along a leading depth axis and re-layout QKV / out
    projection so every head's q/k/v occupies a zero-padded 128-lane chunk
    (mathematically exact: padded weight/bias entries are zero)."""
    depth = len(blocks)
    stk = {k: jnp.stack([blk[k] for blk in blocks], axis=0) for k in blocks[0]}
    # w_qkv: (depth, dim, 3*heads*dh) -> (depth, dim, 3*heads*dhp)
    wq = stk["w_qkv"].reshape(depth, dim, 3, heads, dh)
    wq_p = jnp.zeros((depth, dim, 3, heads, dhp), jnp.float32).at[..., :dh].set(wq)
    stk["w_qkv"] = wq_p.reshape(depth, dim, 3 * heads * dhp)
    # b_qkv: (depth, 3*heads*dh) -> (depth, 3*heads*dhp)
    bq = stk["b_qkv"].reshape(depth, 3, heads, dh)
    bq_p = jnp.zeros((depth, 3, heads, dhp), jnp.float32).at[..., :dh].set(bq)
    stk["b_qkv"] = bq_p.reshape(depth, 3 * heads * dhp)
    # w_out: (depth, heads*dh, dim) -> (depth, heads*dhp, dim) with zero pad rows
    wo = stk["w_out"].reshape(depth, heads, dh, dim)
    wo_p = jnp.zeros((depth, heads, dhp, dim), jnp.float32).at[:, :, :dh, :].set(wo)
    stk["w_out"] = wo_p.reshape(depth, heads * dhp, dim)
    return stk


def init_params(key):
    keys = jax.random.split(key, 16)
    it = iter(keys)
    p = {}
    # encoder patch embedding: LN(patch) -> Linear(patch, E) -> LN(E)
    p["pe_ln1_g"] = jnp.ones((PATCH,), jnp.float32)
    p["pe_ln1_b"] = jnp.zeros((PATCH,), jnp.float32)
    p["pe_w"] = xavier_uniform(next(it), PATCH, EMBED)
    p["pe_b"] = jnp.zeros((EMBED,), jnp.float32)
    p["pe_ln2_g"] = jnp.ones((EMBED,), jnp.float32)
    p["pe_ln2_b"] = jnp.zeros((EMBED,), jnp.float32)
    # fixed sin-cos positional embeddings (sep_embed=True)
    p["pos_embed"] = get_1d_sincos_pos_embed(EMBED, N_PATCHES, sep_embed=True)
    p["sep_embed"] = 0.02 * jax.random.normal(next(it), (EMBED,), jnp.float32)
    p["lead_embeds"] = 0.02 * jax.random.normal(next(it), (LEADS, EMBED), jnp.float32)
    p["enc_blocks"] = stack_and_pad_blocks(
        [init_block(next(it), EMBED, HEADS, DIM_HEAD, MLP_RATIO * EMBED)
         for _ in range(DEPTH)], EMBED, HEADS, DIM_HEAD, DH_PAD)
    p["enc_norm_g"] = jnp.ones((EMBED,), jnp.float32)
    p["enc_norm_b"] = jnp.zeros((EMBED,), jnp.float32)
    # decoder
    p["dec_embed_w"] = xavier_uniform(next(it), EMBED, DEC_EMBED)
    p["dec_embed_b"] = jnp.zeros((DEC_EMBED,), jnp.float32)
    p["mask_embed"] = 0.02 * jax.random.normal(next(it), (DEC_EMBED,), jnp.float32)
    p["dec_pos_embed"] = get_1d_sincos_pos_embed(DEC_EMBED, N_PATCHES, sep_embed=True)
    p["dec_blocks"] = stack_and_pad_blocks(
        [init_block(next(it), DEC_EMBED, DEC_HEADS, DEC_DIM_HEAD, MLP_RATIO * DEC_EMBED)
         for _ in range(DEC_DEPTH)], DEC_EMBED, DEC_HEADS, DEC_DIM_HEAD, DH_PAD)
    p["dec_norm_g"] = jnp.ones((DEC_EMBED,), jnp.float32)
    p["dec_norm_b"] = jnp.zeros((DEC_EMBED,), jnp.float32)
    p["dec_head_w"] = xavier_uniform(next(it), DEC_EMBED, PATCH)
    p["dec_head_b"] = jnp.zeros((PATCH,), jnp.float32)
    return p


# ---------------------------------- main -------------------------------------

if __name__ == "__main__":
    key = jax.random.PRNGKey(0)
    pkey, xkey, mkey = jax.random.split(key, 3)
    params = init_params(pkey)
    series = jax.random.normal(xkey, (BATCH, LEADS, SEQ_LEN), dtype=jnp.float32)

    fwd = jax.jit(functools.partial(st_mem_forward, mask_ratio=MASK_RATIO))
    out = fwd(series, params, mkey)
    jax.block_until_ready(out.loss)
    jax.block_until_ready(out.out)

    assert out.out.shape == (BATCH, LEADS, N_PATCHES + 2, DEC_EMBED)
    assert out.loss.shape == ()
    assert bool(jnp.isfinite(out.loss))
    print("KERNEL_OK")
</pallas_src>

<mosaic_0001>
module attributes {stable_mosaic.version = 11 : i64} {
  func.func @_patch_embed_kernel(%arg0: i32, %arg1: memref<64x32xf32, #tpu.memory_space<vmem>>, %arg2: memref<1x32xf32, #tpu.memory_space<vmem>>, %arg3: memref<1x32xf32, #tpu.memory_space<vmem>>, %arg4: memref<32x64xf32, #tpu.memory_space<vmem>>, %arg5: memref<1x64xf32, #tpu.memory_space<vmem>>, %arg6: memref<1x64xf32, #tpu.memory_space<vmem>>, %arg7: memref<1x64xf32, #tpu.memory_space<vmem>>, %arg8: memref<64x64xf32, #tpu.memory_space<vmem>>) attributes {dimension_semantics = [#tpu.dimension_semantics<arbitrary>], iteration_bounds = array<i64: 1>, scalar_prefetch = 0 : i64, scratch_operands = 0 : i64, tpu.core_type = #tpu.core_type<tc>, window_params = [{pipeline_mode = #tpu.pipeline_mode<synchronous>, transform_indices = @transform_0, window_bounds = array<i64: 64, 32>}, {pipeline_mode = #tpu.pipeline_mode<synchronous>, transform_indices = @transform_1, window_bounds = array<i64: 1, 32>}, {pipeline_mode = #tpu.pipeline_mode<synchronous>, transform_indices = @transform_2, window_bounds = array<i64: 1, 32>}, {pipeline_mode = #tpu.pipeline_mode<synchronous>, transform_indices = @transform_3, window_bounds = array<i64: 32, 64>}, {pipeline_mode = #tpu.pipeline_mode<synchronous>, transform_indices = @transform_4, window_bounds = array<i64: 1, 64>}, {pipeline_mode = #tpu.pipeline_mode<synchronous>, transform_indices = @transform_5, window_bounds = array<i64: 1, 64>}, {pipeline_mode = #tpu.pipeline_mode<synchronous>, transform_indices = @transform_6, window_bounds = array<i64: 1, 64>}, {pipeline_mode = #tpu.pipeline_mode<synchronous>, transform_indices = @transform_7, window_bounds = array<i64: 64, 64>}]} {
    %c0 = arith.constant 0 : index
    %c0_0 = arith.constant 0 : index
    %0 = vector.load %arg1[%c0, %c0_0] : memref<64x32xf32, #tpu.memory_space<vmem>>, vector<64x32xf32>
    %c0_1 = arith.constant 0 : index
    %c0_2 = arith.constant 0 : index
    %1 = vector.load %arg2[%c0_1, %c0_2] : memref<1x32xf32, #tpu.memory_space<vmem>>, vector<1x32xf32>
    %c0_3 = arith.constant 0 : index
    %c0_4 = arith.constant 0 : index
    %2 = vector.load %arg3[%c0_3, %c0_4] : memref<1x32xf32, #tpu.memory_space<vmem>>, vector<1x32xf32>
    %cst = arith.constant dense<0.000000e+00> : vector<64xf32>
    %3 = vector.multi_reduction <add>, %0, %cst [1] : vector<64x32xf32> to vector<64xf32>
    %4 = vector.shape_cast %3 : vector<64xf32> to vector<64x1xf32>
    %cst_5 = arith.constant 3.200000e+01 : f32
    %5 = vector.broadcast %cst_5 : f32 to vector<64x1xf32>
    %6 = arith.divf %4, %5 : vector<64x1xf32>
    %7 = vector.broadcast %6 : vector<64x1xf32> to vector<64x32xf32>
    %8 = arith.subf %0, %7 : vector<64x32xf32>
    %9 = arith.mulf %8, %8 : vector<64x32xf32>
    %cst_6 = arith.constant dense<0.000000e+00> : vector<64xf32>
    %10 = vector.multi_reduction <add>, %9, %cst_6 [1] : vector<64x32xf32> to vector<64xf32>
    %11 = vector.shape_cast %10 : vector<64xf32> to vector<64x1xf32>
    %cst_7 = arith.constant 3.200000e+01 : f32
    %12 = vector.broadcast %cst_7 : f32 to vector<64x1xf32>
    %13 = arith.divf %11, %12 : vector<64x1xf32>
    %cst_8 = arith.constant 9.99999974E-6 : f32
    %14 = vector.broadcast %cst_8 : f32 to vector<64x1xf32>
    %15 = arith.addf %13, %14 : vector<64x1xf32>
    %16 = math.rsqrt %15 : vector<64x1xf32>
    %17 = vector.broadcast %16 : vector<64x1xf32> to vector<64x32xf32>
    %18 = arith.mulf %8, %17 : vector<64x32xf32>
    %19 = vector.broadcast %1 : vector<1x32xf32> to vector<64x32xf32>
    %20 = arith.mulf %18, %19 : vector<64x32xf32>
    %21 = vector.broadcast %2 : vector<1x32xf32> to vector<64x32xf32>
    %22 = arith.addf %20, %21 : vector<64x32xf32>
    %c0_9 = arith.constant 0 : index
    %c0_10 = arith.constant 0 : index
    %23 = vector.load %arg4[%c0_9, %c0_10] : memref<32x64xf32, #tpu.memory_space<vmem>>, vector<32x64xf32>
    %cst_11 = arith.constant dense<0.000000e+00> : vector<64x64xf32>
    %24 = tpu.matmul %22, %23, %cst_11 {dimension_numbers = #tpu.dot_dimension_numbers<[1], [0], [0], [1], [0, 0, 1, 1], [], []>} : vector<64x32xf32>, vector<32x64xf32>, vector<64x64xf32> -> vector<64x64xf32>
    %c0_12 = arith.constant 0 : index
    %c0_13 = arith.constant 0 : index
    %25 = vector.load %arg5[%c0_12, %c0_13] : memref<1x64xf32, #tpu.memory_space<vmem>>, vector<1x64xf32>
    %26 = vector.broadcast %25 : vector<1x64xf32> to vector<64x64xf32>
    %27 = arith.addf %24, %26 : vector<64x64xf32>
    %c0_14 = arith.constant 0 : index
    %c0_15 = arith.constant 0 : index
    %28 = vector.load %arg6[%c0_14, %c0_15] : memref<1x64xf32, #tpu.memory_space<vmem>>, vector<1x64xf32>
    %c0_16 = arith.constant 0 : index
    %c0_17 = arith.constant 0 : index
    %29 = vector.load %arg7[%c0_16, %c0_17] : memref<1x64xf32, #tpu.memory_space<vmem>>, vector<1x64xf32>
    %cst_18 = arith.constant dense<0.000000e+00> : vector<64xf32>
    %30 = vector.multi_reduction <add>, %27, %cst_18 [1] : vector<64x64xf32> to vector<64xf32>
    %31 = vector.shape_cast %30 : vector<64xf32> to vector<64x1xf32>
    %cst_19 = arith.constant 6.400000e+01 : f32
    %32 = vector.broadcast %cst_19 : f32 to vector<64x1xf32>
    %33 = arith.divf %31, %32 : vector<64x1xf32>
    %34 = vector.broadcast %33 : vector<64x1xf32> to vector<64x64xf32>
    %35 = arith.subf %27, %34 : vector<64x64xf32>
    %36 = arith.mulf %35, %35 : vector<64x64xf32>
    %cst_20 = arith.constant dense<0.000000e+00> : vector<64xf32>
    %37 = vector.multi_reduction <add>, %36, %cst_20 [1] : vector<64x64xf32> to vector<64xf32>
    %38 = vector.shape_cast %37 : vector<64xf32> to vector<64x1xf32>
    %cst_21 = arith.constant 6.400000e+01 : f32
    %39 = vector.broadcast %cst_21 : f32 to vector<64x1xf32>
    %40 = arith.divf %38, %39 : vector<64x1xf32>
    %cst_22 = arith.constant 9.99999974E-6 : f32
    %41 = vector.broadcast %cst_22 : f32 to vector<64x1xf32>
    %42 = arith.addf %40, %41 : vector<64x1xf32>
    %43 = math.rsqrt %42 : vector<64x1xf32>
    %44 = vector.broadcast %43 : vector<64x1xf32> to vector<64x64xf32>
    %45 = arith.mulf %35, %44 : vector<64x64xf32>
    %46 = vector.broadcast %28 : vector<1x64xf32> to vector<64x64xf32>
    %47 = arith.mulf %45, %46 : vector<64x64xf32>
    %48 = vector.broadcast %29 : vector<1x64xf32> to vector<64x64xf32>
    %49 = arith.addf %47, %48 : vector<64x64xf32>
    %c0_23 = arith.constant 0 : index
    %c0_24 = arith.constant 0 : index
    %50 = vector.load %arg8[%c0_23, %c0_24] : memref<64x64xf32, #tpu.memory_space<vmem>>, vector<64x64xf32>
    tpu.vector_store %arg8[%c0_23, %c0_24], %49 {strides = array<i32>} : memref<64x64xf32, #tpu.memory_space<vmem>>, vector<64x64xf32>,
    return
  }
  func.func @transform_0(%arg0: i32) -> (i32, i32) {
    %c0_i32 = arith.constant 0 : i32
    %c0_i32_0 = arith.constant 0 : i32
    %c0_i32_1 = arith.constant 0 : i32
    return %c0_i32, %c0_i32_0 : i32, i32
  }
  func.func @transform_1(%arg0: i32) -> (i32, i32) {
    %c0_i32 = arith.constant 0 : i32
    %c0_i32_0 = arith.constant 0 : i32
    %c0_i32_1 = arith.constant 0 : i32
    return %c0_i32, %c0_i32_0 : i32, i32
  }
  func.func @transform_2(%arg0: i32) -> (i32, i32) {
    %c0_i32 = arith.constant 0 : i32
    %c0_i32_0 = arith.constant 0 : i32
    %c0_i32_1 = arith.constant 0 : i32
    return %c0_i32, %c0_i32_0 : i32, i32
  }
  func.func @transform_3(%arg0: i32) -> (i32, i32) {
    %c0_i32 = arith.constant 0 : i32
    %c0_i32_0 = arith.constant 0 : i32
    %c0_i32_1 = arith.constant 0 : i32
    return %c0_i32, %c0_i32_0 : i32, i32
  }
  func.func @transform_4(%arg0: i32) -> (i32, i32) {
    %c0_i32 = arith.constant 0 : i32
    %c0_i32_0 = arith.constant 0 : i32
    %c0_i32_1 = arith.constant 0 : i32
    return %c0_i32, %c0_i32_0 : i32, i32
  }
  func.func @transform_5(%arg0: i32) -> (i32, i32) {
    %c0_i32 = arith.constant 0 : i32
    %c0_i32_0 = arith.constant 0 : i32
    %c0_i32_1 = arith.constant 0 : i32
    return %c0_i32, %c0_i32_0 : i32, i32
  }
  func.func @transform_6(%arg0: i32) -> (i32, i32) {
    %c0_i32 = arith.constant 0 : i32
    %c0_i32_0 = arith.constant 0 : i32
    %c0_i32_1 = arith.constant 0 : i32
    return %c0_i32, %c0_i32_0 : i32, i32
  }
  func.func @transform_7(%arg0: i32) -> (i32, i32) {
    %c0_i32 = arith.constant 0 : i32
    %c0_i32_0 = arith.constant 0 : i32
    %c0_i32_1 = arith.constant 0 : i32
    return %c0_i32, %c0_i32_0 : i32, i32
  }
}

module attributes {stable_mosaic.version = 11 : i64} {
  func.func @_encoder_stack_kernel(%arg0: i32, %arg1: memref<1x16x64xf32, #tpu.memory_space<vmem>>, %arg2: memref<2x1x64xf32, #tpu.memory_space<vmem>>, %arg3: memref<2x1x64xf32, #tpu.memory_space<vmem>>, %arg4: memref<2x64x768xf32, #tpu.memory_space<vmem>>, %arg5: memref<2x1x768xf32, #tpu.memory_space<vmem>>, %arg6: memref<2x256x64xf32, #tpu.memory_space<vmem>>, %arg7: memref<2x1x64xf32, #tpu.memory_space<vmem>>, %arg8: memref<2x1x64xf32, #tpu.memory_space<vmem>>, %arg9: memref<2x1x64xf32, #tpu.memory_space<vmem>>, %arg10: memref<2x64x256xf32, #tpu.memory_space<vmem>>, %arg11: memref<2x1x256xf32, #tpu.memory_space<vmem>>, %arg12: memref<2x256x64xf32, #tpu.memory_space<vmem>>, %arg13: memref<2x1x64xf32, #tpu.memory_space<vmem>>, %arg14: memref<1x1x64xf32, #tpu.memory_space<vmem>>, %arg15: memref<1x1x64xf32, #tpu.memory_space<vmem>>, %arg16: memref<1x64x32xf32, #tpu.memory_space<vmem>>, %arg17: memref<1x1x32xf32, #tpu.memory_space<vmem>>, %arg18: memref<1x16x32xf32, #tpu.memory_space<vmem>>) attributes {dimension_semantics = [#tpu.dimension_semantics<parallel>], iteration_bounds = array<i64: 2>, scalar_prefetch = 0 : i64, scratch_operands = 0 : i64, tpu.core_type = #tpu.core_type<tc>, window_params = [{transform_indices = @transform_0, window_bounds = array<i64: 1, 16, 64>}, {pipeline_mode = #tpu.pipeline_mode<synchronous>, transform_indices = @transform_1, window_bounds = array<i64: 2, 1, 64>}, {pipeline_mode = #tpu.pipeline_mode<synchronous>, transform_indices = @transform_2, window_bounds = array<i64: 2, 1, 64>}, {pipeline_mode = #tpu.pipeline_mode<synchronous>, transform_indices = @transform_3, window_bounds = array<i64: 2, 64, 768>}, {pipeline_mode = #tpu.pipeline_mode<synchronous>, transform_indices = @transform_4, window_bounds = array<i64: 2, 1, 768>}, {pipeline_mode = #tpu.pipeline_mode<synchronous>, transform_indices = @transform_5, window_bounds = array<i64: 2, 256, 64>}, {pipeline_mode = #tpu.pipeline_mode<synchronous>, transform_indices = @transform_6, window_bounds = array<i64: 2, 1, 64>}, {pipeline_mode = #tpu.pipeline_mode<synchronous>, transform_indices = @transform_7, window_bounds = array<i64: 2, 1, 64>}, {pipeline_mode = #tpu.pipeline_mode<synchronous>, transform_indices = @transform_8, window_bounds = array<i64: 2, 1, 64>}, {pipeline_mode = #tpu.pipeline_mode<synchronous>, transform_indices = @transform_9, window_bounds = array<i64: 2, 64, 256>}, {pipeline_mode = #tpu.pipeline_mode<synchronous>, transform_indices = @transform_10, window_bounds = array<i64: 2, 1, 256>}, {pipeline_mode = #tpu.pipeline_mode<synchronous>, transform_indices = @transform_11, window_bounds = array<i64: 2, 256, 64>}, {pipeline_mode = #tpu.pipeline_mode<synchronous>, transform_indices = @transform_12, window_bounds = array<i64: 2, 1, 64>}, {pipeline_mode = #tpu.pipeline_mode<synchronous>, transform_indices = @transform_13, window_bounds = array<i64: 1, 1, 64>}, {pipeline_mode = #tpu.pipeline_mode<synchronous>, transform_indices = @transform_14, window_bounds = array<i64: 1, 1, 64>}, {pipeline_mode = #tpu.pipeline_mode<synchronous>, transform_indices = @transform_15, window_bounds = array<i64: 1, 64, 32>}, {pipeline_mode = #tpu.pipeline_mode<synchronous>, transform_indices = @transform_16, window_bounds = array<i64: 1, 1, 32>}, {transform_indices = @transform_17, window_bounds = array<i64: 1, 16, 32>}]} {
    %c0 = arith.constant 0 : index
    %c0_0 = arith.constant 0 : index
    %c0_1 = arith.constant 0 : index
    %0 = vector.load %arg1[%c0, %c0_0, %c0_1] : memref<1x16x64xf32, #tpu.memory_space<vmem>>, vector<1x16x64xf32>
    %1 = vector.shape_cast %0 : vector<1x16x64xf32> to vector<16x64xf32>
    %c0_2 = arith.constant 0 : index
    %c0_3 = arith.constant 0 : index
    %c0_4 = arith.constant 0 : index
    %2 = vector.load %arg2[%c0_2, %c0_3, %c0_4] : memref<2x1x64xf32, #tpu.memory_space<vmem>>, vector<1x1x64xf32>
    %3 = vector.shape_cast %2 : vector<1x1x64xf32> to vector<1x64xf32>
    %c0_5 = arith.constant 0 : index
    %c0_6 = arith.constant 0 : index
    %c0_7 = arith.constant 0 : index
    %4 = vector.load %arg3[%c0_5, %c0_6, %c0_7] : memref<2x1x64xf32, #tpu.memory_space<vmem>>, vector<1x1x64xf32>
    %5 = vector.shape_cast %4 : vector<1x1x64xf32> to vector<1x64xf32>
    %cst = arith.constant dense<0.000000e+00> : vector<16xf32>
    %6 = vector.multi_reduction <add>, %1, %cst [1] : vector<16x64xf32> to vector<16xf32>
    %7 = vector.shape_cast %6 : vector<16xf32> to vector<16x1xf32>
    %cst_8 = arith.constant 6.400000e+01 : f32
    %8 = vector.broadcast %cst_8 : f32 to vector<16x1xf32>
    %9 = arith.divf %7, %8 : vector<16x1xf32>
    %10 = vector.broadcast %9 : vector<16x1xf32> to vector<16x64xf32>
    %11 = arith.subf %1, %10 : vector<16x64xf32>
    %12 = arith.mulf %11, %11 : vector<16x64xf32>
    %cst_9 = arith.constant dense<0.000000e+00> : vector<16xf32>
    %13 = vector.multi_reduction <add>, %12, %cst_9 [1] : vector<16x64xf32> to vector<16xf32>
    %14 = vector.shape_cast %13 : vector<16xf32> to vector<16x1xf32>
    %cst_10 = arith.constant 6.400000e+01 : f32
    %15 = vector.broadcast %cst_10 : f32 to vector<16x1xf32>
    %16 = arith.divf %14, %15 : vector<16x1xf32>
    %cst_11 = arith.constant 9.99999974E-6 : f32
    %17 = vector.broadcast %cst_11 : f32 to vector<16x1xf32>
    %18 = arith.addf %16, %17 : vector<16x1xf32>
    %19 = math.rsqrt %18 : vector<16x1xf32>
    %20 = vector.broadcast %19 : vector<16x1xf32> to vector<16x64xf32>
    %21 = arith.mulf %11, %20 : vector<16x64xf32>
    %22 = vector.broadcast %3 : vector<1x64xf32> to vector<16x64xf32>
    %23 = arith.mulf %21, %22 : vector<16x64xf32>
    %24 = vector.broadcast %5 : vector<1x64xf32> to vector<16x64xf32>
    %25 = arith.addf %23, %24 : vector<16x64xf32>
    %c0_12 = arith.constant 0 : index
    %c0_13 = arith.constant 0 : index
    %c0_14 = arith.constant 0 : index
    %26 = vector.load %arg4[%c0_12, %c0_13, %c0_14] : memref<2x64x768xf32, #tpu.memory_space<vmem>>, vector<1x64x768xf32>
    %27 = vector.shape_cast %26 : vector<1x64x768xf32> to vector<64x768xf32>
    %cst_15 = arith.constant dense<0.000000e+00> : vector<16x768xf32>
    %28 = tpu.matmul %25, %27, %cst_15 {dimension_numbers = #tpu.dot_dimension_numbers<[1], [0], [0], [1], [0, 0, 1, 1], [], []>} : vector<16x64xf32>, vector<64x768xf32>, vector<16x768xf32> -> vector<16x768xf32>
    %c0_16 = arith.constant 0 : index
    %c0_17 = arith.constant 0 : index
    %c0_18 = arith.constant 0 : index
    %29 = vector.load %arg5[%c0_16, %c0_17, %c0_18] : memref<2x1x768xf32, #tpu.memory_space<vmem>>, vector<1x1x768xf32>
    %30 = vector.shape_cast %29 : vector<1x1x768xf32> to vector<1x768xf32>
    %31 = vector.broadcast %30 : vector<1x768xf32> to vector<16x768xf32>
    %32 = arith.addf %28, %31 : vector<16x768xf32>
    %33 = vector.extract_strided_slice %32 {offsets = [0, 0], sizes = [16, 256], strides = [1, 1]} : vector<16x768xf32> to vector<16x256xf32>
    %cst_19 = arith.constant 1.250000e-01 : f32
    %34 = vector.broadcast %cst_19 : f32 to vector<16x256xf32>
    %35 = arith.mulf %33, %34 : vector<16x256xf32>
    %36 = vector.extract_strided_slice %32 {offsets = [0, 256], sizes = [16, 256], strides = [1, 1]} : vector<16x768xf32> to vector<16x256xf32>
    %37 = vector.extract_strided_slice %32 {offsets = [0, 512], sizes = [16, 256], strides = [1, 1]} : vector<16x768xf32> to vector<16x256xf32>
    %c0_20 = arith.constant 0 : index
    %c0_21 = arith.constant 0 : index
    %c0_22 = arith.constant 0 : index
    %38 = vector.load %arg6[%c0_20, %c0_21, %c0_22] : memref<2x256x64xf32, #tpu.memory_space<vmem>>, vector<1x256x64xf32>
    %39 = vector.shape_cast %38 : vector<1x256x64xf32> to vector<256x64xf32>
    %40 = vector.extract_strided_slice %35 {offsets = [0, 0], sizes = [16, 128], strides = [1, 1]} : vector<16x256xf32> to vector<16x128xf32>
    %41 = vector.extract_strided_slice %36 {offsets = [0, 0], sizes = [16, 128], strides = [1, 1]} : vector<16x256xf32> to vector<16x128xf32>
    %42 = vector.extract_strided_slice %37 {offsets = [0, 0], sizes = [16, 128], strides = [1, 1]} : vector<16x256xf32> to vector<16x128xf32>
    %cst_23 = arith.constant dense<0.000000e+00> : vector<16x16xf32>
    %43 = tpu.matmul %40, %41, %cst_23 {dimension_numbers = #tpu.dot_dimension_numbers<[1], [1], [0], [0], [0, 0, 1, 0], [], []>} : vector<16x128xf32>, vector<16x128xf32>, vector<16x16xf32> -> vector<16x16xf32>
    %cst_24 = arith.constant dense<0xFF800000> : vector<16xf32>
    %44 = vector.multi_reduction <maximumf>, %43, %cst_24 [1] : vector<16x16xf32> to vector<16xf32>
    %45 = vector.shape_cast %44 : vector<16xf32> to vector<16x1xf32>
    %46 = vector.broadcast %45 : vector<16x1xf32> to vector<16x16xf32>
    %47 = arith.subf %43, %46 : vector<16x16xf32>
    %48 = math.exp %47 : vector<16x16xf32>
    %cst_25 = arith.constant dense<0.000000e+00> : vector<16xf32>
    %49 = vector.multi_reduction <add>, %48, %cst_25 [1] : vector<16x16xf32> to vector<16xf32>
    %50 = vector.shape_cast %49 : vector<16xf32> to vector<16x1xf32>
    %51 = tpu.reciprocal %50 {approx = true} : vector<16x1xf32> -> vector<16x1xf32>
    %52 = vector.broadcast %51 : vector<16x1xf32> to vector<16x16xf32>
    %53 = arith.mulf %48, %52 : vector<16x16xf32>
    %cst_26 = arith.constant dense<0.000000e+00> : vector<16x128xf32>
    %54 = tpu.matmul %53, %42, %cst_26 {dimension_numbers = #tpu.dot_dimension_numbers<[1], [0], [0], [1], [0, 0, 1, 1], [], []>} : vector<16x16xf32>, vector<16x128xf32>, vector<16x128xf32> -> vector<16x128xf32>
    %55 = vector.extract_strided_slice %39 {offsets = [0, 0], sizes = [128, 64], strides = [1, 1]} : vector<256x64xf32> to vector<128x64xf32>
    %cst_27 = arith.constant dense<0.000000e+00> : vector<16x64xf32>
    %56 = tpu.matmul %54, %55, %cst_27 {dimension_numbers = #tpu.dot_dimension_numbers<[1], [0], [0], [1], [0, 0, 1, 1], [], []>} : vector<16x128xf32>, vector<128x64xf32>, vector<16x64xf32> -> vector<16x64xf32>
    %57 = vector.extract_strided_slice %35 {offsets = [0, 128], sizes = [16, 128], strides = [1, 1]} : vector<16x256xf32> to vector<16x128xf32>
    %58 = vector.extract_strided_slice %36 {offsets = [0, 128], sizes = [16, 128], strides = [1, 1]} : vector<16x256xf32> to vector<16x128xf32>
    %59 = vector.extract_strided_slice %37 {offsets = [0, 128], sizes = [16, 128], strides = [1, 1]} : vector<16x256xf32> to vector<16x128xf32>
    %cst_28 = arith.constant dense<0.000000e+00> : vector<16x16xf32>
    %60 = tpu.matmul %57, %58, %cst_28 {dimension_numbers = #tpu.dot_dimension_numbers<[1], [1], [0], [0], [0, 0, 1, 0], [], []>} : vector<16x128xf32>, vector<16x128xf32>, vector<16x16xf32> -> vector<16x16xf32>
    %cst_29 = arith.constant dense<0xFF800000> : vector<16xf32>
    %61 = vector.multi_reduction <maximumf>, %60, %cst_29 [1] : vector<16x16xf32> to vector<16xf32>
    %62 = vector.shape_cast %61 : vector<16xf32> to vector<16x1xf32>
    %63 = vector.broadcast %62 : vector<16x1xf32> to vector<16x16xf32>
    %64 = arith.subf %60, %63 : vector<16x16xf32>
    %65 = math.exp %64 : vector<16x16xf32>
    %cst_30 = arith.constant dense<0.000000e+00> : vector<16xf32>
    %66 = vector.multi_reduction <add>, %65, %cst_30 [1] : vector<16x16xf32> to vector<16xf32>
    %67 = vector.shape_cast %66 : vector<16xf32> to vector<16x1xf32>
    %68 = tpu.reciprocal %67 {approx = true} : vector<16x1xf32> -> vector<16x1xf32>
    %69 = vector.broadcast %68 : vector<16x1xf32> to vector<16x16xf32>
    %70 = arith.mulf %65, %69 : vector<16x16xf32>
    %cst_31 = arith.constant dense<0.000000e+00> : vector<16x128xf32>
    %71 = tpu.matmul %70, %59, %cst_31 {dimension_numbers = #tpu.dot_dimension_numbers<[1], [0], [0], [1], [0, 0, 1, 1], [], []>} : vector<16x16xf32>, vector<16x128xf32>, vector<16x128xf32> -> vector<16x128xf32>
    %72 = vector.extract_strided_slice %39 {offsets = [128, 0], sizes = [128, 64], strides = [1, 1]} : vector<256x64xf32> to vector<128x64xf32>
    %cst_32 = arith.constant dense<0.000000e+00> : vector<16x64xf32>
    %73 = tpu.matmul %71, %72, %cst_32 {dimension_numbers = #tpu.dot_dimension_numbers<[1], [0], [0], [1], [0, 0, 1, 1], [], []>} : vector<16x128xf32>, vector<128x64xf32>, vector<16x64xf32> -> vector<16x64xf32>
    %74 = arith.addf %56, %73 : vector<16x64xf32>
    %75 = arith.addf %1, %74 : vector<16x64xf32>
    %c0_33 = arith.constant 0 : index
    %c0_34 = arith.constant 0 : index
    %c0_35 = arith.constant 0 : index
    %76 = vector.load %arg7[%c0_33, %c0_34, %c0_35] : memref<2x1x64xf32, #tpu.memory_space<vmem>>, vector<1x1x64xf32>
    %77 = vector.shape_cast %76 : vector<1x1x64xf32> to vector<1x64xf32>
    %78 = vector.broadcast %77 : vector<1x64xf32> to vector<16x64xf32>
    %79 = arith.addf %75, %78 : vector<16x64xf32>
    %c0_36 = arith.constant 0 : index
    %c0_37 = arith.constant 0 : index
    %c0_38 = arith.constant 0 : index
    %80 = vector.load %arg8[%c0_36, %c0_37, %c0_38] : memref<2x1x64xf32, #tpu.memory_space<vmem>>, vector<1x1x64xf32>
    %81 = vector.shape_cast %80 : vector<1x1x64xf32> to vector<1x64xf32>
    %c0_39 = arith.constant 0 : index
    %c0_40 = arith.constant 0 : index
    %c0_41 = arith.constant 0 : index
    %82 = vector.load %arg9[%c0_39, %c0_40, %c0_41] : memref<2x1x64xf32, #tpu.memory_space<vmem>>, vector<1x1x64xf32>
    %83 = vector.shape_cast %82 : vector<1x1x64xf32> to vector<1x64xf32>
    %cst_42 = arith.constant dense<0.000000e+00> : vector<16xf32>
    %84 = vector.multi_reduction <add>, %79, %cst_42 [1] : vector<16x64xf32> to vector<16xf32>
    %85 = vector.shape_cast %84 : vector<16xf32> to vector<16x1xf32>
    %cst_43 = arith.constant 6.400000e+01 : f32
    %86 = vector.broadcast %cst_43 : f32 to vector<16x1xf32>
    %87 = arith.divf %85, %86 : vector<16x1xf32>
    %88 = vector.broadcast %87 : vector<16x1xf32> to vector<16x64xf32>
    %89 = arith.subf %79, %88 : vector<16x64xf32>
    %90 = arith.mulf %89, %89 : vector<16x64xf32>
    %cst_44 = arith.constant dense<0.000000e+00> : vector<16xf32>
    %91 = vector.multi_reduction <add>, %90, %cst_44 [1] : vector<16x64xf32> to vector<16xf32>
    %92 = vector.shape_cast %91 : vector<16xf32> to vector<16x1xf32>
    %cst_45 = arith.constant 6.400000e+01 : f32
    %93 = vector.broadcast %cst_45 : f32 to vector<16x1xf32>
    %94 = arith.divf %92, %93 : vector<16x1xf32>
    %cst_46 = arith.constant 9.99999974E-6 : f32
    %95 = vector.broadcast %cst_46 : f32 to vector<16x1xf32>
    %96 = arith.addf %94, %95 : vector<16x1xf32>
    %97 = math.rsqrt %96 : vector<16x1xf32>
    %98 = vector.broadcast %97 : vector<16x1xf32> to vector<16x64xf32>
    %99 = arith.mulf %89, %98 : vector<16x64xf32>
    %100 = vector.broadcast %81 : vector<1x64xf32> to vector<16x64xf32>
    %101 = arith.mulf %99, %100 : vector<16x64xf32>
    %102 = vector.broadcast %83 : vector<1x64xf32> to vector<16x64xf32>
    %103 = arith.addf %101, %102 : vector<16x64xf32>
    %c0_47 = arith.constant 0 : index
    %c0_48 = arith.constant 0 : index
    %c0_49 = arith.constant 0 : index
    %104 = vector.load %arg10[%c0_47, %c0_48, %c0_49] : memref<2x64x256xf32, #tpu.memory_space<vmem>>, vector<1x64x256xf32>
    %105 = vector.shape_cast %104 : vector<1x64x256xf32> to vector<64x256xf32>
    %cst_50 = arith.constant dense<0.000000e+00> : vector<16x256xf32>
    %106 = tpu.matmul %103, %105, %cst_50 {dimension_numbers = #tpu.dot_dimension_numbers<[1], [0], [0], [1], [0, 0, 1, 1], [], []>} : vector<16x64xf32>, vector<64x256xf32>, vector<16x256xf32> -> vector<16x256xf32>
    %c0_51 = arith.constant 0 : index
    %c0_52 = arith.constant 0 : index
    %c0_53 = arith.constant 0 : index
    %107 = vector.load %arg11[%c0_51, %c0_52, %c0_53] : memref<2x1x256xf32, #tpu.memory_space<vmem>>, vector<1x1x256xf32>
    %108 = vector.shape_cast %107 : vector<1x1x256xf32> to vector<1x256xf32>
    %109 = vector.broadcast %108 : vector<1x256xf32> to vector<16x256xf32>
    %110 = arith.addf %106, %109 : vector<16x256xf32>
    %cst_54 = arith.constant 5.000000e-01 : f32
    %111 = vector.broadcast %cst_54 : f32 to vector<16x256xf32>
    %112 = arith.mulf %111, %110 : vector<16x256xf32>
    %cst_55 = arith.constant 0.707106769 : f32
    %113 = vector.broadcast %cst_55 : f32 to vector<16x256xf32>
    %114 = arith.mulf %110, %113 : vector<16x256xf32>
    %115 = math.absf %114 : vector<16x256xf32>
    %cst_56 = arith.constant 0.327591091 : f32
    %116 = vector.broadcast %cst_56 : f32 to vector<16x256xf32>
    %117 = arith.mulf %116, %115 : vector<16x256xf32>
    %cst_57 = arith.constant 1.000000e+00 : f32
    %118 = vector.broadcast %cst_57 : f32 to vector<16x256xf32>
    %119 = arith.addf %118, %117 : vector<16x256xf32>
    %120 = tpu.reciprocal %119 {approx = true} : vector<16x256xf32> -> vector<16x256xf32>
    %cst_58 = arith.constant 1.06140542 : f32
    %121 = vector.broadcast %cst_58 : f32 to vector<16x256xf32>
    %122 = arith.mulf %121, %120 : vector<16x256xf32>
    %cst_59 = arith.constant -1.45315206 : f32
    %123 = vector.broadcast %cst_59 : f32 to vector<16x256xf32>
    %124 = arith.addf %122, %123 : vector<16x256xf32>
    %125 = arith.mulf %124, %120 : vector<16x256xf32>
    %cst_60 = arith.constant 1.42141378 : f32
    %126 = vector.broadcast %cst_60 : f32 to vector<16x256xf32>
    %127 = arith.addf %125, %126 : vector<16x256xf32>
    %128 = arith.mulf %127, %120 : vector<16x256xf32>
    %cst_61 = arith.constant -0.284496725 : f32
    %129 = vector.broadcast %cst_61 : f32 to vector<16x256xf32>
    %130 = arith.addf %128, %129 : vector<16x256xf32>
    %131 = arith.mulf %130, %120 : vector<16x256xf32>
    %cst_62 = arith.constant 0.254829586 : f32
    %132 = vector.broadcast %cst_62 : f32 to vector<16x256xf32>
    %133 = arith.addf %131, %132 : vector<16x256xf32>
    %134 = arith.mulf %133, %120 : vector<16x256xf32>
    %cst_63 = arith.constant 0.000000e+00 : f32
    %135 = vector.broadcast %cst_63 : f32 to vector<16x256xf32>
    %136 = arith.subf %135, %115 : vector<16x256xf32>
    %137 = arith.mulf %136, %115 : vector<16x256xf32>
    %138 = math.exp %137 : vector<16x256xf32>
    %139 = arith.mulf %134, %138 : vector<16x256xf32>
    %cst_64 = arith.constant 1.000000e+00 : f32
    %140 = vector.broadcast %cst_64 : f32 to vector<16x256xf32>
    %141 = arith.subf %140, %139 : vector<16x256xf32>
    %cst_65 = arith.constant 0.000000e+00 : f32
    %142 = vector.broadcast %cst_65 : f32 to vector<16x256xf32>
    %143 = arith.cmpf oge, %114, %142 : vector<16x256xf32>
    %cst_66 = arith.constant 0.000000e+00 : f32
    %144 = vector.broadcast %cst_66 : f32 to vector<16x256xf32>
    %145 = arith.subf %144, %141 : vector<16x256xf32>
    %146 = arith.select %143, %141, %145 : vector<16x256xi1>, vector<16x256xf32>
    %cst_67 = arith.constant 1.000000e+00 : f32
    %147 = vector.broadcast %cst_67 : f32 to vector<16x256xf32>
    %148 = arith.addf %147, %146 : vector<16x256xf32>
    %149 = arith.mulf %112, %148 : vector<16x256xf32>
    %c0_68 = arith.constant 0 : index
    %c0_69 = arith.constant 0 : index
    %c0_70 = arith.constant 0 : index
    %150 = vector.load %arg12[%c0_68, %c0_69, %c0_70] : memref<2x256x64xf32, #tpu.memory_space<vmem>>, vector<1x256x64xf32>
    %151 = vector.shape_cast %150 : vector<1x256x64xf32> to vector<256x64xf32>
    %cst_71 = arith.constant dense<0.000000e+00> : vector<16x64xf32>
    %152 = tpu.matmul %149, %151, %cst_71 {dimension_numbers = #tpu.dot_dimension_numbers<[1], [0], [0], [1], [0, 0, 1, 1], [], []>} : vector<16x256xf32>, vector<256x64xf32>, vector<16x64xf32> -> vector<16x64xf32>
    %c0_72 = arith.constant 0 : index
    %c0_73 = arith.constant 0 : index
    %c0_74 = arith.constant 0 : index
    %153 = vector.load %arg13[%c0_72, %c0_73, %c0_74] : memref<2x1x64xf32, #tpu.memory_space<vmem>>, vector<1x1x64xf32>
    %154 = vector.shape_cast %153 : vector<1x1x64xf32> to vector<1x64xf32>
    %155 = vector.broadcast %154 : vector<1x64xf32> to vector<16x64xf32>
    %156 = arith.addf %152, %155 : vector<16x64xf32>
    %157 = arith.addf %79, %156 : vector<16x64xf32>
    %c1 = arith.constant 1 : index
    %c0_75 = arith.constant 0 : index
    %c0_76 = arith.constant 0 : index
    %158 = vector.load %arg2[%c1, %c0_75, %c0_76] : memref<2x1x64xf32, #tpu.memory_space<vmem>>, vector<1x1x64xf32>
    %159 = vector.shape_cast %158 : vector<1x1x64xf32> to vector<1x64xf32>
    %c1_77 = arith.constant 1 : index
    %c0_78 = arith.constant 0 : index
    %c0_79 = arith.constant 0 : index
    %160 = vector.load %arg3[%c1_77, %c0_78, %c0_79] : memref<2x1x64xf32, #tpu.memory_space<vmem>>, vector<1x1x64xf32>
    %161 = vector.shape_cast %160 : vector<1x1x64xf32> to vector<1x64xf32>
    %cst_80 = arith.constant dense<0.000000e+00> : vector<16xf32>
    %162 = vector.multi_reduction <add>, %157, %cst_80 [1] : vector<16x64xf32> to vector<16xf32>
    %163 = vector.shape_cast %162 : vector<16xf32> to vector<16x1xf32>
    %cst_81 = arith.constant 6.400000e+01 : f32
    %164 = vector.broadcast %cst_81 : f32 to vector<16x1xf32>
    %165 = arith.divf %163, %164 : vector<16x1xf32>
    %166 = vector.broadcast %165 : vector<16x1xf32> to vector<16x64xf32>
    %167 = arith.subf %157, %166 : vector<16x64xf32>
    %168 = arith.mulf %167, %167 : vector<16x64xf32>
    %cst_82 = arith.constant dense<0.000000e+00> : vector<16xf32>
    %169 = vector.multi_reduction <add>, %168, %cst_82 [1] : vector<16x64xf32> to vector<16xf32>
    %170 = vector.shape_cast %169 : vector<16xf32> to vector<16x1xf32>
    %cst_83 = arith.constant 6.400000e+01 : f32
    %171 = vector.broadcast %cst_83 : f32 to vector<16x1xf32>
    %172 = arith.divf %170, %171 : vector<16x1xf32>
    %cst_84 = arith.constant 9.99999974E-6 : f32
    %173 = vector.broadcast %cst_84 : f32 to vector<16x1xf32>
    %174 = arith.addf %172, %173 : vector<16x1xf32>
    %175 = math.rsqrt %174 : vector<16x1xf32>
    %176 = vector.broadcast %175 : vector<16x1xf32> to vector<16x64xf32>
    %177 = arith.mulf %167, %176 : vector<16x64xf32>
    %178 = vector.broadcast %159 : vector<1x64xf32> to vector<16x64xf32>
    %179 = arith.mulf %177, %178 : vector<16x64xf32>
    %180 = vector.broadcast %161 : vector<1x64xf32> to vector<16x64xf32>
    %181 = arith.addf %179, %180 : vector<16x64xf32>
    %c1_85 = arith.constant 1 : index
    %c0_86 = arith.constant 0 : index
    %c0_87 = arith.constant 0 : index
    %182 = vector.load %arg4[%c1_85, %c0_86, %c0_87] : memref<2x64x768xf32, #tpu.memory_space<vmem>>, vector<1x64x768xf32>
    %183 = vector.shape_cast %182 : vector<1x64x768xf32> to vector<64x768xf32>
    %cst_88 = arith.constant dense<0.000000e+00> : vector<16x768xf32>
    %184 = tpu.matmul %181, %183, %cst_88 {dimension_numbers = #tpu.dot_dimension_numbers<[1], [0], [0], [1], [0, 0, 1, 1], [], []>} : vector<16x64xf32>, vector<64x768xf32>, vector<16x768xf32> -> vector<16x768xf32>
    %c1_89 = arith.constant 1 : index
    %c0_90 = arith.constant 0 : index
    %c0_91 = arith.constant 0 : index
    %185 = vector.load %arg5[%c1_89, %c0_90, %c0_91] : memref<2x1x768xf32, #tpu.memory_space<vmem>>, vector<1x1x768xf32>
    %186 = vector.shape_cast %185 : vector<1x1x768xf32> to vector<1x768xf32>
    %187 = vector.broadcast %186 : vector<1x768xf32> to vector<16x768xf32>
    %188 = arith.addf %184, %187 : vector<16x768xf32>
    %189 = vector.extract_strided_slice %188 {offsets = [0, 0], sizes = [16, 256], strides = [1, 1]} : vector<16x768xf32> to vector<16x256xf32>
    %cst_92 = arith.constant 1.250000e-01 : f32
    %190 = vector.broadcast %cst_92 : f32 to vector<16x256xf32>
    %191 = arith.mulf %189, %190 : vector<16x256xf32>
    %192 = vector.extract_strided_slice %188 {offsets = [0, 256], sizes = [16, 256], strides = [1, 1]} : vector<16x768xf32> to vector<16x256xf32>
    %193 = vector.extract_strided_slice %188 {offsets = [0, 512], sizes = [16, 256], strides = [1, 1]} : vector<16x768xf32> to vector<16x256xf32>
    %c1_93 = arith.constant 1 : index
    %c0_94 = arith.constant 0 : index
    %c0_95 = arith.constant 0 : index
    %194 = vector.load %arg6[%c1_93, %c0_94, %c0_95] : memref<2x256x64xf32, #tpu.memory_space<vmem>>, vector<1x256x64xf32>
    %195 = vector.shape_cast %194 : vector<1x256x64xf32> to vector<256x64xf32>
    %196 = vector.extract_strided_slice %191 {offsets = [0, 0], sizes = [16, 128], strides = [1, 1]} : vector<16x256xf32> to vector<16x128xf32>
    %197 = vector.extract_strided_slice %192 {offsets = [0, 0], sizes = [16, 128], strides = [1, 1]} : vector<16x256xf32> to vector<16x128xf32>
    %198 = vector.extract_strided_slice %193 {offsets = [0, 0], sizes = [16, 128], strides = [1, 1]} : vector<16x256xf32> to vector<16x128xf32>
    %cst_96 = arith.constant dense<0.000000e+00> : vector<16x16xf32>
    %199 = tpu.matmul %196, %197, %cst_96 {dimension_numbers = #tpu.dot_dimension_numbers<[1], [1], [0], [0], [0, 0, 1, 0], [], []>} : vector<16x128xf32>, vector<16x128xf32>, vector<16x16xf32> -> vector<16x16xf32>
    %cst_97 = arith.constant dense<0xFF800000> : vector<16xf32>
    %200 = vector.multi_reduction <maximumf>, %199, %cst_97 [1] : vector<16x16xf32> to vector<16xf32>
    %201 = vector.shape_cast %200 : vector<16xf32> to vector<16x1xf32>
    %202 = vector.broadcast %201 : vector<16x1xf32> to vector<16x16xf32>
    %203 = arith.subf %199, %202 : vector<16x16xf32>
    %204 = math.exp %203 : vector<16x16xf32>
    %cst_98 = arith.constant dense<0.000000e+00> : vector<16xf32>
    %205 = vector.multi_reduction <add>, %204, %cst_98 [1] : vector<16x16xf32> to vector<16xf32>
    %206 = vector.shape_cast %205 : vector<16xf32> to vector<16x1xf32>
    %207 = tpu.reciprocal %206 {approx = true} : vector<16x1xf32> -> vector<16x1xf32>
    %208 = vector.broadcast %207 : vector<16x1xf32> to vector<16x16xf32>
    %209 = arith.mulf %204, %208 : vector<16x16xf32>
    %cst_99 = arith.constant dense<0.000000e+00> : vector<16x128xf32>
    %210 = tpu.matmul %209, %198, %cst_99 {dimension_numbers = #tpu.dot_dimension_numbers<[1], [0], [0], [1], [0, 0, 1, 1], [], []>} : vector<16x16xf32>, vector<16x128xf32>, vector<16x128xf32> -> vector<16x128xf32>
    %211 = vector.extract_strided_slice %195 {offsets = [0, 0], sizes = [128, 64], strides = [1, 1]} : vector<256x64xf32> to vector<128x64xf32>
    %cst_100 = arith.constant dense<0.000000e+00> : vector<16x64xf32>
    %212 = tpu.matmul %210, %211, %cst_100 {dimension_numbers = #tpu.dot_dimension_numbers<[1], [0], [0], [1], [0, 0, 1, 1], [], []>} : vector<16x128xf32>, vector<128x64xf32>, vector<16x64xf32> -> vector<16x64xf32>
    %213 = vector.extract_strided_slice %191 {offsets = [0, 128], sizes = [16, 128], strides = [1, 1]} : vector<16x256xf32> to vector<16x128xf32>
    %214 = vector.extract_strided_slice %192 {offsets = [0, 128], sizes = [16, 128], strides = [1, 1]} : vector<16x256xf32> to vector<16x128xf32>
    %215 = vector.extract_strided_slice %193 {offsets = [0, 128], sizes = [16, 128], strides = [1, 1]} : vector<16x256xf32> to vector<16x128xf32>
    %cst_101 = arith.constant dense<0.000000e+00> : vector<16x16xf32>
    %216 = tpu.matmul %213, %214, %cst_101 {dimension_numbers = #tpu.dot_dimension_numbers<[1], [1], [0], [0], [0, 0, 1, 0], [], []>} : vector<16x128xf32>, vector<16x128xf32>, vector<16x16xf32> -> vector<16x16xf32>
    %cst_102 = arith.constant dense<0xFF800000> : vector<16xf32>
    %217 = vector.multi_reduction <maximumf>, %216, %cst_102 [1] : vector<16x16xf32> to vector<16xf32>
    %218 = vector.shape_cast %217 : vector<16xf32> to vector<16x1xf32>
    %219 = vector.broadcast %218 : vector<16x1xf32> to vector<16x16xf32>
    %220 = arith.subf %216, %219 : vector<16x16xf32>
    %221 = math.exp %220 : vector<16x16xf32>
    %cst_103 = arith.constant dense<0.000000e+00> : vector<16xf32>
    %222 = vector.multi_reduction <add>, %221, %cst_103 [1] : vector<16x16xf32> to vector<16xf32>
    %223 = vector.shape_cast %222 : vector<16xf32> to vector<16x1xf32>
    %224 = tpu.reciprocal %223 {approx = true} : vector<16x1xf32> -> vector<16x1xf32>
    %225 = vector.broadcast %224 : vector<16x1xf32> to vector<16x16xf32>
    %226 = arith.mulf %221, %225 : vector<16x16xf32>
    %cst_104 = arith.constant dense<0.000000e+00> : vector<16x128xf32>
    %227 = tpu.matmul %226, %215, %cst_104 {dimension_numbers = #tpu.dot_dimension_numbers<[1], [0], [0], [1], [0, 0, 1, 1], [], []>} : vector<16x16xf32>, vector<16x128xf32>, vector<16x128xf32> -> vector<16x128xf32>
    %228 = vector.extract_strided_slice %195 {offsets = [128, 0], sizes = [128, 64], strides = [1, 1]} : vector<256x64xf32> to vector<128x64xf32>
    %cst_105 = arith.constant dense<0.000000e+00> : vector<16x64xf32>
    %229 = tpu.matmul %227, %228, %cst_105 {dimension_numbers = #tpu.dot_dimension_numbers<[1], [0], [0], [1], [0, 0, 1, 1], [], []>} : vector<16x128xf32>, vector<128x64xf32>, vector<16x64xf32> -> vector<16x64xf32>
    %230 = arith.addf %212, %229 : vector<16x64xf32>
    %231 = arith.addf %157, %230 : vector<16x64xf32>
    %c1_106 = arith.constant 1 : index
    %c0_107 = arith.constant 0 : index
    %c0_108 = arith.constant 0 : index
    %232 = vector.load %arg7[%c1_106, %c0_107, %c0_108] : memref<2x1x64xf32, #tpu.memory_space<vmem>>, vector<1x1x64xf32>
    %233 = vector.shape_cast %232 : vector<1x1x64xf32> to vector<1x64xf32>
    %234 = vector.broadcast %233 : vector<1x64xf32> to vector<16x64xf32>
    %235 = arith.addf %231, %234 : vector<16x64xf32>
    %c1_109 = arith.constant 1 : index
    %c0_110 = arith.constant 0 : index
    %c0_111 = arith.constant 0 : index
    %236 = vector.load %arg8[%c1_109, %c0_110, %c0_111] : memref<2x1x64xf32, #tpu.memory_space<vmem>>, vector<1x1x64xf32>
    %237 = vector.shape_cast %236 : vector<1x1x64xf32> to vector<1x64xf32>
    %c1_112 = arith.constant 1 : index
    %c0_113 = arith.constant 0 : index
    %c0_114 = arith.constant 0 : index
    %238 = vector.load %arg9[%c1_112, %c0_113, %c0_114] : memref<2x1x64xf32, #tpu.memory_space<vmem>>, vector<1x1x64xf32>
    %239 = vector.shape_cast %238 : vector<1x1x64xf32> to vector<1x64xf32>
    %cst_115 = arith.constant dense<0.000000e+00> : vector<16xf32>
    %240 = vector.multi_reduction <add>, %235, %cst_115 [1] : vector<16x64xf32> to vector<16xf32>
    %241 = vector.shape_cast %240 : vector<16xf32> to vector<16x1xf32>
    %cst_116 = arith.constant 6.400000e+01 : f32
    %242 = vector.broadcast %cst_116 : f32 to vector<16x1xf32>
    %243 = arith.divf %241, %242 : vector<16x1xf32>
    %244 = vector.broadcast %243 : vector<16x1xf32> to vector<16x64xf32>
    %245 = arith.subf %235, %244 : vector<16x64xf32>
    %246 = arith.mulf %245, %245 : vector<16x64xf32>
    %cst_117 = arith.constant dense<0.000000e+00> : vector<16xf32>
    %247 = vector.multi_reduction <add>, %246, %cst_117 [1] : vector<16x64xf32> to vector<16xf32>
    %248 = vector.shape_cast %247 : vector<16xf32> to vector<16x1xf32>
    %cst_118 = arith.constant 6.400000e+01 : f32
    %249 = vector.broadcast %cst_118 : f32 to vector<16x1xf32>
    %250 = arith.divf %248, %249 : vector<16x1xf32>
    %cst_119 = arith.constant 9.99999974E-6 : f32
    %251 = vector.broadcast %cst_119 : f32 to vector<16x1xf32>
    %252 = arith.addf %250, %251 : vector<16x1xf32>
    %253 = math.rsqrt %252 : vector<16x1xf32>
    %254 = vector.broadcast %253 : vector<16x1xf32> to vector<16x64xf32>
    %255 = arith.mulf %245, %254 : vector<16x64xf32>
    %256 = vector.broadcast %237 : vector<1x64xf32> to vector<16x64xf32>
    %257 = arith.mulf %255, %256 : vector<16x64xf32>
    %258 = vector.broadcast %239 : vector<1x64xf32> to vector<16x64xf32>
    %259 = arith.addf %257, %258 : vector<16x64xf32>
    %c1_120 = arith.constant 1 : index
    %c0_121 = arith.constant 0 : index
    %c0_122 = arith.constant 0 : index
    %260 = vector.load %arg10[%c1_120, %c0_121, %c0_122] : memref<2x64x256xf32, #tpu.memory_space<vmem>>, vector<1x64x256xf32>
    %261 = vector.shape_cast %260 : vector<1x64x256xf32> to vector<64x256xf32>
    %cst_123 = arith.constant dense<0.000000e+00> : vector<16x256xf32>
    %262 = tpu.matmul %259, %261, %cst_123 {dimension_numbers = #tpu.dot_dimension_numbers<[1], [0], [0], [1], [0, 0, 1, 1], [], []>} : vector<16x64xf32>, vector<64x256xf32>, vector<16x256xf32> -> vector<16x256xf32>
    %c1_124 = arith.constant 1 : index
    %c0_125 = arith.constant 0 : index
    %c0_126 = arith.constant 0 : index
    %263 = vector.load %arg11[%c1_124, %c0_125, %c0_126] : memref<2x1x256xf32, #tpu.memory_space<vmem>>, vector<1x1x256xf32>
    %264 = vector.shape_cast %263 : vector<1x1x256xf32> to vector<1x256xf32>
    %265 = vector.broadcast %264 : vector<1x256xf32> to vector<16x256xf32>
    %266 = arith.addf %262, %265 : vector<16x256xf32>
    %cst_127 = arith.constant 5.000000e-01 : f32
    %267 = vector.broadcast %cst_127 : f32 to vector<16x256xf32>
    %268 = arith.mulf %267, %266 : vector<16x256xf32>
    %cst_128 = arith.constant 0.707106769 : f32
    %269 = vector.broadcast %cst_128 : f32 to vector<16x256xf32>
    %270 = arith.mulf %266, %269 : vector<16x256xf32>
    %271 = math.absf %270 : vector<16x256xf32>
    %cst_129 = arith.constant 0.327591091 : f32
    %272 = vector.broadcast %cst_129 : f32 to vector<16x256xf32>
    %273 = arith.mulf %272, %271 : vector<16x256xf32>
    %cst_130 = arith.constant 1.000000e+00 : f32
    %274 = vector.broadcast %cst_130 : f32 to vector<16x256xf32>
    %275 = arith.addf %274, %273 : vector<16x256xf32>
    %276 = tpu.reciprocal %275 {approx = true} : vector<16x256xf32> -> vector<16x256xf32>
    %cst_131 = arith.constant 1.06140542 : f32
    %277 = vector.broadcast %cst_131 : f32 to vector<16x256xf32>
    %278 = arith.mulf %277, %276 : vector<16x256xf32>
    %cst_132 = arith.constant -1.45315206 : f32
    %279 = vector.broadcast %cst_132 : f32 to vector<16x256xf32>
    %280 = arith.addf %278, %279 : vector<16x256xf32>
    %281 = arith.mulf %280, %276 : vector<16x256xf32>
    %cst_133 = arith.constant 1.42141378 : f32
    %282 = vector.broadcast %cst_133 : f32 to vector<16x256xf32>
    %283 = arith.addf %281, %282 : vector<16x256xf32>
    %284 = arith.mulf %283, %276 : vector<16x256xf32>
    %cst_134 = arith.constant -0.284496725 : f32
    %285 = vector.broadcast %cst_134 : f32 to vector<16x256xf32>
    %286 = arith.addf %284, %285 : vector<16x256xf32>
    %287 = arith.mulf %286, %276 : vector<16x256xf32>
    %cst_135 = arith.constant 0.254829586 : f32
    %288 = vector.broadcast %cst_135 : f32 to vector<16x256xf32>
    %289 = arith.addf %287, %288 : vector<16x256xf32>
    %290 = arith.mulf %289, %276 : vector<16x256xf32>
    %cst_136 = arith.constant 0.000000e+00 : f32
    %291 = vector.broadcast %cst_136 : f32 to vector<16x256xf32>
    %292 = arith.subf %291, %271 : vector<16x256xf32>
    %293 = arith.mulf %292, %271 : vector<16x256xf32>
    %294 = math.exp %293 : vector<16x256xf32>
    %295 = arith.mulf %290, %294 : vector<16x256xf32>
    %cst_137 = arith.constant 1.000000e+00 : f32
    %296 = vector.broadcast %cst_137 : f32 to vector<16x256xf32>
    %297 = arith.subf %296, %295 : vector<16x256xf32>
    %cst_138 = arith.constant 0.000000e+00 : f32
    %298 = vector.broadcast %cst_138 : f32 to vector<16x256xf32>
    %299 = arith.cmpf oge, %270, %298 : vector<16x256xf32>
    %cst_139 = arith.constant 0.000000e+00 : f32
    %300 = vector.broadcast %cst_139 : f32 to vector<16x256xf32>
    %301 = arith.subf %300, %297 : vector<16x256xf32>
    %302 = arith.select %299, %297, %301 : vector<16x256xi1>, vector<16x256xf32>
    %cst_140 = arith.constant 1.000000e+00 : f32
    %303 = vector.broadcast %cst_140 : f32 to vector<16x256xf32>
    %304 = arith.addf %303, %302 : vector<16x256xf32>
    %305 = arith.mulf %268, %304 : vector<16x256xf32>
    %c1_141 = arith.constant 1 : index
    %c0_142 = arith.constant 0 : index
    %c0_143 = arith.constant 0 : index
    %306 = vector.load %arg12[%c1_141, %c0_142, %c0_143] : memref<2x256x64xf32, #tpu.memory_space<vmem>>, vector<1x256x64xf32>
    %307 = vector.shape_cast %306 : vector<1x256x64xf32> to vector<256x64xf32>
    %cst_144 = arith.constant dense<0.000000e+00> : vector<16x64xf32>
    %308 = tpu.matmul %305, %307, %cst_144 {dimension_numbers = #tpu.dot_dimension_numbers<[1], [0], [0], [1], [0, 0, 1, 1], [], []>} : vector<16x256xf32>, vector<256x64xf32>, vector<16x64xf32> -> vector<16x64xf32>
    %c1_145 = arith.constant 1 : index
    %c0_146 = arith.constant 0 : index
    %c0_147 = arith.constant 0 : index
    %309 = vector.load %arg13[%c1_145, %c0_146, %c0_147] : memref<2x1x64xf32, #tpu.memory_space<vmem>>, vector<1x1x64xf32>
    %310 = vector.shape_cast %309 : vector<1x1x64xf32> to vector<1x64xf32>
    %311 = vector.broadcast %310 : vector<1x64xf32> to vector<16x64xf32>
    %312 = arith.addf %308, %311 : vector<16x64xf32>
    %313 = arith.addf %235, %312 : vector<16x64xf32>
    %c0_148 = arith.constant 0 : index
    %c0_149 = arith.constant 0 : index
    %c0_150 = arith.constant 0 : index
    %314 = vector.load %arg14[%c0_148, %c0_149, %c0_150] : memref<1x1x64xf32, #tpu.memory_space<vmem>>, vector<1x1x64xf32>
    %315 = vector.shape_cast %314 : vector<1x1x64xf32> to vector<1x64xf32>
    %c0_151 = arith.constant 0 : index
    %c0_152 = arith.constant 0 : index
    %c0_153 = arith.constant 0 : index
    %316 = vector.load %arg15[%c0_151, %c0_152, %c0_153] : memref<1x1x64xf32, #tpu.memory_space<vmem>>, vector<1x1x64xf32>
    %317 = vector.shape_cast %316 : vector<1x1x64xf32> to vector<1x64xf32>
    %cst_154 = arith.constant dense<0.000000e+00> : vector<16xf32>
    %318 = vector.multi_reduction <add>, %313, %cst_154 [1] : vector<16x64xf32> to vector<16xf32>
    %319 = vector.shape_cast %318 : vector<16xf32> to vector<16x1xf32>
    %cst_155 = arith.constant 6.400000e+01 : f32
    %320 = vector.broadcast %cst_155 : f32 to vector<16x1xf32>
    %321 = arith.divf %319, %320 : vector<16x1xf32>
    %322 = vector.broadcast %321 : vector<16x1xf32> to vector<16x64xf32>
    %323 = arith.subf %313, %322 : vector<16x64xf32>
    %324 = arith.mulf %323, %323 : vector<16x64xf32>
    %cst_156 = arith.constant dense<0.000000e+00> : vector<16xf32>
    %325 = vector.multi_reduction <add>, %324, %cst_156 [1] : vector<16x64xf32> to vector<16xf32>
    %326 = vector.shape_cast %325 : vector<16xf32> to vector<16x1xf32>
    %cst_157 = arith.constant 6.400000e+01 : f32
    %327 = vector.broadcast %cst_157 : f32 to vector<16x1xf32>
    %328 = arith.divf %326, %327 : vector<16x1xf32>
    %cst_158 = arith.constant 9.99999974E-6 : f32
    %329 = vector.broadcast %cst_158 : f32 to vector<16x1xf32>
    %330 = arith.addf %328, %329 : vector<16x1xf32>
    %331 = math.rsqrt %330 : vector<16x1xf32>
    %332 = vector.broadcast %331 : vector<16x1xf32> to vector<16x64xf32>
    %333 = arith.mulf %323, %332 : vector<16x64xf32>
    %334 = vector.broadcast %315 : vector<1x64xf32> to vector<16x64xf32>
    %335 = arith.mulf %333, %334 : vector<16x64xf32>
    %336 = vector.broadcast %317 : vector<1x64xf32> to vector<16x64xf32>
    %337 = arith.addf %335, %336 : vector<16x64xf32>
    %c0_159 = arith.constant 0 : index
    %c0_160 = arith.constant 0 : index
    %c0_161 = arith.constant 0 : index
    %338 = vector.load %arg16[%c0_159, %c0_160, %c0_161] : memref<1x64x32xf32, #tpu.memory_space<vmem>>, vector<1x64x32xf32>
    %339 = vector.shape_cast %338 : vector<1x64x32xf32> to vector<64x32xf32>
    %cst_162 = arith.constant dense<0.000000e+00> : vector<16x32xf32>
    %340 = tpu.matmul %337, %339, %cst_162 {dimension_numbers = #tpu.dot_dimension_numbers<[1], [0], [0], [1], [0, 0, 1, 1], [], []>} : vector<16x64xf32>, vector<64x32xf32>, vector<16x32xf32> -> vector<16x32xf32>
    %c0_163 = arith.constant 0 : index
    %c0_164 = arith.constant 0 : index
    %c0_165 = arith.constant 0 : index
    %341 = vector.load %arg17[%c0_163, %c0_164, %c0_165] : memref<1x1x32xf32, #tpu.memory_space<vmem>>, vector<1x1x32xf32>
    %342 = vector.shape_cast %341 : vector<1x1x32xf32> to vector<1x32xf32>
    %343 = vector.broadcast %342 : vector<1x32xf32> to vector<16x32xf32>
    %344 = arith.addf %340, %343 : vector<16x32xf32>
    %c0_166 = arith.constant 0 : index
    %c0_167 = arith.constant 0 : index
    %c0_168 = arith.constant 0 : index
    %345 = vector.load %arg18[%c0_166, %c0_167, %c0_168] : memref<1x16x32xf32, #tpu.memory_space<vmem>>, vector<1x16x32xf32>
    %346 = vector.shape_cast %345 : vector<1x16x32xf32> to vector<16x32xf32>
    %347 = vector.shape_cast %344 : vector<16x32xf32> to vector<1x16x32xf32>
    tpu.vector_store %arg18[%c0_166, %c0_167, %c0_168], %347 {strides = array<i32>} : memref<1x16x32xf32, #tpu.memory_space<vmem>>, vector<1x16x32xf32>,
    return
  }
  func.func @transform_0(%arg0: i32) -> (i32, i32, i32) {
    %c0_i32 = arith.constant 0 : i32
    %c0_i32_0 = arith.constant 0 : i32
    %c0_i32_1 = arith.constant 0 : i32
    return %arg0, %c0_i32, %c0_i32_0 : i32, i32, i32
  }
  func.func @transform_1(%arg0: i32) -> (i32, i32, i32) {
    %c0_i32 = arith.constant 0 : i32
    %c0_i32_0 = arith.constant 0 : i32
    %c0_i32_1 = arith.constant 0 : i32
    %c0_i32_2 = arith.constant 0 : i32
    return %c0_i32, %c0_i32_0, %c0_i32_1 : i32, i32, i32
  }
  func.func @transform_2(%arg0: i32) -> (i32, i32, i32) {
    %c0_i32 = arith.constant 0 : i32
    %c0_i32_0 = arith.constant 0 : i32
    %c0_i32_1 = arith.constant 0 : i32
    %c0_i32_2 = arith.constant 0 : i32
    return %c0_i32, %c0_i32_0, %c0_i32_1 : i32, i32, i32
  }
  func.func @transform_3(%arg0: i32) -> (i32, i32, i32) {
    %c0_i32 = arith.constant 0 : i32
    %c0_i32_0 = arith.constant 0 : i32
    %c0_i32_1 = arith.constant 0 : i32
    %c0_i32_2 = arith.constant 0 : i32
    return %c0_i32, %c0_i32_0, %c0_i32_1 : i32, i32, i32
  }
  func.func @transform_4(%arg0: i32) -> (i32, i32, i32) {
    %c0_i32 = arith.constant 0 : i32
    %c0_i32_0 = arith.constant 0 : i32
    %c0_i32_1 = arith.constant 0 : i32
    %c0_i32_2 = arith.constant 0 : i32
    return %c0_i32, %c0_i32_0, %c0_i32_1 : i32, i32, i32
  }
  func.func @transform_5(%arg0: i32) -> (i32, i32, i32) {
    %c0_i32 = arith.constant 0 : i32
    %c0_i32_0 = arith.constant 0 : i32
    %c0_i32_1 = arith.constant 0 : i32
    %c0_i32_2 = arith.constant 0 : i32
    return %c0_i32, %c0_i32_0, %c0_i32_1 : i32, i32, i32
  }
  func.func @transform_6(%arg0: i32) -> (i32, i32, i32) {
    %c0_i32 = arith.constant 0 : i32
    %c0_i32_0 = arith.constant 0 : i32
    %c0_i32_1 = arith.constant 0 : i32
    %c0_i32_2 = arith.constant 0 : i32
    return %c0_i32, %c0_i32_0, %c0_i32_1 : i32, i32, i32
  }
  func.func @transform_7(%arg0: i32) -> (i32, i32, i32) {
    %c0_i32 = arith.constant 0 : i32
    %c0_i32_0 = arith.constant 0 : i32
    %c0_i32_1 = arith.constant 0 : i32
    %c0_i32_2 = arith.constant 0 : i32
    return %c0_i32, %c0_i32_0, %c0_i32_1 : i32, i32, i32
  }
  func.func @transform_8(%arg0: i32) -> (i32, i32, i32) {
    %c0_i32 = arith.constant 0 : i32
    %c0_i32_0 = arith.constant 0 : i32
    %c0_i32_1 = arith.constant 0 : i32
    %c0_i32_2 = arith.constant 0 : i32
    return %c0_i32, %c0_i32_0, %c0_i32_1 : i32, i32, i32
  }
  func.func @transform_9(%arg0: i32) -> (i32, i32, i32) {
    %c0_i32 = arith.constant 0 : i32
    %c0_i32_0 = arith.constant 0 : i32
    %c0_i32_1 = arith.constant 0 : i32
    %c0_i32_2 = arith.constant 0 : i32
    return %c0_i32, %c0_i32_0, %c0_i32_1 : i32, i32, i32
  }
  func.func @transform_10(%arg0: i32) -> (i32, i32, i32) {
    %c0_i32 = arith.constant 0 : i32
    %c0_i32_0 = arith.constant 0 : i32
    %c0_i32_1 = arith.constant 0 : i32
    %c0_i32_2 = arith.constant 0 : i32
    return %c0_i32, %c0_i32_0, %c0_i32_1 : i32, i32, i32
  }
  func.func @transform_11(%arg0: i32) -> (i32, i32, i32) {
    %c0_i32 = arith.constant 0 : i32
    %c0_i32_0 = arith.constant 0 : i32
    %c0_i32_1 = arith.constant 0 : i32
    %c0_i32_2 = arith.constant 0 : i32
    return %c0_i32, %c0_i32_0, %c0_i32_1 : i32, i32, i32
  }
  func.func @transform_12(%arg0: i32) -> (i32, i32, i32) {
    %c0_i32 = arith.constant 0 : i32
    %c0_i32_0 = arith.constant 0 : i32
    %c0_i32_1 = arith.constant 0 : i32
    %c0_i32_2 = arith.constant 0 : i32
    return %c0_i32, %c0_i32_0, %c0_i32_1 : i32, i32, i32
  }
  func.func @transform_13(%arg0: i32) -> (i32, i32, i32) {
    %c0_i32 = arith.constant 0 : i32
    %c0_i32_0 = arith.constant 0 : i32
    %c0_i32_1 = arith.constant 0 : i32
    %c0_i32_2 = arith.constant 0 : i32
    return %c0_i32, %c0_i32_0, %c0_i32_1 : i32, i32, i32
  }
  func.func @transform_14(%arg0: i32) -> (i32, i32, i32) {
    %c0_i32 = arith.constant 0 : i32
    %c0_i32_0 = arith.constant 0 : i32
    %c0_i32_1 = arith.constant 0 : i32
    %c0_i32_2 = arith.constant 0 : i32
    return %c0_i32, %c0_i32_0, %c0_i32_1 : i32, i32, i32
  }
  func.func @transform_15(%arg0: i32) -> (i32, i32, i32) {
    %c0_i32 = arith.constant 0 : i32
    %c0_i32_0 = arith.constant 0 : i32
    %c0_i32_1 = arith.constant 0 : i32
    %c0_i32_2 = arith.constant 0 : i32
    return %c0_i32, %c0_i32_0, %c0_i32_1 : i32, i32, i32
  }
  func.func @transform_16(%arg0: i32) -> (i32, i32, i32) {
    %c0_i32 = arith.constant 0 : i32
    %c0_i32_0 = arith.constant 0 : i32
    %c0_i32_1 = arith.constant 0 : i32
    %c0_i32_2 = arith.constant 0 : i32
    return %c0_i32, %c0_i32_0, %c0_i32_1 : i32, i32, i32
  }
  func.func @transform_17(%arg0: i32) -> (i32, i32, i32) {
    %c0_i32 = arith.constant 0 : i32
    %c0_i32_0 = arith.constant 0 : i32
    %c0_i32_1 = arith.constant 0 : i32
    return %arg0, %c0_i32, %c0_i32_0 : i32, i32, i32
  }
}

module attributes {stable_mosaic.version = 11 : i64} {
  func.func @_decoder_stack_kernel(%arg0: i32, %arg1: memref<1x40x32xf32, #tpu.memory_space<vmem>>, %arg2: memref<1x1x32xf32, #tpu.memory_space<vmem>>, %arg3: memref<1x1x32xf32, #tpu.memory_space<vmem>>, %arg4: memref<1x32x768xf32, #tpu.memory_space<vmem>>, %arg5: memref<1x1x768xf32, #tpu.memory_space<vmem>>, %arg6: memref<1x256x32xf32, #tpu.memory_space<vmem>>, %arg7: memref<1x1x32xf32, #tpu.memory_space<vmem>>, %arg8: memref<1x1x32xf32, #tpu.memory_space<vmem>>, %arg9: memref<1x1x32xf32, #tpu.memory_space<vmem>>, %arg10: memref<1x32x128xf32, #tpu.memory_space<vmem>>, %arg11: memref<1x1x128xf32, #tpu.memory_space<vmem>>, %arg12: memref<1x128x32xf32, #tpu.memory_space<vmem>>, %arg13: memref<1x1x32xf32, #tpu.memory_space<vmem>>, %arg14: memref<1x1x32xf32, #tpu.memory_space<vmem>>, %arg15: memref<1x1x32xf32, #tpu.memory_space<vmem>>, %arg16: memref<1x32x32xf32, #tpu.memory_space<vmem>>, %arg17: memref<1x1x32xf32, #tpu.memory_space<vmem>>, %arg18: memref<1x40x32xf32, #tpu.memory_space<vmem>>, %arg19: memref<1x40x32xf32, #tpu.memory_space<vmem>>) attributes {dimension_semantics = [#tpu.dimension_semantics<parallel>], iteration_bounds = array<i64: 2>, scalar_prefetch = 0 : i64, scratch_operands = 0 : i64, tpu.core_type = #tpu.core_type<tc>, window_params = [{transform_indices = @transform_0, window_bounds = array<i64: 1, 40, 32>}, {pipeline_mode = #tpu.pipeline_mode<synchronous>, transform_indices = @transform_1, window_bounds = array<i64: 1, 1, 32>}, {pipeline_mode = #tpu.pipeline_mode<synchronous>, transform_indices = @transform_2, window_bounds = array<i64: 1, 1, 32>}, {pipeline_mode = #tpu.pipeline_mode<synchronous>, transform_indices = @transform_3, window_bounds = array<i64: 1, 32, 768>}, {pipeline_mode = #tpu.pipeline_mode<synchronous>, transform_indices = @transform_4, window_bounds = array<i64: 1, 1, 768>}, {pipeline_mode = #tpu.pipeline_mode<synchronous>, transform_indices = @transform_5, window_bounds = array<i64: 1, 256, 32>}, {pipeline_mode = #tpu.pipeline_mode<synchronous>, transform_indices = @transform_6, window_bounds = array<i64: 1, 1, 32>}, {pipeline_mode = #tpu.pipeline_mode<synchronous>, transform_indices = @transform_7, window_bounds = array<i64: 1, 1, 32>}, {pipeline_mode = #tpu.pipeline_mode<synchronous>, transform_indices = @transform_8, window_bounds = array<i64: 1, 1, 32>}, {pipeline_mode = #tpu.pipeline_mode<synchronous>, transform_indices = @transform_9, window_bounds = array<i64: 1, 32, 128>}, {pipeline_mode = #tpu.pipeline_mode<synchronous>, transform_indices = @transform_10, window_bounds = array<i64: 1, 1, 128>}, {pipeline_mode = #tpu.pipeline_mode<synchronous>, transform_indices = @transform_11, window_bounds = array<i64: 1, 128, 32>}, {pipeline_mode = #tpu.pipeline_mode<synchronous>, transform_indices = @transform_12, window_bounds = array<i64: 1, 1, 32>}, {pipeline_mode = #tpu.pipeline_mode<synchronous>, transform_indices = @transform_13, window_bounds = array<i64: 1, 1, 32>}, {pipeline_mode = #tpu.pipeline_mode<synchronous>, transform_indices = @transform_14, window_bounds = array<i64: 1, 1, 32>}, {pipeline_mode = #tpu.pipeline_mode<synchronous>, transform_indices = @transform_15, window_bounds = array<i64: 1, 32, 32>}, {pipeline_mode = #tpu.pipeline_mode<synchronous>, transform_indices = @transform_16, window_bounds = array<i64: 1, 1, 32>}, {transform_indices = @transform_17, window_bounds = array<i64: 1, 40, 32>}, {transform_indices = @transform_18, window_bounds = array<i64: 1, 40, 32>}]} {
    %c0 = arith.constant 0 : index
    %c0_0 = arith.constant 0 : index
    %c0_1 = arith.constant 0 : index
    %0 = vector.load %arg1[%c0, %c0_0, %c0_1] : memref<1x40x32xf32, #tpu.memory_space<vmem>>, vector<1x40x32xf32>
    %1 = vector.shape_cast %0 : vector<1x40x32xf32> to vector<40x32xf32>
    %c0_2 = arith.constant 0 : index
    %c0_3 = arith.constant 0 : index
    %c0_4 = arith.constant 0 : index
    %2 = vector.load %arg2[%c0_2, %c0_3, %c0_4] : memref<1x1x32xf32, #tpu.memory_space<vmem>>, vector<1x1x32xf32>
    %3 = vector.shape_cast %2 : vector<1x1x32xf32> to vector<1x32xf32>
    %c0_5 = arith.constant 0 : index
    %c0_6 = arith.constant 0 : index
    %c0_7 = arith.constant 0 : index
    %4 = vector.load %arg3[%c0_5, %c0_6, %c0_7] : memref<1x1x32xf32, #tpu.memory_space<vmem>>, vector<1x1x32xf32>
    %5 = vector.shape_cast %4 : vector<1x1x32xf32> to vector<1x32xf32>
    %cst = arith.constant dense<0.000000e+00> : vector<40xf32>
    %6 = vector.multi_reduction <add>, %1, %cst [1] : vector<40x32xf32> to vector<40xf32>
    %7 = vector.shape_cast %6 : vector<40xf32> to vector<40x1xf32>
    %cst_8 = arith.constant 3.200000e+01 : f32
    %8 = vector.broadcast %cst_8 : f32 to vector<40x1xf32>
    %9 = arith.divf %7, %8 : vector<40x1xf32>
    %10 = vector.broadcast %9 : vector<40x1xf32> to vector<40x32xf32>
    %11 = arith.subf %1, %10 : vector<40x32xf32>
    %12 = arith.mulf %11, %11 : vector<40x32xf32>
    %cst_9 = arith.constant dense<0.000000e+00> : vector<40xf32>
    %13 = vector.multi_reduction <add>, %12, %cst_9 [1] : vector<40x32xf32> to vector<40xf32>
    %14 = vector.shape_cast %13 : vector<40xf32> to vector<40x1xf32>
    %cst_10 = arith.constant 3.200000e+01 : f32
    %15 = vector.broadcast %cst_10 : f32 to vector<40x1xf32>
    %16 = arith.divf %14, %15 : vector<40x1xf32>
    %cst_11 = arith.constant 9.99999974E-6 : f32
    %17 = vector.broadcast %cst_11 : f32 to vector<40x1xf32>
    %18 = arith.addf %16, %17 : vector<40x1xf32>
    %19 = math.rsqrt %18 : vector<40x1xf32>
    %20 = vector.broadcast %19 : vector<40x1xf32> to vector<40x32xf32>
    %21 = arith.mulf %11, %20 : vector<40x32xf32>
    %22 = vector.broadcast %3 : vector<1x32xf32> to vector<40x32xf32>
    %23 = arith.mulf %21, %22 : vector<40x32xf32>
    %24 = vector.broadcast %5 : vector<1x32xf32> to vector<40x32xf32>
    %25 = arith.addf %23, %24 : vector<40x32xf32>
    %c0_12 = arith.constant 0 : index
    %c0_13 = arith.constant 0 : index
    %c0_14 = arith.constant 0 : index
    %26 = vector.load %arg4[%c0_12, %c0_13, %c0_14] : memref<1x32x768xf32, #tpu.memory_space<vmem>>, vector<1x32x768xf32>
    %27 = vector.shape_cast %26 : vector<1x32x768xf32> to vector<32x768xf32>
    %cst_15 = arith.constant dense<0.000000e+00> : vector<40x768xf32>
    %28 = tpu.matmul %25, %27, %cst_15 {dimension_numbers = #tpu.dot_dimension_numbers<[1], [0], [0], [1], [0, 0, 1, 1], [], []>} : vector<40x32xf32>, vector<32x768xf32>, vector<40x768xf32> -> vector<40x768xf32>
    %c0_16 = arith.constant 0 : index
    %c0_17 = arith.constant 0 : index
    %c0_18 = arith.constant 0 : index
    %29 = vector.load %arg5[%c0_16, %c0_17, %c0_18] : memref<1x1x768xf32, #tpu.memory_space<vmem>>, vector<1x1x768xf32>
    %30 = vector.shape_cast %29 : vector<1x1x768xf32> to vector<1x768xf32>
    %31 = vector.broadcast %30 : vector<1x768xf32> to vector<40x768xf32>
    %32 = arith.addf %28, %31 : vector<40x768xf32>
    %33 = vector.extract_strided_slice %32 {offsets = [0, 0], sizes = [40, 256], strides = [1, 1]} : vector<40x768xf32> to vector<40x256xf32>
    %cst_19 = arith.constant 1.250000e-01 : f32
    %34 = vector.broadcast %cst_19 : f32 to vector<40x256xf32>
    %35 = arith.mulf %33, %34 : vector<40x256xf32>
    %36 = vector.extract_strided_slice %32 {offsets = [0, 256], sizes = [40, 256], strides = [1, 1]} : vector<40x768xf32> to vector<40x256xf32>
    %37 = vector.extract_strided_slice %32 {offsets = [0, 512], sizes = [40, 256], strides = [1, 1]} : vector<40x768xf32> to vector<40x256xf32>
    %c0_20 = arith.constant 0 : index
    %c0_21 = arith.constant 0 : index
    %c0_22 = arith.constant 0 : index
    %38 = vector.load %arg6[%c0_20, %c0_21, %c0_22] : memref<1x256x32xf32, #tpu.memory_space<vmem>>, vector<1x256x32xf32>
    %39 = vector.shape_cast %38 : vector<1x256x32xf32> to vector<256x32xf32>
    %40 = vector.extract_strided_slice %35 {offsets = [0, 0], sizes = [10, 128], strides = [1, 1]} : vector<40x256xf32> to vector<10x128xf32>
    %41 = vector.extract_strided_slice %36 {offsets = [0, 0], sizes = [10, 128], strides = [1, 1]} : vector<40x256xf32> to vector<10x128xf32>
    %42 = vector.extract_strided_slice %37 {offsets = [0, 0], sizes = [10, 128], strides = [1, 1]} : vector<40x256xf32> to vector<10x128xf32>
    %cst_23 = arith.constant dense<0.000000e+00> : vector<10x10xf32>
    %43 = tpu.matmul %40, %41, %cst_23 {dimension_numbers = #tpu.dot_dimension_numbers<[1], [1], [0], [0], [0, 0, 1, 0], [], []>} : vector<10x128xf32>, vector<10x128xf32>, vector<10x10xf32> -> vector<10x10xf32>
    %cst_24 = arith.constant dense<0xFF800000> : vector<10xf32>
    %44 = vector.multi_reduction <maximumf>, %43, %cst_24 [1] : vector<10x10xf32> to vector<10xf32>
    %45 = vector.shape_cast %44 : vector<10xf32> to vector<10x1xf32>
    %46 = vector.broadcast %45 : vector<10x1xf32> to vector<10x10xf32>
    %47 = arith.subf %43, %46 : vector<10x10xf32>
    %48 = math.exp %47 : vector<10x10xf32>
    %cst_25 = arith.constant dense<0.000000e+00> : vector<10xf32>
    %49 = vector.multi_reduction <add>, %48, %cst_25 [1] : vector<10x10xf32> to vector<10xf32>
    %50 = vector.shape_cast %49 : vector<10xf32> to vector<10x1xf32>
    %51 = tpu.reciprocal %50 {approx = true} : vector<10x1xf32> -> vector<10x1xf32>
    %52 = vector.broadcast %51 : vector<10x1xf32> to vector<10x10xf32>
    %53 = arith.mulf %48, %52 : vector<10x10xf32>
    %cst_26 = arith.constant dense<0.000000e+00> : vector<10x128xf32>
    %54 = tpu.matmul %53, %42, %cst_26 {dimension_numbers = #tpu.dot_dimension_numbers<[1], [0], [0], [1], [0, 0, 1, 1], [], []>} : vector<10x10xf32>, vector<10x128xf32>, vector<10x128xf32> -> vector<10x128xf32>
    %55 = vector.extract_strided_slice %39 {offsets = [0, 0], sizes = [128, 32], strides = [1, 1]} : vector<256x32xf32> to vector<128x32xf32>
    %cst_27 = arith.constant dense<0.000000e+00> : vector<10x32xf32>
    %56 = tpu.matmul %54, %55, %cst_27 {dimension_numbers = #tpu.dot_dimension_numbers<[1], [0], [0], [1], [0, 0, 1, 1], [], []>} : vector<10x128xf32>, vector<128x32xf32>, vector<10x32xf32> -> vector<10x32xf32>
    %57 = vector.extract_strided_slice %35 {offsets = [0, 128], sizes = [10, 128], strides = [1, 1]} : vector<40x256xf32> to vector<10x128xf32>
    %58 = vector.extract_strided_slice %36 {offsets = [0, 128], sizes = [10, 128], strides = [1, 1]} : vector<40x256xf32> to vector<10x128xf32>
    %59 = vector.extract_strided_slice %37 {offsets = [0, 128], sizes = [10, 128], strides = [1, 1]} : vector<40x256xf32> to vector<10x128xf32>
    %cst_28 = arith.constant dense<0.000000e+00> : vector<10x10xf32>
    %60 = tpu.matmul %57, %58, %cst_28 {dimension_numbers = #tpu.dot_dimension_numbers<[1], [1], [0], [0], [0, 0, 1, 0], [], []>} : vector<10x128xf32>, vector<10x128xf32>, vector<10x10xf32> -> vector<10x10xf32>
    %cst_29 = arith.constant dense<0xFF800000> : vector<10xf32>
    %61 = vector.multi_reduction <maximumf>, %60, %cst_29 [1] : vector<10x10xf32> to vector<10xf32>
    %62 = vector.shape_cast %61 : vector<10xf32> to vector<10x1xf32>
    %63 = vector.broadcast %62 : vector<10x1xf32> to vector<10x10xf32>
    %64 = arith.subf %60, %63 : vector<10x10xf32>
    %65 = math.exp %64 : vector<10x10xf32>
    %cst_30 = arith.constant dense<0.000000e+00> : vector<10xf32>
    %66 = vector.multi_reduction <add>, %65, %cst_30 [1] : vector<10x10xf32> to vector<10xf32>
    %67 = vector.shape_cast %66 : vector<10xf32> to vector<10x1xf32>
    %68 = tpu.reciprocal %67 {approx = true} : vector<10x1xf32> -> vector<10x1xf32>
    %69 = vector.broadcast %68 : vector<10x1xf32> to vector<10x10xf32>
    %70 = arith.mulf %65, %69 : vector<10x10xf32>
    %cst_31 = arith.constant dense<0.000000e+00> : vector<10x128xf32>
    %71 = tpu.matmul %70, %59, %cst_31 {dimension_numbers = #tpu.dot_dimension_numbers<[1], [0], [0], [1], [0, 0, 1, 1], [], []>} : vector<10x10xf32>, vector<10x128xf32>, vector<10x128xf32> -> vector<10x128xf32>
    %72 = vector.extract_strided_slice %39 {offsets = [128, 0], sizes = [128, 32], strides = [1, 1]} : vector<256x32xf32> to vector<128x32xf32>
    %cst_32 = arith.constant dense<0.000000e+00> : vector<10x32xf32>
    %73 = tpu.matmul %71, %72, %cst_32 {dimension_numbers = #tpu.dot_dimension_numbers<[1], [0], [0], [1], [0, 0, 1, 1], [], []>} : vector<10x128xf32>, vector<128x32xf32>, vector<10x32xf32> -> vector<10x32xf32>
    %74 = arith.addf %56, %73 : vector<10x32xf32>
    %75 = vector.extract_strided_slice %35 {offsets = [10, 0], sizes = [10, 128], strides = [1, 1]} : vector<40x256xf32> to vector<10x128xf32>
    %76 = vector.extract_strided_slice %36 {offsets = [10, 0], sizes = [10, 128], strides = [1, 1]} : vector<40x256xf32> to vector<10x128xf32>
    %77 = vector.extract_strided_slice %37 {offsets = [10, 0], sizes = [10, 128], strides = [1, 1]} : vector<40x256xf32> to vector<10x128xf32>
    %cst_33 = arith.constant dense<0.000000e+00> : vector<10x10xf32>
    %78 = tpu.matmul %75, %76, %cst_33 {dimension_numbers = #tpu.dot_dimension_numbers<[1], [1], [0], [0], [0, 0, 1, 0], [], []>} : vector<10x128xf32>, vector<10x128xf32>, vector<10x10xf32> -> vector<10x10xf32>
    %cst_34 = arith.constant dense<0xFF800000> : vector<10xf32>
    %79 = vector.multi_reduction <maximumf>, %78, %cst_34 [1] : vector<10x10xf32> to vector<10xf32>
    %80 = vector.shape_cast %79 : vector<10xf32> to vector<10x1xf32>
    %81 = vector.broadcast %80 : vector<10x1xf32> to vector<10x10xf32>
    %82 = arith.subf %78, %81 : vector<10x10xf32>
    %83 = math.exp %82 : vector<10x10xf32>
    %cst_35 = arith.constant dense<0.000000e+00> : vector<10xf32>
    %84 = vector.multi_reduction <add>, %83, %cst_35 [1] : vector<10x10xf32> to vector<10xf32>
    %85 = vector.shape_cast %84 : vector<10xf32> to vector<10x1xf32>
    %86 = tpu.reciprocal %85 {approx = true} : vector<10x1xf32> -> vector<10x1xf32>
    %87 = vector.broadcast %86 : vector<10x1xf32> to vector<10x10xf32>
    %88 = arith.mulf %83, %87 : vector<10x10xf32>
    %cst_36 = arith.constant dense<0.000000e+00> : vector<10x128xf32>
    %89 = tpu.matmul %88, %77, %cst_36 {dimension_numbers = #tpu.dot_dimension_numbers<[1], [0], [0], [1], [0, 0, 1, 1], [], []>} : vector<10x10xf32>, vector<10x128xf32>, vector<10x128xf32> -> vector<10x128xf32>
    %90 = vector.extract_strided_slice %39 {offsets = [0, 0], sizes = [128, 32], strides = [1, 1]} : vector<256x32xf32> to vector<128x32xf32>
    %cst_37 = arith.constant dense<0.000000e+00> : vector<10x32xf32>
    %91 = tpu.matmul %89, %90, %cst_37 {dimension_numbers = #tpu.dot_dimension_numbers<[1], [0], [0], [1], [0, 0, 1, 1], [], []>} : vector<10x128xf32>, vector<128x32xf32>, vector<10x32xf32> -> vector<10x32xf32>
    %92 = vector.extract_strided_slice %35 {offsets = [10, 128], sizes = [10, 128], strides = [1, 1]} : vector<40x256xf32> to vector<10x128xf32>
    %93 = vector.extract_strided_slice %36 {offsets = [10, 128], sizes = [10, 128], strides = [1, 1]} : vector<40x256xf32> to vector<10x128xf32>
    %94 = vector.extract_strided_slice %37 {offsets = [10, 128], sizes = [10, 128], strides = [1, 1]} : vector<40x256xf32> to vector<10x128xf32>
    %cst_38 = arith.constant dense<0.000000e+00> : vector<10x10xf32>
    %95 = tpu.matmul %92, %93, %cst_38 {dimension_numbers = #tpu.dot_dimension_numbers<[1], [1], [0], [0], [0, 0, 1, 0], [], []>} : vector<10x128xf32>, vector<10x128xf32>, vector<10x10xf32> -> vector<10x10xf32>
    %cst_39 = arith.constant dense<0xFF800000> : vector<10xf32>
    %96 = vector.multi_reduction <maximumf>, %95, %cst_39 [1] : vector<10x10xf32> to vector<10xf32>
    %97 = vector.shape_cast %96 : vector<10xf32> to vector<10x1xf32>
    %98 = vector.broadcast %97 : vector<10x1xf32> to vector<10x10xf32>
    %99 = arith.subf %95, %98 : vector<10x10xf32>
    %100 = math.exp %99 : vector<10x10xf32>
    %cst_40 = arith.constant dense<0.000000e+00> : vector<10xf32>
    %101 = vector.multi_reduction <add>, %100, %cst_40 [1] : vector<10x10xf32> to vector<10xf32>
    %102 = vector.shape_cast %101 : vector<10xf32> to vector<10x1xf32>
    %103 = tpu.reciprocal %102 {approx = true} : vector<10x1xf32> -> vector<10x1xf32>
    %104 = vector.broadcast %103 : vector<10x1xf32> to vector<10x10xf32>
    %105 = arith.mulf %100, %104 : vector<10x10xf32>
    %cst_41 = arith.constant dense<0.000000e+00> : vector<10x128xf32>
    %106 = tpu.matmul %105, %94, %cst_41 {dimension_numbers = #tpu.dot_dimension_numbers<[1], [0], [0], [1], [0, 0, 1, 1], [], []>} : vector<10x10xf32>, vector<10x128xf32>, vector<10x128xf32> -> vector<10x128xf32>
    %107 = vector.extract_strided_slice %39 {offsets = [128, 0], sizes = [128, 32], strides = [1, 1]} : vector<256x32xf32> to vector<128x32xf32>
    %cst_42 = arith.constant dense<0.000000e+00> : vector<10x32xf32>
    %108 = tpu.matmul %106, %107, %cst_42 {dimension_numbers = #tpu.dot_dimension_numbers<[1], [0], [0], [1], [0, 0, 1, 1], [], []>} : vector<10x128xf32>, vector<128x32xf32>, vector<10x32xf32> -> vector<10x32xf32>
    %109 = arith.addf %91, %108 : vector<10x32xf32>
    %110 = vector.extract_strided_slice %35 {offsets = [20, 0], sizes = [10, 128], strides = [1, 1]} : vector<40x256xf32> to vector<10x128xf32>
    %111 = vector.extract_strided_slice %36 {offsets = [20, 0], sizes = [10, 128], strides = [1, 1]} : vector<40x256xf32> to vector<10x128xf32>
    %112 = vector.extract_strided_slice %37 {offsets = [20, 0], sizes = [10, 128], strides = [1, 1]} : vector<40x256xf32> to vector<10x128xf32>
    %cst_43 = arith.constant dense<0.000000e+00> : vector<10x10xf32>
    %113 = tpu.matmul %110, %111, %cst_43 {dimension_numbers = #tpu.dot_dimension_numbers<[1], [1], [0], [0], [0, 0, 1, 0], [], []>} : vector<10x128xf32>, vector<10x128xf32>, vector<10x10xf32> -> vector<10x10xf32>
    %cst_44 = arith.constant dense<0xFF800000> : vector<10xf32>
    %114 = vector.multi_reduction <maximumf>, %113, %cst_44 [1] : vector<10x10xf32> to vector<10xf32>
    %115 = vector.shape_cast %114 : vector<10xf32> to vector<10x1xf32>
    %116 = vector.broadcast %115 : vector<10x1xf32> to vector<10x10xf32>
    %117 = arith.subf %113, %116 : vector<10x10xf32>
    %118 = math.exp %117 : vector<10x10xf32>
    %cst_45 = arith.constant dense<0.000000e+00> : vector<10xf32>
    %119 = vector.multi_reduction <add>, %118, %cst_45 [1] : vector<10x10xf32> to vector<10xf32>
    %120 = vector.shape_cast %119 : vector<10xf32> to vector<10x1xf32>
    %121 = tpu.reciprocal %120 {approx = true} : vector<10x1xf32> -> vector<10x1xf32>
    %122 = vector.broadcast %121 : vector<10x1xf32> to vector<10x10xf32>
    %123 = arith.mulf %118, %122 : vector<10x10xf32>
    %cst_46 = arith.constant dense<0.000000e+00> : vector<10x128xf32>
    %124 = tpu.matmul %123, %112, %cst_46 {dimension_numbers = #tpu.dot_dimension_numbers<[1], [0], [0], [1], [0, 0, 1, 1], [], []>} : vector<10x10xf32>, vector<10x128xf32>, vector<10x128xf32> -> vector<10x128xf32>
    %125 = vector.extract_strided_slice %39 {offsets = [0, 0], sizes = [128, 32], strides = [1, 1]} : vector<256x32xf32> to vector<128x32xf32>
    %cst_47 = arith.constant dense<0.000000e+00> : vector<10x32xf32>
    %126 = tpu.matmul %124, %125, %cst_47 {dimension_numbers = #tpu.dot_dimension_numbers<[1], [0], [0], [1], [0, 0, 1, 1], [], []>} : vector<10x128xf32>, vector<128x32xf32>, vector<10x32xf32> -> vector<10x32xf32>
    %127 = vector.extract_strided_slice %35 {offsets = [20, 128], sizes = [10, 128], strides = [1, 1]} : vector<40x256xf32> to vector<10x128xf32>
    %128 = vector.extract_strided_slice %36 {offsets = [20, 128], sizes = [10, 128], strides = [1, 1]} : vector<40x256xf32> to vector<10x128xf32>
    %129 = vector.extract_strided_slice %37 {offsets = [20, 128], sizes = [10, 128], strides = [1, 1]} : vector<40x256xf32> to vector<10x128xf32>
    %cst_48 = arith.constant dense<0.000000e+00> : vector<10x10xf32>
    %130 = tpu.matmul %127, %128, %cst_48 {dimension_numbers = #tpu.dot_dimension_numbers<[1], [1], [0], [0], [0, 0, 1, 0], [], []>} : vector<10x128xf32>, vector<10x128xf32>, vector<10x10xf32> -> vector<10x10xf32>
    %cst_49 = arith.constant dense<0xFF800000> : vector<10xf32>
    %131 = vector.multi_reduction <maximumf>, %130, %cst_49 [1] : vector<10x10xf32> to vector<10xf32>
    %132 = vector.shape_cast %131 : vector<10xf32> to vector<10x1xf32>
    %133 = vector.broadcast %132 : vector<10x1xf32> to vector<10x10xf32>
    %134 = arith.subf %130, %133 : vector<10x10xf32>
    %135 = math.exp %134 : vector<10x10xf32>
    %cst_50 = arith.constant dense<0.000000e+00> : vector<10xf32>
    %136 = vector.multi_reduction <add>, %135, %cst_50 [1] : vector<10x10xf32> to vector<10xf32>
    %137 = vector.shape_cast %136 : vector<10xf32> to vector<10x1xf32>
    %138 = tpu.reciprocal %137 {approx = true} : vector<10x1xf32> -> vector<10x1xf32>
    %139 = vector.broadcast %138 : vector<10x1xf32> to vector<10x10xf32>
    %140 = arith.mulf %135, %139 : vector<10x10xf32>
    %cst_51 = arith.constant dense<0.000000e+00> : vector<10x128xf32>
    %141 = tpu.matmul %140, %129, %cst_51 {dimension_numbers = #tpu.dot_dimension_numbers<[1], [0], [0], [1], [0, 0, 1, 1], [], []>} : vector<10x10xf32>, vector<10x128xf32>, vector<10x128xf32> -> vector<10x128xf32>
    %142 = vector.extract_strided_slice %39 {offsets = [128, 0], sizes = [128, 32], strides = [1, 1]} : vector<256x32xf32> to vector<128x32xf32>
    %cst_52 = arith.constant dense<0.000000e+00> : vector<10x32xf32>
    %143 = tpu.matmul %141, %142, %cst_52 {dimension_numbers = #tpu.dot_dimension_numbers<[1], [0], [0], [1], [0, 0, 1, 1], [], []>} : vector<10x128xf32>, vector<128x32xf32>, vector<10x32xf32> -> vector<10x32xf32>
    %144 = arith.addf %126, %143 : vector<10x32xf32>
    %145 = vector.extract_strided_slice %35 {offsets = [30, 0], sizes = [10, 128], strides = [1, 1]} : vector<40x256xf32> to vector<10x128xf32>
    %146 = vector.extract_strided_slice %36 {offsets = [30, 0], sizes = [10, 128], strides = [1, 1]} : vector<40x256xf32> to vector<10x128xf32>
    %147 = vector.extract_strided_slice %37 {offsets = [30, 0], sizes = [10, 128], strides = [1, 1]} : vector<40x256xf32> to vector<10x128xf32>
    %cst_53 = arith.constant dense<0.000000e+00> : vector<10x10xf32>
    %148 = tpu.matmul %145, %146, %cst_53 {dimension_numbers = #tpu.dot_dimension_numbers<[1], [1], [0], [0], [0, 0, 1, 0], [], []>} : vector<10x128xf32>, vector<10x128xf32>, vector<10x10xf32> -> vector<10x10xf32>
    %cst_54 = arith.constant dense<0xFF800000> : vector<10xf32>
    %149 = vector.multi_reduction <maximumf>, %148, %cst_54 [1] : vector<10x10xf32> to vector<10xf32>
    %150 = vector.shape_cast %149 : vector<10xf32> to vector<10x1xf32>
    %151 = vector.broadcast %150 : vector<10x1xf32> to vector<10x10xf32>
    %152 = arith.subf %148, %151 : vector<10x10xf32>
    %153 = math.exp %152 : vector<10x10xf32>
    %cst_55 = arith.constant dense<0.000000e+00> : vector<10xf32>
    %154 = vector.multi_reduction <add>, %153, %cst_55 [1] : vector<10x10xf32> to vector<10xf32>
    %155 = vector.shape_cast %154 : vector<10xf32> to vector<10x1xf32>
    %156 = tpu.reciprocal %155 {approx = true} : vector<10x1xf32> -> vector<10x1xf32>
    %157 = vector.broadcast %156 : vector<10x1xf32> to vector<10x10xf32>
    %158 = arith.mulf %153, %157 : vector<10x10xf32>
    %cst_56 = arith.constant dense<0.000000e+00> : vector<10x128xf32>
    %159 = tpu.matmul %158, %147, %cst_56 {dimension_numbers = #tpu.dot_dimension_numbers<[1], [0], [0], [1], [0, 0, 1, 1], [], []>} : vector<10x10xf32>, vector<10x128xf32>, vector<10x128xf32> -> vector<10x128xf32>
    %160 = vector.extract_strided_slice %39 {offsets = [0, 0], sizes = [128, 32], strides = [1, 1]} : vector<256x32xf32> to vector<128x32xf32>
    %cst_57 = arith.constant dense<0.000000e+00> : vector<10x32xf32>
    %161 = tpu.matmul %159, %160, %cst_57 {dimension_numbers = #tpu.dot_dimension_numbers<[1], [0], [0], [1], [0, 0, 1, 1], [], []>} : vector<10x128xf32>, vector<128x32xf32>, vector<10x32xf32> -> vector<10x32xf32>
    %162 = vector.extract_strided_slice %35 {offsets = [30, 128], sizes = [10, 128], strides = [1, 1]} : vector<40x256xf32> to vector<10x128xf32>
    %163 = vector.extract_strided_slice %36 {offsets = [30, 128], sizes = [10, 128], strides = [1, 1]} : vector<40x256xf32> to vector<10x128xf32>
    %164 = vector.extract_strided_slice %37 {offsets = [30, 128], sizes = [10, 128], strides = [1, 1]} : vector<40x256xf32> to vector<10x128xf32>
    %cst_58 = arith.constant dense<0.000000e+00> : vector<10x10xf32>
    %165 = tpu.matmul %162, %163, %cst_58 {dimension_numbers = #tpu.dot_dimension_numbers<[1], [1], [0], [0], [0, 0, 1, 0], [], []>} : vector<10x128xf32>, vector<10x128xf32>, vector<10x10xf32> -> vector<10x10xf32>
    %cst_59 = arith.constant dense<0xFF800000> : vector<10xf32>
    %166 = vector.multi_reduction <maximumf>, %165, %cst_59 [1] : vector<10x10xf32> to vector<10xf32>
    %167 = vector.shape_cast %166 : vector<10xf32> to vector<10x1xf32>
    %168 = vector.broadcast %167 : vector<10x1xf32> to vector<10x10xf32>
    %169 = arith.subf %165, %168 : vector<10x10xf32>
    %170 = math.exp %169 : vector<10x10xf32>
    %cst_60 = arith.constant dense<0.000000e+00> : vector<10xf32>
    %171 = vector.multi_reduction <add>, %170, %cst_60 [1] : vector<10x10xf32> to vector<10xf32>
    %172 = vector.shape_cast %171 : vector<10xf32> to vector<10x1xf32>
    %173 = tpu.reciprocal %172 {approx = true} : vector<10x1xf32> -> vector<10x1xf32>
    %174 = vector.broadcast %173 : vector<10x1xf32> to vector<10x10xf32>
    %175 = arith.mulf %170, %174 : vector<10x10xf32>
    %cst_61 = arith.constant dense<0.000000e+00> : vector<10x128xf32>
    %176 = tpu.matmul %175, %164, %cst_61 {dimension_numbers = #tpu.dot_dimension_numbers<[1], [0], [0], [1], [0, 0, 1, 1], [], []>} : vector<10x10xf32>, vector<10x128xf32>, vector<10x128xf32> -> vector<10x128xf32>
    %177 = vector.extract_strided_slice %39 {offsets = [128, 0], sizes = [128, 32], strides = [1, 1]} : vector<256x32xf32> to vector<128x32xf32>
    %cst_62 = arith.constant dense<0.000000e+00> : vector<10x32xf32>
    %178 = tpu.matmul %176, %177, %cst_62 {dimension_numbers = #tpu.dot_dimension_numbers<[1], [0], [0], [1], [0, 0, 1, 1], [], []>} : vector<10x128xf32>, vector<128x32xf32>, vector<10x32xf32> -> vector<10x32xf32>
    %179 = arith.addf %161, %178 : vector<10x32xf32>
    %180 = tpu.concatenate %74, %109, %144, %179 in 0 : vector<10x32xf32>, vector<10x32xf32>, vector<10x32xf32>, vector<10x32xf32> -> vector<40x32xf32>
    %181 = arith.addf %1, %180 : vector<40x32xf32>
    %c0_63 = arith.constant 0 : index
    %c0_64 = arith.constant 0 : index
    %c0_65 = arith.constant 0 : index
    %182 = vector.load %arg7[%c0_63, %c0_64, %c0_65] : memref<1x1x32xf32, #tpu.memory_space<vmem>>, vector<1x1x32xf32>
    %183 = vector.shape_cast %182 : vector<1x1x32xf32> to vector<1x32xf32>
    %184 = vector.broadcast %183 : vector<1x32xf32> to vector<40x32xf32>
    %185 = arith.addf %181, %184 : vector<40x32xf32>
    %c0_66 = arith.constant 0 : index
    %c0_67 = arith.constant 0 : index
    %c0_68 = arith.constant 0 : index
    %186 = vector.load %arg8[%c0_66, %c0_67, %c0_68] : memref<1x1x32xf32, #tpu.memory_space<vmem>>, vector<1x1x32xf32>
    %187 = vector.shape_cast %186 : vector<1x1x32xf32> to vector<1x32xf32>
    %c0_69 = arith.constant 0 : index
    %c0_70 = arith.constant 0 : index
    %c0_71 = arith.constant 0 : index
    %188 = vector.load %arg9[%c0_69, %c0_70, %c0_71] : memref<1x1x32xf32, #tpu.memory_space<vmem>>, vector<1x1x32xf32>
    %189 = vector.shape_cast %188 : vector<1x1x32xf32> to vector<1x32xf32>
    %cst_72 = arith.constant dense<0.000000e+00> : vector<40xf32>
    %190 = vector.multi_reduction <add>, %185, %cst_72 [1] : vector<40x32xf32> to vector<40xf32>
    %191 = vector.shape_cast %190 : vector<40xf32> to vector<40x1xf32>
    %cst_73 = arith.constant 3.200000e+01 : f32
    %192 = vector.broadcast %cst_73 : f32 to vector<40x1xf32>
    %193 = arith.divf %191, %192 : vector<40x1xf32>
    %194 = vector.broadcast %193 : vector<40x1xf32> to vector<40x32xf32>
    %195 = arith.subf %185, %194 : vector<40x32xf32>
    %196 = arith.mulf %195, %195 : vector<40x32xf32>
    %cst_74 = arith.constant dense<0.000000e+00> : vector<40xf32>
    %197 = vector.multi_reduction <add>, %196, %cst_74 [1] : vector<40x32xf32> to vector<40xf32>
    %198 = vector.shape_cast %197 : vector<40xf32> to vector<40x1xf32>
    %cst_75 = arith.constant 3.200000e+01 : f32
    %199 = vector.broadcast %cst_75 : f32 to vector<40x1xf32>
    %200 = arith.divf %198, %199 : vector<40x1xf32>
    %cst_76 = arith.constant 9.99999974E-6 : f32
    %201 = vector.broadcast %cst_76 : f32 to vector<40x1xf32>
    %202 = arith.addf %200, %201 : vector<40x1xf32>
    %203 = math.rsqrt %202 : vector<40x1xf32>
    %204 = vector.broadcast %203 : vector<40x1xf32> to vector<40x32xf32>
    %205 = arith.mulf %195, %204 : vector<40x32xf32>
    %206 = vector.broadcast %187 : vector<1x32xf32> to vector<40x32xf32>
    %207 = arith.mulf %205, %206 : vector<40x32xf32>
    %208 = vector.broadcast %189 : vector<1x32xf32> to vector<40x32xf32>
    %209 = arith.addf %207, %208 : vector<40x32xf32>
    %c0_77 = arith.constant 0 : index
    %c0_78 = arith.constant 0 : index
    %c0_79 = arith.constant 0 : index
    %210 = vector.load %arg10[%c0_77, %c0_78, %c0_79] : memref<1x32x128xf32, #tpu.memory_space<vmem>>, vector<1x32x128xf32>
    %211 = vector.shape_cast %210 : vector<1x32x128xf32> to vector<32x128xf32>
    %cst_80 = arith.constant dense<0.000000e+00> : vector<40x128xf32>
    %212 = tpu.matmul %209, %211, %cst_80 {dimension_numbers = #tpu.dot_dimension_numbers<[1], [0], [0], [1], [0, 0, 1, 1], [], []>} : vector<40x32xf32>, vector<32x128xf32>, vector<40x128xf32> -> vector<40x128xf32>
    %c0_81 = arith.constant 0 : index
    %c0_82 = arith.constant 0 : index
    %c0_83 = arith.constant 0 : index
    %213 = vector.load %arg11[%c0_81, %c0_82, %c0_83] : memref<1x1x128xf32, #tpu.memory_space<vmem>>, vector<1x1x128xf32>
    %214 = vector.shape_cast %213 : vector<1x1x128xf32> to vector<1x128xf32>
    %215 = vector.broadcast %214 : vector<1x128xf32> to vector<40x128xf32>
    %216 = arith.addf %212, %215 : vector<40x128xf32>
    %cst_84 = arith.constant 5.000000e-01 : f32
    %217 = vector.broadcast %cst_84 : f32 to vector<40x128xf32>
    %218 = arith.mulf %217, %216 : vector<40x128xf32>
    %cst_85 = arith.constant 0.707106769 : f32
    %219 = vector.broadcast %cst_85 : f32 to vector<40x128xf32>
    %220 = arith.mulf %216, %219 : vector<40x128xf32>
    %221 = math.absf %220 : vector<40x128xf32>
    %cst_86 = arith.constant 0.327591091 : f32
    %222 = vector.broadcast %cst_86 : f32 to vector<40x128xf32>
    %223 = arith.mulf %222, %221 : vector<40x128xf32>
    %cst_87 = arith.constant 1.000000e+00 : f32
    %224 = vector.broadcast %cst_87 : f32 to vector<40x128xf32>
    %225 = arith.addf %224, %223 : vector<40x128xf32>
    %226 = tpu.reciprocal %225 {approx = true} : vector<40x128xf32> -> vector<40x128xf32>
    %cst_88 = arith.constant 1.06140542 : f32
    %227 = vector.broadcast %cst_88 : f32 to vector<40x128xf32>
    %228 = arith.mulf %227, %226 : vector<40x128xf32>
    %cst_89 = arith.constant -1.45315206 : f32
    %229 = vector.broadcast %cst_89 : f32 to vector<40x128xf32>
    %230 = arith.addf %228, %229 : vector<40x128xf32>
    %231 = arith.mulf %230, %226 : vector<40x128xf32>
    %cst_90 = arith.constant 1.42141378 : f32
    %232 = vector.broadcast %cst_90 : f32 to vector<40x128xf32>
    %233 = arith.addf %231, %232 : vector<40x128xf32>
    %234 = arith.mulf %233, %226 : vector<40x128xf32>
    %cst_91 = arith.constant -0.284496725 : f32
    %235 = vector.broadcast %cst_91 : f32 to vector<40x128xf32>
    %236 = arith.addf %234, %235 : vector<40x128xf32>
    %237 = arith.mulf %236, %226 : vector<40x128xf32>
    %cst_92 = arith.constant 0.254829586 : f32
    %238 = vector.broadcast %cst_92 : f32 to vector<40x128xf32>
    %239 = arith.addf %237, %238 : vector<40x128xf32>
    %240 = arith.mulf %239, %226 : vector<40x128xf32>
    %cst_93 = arith.constant 0.000000e+00 : f32
    %241 = vector.broadcast %cst_93 : f32 to vector<40x128xf32>
    %242 = arith.subf %241, %221 : vector<40x128xf32>
    %243 = arith.mulf %242, %221 : vector<40x128xf32>
    %244 = math.exp %243 : vector<40x128xf32>
    %245 = arith.mulf %240, %244 : vector<40x128xf32>
    %cst_94 = arith.constant 1.000000e+00 : f32
    %246 = vector.broadcast %cst_94 : f32 to vector<40x128xf32>
    %247 = arith.subf %246, %245 : vector<40x128xf32>
    %cst_95 = arith.constant 0.000000e+00 : f32
    %248 = vector.broadcast %cst_95 : f32 to vector<40x128xf32>
    %249 = arith.cmpf oge, %220, %248 : vector<40x128xf32>
    %cst_96 = arith.constant 0.000000e+00 : f32
    %250 = vector.broadcast %cst_96 : f32 to vector<40x128xf32>
    %251 = arith.subf %250, %247 : vector<40x128xf32>
    %252 = arith.select %249, %247, %251 : vector<40x128xi1>, vector<40x128xf32>
    %cst_97 = arith.constant 1.000000e+00 : f32
    %253 = vector.broadcast %cst_97 : f32 to vector<40x128xf32>
    %254 = arith.addf %253, %252 : vector<40x128xf32>
    %255 = arith.mulf %218, %254 : vector<40x128xf32>
    %c0_98 = arith.constant 0 : index
    %c0_99 = arith.constant 0 : index
    %c0_100 = arith.constant 0 : index
    %256 = vector.load %arg12[%c0_98, %c0_99, %c0_100] : memref<1x128x32xf32, #tpu.memory_space<vmem>>, vector<1x128x32xf32>
    %257 = vector.shape_cast %256 : vector<1x128x32xf32> to vector<128x32xf32>
    %cst_101 = arith.constant dense<0.000000e+00> : vector<40x32xf32>
    %258 = tpu.matmul %255, %257, %cst_101 {dimension_numbers = #tpu.dot_dimension_numbers<[1], [0], [0], [1], [0, 0, 1, 1], [], []>} : vector<40x128xf32>, vector<128x32xf32>, vector<40x32xf32> -> vector<40x32xf32>
    %c0_102 = arith.constant 0 : index
    %c0_103 = arith.constant 0 : index
    %c0_104 = arith.constant 0 : index
    %259 = vector.load %arg13[%c0_102, %c0_103, %c0_104] : memref<1x1x32xf32, #tpu.memory_space<vmem>>, vector<1x1x32xf32>
    %260 = vector.shape_cast %259 : vector<1x1x32xf32> to vector<1x32xf32>
    %261 = vector.broadcast %260 : vector<1x32xf32> to vector<40x32xf32>
    %262 = arith.addf %258, %261 : vector<40x32xf32>
    %263 = arith.addf %185, %262 : vector<40x32xf32>
    %c0_105 = arith.constant 0 : index
    %c0_106 = arith.constant 0 : index
    %c0_107 = arith.constant 0 : index
    %264 = vector.load %arg18[%c0_105, %c0_106, %c0_107] : memref<1x40x32xf32, #tpu.memory_space<vmem>>, vector<1x40x32xf32>
    %265 = vector.shape_cast %264 : vector<1x40x32xf32> to vector<40x32xf32>
    %266 = vector.shape_cast %263 : vector<40x32xf32> to vector<1x40x32xf32>
    tpu.vector_store %arg18[%c0_105, %c0_106, %c0_107], %266 {strides = array<i32>} : memref<1x40x32xf32, #tpu.memory_space<vmem>>, vector<1x40x32xf32>,
    %c0_108 = arith.constant 0 : index
    %c0_109 = arith.constant 0 : index
    %c0_110 = arith.constant 0 : index
    %267 = vector.load %arg14[%c0_108, %c0_109, %c0_110] : memref<1x1x32xf32, #tpu.memory_space<vmem>>, vector<1x1x32xf32>
    %268 = vector.shape_cast %267 : vector<1x1x32xf32> to vector<1x32xf32>
    %c0_111 = arith.constant 0 : index
    %c0_112 = arith.constant 0 : index
    %c0_113 = arith.constant 0 : index
    %269 = vector.load %arg15[%c0_111, %c0_112, %c0_113] : memref<1x1x32xf32, #tpu.memory_space<vmem>>, vector<1x1x32xf32>
    %270 = vector.shape_cast %269 : vector<1x1x32xf32> to vector<1x32xf32>
    %cst_114 = arith.constant dense<0.000000e+00> : vector<40xf32>
    %271 = vector.multi_reduction <add>, %263, %cst_114 [1] : vector<40x32xf32> to vector<40xf32>
    %272 = vector.shape_cast %271 : vector<40xf32> to vector<40x1xf32>
    %cst_115 = arith.constant 3.200000e+01 : f32
    %273 = vector.broadcast %cst_115 : f32 to vector<40x1xf32>
    %274 = arith.divf %272, %273 : vector<40x1xf32>
    %275 = vector.broadcast %274 : vector<40x1xf32> to vector<40x32xf32>
    %276 = arith.subf %263, %275 : vector<40x32xf32>
    %277 = arith.mulf %276, %276 : vector<40x32xf32>
    %cst_116 = arith.constant dense<0.000000e+00> : vector<40xf32>
    %278 = vector.multi_reduction <add>, %277, %cst_116 [1] : vector<40x32xf32> to vector<40xf32>
    %279 = vector.shape_cast %278 : vector<40xf32> to vector<40x1xf32>
    %cst_117 = arith.constant 3.200000e+01 : f32
    %280 = vector.broadcast %cst_117 : f32 to vector<40x1xf32>
    %281 = arith.divf %279, %280 : vector<40x1xf32>
    %cst_118 = arith.constant 9.99999974E-6 : f32
    %282 = vector.broadcast %cst_118 : f32 to vector<40x1xf32>
    %283 = arith.addf %281, %282 : vector<40x1xf32>
    %284 = math.rsqrt %283 : vector<40x1xf32>
    %285 = vector.broadcast %284 : vector<40x1xf32> to vector<40x32xf32>
    %286 = arith.mulf %276, %285 : vector<40x32xf32>
    %287 = vector.broadcast %268 : vector<1x32xf32> to vector<40x32xf32>
    %288 = arith.mulf %286, %287 : vector<40x32xf32>
    %289 = vector.broadcast %270 : vector<1x32xf32> to vector<40x32xf32>
    %290 = arith.addf %288, %289 : vector<40x32xf32>
    %c0_119 = arith.constant 0 : index
    %c0_120 = arith.constant 0 : index
    %c0_121 = arith.constant 0 : index
    %291 = vector.load %arg16[%c0_119, %c0_120, %c0_121] : memref<1x32x32xf32, #tpu.memory_space<vmem>>, vector<1x32x32xf32>
    %292 = vector.shape_cast %291 : vector<1x32x32xf32> to vector<32x32xf32>
    %cst_122 = arith.constant dense<0.000000e+00> : vector<40x32xf32>
    %293 = tpu.matmul %290, %292, %cst_122 {dimension_numbers = #tpu.dot_dimension_numbers<[1], [0], [0], [1], [0, 0, 1, 1], [], []>} : vector<40x32xf32>, vector<32x32xf32>, vector<40x32xf32> -> vector<40x32xf32>
    %c0_123 = arith.constant 0 : index
    %c0_124 = arith.constant 0 : index
    %c0_125 = arith.constant 0 : index
    %294 = vector.load %arg17[%c0_123, %c0_124, %c0_125] : memref<1x1x32xf32, #tpu.memory_space<vmem>>, vector<1x1x32xf32>
    %295 = vector.shape_cast %294 : vector<1x1x32xf32> to vector<1x32xf32>
    %296 = vector.broadcast %295 : vector<1x32xf32> to vector<40x32xf32>
    %297 = arith.addf %293, %296 : vector<40x32xf32>
    %c0_126 = arith.constant 0 : index
    %c0_127 = arith.constant 0 : index
    %c0_128 = arith.constant 0 : index
    %298 = vector.load %arg19[%c0_126, %c0_127, %c0_128] : memref<1x40x32xf32, #tpu.memory_space<vmem>>, vector<1x40x32xf32>
    %299 = vector.shape_cast %298 : vector<1x40x32xf32> to vector<40x32xf32>
    %300 = vector.shape_cast %297 : vector<40x32xf32> to vector<1x40x32xf32>
    tpu.vector_store %arg19[%c0_126, %c0_127, %c0_128], %300 {strides = array<i32>} : memref<1x40x32xf32, #tpu.memory_space<vmem>>, vector<1x40x32xf32>,
    return
  }
  func.func @transform_0(%arg0: i32) -> (i32, i32, i32) {
    %c0_i32 = arith.constant 0 : i32
    %c0_i32_0 = arith.constant 0 : i32
    %c0_i32_1 = arith.constant 0 : i32
    return %arg0, %c0_i32, %c0_i32_0 : i32, i32, i32
  }
  func.func @transform_1(%arg0: i32) -> (i32, i32, i32) {
    %c0_i32 = arith.constant 0 : i32
    %c0_i32_0 = arith.constant 0 : i32
    %c0_i32_1 = arith.constant 0 : i32
    %c0_i32_2 = arith.constant 0 : i32
    return %c0_i32, %c0_i32_0, %c0_i32_1 : i32, i32, i32
  }
  func.func @transform_2(%arg0: i32) -> (i32, i32, i32) {
    %c0_i32 = arith.constant 0 : i32
    %c0_i32_0 = arith.constant 0 : i32
    %c0_i32_1 = arith.constant 0 : i32
    %c0_i32_2 = arith.constant 0 : i32
    return %c0_i32, %c0_i32_0, %c0_i32_1 : i32, i32, i32
  }
  func.func @transform_3(%arg0: i32) -> (i32, i32, i32) {
    %c0_i32 = arith.constant 0 : i32
    %c0_i32_0 = arith.constant 0 : i32
    %c0_i32_1 = arith.constant 0 : i32
    %c0_i32_2 = arith.constant 0 : i32
    return %c0_i32, %c0_i32_0, %c0_i32_1 : i32, i32, i32
  }
  func.func @transform_4(%arg0: i32) -> (i32, i32, i32) {
    %c0_i32 = arith.constant 0 : i32
    %c0_i32_0 = arith.constant 0 : i32
    %c0_i32_1 = arith.constant 0 : i32
    %c0_i32_2 = arith.constant 0 : i32
    return %c0_i32, %c0_i32_0, %c0_i32_1 : i32, i32, i32
  }
  func.func @transform_5(%arg0: i32) -> (i32, i32, i32) {
    %c0_i32 = arith.constant 0 : i32
    %c0_i32_0 = arith.constant 0 : i32
    %c0_i32_1 = arith.constant 0 : i32
    %c0_i32_2 = arith.constant 0 : i32
    return %c0_i32, %c0_i32_0, %c0_i32_1 : i32, i32, i32
  }
  func.func @transform_6(%arg0: i32) -> (i32, i32, i32) {
    %c0_i32 = arith.constant 0 : i32
    %c0_i32_0 = arith.constant 0 : i32
    %c0_i32_1 = arith.constant 0 : i32
    %c0_i32_2 = arith.constant 0 : i32
    return %c0_i32, %c0_i32_0, %c0_i32_1 : i32, i32, i32
  }
  func.func @transform_7(%arg0: i32) -> (i32, i32, i32) {
    %c0_i32 = arith.constant 0 : i32
    %c0_i32_0 = arith.constant 0 : i32
    %c0_i32_1 = arith.constant 0 : i32
    %c0_i32_2 = arith.constant 0 : i32
    return %c0_i32, %c0_i32_0, %c0_i32_1 : i32, i32, i32
  }
  func.func @transform_8(%arg0: i32) -> (i32, i32, i32) {
    %c0_i32 = arith.constant 0 : i32
    %c0_i32_0 = arith.constant 0 : i32
    %c0_i32_1 = arith.constant 0 : i32
    %c0_i32_2 = arith.constant 0 : i32
    return %c0_i32, %c0_i32_0, %c0_i32_1 : i32, i32, i32
  }
  func.func @transform_9(%arg0: i32) -> (i32, i32, i32) {
    %c0_i32 = arith.constant 0 : i32
    %c0_i32_0 = arith.constant 0 : i32
    %c0_i32_1 = arith.constant 0 : i32
    %c0_i32_2 = arith.constant 0 : i32
    return %c0_i32, %c0_i32_0, %c0_i32_1 : i32, i32, i32
  }
  func.func @transform_10(%arg0: i32) -> (i32, i32, i32) {
    %c0_i32 = arith.constant 0 : i32
    %c0_i32_0 = arith.constant 0 : i32
    %c0_i32_1 = arith.constant 0 : i32
    %c0_i32_2 = arith.constant 0 : i32
    return %c0_i32, %c0_i32_0, %c0_i32_1 : i32, i32, i32
  }
  func.func @transform_11(%arg0: i32) -> (i32, i32, i32) {
    %c0_i32 = arith.constant 0 : i32
    %c0_i32_0 = arith.constant 0 : i32
    %c0_i32_1 = arith.constant 0 : i32
    %c0_i32_2 = arith.constant 0 : i32
    return %c0_i32, %c0_i32_0, %c0_i32_1 : i32, i32, i32
  }
  func.func @transform_12(%arg0: i32) -> (i32, i32, i32) {
    %c0_i32 = arith.constant 0 : i32
    %c0_i32_0 = arith.constant 0 : i32
    %c0_i32_1 = arith.constant 0 : i32
    %c0_i32_2 = arith.constant 0 : i32
    return %c0_i32, %c0_i32_0, %c0_i32_1 : i32, i32, i32
  }
  func.func @transform_13(%arg0: i32) -> (i32, i32, i32) {
    %c0_i32 = arith.constant 0 : i32
    %c0_i32_0 = arith.constant 0 : i32
    %c0_i32_1 = arith.constant 0 : i32
    %c0_i32_2 = arith.constant 0 : i32
    return %c0_i32, %c0_i32_0, %c0_i32_1 : i32, i32, i32
  }
  func.func @transform_14(%arg0: i32) -> (i32, i32, i32) {
    %c0_i32 = arith.constant 0 : i32
    %c0_i32_0 = arith.constant 0 : i32
    %c0_i32_1 = arith.constant 0 : i32
    %c0_i32_2 = arith.constant 0 : i32
    return %c0_i32, %c0_i32_0, %c0_i32_1 : i32, i32, i32
  }
  func.func @transform_15(%arg0: i32) -> (i32, i32, i32) {
    %c0_i32 = arith.constant 0 : i32
    %c0_i32_0 = arith.constant 0 : i32
    %c0_i32_1 = arith.constant 0 : i32
    %c0_i32_2 = arith.constant 0 : i32
    return %c0_i32, %c0_i32_0, %c0_i32_1 : i32, i32, i32
  }
  func.func @transform_16(%arg0: i32) -> (i32, i32, i32) {
    %c0_i32 = arith.constant 0 : i32
    %c0_i32_0 = arith.constant 0 : i32
    %c0_i32_1 = arith.constant 0 : i32
    %c0_i32_2 = arith.constant 0 : i32
    return %c0_i32, %c0_i32_0, %c0_i32_1 : i32, i32, i32
  }
  func.func @transform_17(%arg0: i32) -> (i32, i32, i32) {
    %c0_i32 = arith.constant 0 : i32
    %c0_i32_0 = arith.constant 0 : i32
    %c0_i32_1 = arith.constant 0 : i32
    return %arg0, %c0_i32, %c0_i32_0 : i32, i32, i32
  }
  func.func @transform_18(%arg0: i32) -> (i32, i32, i32) {
    %c0_i32 = arith.constant 0 : i32
    %c0_i32_0 = arith.constant 0 : i32
    %c0_i32_1 = arith.constant 0 : i32
    return %arg0, %c0_i32, %c0_i32_0 : i32, i32, i32
  }
}

</mosaic_0001>

<bundles_post_ra>
// kernel: st_mem_forward.3
= control target key start
LH: loop header
LB: loop body
LE: loop exit
PB: predicated region body
PF: predicated region fallthrough
CT: control target
= control target key end

     0   :  { %vm36_vm0 = vcmask 261120   ;;  %v598_v16 = vmov 32.0   ;;  %s996_s0 = inlined_call_operand.vmem [shape: f32[64,32], index: 0, kind: input, shape index: {}]   ;;  %s997_s1 = inlined_call_operand.vmem [shape: f32[1,32], index: 1, kind: input, shape index: {}]   ;;  %s998_s2 = inlined_call_operand.vmem [shape: f32[1,32], index: 2, kind: input, shape index: {}]   ;;  %s999_s4 = inlined_call_operand.vmem [shape: f32[1,64], index: 4, kind: input, shape index: {}]   ;;  %s1000_s3 = inlined_call_operand.vmem [shape: f32[32,64], index: 3, kind: input, shape index: {}]   ;;  %s1001_s5 = inlined_call_operand.vmem [shape: f32[1,64], index: 5, kind: input, shape index: {}]   ;;  %s1002_s6 = inlined_call_operand.vmem [shape: f32[1,64], index: 6, kind: input, shape index: {}]   ;;  %s1003_s7 = inlined_call_operand.vmem [shape: f32[64,64], index: 7, kind: output, shape index: {}]  }
   0x1   :  { %v31_v0 = vld [vmem:[%s996_s0 + $0x28] sm:$0xff]  ;;  %v30_v1 = vld [vmem:[%s996_s0 + $0x20] sm:$0xff]  ;;  %v33_v6 = vld [vmem:[%s996_s0 + $0x38] sm:$0xff]  ;;  %562 = vrcp.f32 %v598_v16 }
   0x2   :  { %v26_v2 = vld [vmem:[%s996_s0] sm:$0xff]  ;;  %v52_v3 = vsel %vm36_vm0, %v31_v0, 0.0  ;;  %v49_v4 = vsel %vm36_vm0, %v30_v1, 0.0  ;;  %v32_v7 = vld [vmem:[%s996_s0 + $0x30] sm:$0xff]  ;;  %v58_v9 = vsel %vm36_vm0, %v33_v6, 0.0  ;;  %v27_v12 = vld [vmem:[%s996_s0 + $0x8] sm:$0xff] }
   0x3   :  { %v37_v5 = vsel %vm36_vm0, %v26_v2, 0.0  ;;  %53 = vadd.xlane.f32.xlu2 %v52_v3  ;;  %50 = vadd.xlane.f32.xlu0 %v49_v4  ;;  %v28_v8 = vld [vmem:[%s996_s0 + $0x10] sm:$0xff]  ;;  %v55_v10 = vsel %vm36_vm0, %v32_v7, 0.0  ;;  %v29_v13 = vld [vmem:[%s996_s0 + $0x18] sm:$0xff]  ;;  %v40_v14 = vsel %vm36_vm0, %v27_v12, 0.0 }
   0x4   :  { %38 = vadd.xlane.f32.xlu1 %v37_v5  ;;  %v43_v11 = vsel %vm36_vm0, %v28_v8, 0.0  ;;  %v46_v15 = vsel %vm36_vm0, %v29_v13, 0.0  ;;  %v245_v63 = vld [vmem:[%s1000_s3 + $0x18] sm:$0xff] }
   0x5   :  { %286 = vmatpush.msra.mxu0 %v245_v63  ;;  %544 = vmatpush.msra.mxu2 %v245_v63 }
   0x6   :  { %543 = vmatpush.msra.mxu1 %v245_v63  ;;  %545 = vmatpush.msra.mxu3 %v245_v63  ;;  %v782_v63 = vld [vmem:[%s998_s2] ss:$0 sm:$0xff] }
   0x7   :  { %v563_v17 = vpop.eup %562 }
   0x8   :  { %v62_v18 = vmul.f32 32.0, %v563_v17  ;;  %vm66_vm1 = vweird.f32 %v563_v17 }
   0xa   :  { %v63_v19 = vsub.f32 1.0, %v62_v18 }
   0xb   :  { %59 = vadd.xlane.f32.xlu2 %v58_v9  ;;  %56 = vadd.xlane.f32.xlu0 %v55_v10 }
   0xc   :  { %44 = vadd.xlane.f32.xlu1 %v43_v11  ;;  %v64_v20 = vmul.f32 %v563_v17, %v63_v19 }
   0xe   :  { %v65_v21 = vadd.f32 %v563_v17, %v64_v20 }
  0x10   :  { %v672_v22 = vsel %vm66_vm1, %v563_v17, %v65_v21 }
  0x13   :  { %41 = vadd.xlane.f32.xlu0 %v40_v14 }
  0x14   :  { %47 = vadd.xlane.f32.xlu1 %v46_v15 }
  0x76   :  { %v54_v23 = vpop.xlane.xlu2 %53  ;;  %v51_v24 = vpop.xlane.xlu0 %50 }
  0x77   :  { %v72_v25 = vmul.f32 %v672_v22, %v51_v24  ;;  %v39_v26 = vpop.xlane.xlu1 %38  ;;  %v73_v36 = vmul.f32 %v672_v22, %v54_v23 }
  0x78   :  { %v68_v27 = vmul.f32 %v672_v22, %v39_v26 }
  0x79   :  { %v676_v28 = vsub.f32 %v30_v1, %v72_v25  ;;  %v696_v44 = vsub.f32 %v31_v0, %v73_v36  ;;  %v244_v0 = vld [vmem:[%s1000_s3 + $0x10] sm:$0xff]  ;;  %v243_v1 = vld [vmem:[%s1000_s3 + $0x8] sm:$0xff] }
  0x7a   :  { %v678_v29 = vsub.f32 %v26_v2, %v68_v27  ;;  %287 = vmatpush.msra.mxu0 %v244_v0  ;;  %547 = vmatpush.msra.mxu2 %v244_v0  ;;  %v242_v2 = vld [vmem:[%s1000_s3] sm:$0xff] }
  0x7b   :  { %v88_v30 = vmul.f32 %v676_v28, %v676_v28  ;;  %v89_v53 = vmul.f32 %v696_v44, %v696_v44  ;;  %546 = vmatpush.msra.mxu1 %v244_v0  ;;  %548 = vmatpush.msra.mxu3 %v244_v0 }
  0x7c   :  { %v84_v31 = vmul.f32 %v678_v29, %v678_v29  ;;  %288 = vmatpush.msra.mxu0 %v243_v1  ;;  %550 = vmatpush.msra.mxu2 %v243_v1 }
  0x7d   :  { %v104_v32 = vsel %vm36_vm0, %v88_v30, 0.0  ;;  %v107_v57 = vsel %vm36_vm0, %v89_v53, 0.0  ;;  %549 = vmatpush.msra.mxu1 %v243_v1  ;;  %551 = vmatpush.msra.mxu3 %v243_v1 }
  0x7e   :  { %v60_v33 = vpop.xlane.xlu2 %59  ;;  %105 = vadd.xlane.f32.xlu2 %v104_v32  ;;  %v57_v34 = vpop.xlane.xlu0 %56  ;;  %v92_v35 = vsel %vm36_vm0, %v84_v31, 0.0  ;;  %289 = vmatpush.msra.mxu0 %v242_v2 }
  0x7f   :  { %v75_v37 = vmul.f32 %v672_v22, %v60_v33  ;;  %v74_v38 = vmul.f32 %v672_v22, %v57_v34  ;;  %93 = vadd.xlane.f32.xlu1 %v92_v35  ;;  %v45_v39 = vpop.xlane.xlu1 %44  ;;  %553 = vmatpush.msra.mxu2 %v242_v2 }
  0x80   :  { %v70_v40 = vmul.f32 %v672_v22, %v45_v39  ;;  %552 = vmatpush.msra.mxu1 %v242_v2  ;;  %554 = vmatpush.msra.mxu3 %v242_v2 }
  0x81   :  { %v690_v41 = vsub.f32 %v33_v6, %v75_v37  ;;  %v692_v42 = vsub.f32 %v32_v7, %v74_v38 }
  0x82   :  { %v694_v43 = vsub.f32 %v28_v8, %v70_v40 }
  0x83   :  { %v90_v45 = vmul.f32 %v692_v42, %v692_v42  ;;  %v91_v46 = vmul.f32 %v690_v41, %v690_v41 }
  0x84   :  { %v86_v47 = vmul.f32 %v694_v43, %v694_v43 }
  0x85   :  { %v110_v48 = vsel %vm36_vm0, %v90_v45, 0.0  ;;  %v113_v49 = vsel %vm36_vm0, %v91_v46, 0.0 }
  0x86   :  { %111 = vadd.xlane.f32.xlu0 %v110_v48  ;;  %v42_v50 = vpop.xlane.xlu0 %41  ;;  %v98_v51 = vsel %vm36_vm0, %v86_v47, 0.0 }
  0x87   :  { %v69_v52 = vmul.f32 %v672_v22, %v42_v50  ;;  %114 = vadd.xlane.f32.xlu1 %v113_v49  ;;  %99 = vadd.xlane.f32.xlu2 %v98_v51  ;;  %v48_v54 = vpop.xlane.xlu1 %47 }
  0x88   :  { %v71_v55 = vmul.f32 %v672_v22, %v48_v54 }
  0x89   :  { %v711_v56 = vsub.f32 %v27_v12, %v69_v52  ;;  %v771_v52 = vld [vmem:[%s997_s1] ss:$0 sm:$0xff] }
  0x8a   :  { %v716_v59 = vsub.f32 %v29_v13, %v71_v55 }
  0x8b   :  { %v85_v58 = vmul.f32 %v711_v56, %v711_v56 }
  0x8c   :  { %v87_v61 = vmul.f32 %v716_v59, %v716_v59 }
  0x8d   :  { %v95_v60 = vsel %vm36_vm0, %v85_v58, 0.0 }
  0x8e   :  { %108 = vadd.xlane.f32.xlu0 %v107_v57  ;;  %v101_v62 = vsel %vm36_vm0, %v87_v61, 0.0 }
  0x8f   :  { %96 = vadd.xlane.f32.xlu2 %v95_v60 }
  0x96   :  { %102 = vadd.xlane.f32.xlu0 %v101_v62 }
  0xf1   :  { %v106_v3 = vpop.xlane.xlu2 %105 }
  0xf2   :  { %v120_v4 = vmul.f32 %v106_v3, %v672_v22  ;;  %v94_v5 = vpop.xlane.xlu1 %93 }
  0xf3   :  { %v116_v6 = vmul.f32 %v94_v5, %v672_v22 }
  0xf4   :  { %v128_v7 = vadd.f32 1e-05, %v120_v4 }
  0xf5   :  { %v124_v8 = vadd.f32 1e-05, %v116_v6 }
  0xf6   :  { %564 = vrsqrt.f32 %v128_v7  ;;  %vm178_vm5 = vweird.f32 %v128_v7 }
  0xf7   :  { %566 = vrsqrt.f32 %v124_v8  ;;  %vm138_vm3 = vweird.f32 %v124_v8 }
  0xf9   :  { %v112_v9 = vpop.xlane.xlu0 %111 }
  0xfa   :  { %v122_v10 = vmul.f32 %v112_v9, %v672_v22  ;;  %v100_v11 = vpop.xlane.xlu2 %99  ;;  %v115_v12 = vpop.xlane.xlu1 %114 }
  0xfb   :  { %v118_v13 = vmul.f32 %v100_v11, %v672_v22  ;;  %v123_v14 = vmul.f32 %v115_v12, %v672_v22 }
  0xfc   :  { %v565_v15 = vpop.eup %564  ;;  %v739_v16 = vadd.f32 1e-05, %v122_v10 }
  0xfd   :  { %v567_v17 = vpop.eup %566  ;;  %v173_v18 = vmul.f32 %v565_v15, %v128_v7  ;;  %v741_v19 = vadd.f32 1e-05, %v118_v13  ;;  %v743_v20 = vadd.f32 1e-05, %v123_v14  ;;  %vm179_vm2 = vweird.f32 %v565_v15 }
  0xfe   :  { %v133_v21 = vmul.f32 %v567_v17, %v124_v8  ;;  %568 = vrsqrt.f32 %v739_v16  ;;  %vm139_vm4 = vweird.f32 %v567_v17  ;;  %vm757_vm6 = vmor %vm178_vm5, %vm179_vm2  ;;  %vm198_vm8 = vweird.f32 %v739_v16 }
  0xff   :  { %v174_v23 = vmul.f32 %v565_v15, %v173_v18  ;;  %570 = vrsqrt.f32 %v741_v19  ;;  %vm140_vm7 = vmor %vm138_vm3, %vm139_vm4  ;;  %vm158_vm9 = vweird.f32 %v741_v19  ;;  %vm208_vm10 = vweird.f32 %v743_v20 }
 0x100   :  { %v134_v24 = vmul.f32 %v567_v17, %v133_v21  ;;  %572 = vrsqrt.f32 %v743_v20 }
 0x101   :  { %v175_v25 = vmul.f32 0.5, %v174_v23  ;;  %v109_v26 = vpop.xlane.xlu0 %108 }
 0x102   :  { %v135_v27 = vmul.f32 0.5, %v134_v24  ;;  %v121_v30 = vmul.f32 %v109_v26, %v672_v22  ;;  %v97_v31 = vpop.xlane.xlu2 %96 }
 0x103   :  { %v176_v32 = vsub.f32 1.5, %v175_v25  ;;  %v117_v33 = vmul.f32 %v97_v31, %v672_v22 }
 0x104   :  { %v569_v34 = vpop.eup %568  ;;  %v136_v35 = vsub.f32 1.5, %v135_v27  ;;  %v750_v36 = vadd.f32 1e-05, %v121_v30 }
 0x105   :  { %v571_v37 = vpop.eup %570  ;;  %v177_v38 = vmul.f32 %v565_v15, %v176_v32  ;;  %v193_v39 = vmul.f32 %v569_v34, %v739_v16  ;;  %v753_v40 = vadd.f32 1e-05, %v117_v33  ;;  %vm199_vm11 = vweird.f32 %v569_v34 }
 0x106   :  { %v755_v45 = vpop.eup %572  ;;  %v137_v47 = vmul.f32 %v567_v17, %v136_v35  ;;  %v153_v48 = vmul.f32 %v571_v37, %v741_v19  ;;  %574 = vrsqrt.f32 %v750_v36  ;;  %vm159_vm13 = vweird.f32 %v571_v37  ;;  %vm791_vm14 = vmor %vm198_vm8, %vm199_vm11 }
 0x107   :  { %v181_v49 = vsel %vm757_vm6, %v565_v15, %v177_v38  ;;  %v194_v50 = vmul.f32 %v569_v34, %v193_v39  ;;  %v203_v51 = vmul.f32 %v755_v45, %v743_v20  ;;  %576 = vrsqrt.f32 %v753_v40  ;;  %vm160_vm1 = vmor %vm158_vm9, %vm159_vm13 }
 0x108   :  { %v141_v53 = vsel %vm140_vm7, %v567_v17, %v137_v47  ;;  %v154_v54 = vmul.f32 %v571_v37, %v153_v48  ;;  %v216_v0 = vmul.f32 %v181_v49, %v676_v28  ;;  %vm209_vm12 = vweird.f32 %v755_v45 }
 0x109   :  { %v195_v55 = vmul.f32 0.5, %v194_v50  ;;  %v204_v57 = vmul.f32 %v755_v45, %v203_v51  ;;  %v103_v58 = vpop.xlane.xlu0 %102  ;;  %v212_v60 = vmul.f32 %v141_v53, %v678_v29  ;;  %vm798_vm15 = vmor %vm208_vm10, %vm209_vm12  ;;  %vm188_vm3 = vweird.f32 %v750_v36 }
 0x10a   :  { %v155_v61 = vmul.f32 0.5, %v154_v54  ;;  %v119_v62 = vmul.f32 %v103_v58, %v672_v22  ;;  %v227_v6 = vmul.f32 %v771_v52, %v216_v0  ;;  %vm148_vm4 = vweird.f32 %v753_v40  ;;  %v559_v58 = vld [vmem:[%s999_s4] ss:$0 sm:$0xff] }
 0x10b   :  { %v196_v1 = vsub.f32 1.5, %v195_v55  ;;  %v205_v2 = vmul.f32 0.5, %v204_v57  ;;  %v223_v3 = vmul.f32 %v771_v52, %v212_v60  ;;  %vm317_vm11 = vcmask 523264  }
 0x10c   :  { %v575_v4 = vpop.eup %574  ;;  %v156_v5 = vsub.f32 1.5, %v155_v61  ;;  %v127_v29 = vadd.f32 1e-05, %v119_v62  ;;  %v238_v18 = vadd.f32 %v782_v63, %v227_v6 }
 0x10d   :  { %v197_v22 = vmul.f32 %v569_v34, %v196_v1  ;;  %v206_v28 = vsub.f32 1.5, %v205_v2  ;;  %v183_v8 = vmul.f32 %v575_v4, %v750_v36  ;;  %v577_v9 = vpop.eup %576  ;;  %v234_v12 = vadd.f32 %v782_v63, %v223_v3 }
 0x10e   :  { %v157_v10 = vmul.f32 %v571_v37, %v156_v5  ;;  %578 = vrsqrt.f32 %v127_v29  ;;  %v143_v16 = vmul.f32 %v577_v9, %v753_v40  ;;  %539 = vmatmul.msk.f32.vlgmr.msra.gmra.mxu2 %vm36_vm0, %v238_v18  ;;  %vm189_vm2 = vweird.f32 %v575_v4 }
 0x10f   :  { %v201_v13 = vsel %vm791_vm14, %v569_v34, %v197_v22  ;;  %v207_v14 = vmul.f32 %v755_v45, %v206_v28  ;;  %v184_v15 = vmul.f32 %v575_v4, %v183_v8  ;;  %535 = vmatmul.msk.f32.vlgmr.msra.gmra.mxu0 %vm36_vm0, %v234_v12  ;;  %vm149_vm5 = vweird.f32 %v577_v9  ;;  %vm190_vm6 = vmor %vm188_vm3, %vm189_vm2 }
 0x110   :  { %v161_v17 = vsel %vm160_vm1, %v571_v37, %v157_v10  ;;  %v218_v20 = vmul.f32 %v201_v13, %v692_v42  ;;  %v144_v24 = vmul.f32 %v577_v9, %v143_v16  ;;  %vm150_vm7 = vmor %vm148_vm4, %vm149_vm5  ;;  %vm168_vm9 = vweird.f32 %v127_v29 }
 0x111   :  { %v211_v21 = vsel %vm798_vm15, %v755_v45, %v207_v14  ;;  %v185_v23 = vmul.f32 0.5, %v184_v15  ;;  %v214_v19 = vmul.f32 %v161_v17, %v694_v43  ;;  %v599_v15 = vmov 64.0  }
 0x112   :  { %v229_v25 = vmul.f32 %v771_v52, %v218_v20  ;;  %v145_v27 = vmul.f32 0.5, %v144_v24  ;;  %v219_v32 = vmul.f32 %v211_v21, %v690_v41  ;;  %580 = vrcp.f32 %v599_v15 }
 0x113   :  { %v186_v26 = vsub.f32 1.5, %v185_v23  ;;  %v225_v30 = vmul.f32 %v771_v52, %v214_v19 }
 0x114   :  { %v579_v31 = vpop.eup %578  ;;  %v240_v42 = vadd.f32 %v782_v63, %v229_v25  ;;  %v146_v43 = vsub.f32 1.5, %v145_v27  ;;  %v230_v40 = vmul.f32 %v771_v52, %v219_v32 }
 0x115   :  { %v187_v33 = vmul.f32 %v575_v4, %v186_v26  ;;  %v163_v34 = vmul.f32 %v579_v31, %v127_v29  ;;  %v236_v35 = vadd.f32 %v782_v63, %v225_v30  ;;  %vm169_vm8 = vweird.f32 %v579_v31 }
 0x116   :  { %541 = vmatmul.msk.f32.vlgmr.msra.gmra.mxu3 %vm36_vm0, %v240_v42  ;;  %v147_v38 = vmul.f32 %v577_v9, %v146_v43  ;;  %v241_v51 = vadd.f32 %v782_v63, %v230_v40  ;;  %vm170_vm10 = vmor %vm168_vm9, %vm169_vm8 }
 0x117   :  { %v191_v37 = vsel %vm190_vm6, %v575_v4, %v187_v33  ;;  %v164_v39 = vmul.f32 %v579_v31, %v163_v34  ;;  %537 = vmatmul.msk.f32.vlgmr.msra.gmra.mxu1 %vm36_vm0, %v236_v35 }
 0x118   :  { %v217_v36 = vmul.f32 %v191_v37, %v696_v44  ;;  %v151_v41 = vsel %vm150_vm7, %v577_v9, %v147_v38  ;;  %v581_v16 = vpop.eup %580 }
 0x119   :  { %v165_v45 = vmul.f32 0.5, %v164_v39  ;;  %v213_v46 = vmul.f32 %v151_v41, %v711_v56  ;;  %v343_v17 = vmul.f32 64.0, %v581_v16 }
 0x11a   :  { %v228_v47 = vmul.f32 %v771_v52, %v217_v36 }
 0x11b   :  { %v166_v48 = vsub.f32 1.5, %v165_v45  ;;  %v224_v49 = vmul.f32 %v771_v52, %v213_v46  ;;  %v344_v18 = vsub.f32 1.0, %v343_v17 }
 0x11c   :  { %v239_v50 = vadd.f32 %v782_v63, %v228_v47 }
 0x11d   :  { %v167_v53 = vmul.f32 %v579_v31, %v166_v48  ;;  %v235_v44 = vadd.f32 %v782_v63, %v224_v49  ;;  %v345_v20 = vmul.f32 %v581_v16, %v344_v18 }
 0x11e   :  { %540 = vmatmul.msk.f32.gmra.mxu2 %vm36_vm0, %v239_v50  ;;  %542 = vmatmul.msk.f32.gmra.mxu3 %vm36_vm0, %v241_v51 }
 0x11f   :  { %v171_v56 = vsel %vm170_vm10, %v579_v31, %v167_v53  ;;  %536 = vmatmul.msk.f32.gmra.mxu0 %vm36_vm0, %v235_v44  ;;  %v346_v21 = vadd.f32 %v581_v16, %v345_v20 }
 0x120   :  { %v215_v54 = vmul.f32 %v171_v56, %v716_v59 }
 0x122   :  { %v226_v55 = vmul.f32 %v771_v52, %v215_v54 }
 0x124   :  { %v237_v57 = vadd.f32 %v782_v63, %v226_v55 }
 0x126   :  { %538 = vmatmul.msk.f32.gmra.mxu1 %vm36_vm0, %v237_v57  ;;  %vm347_vm0 = vweird.f32 %v581_v16 }
 0x127   :  { %v852_v23 = vsel %vm347_vm0, %v581_v16, %v346_v21  ;;  %v911_v21 = vld [vmem:[%s1001_s5] ss:$0 sm:$0xff] }
 0x18c   :  { %v291_v60 = vpop.f32.mrf.mxu0 }
 0x18d   :  { %v292_v61 = vadd.f32 %v559_v58, %v291_v60 }
 0x18f   :  { %v318_v62 = vsel %vm317_vm11, %v292_v61, 0.0 }
 0x190   :  { %319 = vadd.xlane.f32.xlu1 %v318_v62 }
 0x191   :  { %v303_v0 = vpop.f32.mrf.mxu2 }
 0x192   :  { %v304_v2 = vadd.f32 %v559_v58, %v303_v0 }
 0x194   :  { %v297_v1 = vpop.f32.mrf.mxu1  ;;  %v330_v52 = vsel %vm317_vm11, %v304_v2, 0.0 }
 0x195   :  { %v298_v59 = vadd.f32 %v559_v58, %v297_v1  ;;  %331 = vadd.xlane.f32.xlu2 %v330_v52 }
 0x197   :  { %v324_v63 = vsel %vm317_vm11, %v298_v59, 0.0 }
 0x198   :  { %325 = vadd.xlane.f32.xlu0 %v324_v63 }
 0x199   :  { %v309_v3 = vpop.f32.mrf.mxu3 }
 0x19a   :  { %v310_v13 = vadd.f32 %v559_v58, %v309_v3 }
 0x19c   :  { %v294_v4 = vpop.f32.mrf.mxu0  ;;  %v336_v14 = vsel %vm317_vm11, %v310_v13, 0.0 }
 0x19d   :  { %v295_v5 = vadd.f32 %v559_v58, %v294_v4 }
 0x19f   :  { %v321_v29 = vsel %vm317_vm11, %v295_v5, 0.0 }
 0x1a0   :  { %322 = vadd.xlane.f32.xlu2 %v321_v29 }
 0x1a1   :  { %v306_v6 = vpop.f32.mrf.mxu2  ;;  %v312_v22 = vpop.f32.mrf.mxu3 }
 0x1a2   :  { %v307_v7 = vadd.f32 %v559_v58, %v306_v6  ;;  %v313_v8 = vadd.f32 %v559_v58, %v312_v22 }
 0x1a3   :  { %v300_v28 = vpop.f32.mrf.mxu1 }
 0x1a4   :  { %v301_v9 = vadd.f32 %v559_v58, %v300_v28  ;;  %v333_v10 = vsel %vm317_vm11, %v307_v7, 0.0  ;;  %v339_v12 = vsel %vm317_vm11, %v313_v8, 0.0 }
 0x1a5   :  { %334 = vadd.xlane.f32.xlu0 %v333_v10 }
 0x1a6   :  { %v327_v11 = vsel %vm317_vm11, %v301_v9, 0.0 }
 0x1a7   :  { %328 = vadd.xlane.f32.xlu1 %v327_v11 }
 0x1a8   :  { %340 = vadd.xlane.f32.xlu2 %v339_v12 }
 0x1af   :  { %337 = vadd.xlane.f32.xlu1 %v336_v14 }
 0x203   :  { %v320_v24 = vpop.xlane.xlu1 %319 }
 0x204   :  { %v349_v19 = vmul.f32 %v852_v23, %v320_v24 }
 0x206   :  { %v855_v25 = vsub.f32 %v292_v61, %v349_v19 }
 0x208   :  { %v365_v26 = vmul.f32 %v855_v25, %v855_v25  ;;  %v332_v30 = vpop.xlane.xlu2 %331 }
 0x209   :  { %v353_v42 = vmul.f32 %v852_v23, %v332_v30 }
 0x20a   :  { %v373_v27 = vsel %vm317_vm11, %v365_v26, 0.0 }
 0x20b   :  { %v326_v31 = vpop.xlane.xlu0 %325  ;;  %374 = vadd.xlane.f32.xlu0 %v373_v27  ;;  %v862_v33 = vsub.f32 %v304_v2, %v353_v42 }
 0x20c   :  { %v351_v32 = vmul.f32 %v852_v23, %v326_v31  ;;  %v918_v31 = vld [vmem:[%s1002_s6] ss:$0 sm:$0xff] }
 0x20d   :  { %v369_v34 = vmul.f32 %v862_v33, %v862_v33 }
 0x20e   :  { %v864_v43 = vsub.f32 %v298_v59, %v351_v32 }
 0x20f   :  { %v385_v37 = vsel %vm317_vm11, %v369_v34, 0.0 }
 0x210   :  { %v367_v35 = vmul.f32 %v864_v43, %v864_v43  ;;  %386 = vadd.xlane.f32.xlu1 %v385_v37 }
 0x212   :  { %v379_v38 = vsel %vm317_vm11, %v367_v35, 0.0 }
 0x213   :  { %v323_v39 = vpop.xlane.xlu2 %322  ;;  %380 = vadd.xlane.f32.xlu2 %v379_v38 }
 0x214   :  { %v350_v36 = vmul.f32 %v852_v23, %v323_v39 }
 0x216   :  { %v873_v40 = vsub.f32 %v295_v5, %v350_v36 }
 0x218   :  { %v335_v41 = vpop.xlane.xlu0 %334  ;;  %v366_v46 = vmul.f32 %v873_v40, %v873_v40 }
 0x219   :  { %v354_v45 = vmul.f32 %v852_v23, %v335_v41 }
 0x21a   :  { %v329_v47 = vpop.xlane.xlu1 %328  ;;  %v376_v49 = vsel %vm317_vm11, %v366_v46, 0.0 }
 0x21b   :  { %v878_v48 = vsub.f32 %v307_v7, %v354_v45  ;;  %v352_v50 = vmul.f32 %v852_v23, %v329_v47  ;;  %377 = vadd.xlane.f32.xlu1 %v376_v49  ;;  %v341_v51 = vpop.xlane.xlu2 %340 }
 0x21c   :  { %v356_v53 = vmul.f32 %v852_v23, %v341_v51 }
 0x21d   :  { %v883_v44 = vsub.f32 %v301_v9, %v352_v50  ;;  %v370_v56 = vmul.f32 %v878_v48, %v878_v48 }
 0x21e   :  { %v887_v54 = vsub.f32 %v313_v8, %v356_v53 }
 0x21f   :  { %v388_v55 = vsel %vm317_vm11, %v370_v56, 0.0  ;;  %v368_v57 = vmul.f32 %v883_v44, %v883_v44 }
 0x220   :  { %389 = vadd.xlane.f32.xlu2 %v388_v55  ;;  %v372_v58 = vmul.f32 %v887_v54, %v887_v54 }
 0x221   :  { %v382_v60 = vsel %vm317_vm11, %v368_v57, 0.0 }
 0x222   :  { %383 = vadd.xlane.f32.xlu0 %v382_v60  ;;  %v338_v61 = vpop.xlane.xlu1 %337  ;;  %v394_v62 = vsel %vm317_vm11, %v372_v58, 0.0 }
 0x223   :  { %v355_v0 = vmul.f32 %v852_v23, %v338_v61  ;;  %395 = vadd.xlane.f32.xlu1 %v394_v62 }
 0x225   :  { %v897_v1 = vsub.f32 %v310_v13, %v355_v0 }
 0x227   :  { %v371_v2 = vmul.f32 %v897_v1, %v897_v1 }
 0x229   :  { %v391_v59 = vsel %vm317_vm11, %v371_v2, 0.0 }
 0x22a   :  { %392 = vadd.xlane.f32.xlu0 %v391_v59 }
 0x27e   :  { %v375_v52 = vpop.xlane.xlu0 %374 }
 0x27f   :  { %v397_v63 = vmul.f32 %v375_v52, %v852_v23 }
 0x281   :  { %v405_v3 = vadd.f32 1e-05, %v397_v63 }
 0x283   :  { %582 = vrsqrt.f32 %v405_v3  ;;  %v387_v4 = vpop.xlane.xlu1 %386  ;;  %vm419_vm13 = vweird.f32 %v405_v3 }
 0x284   :  { %v401_v29 = vmul.f32 %v387_v4, %v852_v23 }
 0x286   :  { %v381_v5 = vpop.xlane.xlu2 %380  ;;  %v409_v7 = vadd.f32 1e-05, %v401_v29 }
 0x287   :  { %v399_v6 = vmul.f32 %v381_v5, %v852_v23 }
 0x288   :  { %584 = vrsqrt.f32 %v409_v7  ;;  %vm459_vm2 = vweird.f32 %v409_v7 }
 0x289   :  { %v583_v22 = vpop.eup %582  ;;  %v407_v28 = vadd.f32 1e-05, %v399_v6 }
 0x28a   :  { %v414_v8 = vmul.f32 %v583_v22, %v405_v3  ;;  %vm420_vm12 = vweird.f32 %v583_v22 }
 0x28b   :  { %586 = vrsqrt.f32 %v407_v28  ;;  %vm421_vm14 = vmor %vm419_vm13, %vm420_vm12  ;;  %vm439_vm4 = vweird.f32 %v407_v28 }
 0x28c   :  { %v415_v9 = vmul.f32 %v583_v22, %v414_v8 }
 0x28e   :  { %v416_v10 = vmul.f32 0.5, %v415_v9  ;;  %v378_v11 = vpop.xlane.xlu1 %377  ;;  %v585_v14 = vpop.eup %584 }
 0x28f   :  { %v398_v12 = vmul.f32 %v378_v11, %v852_v23  ;;  %v454_v18 = vmul.f32 %v585_v14, %v409_v7  ;;  %vm460_vm15 = vweird.f32 %v585_v14 }
 0x290   :  { %v417_v13 = vsub.f32 1.5, %v416_v10  ;;  %vm461_vm3 = vmor %vm459_vm2, %vm460_vm15 }
 0x291   :  { %v906_v15 = vadd.f32 1e-05, %v398_v12  ;;  %v587_v16 = vpop.eup %586  ;;  %v455_v26 = vmul.f32 %v585_v14, %v454_v18 }
 0x292   :  { %v418_v17 = vmul.f32 %v583_v22, %v417_v13  ;;  %v434_v24 = vmul.f32 %v587_v16, %v407_v28  ;;  %vm440_vm1 = vweird.f32 %v587_v16 }
 0x293   :  { %v390_v20 = vpop.xlane.xlu2 %389  ;;  %588 = vrsqrt.f32 %v906_v15  ;;  %v456_v35 = vmul.f32 0.5, %v455_v26  ;;  %vm441_vm5 = vmor %vm439_vm4, %vm440_vm1  ;;  %vm429_vm7 = vweird.f32 %v906_v15 }
 0x294   :  { %v422_v19 = vsel %vm421_vm14, %v583_v22, %v418_v17  ;;  %v402_v27 = vmul.f32 %v390_v20, %v852_v23  ;;  %v435_v32 = vmul.f32 %v587_v16, %v434_v24 }
 0x295   :  { %v384_v30 = vpop.xlane.xlu0 %383  ;;  %v493_v42 = vmul.f32 %v422_v19, %v855_v25  ;;  %v457_v46 = vsub.f32 1.5, %v456_v35 }
 0x296   :  { %v400_v34 = vmul.f32 %v384_v30, %v852_v23  ;;  %v922_v37 = vadd.f32 1e-05, %v402_v27  ;;  %v396_v38 = vpop.xlane.xlu1 %395  ;;  %v436_v36 = vmul.f32 0.5, %v435_v32 }
 0x297   :  { %v504_v39 = vmul.f32 %v911_v21, %v493_v42  ;;  %v404_v45 = vmul.f32 %v396_v38, %v852_v23  ;;  %v458_v50 = vmul.f32 %v585_v14, %v457_v46 }
 0x298   :  { %v925_v41 = vadd.f32 1e-05, %v400_v34  ;;  %590 = vrsqrt.f32 %v922_v37  ;;  %v437_v49 = vsub.f32 1.5, %v436_v36  ;;  %vm469_vm0 = vweird.f32 %v922_v37 }
 0x299   :  { %v589_v47 = vpop.eup %588  ;;  %v515_v25 = vadd.f32 %v918_v31, %v504_v39  ;;  %v932_v53 = vadd.f32 1e-05, %v404_v45  ;;  %v462_v55 = vsel %vm461_vm3, %v585_v14, %v458_v50 }
 0x29a   :  { %592 = vrsqrt.f32 %v925_v41  ;;  %v424_v51 = vmul.f32 %v589_v47, %v906_v15  ;;  %v438_v56 = vmul.f32 %v587_v16, %v437_v49  ;;  %v497_v60 = vmul.f32 %v462_v55, %v862_v33 }
 0x29b   :  { %523 = vst.msk [vmem:[%s1003_s7] sm:$0xff] %vm317_vm11, %v515_v25  ;;  %594 = vrsqrt.f32 %v932_v53  ;;  %vm430_vm6 = vweird.f32 %v589_v47  ;;  %vm449_vm13 = vweird.f32 %v925_v41  ;;  %vm489_vm1 = vweird.f32 %v932_v53 }
 0x29c   :  { %v425_v57 = vmul.f32 %v589_v47, %v424_v51  ;;  %v442_v61 = vsel %vm441_vm5, %v587_v16, %v438_v56  ;;  %v508_v63 = vmul.f32 %v911_v21, %v497_v60  ;;  %vm431_vm8 = vmor %vm429_vm7, %vm430_vm6 }
 0x29d   :  { %v393_v58 = vpop.xlane.xlu0 %392  ;;  %v495_v2 = vmul.f32 %v442_v61, %v864_v43 }
 0x29e   :  { %v403_v62 = vmul.f32 %v393_v58, %v852_v23  ;;  %v591_v0 = vpop.eup %590  ;;  %v426_v59 = vmul.f32 0.5, %v425_v57  ;;  %v519_v33 = vadd.f32 %v918_v31, %v508_v63 }
 0x29f   :  { %v464_v3 = vmul.f32 %v591_v0, %v922_v37  ;;  %v506_v5 = vmul.f32 %v911_v21, %v495_v2  ;;  %vm470_vm9 = vweird.f32 %v591_v0 }
 0x2a0   :  { %v593_v52 = vpop.eup %592  ;;  %v411_v4 = vadd.f32 1e-05, %v403_v62  ;;  %v427_v29 = vsub.f32 1.5, %v426_v59  ;;  %527 = vst.msk [vmem:[%s1003_s7 + $0x20] sm:$0xff] %vm317_vm11, %v519_v33  ;;  %vm471_vm12 = vmor %vm469_vm0, %vm470_vm9 }
 0x2a1   :  { %v444_v6 = vmul.f32 %v593_v52, %v925_v41  ;;  %v465_v22 = vmul.f32 %v591_v0, %v464_v3  ;;  %v595_v23 = vpop.eup %594  ;;  %v517_v43 = vadd.f32 %v918_v31, %v506_v5  ;;  %vm450_vm10 = vweird.f32 %v593_v52 }
 0x2a2   :  { %596 = vrsqrt.f32 %v411_v4  ;;  %v428_v7 = vmul.f32 %v589_v47, %v427_v29  ;;  %v484_v9 = vmul.f32 %v595_v23, %v932_v53  ;;  %vm451_vm14 = vmor %vm449_vm13, %vm450_vm10  ;;  %vm490_vm15 = vweird.f32 %v595_v23 }
 0x2a3   :  { %v445_v28 = vmul.f32 %v593_v52, %v444_v6  ;;  %v466_v8 = vmul.f32 0.5, %v465_v22  ;;  %525 = vst.msk [vmem:[%s1003_s7 + $0x10] sm:$0xff] %vm317_vm11, %v517_v43  ;;  %vm491_vm2 = vmor %vm489_vm1, %vm490_vm15  ;;  %vm479_vm4 = vweird.f32 %v411_v4 }
 0x2a4   :  { %v432_v10 = vsel %vm431_vm8, %v589_v47, %v428_v7  ;;  %v485_v14 = vmul.f32 %v595_v23, %v484_v9 }
 0x2a5   :  { %v446_v11 = vmul.f32 0.5, %v445_v28  ;;  %v494_v12 = vmul.f32 %v432_v10, %v873_v40  ;;  %v467_v13 = vsub.f32 1.5, %v466_v8 }
 0x2a6   :  { %v486_v20 = vmul.f32 0.5, %v485_v14 }
 0x2a7   :  { %v447_v15 = vsub.f32 1.5, %v446_v11  ;;  %v505_v17 = vmul.f32 %v911_v21, %v494_v12  ;;  %v468_v18 = vmul.f32 %v591_v0, %v467_v13 }
 0x2a8   :  { %v597_v16 = vpop.eup %596  ;;  %v487_v27 = vsub.f32 1.5, %v486_v20 }
 0x2a9   :  { %v448_v24 = vmul.f32 %v593_v52, %v447_v15  ;;  %v474_v19 = vmul.f32 %v597_v16, %v411_v4  ;;  %v516_v26 = vadd.f32 %v918_v31, %v505_v17  ;;  %v472_v40 = vsel %vm471_vm12, %v591_v0, %v468_v18 }
 0x2aa   :  { %v498_v30 = vmul.f32 %v472_v40, %v878_v48  ;;  %v488_v35 = vmul.f32 %v595_v23, %v487_v27  ;;  %vm480_vm3 = vweird.f32 %v597_v16 }
 0x2ab   :  { %v452_v42 = vsel %vm451_vm14, %v593_v52, %v448_v24  ;;  %v475_v32 = vmul.f32 %v597_v16, %v474_v19  ;;  %524 = vst.msk [vmem:[%s1003_s7 + $0x8] sm:$0xff] %vm317_vm11, %v516_v26  ;;  %vm481_vm5 = vmor %vm479_vm4, %vm480_vm3 }
 0x2ac   :  { %v496_v34 = vmul.f32 %v452_v42, %v883_v44  ;;  %v509_v37 = vmul.f32 %v911_v21, %v498_v30  ;;  %v492_v36 = vsel %vm491_vm2, %v595_v23, %v488_v35 }
 0x2ad   :  { %v476_v38 = vmul.f32 0.5, %v475_v32  ;;  %v500_v41 = vmul.f32 %v492_v36, %v887_v54 }
 0x2ae   :  { %v507_v39 = vmul.f32 %v911_v21, %v496_v34  ;;  %v520_v48 = vadd.f32 %v918_v31, %v509_v37 }
 0x2af   :  { %v477_v45 = vsub.f32 1.5, %v476_v38  ;;  %v511_v44 = vmul.f32 %v911_v21, %v500_v41 }
 0x2b0   :  { %v518_v46 = vadd.f32 %v918_v31, %v507_v39  ;;  %528 = vst.msk [vmem:[%s1003_s7 + $0x28] sm:$0xff] %vm317_vm11, %v520_v48 }
 0x2b1   :  { %v478_v47 = vmul.f32 %v597_v16, %v477_v45  ;;  %v522_v54 = vadd.f32 %v918_v31, %v511_v44 }
 0x2b2   :  { %526 = vst.msk [vmem:[%s1003_s7 + $0x18] sm:$0xff] %vm317_vm11, %v518_v46 }
 0x2b3   :  { %v482_v25 = vsel %vm481_vm5, %v597_v16, %v478_v47  ;;  %530 = vst.msk [vmem:[%s1003_s7 + $0x38] sm:$0xff] %vm317_vm11, %v522_v54 }
 0x2b4   :  { %v499_v49 = vmul.f32 %v482_v25, %v897_v1 }
 0x2b6   :  { %v510_v50 = vmul.f32 %v911_v21, %v499_v49 }
 0x2b8   :  { %v521_v51 = vadd.f32 %v918_v31, %v510_v50 }
 0x2ba   :  { %529 = vst.msk [vmem:[%s1003_s7 + $0x30] sm:$0xff] %vm317_vm11, %v521_v51 }

// kernel: st_mem_forward.4
= control target key start
LH: loop header
LB: loop body
LE: loop exit
PB: predicated region body
PF: predicated region fallthrough
CT: control target
= control target key end

     0   :  { %s2771_s24 = smov 0   ;;  %s3908_s0 = inlined_call_operand.vmem [shape: f32[2,16,64], index: 0, kind: input, shape index: {}]   ;;  %s3909_s1 = inlined_call_operand.vmem [shape: f32[2,1,64], index: 1, kind: input, shape index: {}]   ;;  %s3910_s2 = inlined_call_operand.vmem [shape: f32[2,1,64], index: 2, kind: input, shape index: {}]   ;;  %s3911_s3 = inlined_call_operand.vmem [shape: f32[2,64,768], index: 3, kind: input, shape index: {}]   ;;  %s3912_s4 = inlined_call_operand.vmem [shape: f32[2,1,768], index: 4, kind: input, shape index: {}]   ;;  %s3913_s5 = inlined_call_operand.vmem [shape: f32[2,256,64], index: 5, kind: input, shape index: {}]   ;;  %s3914_s6 = inlined_call_operand.vmem [shape: f32[2,1,64], index: 6, kind: input, shape index: {}]   ;;  %s3915_s7 = inlined_call_operand.vmem [shape: f32[2,1,64], index: 7, kind: input, shape index: {}]   ;;  %s3916_s8 = inlined_call_operand.vmem [shape: f32[2,1,64], index: 8, kind: input, shape index: {}]   ;;  %s3917_s9 = inlined_call_operand.vmem [shape: f32[2,64,256], index: 9, kind: input, shape index: {}]   ;;  %s3918_s10 = inlined_call_operand.vmem [shape: f32[2,1,256], index: 10, kind: input, shape index: {}]   ;;  %s3919_s11 = inlined_call_operand.vmem [shape: f32[2,256,64], index: 11, kind: input, shape index: {}]   ;;  %s3920_s12 = inlined_call_operand.vmem [shape: f32[2,1,64], index: 12, kind: input, shape index: {}]   ;;  %s3921_s13 = inlined_call_operand.vmem [shape: f32[1,1,64], index: 13, kind: input, shape index: {}]   ;;  %s3922_s14 = inlined_call_operand.vmem [shape: f32[1,1,64], index: 14, kind: input, shape index: {}]   ;;  %s3923_s15 = inlined_call_operand.vmem [shape: f32[1,64,32], index: 15, kind: input, shape index: {}]   ;;  %s3924_s16 = inlined_call_operand.vmem [shape: f32[1,1,32], index: 16, kind: input, shape index: {}]   ;;  %s3925_s17 = inlined_call_operand.vmem [shape: f32[2,16,32], index: 17, kind: output, shape index: {}]  }
   0x1   :  { %3927 = sst [smem:[#allocation2_spill]] %s3908_s0 }
   0x2   :  { %3928 = sst [smem:[#allocation3_spill]] %s3909_s1 }
   0x3 LB: > { %s2363_s25 = sadd.s32 4294967295, %s2678_s24   ;;  %p2367_p0 = scmp.ge.s32.totalorder %s2678_s24, 1  ;;  %s2678_s24 = sphi %s2771_s24, %s27_s24  }
   0x4   : > { %p487_p1 = scmp.lt.s32.totalorder %s2678_s24, 3 }
   0x6   : > { %p488_p2 = pnand %p2367_p0, %p487_p1 }
   0x7   : > { %p539_p3 = scmp.lt.s32.totalorder (!%p488_p2), %s2363_s25, 1  ;;  %s3929_s29 = sld [smem:[#allocation2_spill]] (!%p488_p2) }
   0x8   : > { %491 = sbr.rel (%p488_p2) target bundleno = 3739 (0xe9b), region = 88  ;;  %s3930_s19 = sld [smem:[#allocation3_spill]] (!%p488_p2) }
   0xd   : > { %s3932_s25 = smov (!%p539_p3, %s2363_s25), 1  ;;  %vm553_vm0 = vcmask 523264   ;;  %v2680_v4 = vmov 64.0   ;;  %v657_v21 = vld [vmem:[%s3911_s3 + $0x150] sm:$0xff]  ;;  %v658_v22 = vld [vmem:[%s3911_s3 + $0x158] sm:$0xff]  ;;  %v659_v23 = vld [vmem:[%s3911_s3 + $0x160] sm:$0xff] }
   0xe   : > { %s2552_s26 = sshll.u32 %s3932_s25, 4  ;;  %2586 = vrcp.f32 %v2680_v4  ;;  %691 = vmatpush.msra.mxu3 %v657_v21  ;;  %714 = vmatpush.msra.mxu1 %v658_v22  ;;  %v661_v24 = vld [vmem:[%s3911_s3 + $0x170] sm:$0xff]  ;;  %v651_v25 = vld [vmem:[%s3911_s3 + $0x120] sm:$0xff]  ;;  %v652_v26 = vld [vmem:[%s3911_s3 + $0x128] sm:$0xff]  ;;  %vm880_vm8 = vcmask 130048  }
   0xf   : > { %s543_s0 = scalar_lea.vmem %s3929_s29, %s2552_s26  ;;  %737 = vmatpush.msra.mxu2 %v659_v23  ;;  %783 = vmatpush.msra.mxu0 %v661_v24  ;;  %v653_v27 = vld [vmem:[%s3911_s3 + $0x130] sm:$0xff]  ;;  %v655_v28 = vld [vmem:[%s3911_s3 + $0x140] sm:$0xff]  ;;  %v646_v30 = vld [vmem:[%s3911_s3 + $0xf8] sm:$0xff] }
  0x10   : > { %v2787_v0 = vld [vmem:[%s543_s0] sm:$0xff]  ;;  %v2791_v2 = vld [vmem:[%s543_s0 + $0x8] sm:$0xff]  ;;  %692 = vmatpush.msra.mxu3 %v651_v25  ;;  %715 = vmatpush.msra.mxu1 %v652_v26  ;;  %v645_v29 = vld [vmem:[%s3911_s3 + $0xf0] sm:$0xff]  ;;  %s548_s0 = scalar_lea.vmem %s3925_s17, %s2552_s26 }
  0x11   : > { %v554_v1 = vsel %vm553_vm0, %v2787_v0, 0.0  ;;  %v557_v3 = vsel %vm553_vm0, %v2791_v2, 0.0  ;;  %738 = vmatpush.msra.mxu2 %v653_v27  ;;  %784 = vmatpush.msra.mxu0 %v655_v28  ;;  %v647_v31 = vld [vmem:[%s3911_s3 + $0x100] sm:$0xff]  ;;  %v649_v32 = vld [vmem:[%s3911_s3 + $0x110] sm:$0xff]  ;;  %v640_v34 = vld [vmem:[%s3911_s3 + $0xc8] sm:$0xff] }
  0x12   : > { %555 = vadd.xlane.f32.xlu0 %v554_v1  ;;  %693 = vmatpush.msra.mxu3 %v645_v29  ;;  %v639_v33 = vld [vmem:[%s3911_s3 + $0xc0] sm:$0xff]  ;;  %v641_v35 = vld [vmem:[%s3911_s3 + $0xd0] sm:$0xff]  ;;  %v634_v38 = vld [vmem:[%s3911_s3 + $0x98] sm:$0xff] }
  0x13   : > { %716 = vmatpush.msra.mxu1 %v646_v30  ;;  %739 = vmatpush.msra.mxu2 %v647_v31  ;;  %v643_v36 = vld [vmem:[%s3911_s3 + $0xe0] sm:$0xff]  ;;  %v633_v37 = vld [vmem:[%s3911_s3 + $0x90] sm:$0xff]  ;;  %v628_v42 = vld [vmem:[%s3911_s3 + $0x68] sm:$0xff] }
  0x14   : > { %v2587_v5 = vpop.eup %2586  ;;  %785 = vmatpush.msra.mxu0 %v649_v32  ;;  %694 = vmatpush.msra.mxu3 %v639_v33  ;;  %v635_v39 = vld [vmem:[%s3911_s3 + $0xa0] sm:$0xff]  ;;  %v637_v40 = vld [vmem:[%s3911_s3 + $0xb0] sm:$0xff]  ;;  %v622_v46 = vld [vmem:[%s3911_s3 + $0x38] sm:$0xff] }
  0x15   : > { %v561_v6 = vmul.f32 64.0, %v2587_v5  ;;  %vm565_vm1 = vweird.f32 %v2587_v5  ;;  %717 = vmatpush.msra.mxu1 %v640_v34  ;;  %740 = vmatpush.msra.mxu2 %v641_v35  ;;  %v627_v41 = vld [vmem:[%s3911_s3 + $0x60] sm:$0xff]  ;;  %v629_v43 = vld [vmem:[%s3911_s3 + $0x70] sm:$0xff]  ;;  %v616_v50 = vld [vmem:[%s3911_s3 + $0x8] sm:$0xff] }
  0x16   : > { %786 = vmatpush.msra.mxu0 %v643_v36  ;;  %695 = vmatpush.msra.mxu3 %v633_v37  ;;  %v631_v44 = vld [vmem:[%s3911_s3 + $0x80] sm:$0xff]  ;;  %v621_v45 = vld [vmem:[%s3911_s3 + $0x30] sm:$0xff]  ;;  %v660_v53 = vld [vmem:[%s3911_s3 + $0x168] sm:$0xff] }
  0x17   : > { %v562_v7 = vsub.f32 1.0, %v561_v6  ;;  %718 = vmatpush.msra.mxu1 %v634_v38  ;;  %741 = vmatpush.msra.mxu2 %v635_v39  ;;  %v623_v47 = vld [vmem:[%s3911_s3 + $0x40] sm:$0xff]  ;;  %v625_v48 = vld [vmem:[%s3911_s3 + $0x50] sm:$0xff]  ;;  %v662_v54 = vld [vmem:[%s3911_s3 + $0x178] sm:$0xff] }
  0x18   : > { %787 = vmatpush.msra.mxu0 %v637_v40  ;;  %696 = vmatpush.msra.mxu3 %v627_v41  ;;  %v615_v49 = vld [vmem:[%s3911_s3] sm:$0xff]  ;;  %v617_v51 = vld [vmem:[%s3911_s3 + $0x10] sm:$0xff]  ;;  %v654_v56 = vld [vmem:[%s3911_s3 + $0x138] sm:$0xff] }
  0x19   : > { %v563_v8 = vmul.f32 %v2587_v5, %v562_v7  ;;  %719 = vmatpush.msra.mxu1 %v628_v42  ;;  %742 = vmatpush.msra.mxu2 %v629_v43  ;;  %v619_v52 = vld [vmem:[%s3911_s3 + $0x20] sm:$0xff]  ;;  %v656_v57 = vld [vmem:[%s3911_s3 + $0x148] sm:$0xff]  ;;  %v650_v60 = vld [vmem:[%s3911_s3 + $0x118] sm:$0xff] }
  0x1a   : > { %558 = vadd.xlane.f32.xlu0 %v557_v3  ;;  %788 = vmatpush.msra.mxu0 %v631_v44  ;;  %v648_v59 = vld [vmem:[%s3911_s3 + $0x108] sm:$0xff]  ;;  %v642_v62 = vld [vmem:[%s3911_s3 + $0xd8] sm:$0xff]  ;;  %v2571_v24 = vld [vmem:[%s3930_s19] ss:$0 sm:$0xff] }
  0x1b   : > { %v564_v9 = vadd.f32 %v2587_v5, %v563_v8  ;;  %697 = vmatpush.msra.mxu3 %v621_v45  ;;  %720 = vmatpush.msra.mxu1 %v622_v46  ;;  %v644_v63 = vld [vmem:[%s3911_s3 + $0xe8] sm:$0xff]  ;;  %v638_v3 = vld [vmem:[%s3911_s3 + $0xb8] sm:$0xff]  ;;  %v2572_v27 = vld [vmem:[%s3910_s2] ss:$0 sm:$0xff] }
  0x1c   : > { %743 = vmatpush.msra.mxu2 %v623_v47  ;;  %789 = vmatpush.msra.mxu0 %v625_v48  ;;  %v636_v1 = vld [vmem:[%s3911_s3 + $0xa8] sm:$0xff]  ;;  %v630_v4 = vld [vmem:[%s3911_s3 + $0x78] sm:$0xff]  ;;  %v663_v38 = vld [vmem:[%s3912_s4] sm:$0x3f] }
  0x1d   : > { %v2795_v10 = vsel %vm565_vm1, %v2587_v5, %v564_v9  ;;  %698 = vmatpush.msra.mxu3 %v615_v49  ;;  %721 = vmatpush.msra.mxu1 %v616_v50  ;;  %v632_v5 = vld [vmem:[%s3911_s3 + $0x88] sm:$0xff]  ;;  %v626_v8 = vld [vmem:[%s3911_s3 + $0x58] sm:$0xff]  ;;  %v669_v41 = vperm.slane %v663_v38, 4  ;;  %v670_v46 = vperm.slane %v663_v38, 5  ;;  %v667_v47 = vperm.slane %v663_v38, 2 }
  0x1e   : > { %744 = vmatpush.msra.mxu2 %v617_v51  ;;  %790 = vmatpush.msra.mxu0 %v619_v52  ;;  %v624_v7 = vld [vmem:[%s3911_s3 + $0x48] sm:$0xff]  ;;  %v665_v49 = vperm.slane %v663_v38, 0 }
  0x1f   : > { %760 = vmatpush.msrb.mxu3 %v660_v53  ;;  %2554 = vmatpush.msrb.mxu1 %v662_v54 }
  0x20   : > { %806 = vmatpush.msrb.mxu0 %v662_v54 }
  0x21   : > { %761 = vmatpush.msrb.mxu3 %v654_v56  ;;  %2555 = vmatpush.msrb.mxu1 %v656_v57 }
  0x22   : > { %807 = vmatpush.msrb.mxu0 %v656_v57 }
  0x23   : > { %762 = vmatpush.msrb.mxu3 %v648_v59  ;;  %2556 = vmatpush.msrb.mxu1 %v650_v60 }
  0x24   : > { %808 = vmatpush.msrb.mxu0 %v650_v60 }
  0x25   : > { %763 = vmatpush.msrb.mxu3 %v642_v62  ;;  %2557 = vmatpush.msrb.mxu1 %v644_v63  ;;  %v666_v62 = vperm.slane %v663_v38, 1 }
  0x26   : > { %809 = vmatpush.msrb.mxu0 %v644_v63 }
  0x27   : > { %764 = vmatpush.msrb.mxu3 %v636_v1  ;;  %2558 = vmatpush.msrb.mxu1 %v638_v3 }
  0x28   : > { %810 = vmatpush.msrb.mxu0 %v638_v3 }
  0x29   : > { %765 = vmatpush.msrb.mxu3 %v630_v4  ;;  %2559 = vmatpush.msrb.mxu1 %v632_v5 }
  0x2a   : > { %811 = vmatpush.msrb.mxu0 %v632_v5 }
  0x2b   : > { %766 = vmatpush.msrb.mxu3 %v624_v7  ;;  %2560 = vmatpush.msrb.mxu1 %v626_v8 }
  0x2c   : > { %812 = vmatpush.msrb.mxu0 %v626_v8 }
  0x85   : > { %v556_v11 = vpop.xlane.xlu0 %555 }
  0x86   : > { %v567_v12 = vmul.f32 %v2795_v10, %v556_v11  ;;  %v618_v11 = vld [vmem:[%s3911_s3 + $0x18] sm:$0xff] }
  0x87   : > { %767 = vmatpush.msrb.mxu3 %v618_v11 }
  0x88   : > { %v2799_v13 = vsub.f32 %v2787_v0, %v567_v12  ;;  %v620_v12 = vld [vmem:[%s3911_s3 + $0x28] sm:$0xff] }
  0x89   : > { %813 = vmatpush.msrb.mxu0 %v620_v12  ;;  %2561 = vmatpush.msrb.mxu1 %v620_v12 }
  0x8a   : > { %v571_v14 = vmul.f32 %v2799_v13, %v2799_v13 }
  0x8c   : > { %v573_v15 = vsel %vm553_vm0, %v571_v14, 0.0 }
  0x8d   : > { %574 = vadd.xlane.f32.xlu1 %v573_v15  ;;  %v559_v16 = vpop.xlane.xlu0 %558 }
  0x8e   : > { %v568_v17 = vmul.f32 %v2795_v10, %v559_v16 }
  0x90   : > { %v2806_v18 = vsub.f32 %v2791_v2, %v568_v17 }
  0x92   : > { %v572_v19 = vmul.f32 %v2806_v18, %v2806_v18 }
  0x94   : > { %v576_v20 = vsel %vm553_vm0, %v572_v19, 0.0 }
  0x95   : > { %577 = vadd.xlane.f32.xlu1 %v576_v20 }
 0x100   : > { %v575_v55 = vpop.xlane.xlu1 %574 }
 0x101   : > { %v579_v58 = vmul.f32 %v575_v55, %v2795_v10 }
 0x103   : > { %v581_v61 = vadd.f32 1e-05, %v579_v58 }
 0x105   : > { %2588 = vrsqrt.f32 %v581_v61  ;;  %vm589_vm3 = vweird.f32 %v581_v61 }
 0x108   : > { %v578_v6 = vpop.xlane.xlu1 %577 }
 0x109   : > { %v580_v9 = vmul.f32 %v578_v6, %v2795_v10 }
 0x10b   : > { %v2589_v14 = vpop.eup %2588  ;;  %v582_v15 = vadd.f32 1e-05, %v580_v9 }
 0x10c   : > { %v584_v16 = vmul.f32 %v2589_v14, %v581_v61  ;;  %vm590_vm2 = vweird.f32 %v2589_v14  ;;  %v668_v61 = vperm.slane %v663_v38, 3  ;;  %v840_v38 = vld [vmem:[%s3913_s5 + $0x78] sm:$0xff] }
 0x10d   : > { %2590 = vrsqrt.f32 %v582_v15  ;;  %vm591_vm4 = vmor %vm589_vm3, %vm590_vm2  ;;  %vm599_vm6 = vweird.f32 %v582_v15 }
 0x10e   : > { %v585_v17 = vmul.f32 %v2589_v14, %v584_v16 }
 0x110   : > { %v586_v19 = vmul.f32 0.5, %v585_v17 }
 0x112   : > { %v587_v20 = vsub.f32 1.5, %v586_v19 }
 0x113   : > { %v2591_v21 = vpop.eup %2590 }
 0x114   : > { %v588_v22 = vmul.f32 %v2589_v14, %v587_v20  ;;  %v594_v23 = vmul.f32 %v2591_v21, %v582_v15  ;;  %vm600_vm5 = vweird.f32 %v2591_v21 }
 0x115   : > { %vm601_vm7 = vmor %vm599_vm6, %vm600_vm5 }
 0x116   : > { %v592_v25 = vsel %vm591_vm4, %v2589_v14, %v588_v22  ;;  %v595_v26 = vmul.f32 %v2591_v21, %v594_v23 }
 0x117   : > { %v603_v28 = vmul.f32 %v592_v25, %v2799_v13 }
 0x118   : > { %v596_v29 = vmul.f32 0.5, %v595_v26 }
 0x119   : > { %v608_v30 = vmul.f32 %v2571_v24, %v603_v28 }
 0x11a   : > { %v597_v31 = vsub.f32 1.5, %v596_v29 }
 0x11b   : > { %v613_v32 = vadd.f32 %v2572_v27, %v608_v30 }
 0x11c   : > { %v598_v33 = vmul.f32 %v2591_v21, %v597_v31 }
 0x11d   : > { %2372 = vmatmul.msk.f32.vlgmr.msra.gmra.mxu3 %vm553_vm0, %v613_v32  ;;  %2374 = vmatmul.msk.f32.vlgmr.msra.gmra.mxu1 %vm553_vm0, %v613_v32 }
 0x11e   : > { %v602_v34 = vsel %vm601_vm7, %v2591_v21, %v598_v33  ;;  %2376 = vmatmul.msk.f32.vlgmr.msra.gmra.mxu2 %vm553_vm0, %v613_v32  ;;  %2380 = vmatmul.msk.f32.vlgmr.msra.gmra.mxu0 %vm553_vm0, %v613_v32 }
 0x11f   : > { %v604_v35 = vmul.f32 %v602_v34, %v2806_v18 }
 0x121   : > { %v609_v13 = vmul.f32 %v2571_v24, %v604_v35 }
 0x123   : > { %v614_v36 = vadd.f32 %v2572_v27, %v609_v13 }
 0x125   : > { %2373 = vmatmul.msk.f32.gmra.mxu3 %vm553_vm0, %v614_v36  ;;  %2375 = vmatmul.msk.f32.gmra.mxu1 %vm553_vm0, %v614_v36 }
 0x126   : > { %2377 = vmatmul.msk.f32.gmra.mxu2 %vm553_vm0, %v614_v36  ;;  %2381 = vmatmul.msk.f32.gmra.mxu0 %vm553_vm0, %v614_v36 }
 0x12d   : > { %2378 = vmatmul.msk.f32.vlgmr.msrb.gmra.mxu3 %vm553_vm0, %v613_v32  ;;  %2383 = vmatmul.msk.f32.vlgmr.msrb.gmra.mxu1 %vm553_vm0, %v614_v36 }
 0x12e   : > { %2382 = vmatmul.msk.f32.vlgmr.msrb.gmra.mxu0 %vm553_vm0, %v613_v32 }
 0x135   : > { %2379 = vmatmul.msk.f32.gmra.mxu3 %vm553_vm0, %v614_v36 }
 0x19a   : > { %v723_v37 = vpop.f32.mrf.mxu1 }
 0x19b   : > { %v792_v18 = vpop.f32.mrf.mxu0  ;;  %v724_v4 = vadd.f32 %v723_v37, %v666_v62 }
 0x19c   : > { %v793_v45 = vadd.f32 %v792_v18, %v669_v41 }
 0x19d   : > { %v822_v6 = vmul.f32 0.125, %v724_v4  ;;  %v845_v4 = vld [vmem:[%s3913_s5 + $0xa0] sm:$0xff] }
 0x1a0   : > { %v700_v39 = vpop.f32.mrf.mxu3 }
 0x1a1   : > { %v746_v40 = vpop.f32.mrf.mxu2  ;;  %v701_v55 = vadd.f32 %v700_v39, %v665_v49  ;;  %v839_v39 = vld [vmem:[%s3913_s5 + $0x70] sm:$0xff] }
 0x1a2   : > { %v726_v42 = vpop.f32.mrf.mxu1  ;;  %v747_v57 = vadd.f32 %v746_v40, %v667_v47  ;;  %v856_v40 = vld [vmem:[%s3913_s5 + $0xf8] sm:$0xff] }
 0x1a3   : > { %v795_v43 = vpop.f32.mrf.mxu0  ;;  %v821_v59 = vmul.f32 0.125, %v701_v55  ;;  %v727_v7 = vadd.f32 %v726_v42, %v666_v62  ;;  %v838_v42 = vld [vmem:[%s3913_s5 + $0x68] sm:$0xff]  ;;  %v831_v62 = vld [vmem:[%s3913_s5 + $0x30] sm:$0xff] }
 0x1a4   : > { %v796_v44 = vadd.f32 %v795_v43, %v669_v41  ;;  %v855_v41 = vld [vmem:[%s3913_s5 + $0xf0] sm:$0xff]  ;;  %v854_v43 = vld [vmem:[%s3913_s5 + $0xe8] sm:$0xff] }
 0x1a5   : > { %v824_v8 = vmul.f32 0.125, %v727_v7  ;;  %v829_v7 = vld [vmem:[%s3913_s5 + $0x20] sm:$0xff] }
 0x1a6   : > { %923 = vmatpush.msra.mxu3 %v796_v44  ;;  %v837_v44 = vld [vmem:[%s3913_s5 + $0x60] sm:$0xff] }
 0x1a8   : > { %924 = vmatpush.msra.mxu3 %v793_v45  ;;  %v703_v48 = vpop.f32.mrf.mxu3  ;;  %v853_v45 = vld [vmem:[%s3913_s5 + $0xe0] sm:$0xff] }
 0x1a9   : > { %v749_v50 = vpop.f32.mrf.mxu2  ;;  %v704_v60 = vadd.f32 %v703_v48, %v665_v49  ;;  %v852_v48 = vld [vmem:[%s3913_s5 + $0xd8] sm:$0xff]  ;;  %v835_v49 = vld [vmem:[%s3913_s5 + $0x50] sm:$0xff] }
 0x1aa   : > { %v750_v51 = vadd.f32 %v749_v50, %v667_v47  ;;  %v818_v52 = vpop.f32.mrf.mxu1  ;;  %1029 = vmatpush.msrb.mxu3 %v840_v38  ;;  %v836_v47 = vld [vmem:[%s3913_s5 + $0x58] sm:$0xff]  ;;  %v851_v50 = vld [vmem:[%s3913_s5 + $0xd0] sm:$0xff] }
 0x1ab   : > { %v815_v53 = vpop.f32.mrf.mxu0  ;;  %v819_v54 = vadd.f32 %v818_v52, %v670_v46  ;;  %v823_v1 = vmul.f32 0.125, %v704_v60  ;;  %v850_v52 = vld [vmem:[%s3913_s5 + $0xc8] sm:$0xff]  ;;  %v832_v60 = vld [vmem:[%s3913_s5 + $0x38] sm:$0xff] }
 0x1ac   : > { %871 = vmatpush.xpose.msrb.mxu2 %v750_v51  ;;  %v816_v56 = vadd.f32 %v815_v53, %v670_v46  ;;  %1030 = vmatpush.msrb.mxu3 %v839_v39  ;;  %v834_v51 = vld [vmem:[%s3913_s5 + $0x48] sm:$0xff] }
 0x1ad   : > { %997 = vmatpush.msra.mxu1 %v819_v54  ;;  %v849_v54 = vld [vmem:[%s3913_s5 + $0xc0] sm:$0xff] }
 0x1ae   : > { %1031 = vmatpush.msrb.mxu3 %v838_v42 }
 0x1af   : > { %998 = vmatpush.msra.mxu1 %v816_v56 }
 0x1b0   : > { %872 = vmatpush.xpose.msrb.mxu2 %v747_v57  ;;  %v769_v58 = vpop.f32.mrf.mxu3  ;;  %1032 = vmatpush.msrb.mxu3 %v837_v44  ;;  %v833_v57 = vld [vmem:[%s3913_s5 + $0x40] sm:$0xff] }
 0x1b1   : > { %v770_v5 = vadd.f32 %v769_v58, %v668_v61 }
 0x1b2   : > { %1033 = vmatpush.msrb.mxu3 %v836_v47  ;;  %v1131_v47 = vld [vmem:[%s3917_s9 + $0x78] sm:$0xff] }
 0x1b3   : > { %873 = vmatmul.f32.vlgmr.msrb.gmra.mxu2 %v821_v59  ;;  %v848_v59 = vld [vmem:[%s3913_s5 + $0xb8] sm:$0xff]  ;;  %1175 = vmatpush.msrb.mxu1 %v1131_v47  ;;  %v1318_v47 = vld [vmem:[%s3919_s11 + $0xc0] sm:$0xff] }
 0x1b4   : > { %1006 = vmatpush.msra.mxu2 %v856_v40  ;;  %1034 = vmatpush.msrb.mxu3 %v835_v49  ;;  %v1129_v49 = vld [vmem:[%s3917_s9 + $0x68] sm:$0xff] }
 0x1b5   : > { %1176 = vmatpush.msrb.mxu1 %v1129_v49 }
 0x1b6   : > { %1007 = vmatpush.msra.mxu2 %v855_v41  ;;  %1035 = vmatpush.msrb.mxu3 %v834_v51  ;;  %v1127_v51 = vld [vmem:[%s3917_s9 + $0x58] sm:$0xff] }
 0x1b7   : > { %1177 = vmatpush.msrb.mxu1 %v1127_v51 }
 0x1b8   : > { %v772_v63 = vpop.f32.mrf.mxu3  ;;  %1008 = vmatpush.msra.mxu2 %v854_v43  ;;  %1036 = vmatpush.msrb.mxu3 %v833_v57  ;;  %v1121_v57 = vld [vmem:[%s3917_s9 + $0x28] sm:$0xff] }
 0x1b9   : > { %v773_v3 = vadd.f32 %v772_v63, %v668_v61  ;;  %v847_v61 = vld [vmem:[%s3913_s5 + $0xb0] sm:$0xff]  ;;  %v846_v63 = vld [vmem:[%s3913_s5 + $0xa8] sm:$0xff] }
 0x1ba   : > { %1009 = vmatpush.msra.mxu2 %v853_v45  ;;  %1037 = vmatpush.msrb.mxu3 %v832_v60  ;;  %v1116_v60 = vld [vmem:[%s3917_s9] sm:$0xff] }
 0x1bb   : > { %876 = vmatmul.f32.gmra.mxu2 %v823_v1  ;;  %946 = vmatpush.xpose.msra.mxu0 %v773_v3  ;;  %v830_v1 = vld [vmem:[%s3913_s5 + $0x28] sm:$0xff] }
 0x1bc   : > { %1010 = vmatpush.msra.mxu2 %v852_v48  ;;  %1038 = vmatpush.msrb.mxu3 %v831_v62  ;;  %v1128_v48 = vld [vmem:[%s3917_s9 + $0x60] sm:$0xff] }
 0x1be   : > { %1011 = vmatpush.msra.mxu2 %v851_v50  ;;  %1039 = vmatpush.msrb.mxu3 %v830_v1  ;;  %v1126_v50 = vld [vmem:[%s3917_s9 + $0x50] sm:$0xff] }
 0x1bf   : > { %947 = vmatpush.xpose.msra.mxu0 %v770_v5 }
 0x1c0   : > { %1012 = vmatpush.msra.mxu2 %v850_v52  ;;  %1040 = vmatpush.msrb.mxu3 %v829_v7  ;;  %v1124_v52 = vld [vmem:[%s3917_s9 + $0x40] sm:$0xff] }
 0x1c2   : > { %948 = vmatmul.f32.vlgmr.msra.gmra.mxu0 %v822_v6  ;;  %1013 = vmatpush.msra.mxu2 %v849_v54  ;;  %v1122_v54 = vld [vmem:[%s3917_s9 + $0x30] sm:$0xff] }
 0x1c4   : > { %1014 = vmatpush.msra.mxu2 %v848_v59  ;;  %v1119_v59 = vld [vmem:[%s3917_s9 + $0x18] sm:$0xff] }
 0x1c6   : > { %1015 = vmatpush.msra.mxu2 %v847_v61  ;;  %v1117_v61 = vld [vmem:[%s3917_s9 + $0x8] sm:$0xff] }
 0x1c8   : > { %1016 = vmatpush.msra.mxu2 %v846_v63 }
 0x1ca   : > { %951 = vmatmul.f32.gmra.mxu0 %v824_v8  ;;  %1017 = vmatpush.msra.mxu2 %v845_v4 }
 0x236   : > { %v874_v9 = vpop.f32.mrf.mxu2 }
 0x237   : > { %v881_v11 = vsel %vm880_vm8, %v874_v9, -inf }
 0x238   : > { %882 = vmax.xlane.f32.xlu2 %v881_v11  ;;  %v844_v11 = vld [vmem:[%s3913_s5 + $0x98] sm:$0xff] }
 0x239   : > { %1018 = vmatpush.msra.mxu2 %v844_v11 }
 0x23e   : > { %v877_v12 = vpop.f32.mrf.mxu2 }
 0x23f   : > { %v949_v14 = vpop.f32.mrf.mxu0  ;;  %v884_v15 = vsel %vm880_vm8, %v877_v12, -inf }
 0x240   : > { %885 = vmax.xlane.f32.xlu0 %v884_v15  ;;  %v955_v16 = vsel %vm880_vm8, %v949_v14, -inf  ;;  %v826_v15 = vld [vmem:[%s3913_s5 + $0x8] sm:$0xff] }
 0x241   : > { %956 = vmax.xlane.f32.xlu2 %v955_v16 }
 0x247   : > { %v952_v17 = vpop.f32.mrf.mxu0 }
 0x248   : > { %v958_v19 = vsel %vm880_vm8, %v952_v17, -inf }
 0x249   : > { %959 = vmax.xlane.f32.xlu1 %v958_v19  ;;  %v843_v19 = vld [vmem:[%s3913_s5 + $0x90] sm:$0xff] }
 0x24a   : > { %1019 = vmatpush.msra.mxu2 %v843_v19 }
 0x2ab   : > { %v883_v20 = vpop.xlane.xlu2 %882 }
 0x2ac   : > { %v887_v21 = vsub.f32 %v874_v9, %v883_v20  ;;  %v825_v20 = vld [vmem:[%s3913_s5] sm:$0xff] }
 0x2ae   : > { %v889_v22 = vmul.f32 1.442695, %v887_v21  ;;  %v842_v21 = vld [vmem:[%s3913_s5 + $0x88] sm:$0xff] }
 0x2af   : > { %1020 = vmatpush.msra.mxu2 %v842_v21  ;;  %v2575_v21 = vld [vmem:[%s3916_s8] ss:$0 sm:$0xff] }
 0x2b0   : > { %2592 = vpow2.f32 %v889_v22  ;;  %v841_v22 = vld [vmem:[%s3913_s5 + $0x80] sm:$0xff] }
 0x2b1   : > { %1021 = vmatpush.msra.mxu2 %v841_v22 }
 0x2b3   : > { %v886_v23 = vpop.xlane.xlu0 %885 }
 0x2b4   : > { %v888_v24 = vsub.f32 %v877_v12, %v886_v23  ;;  %v957_v25 = vpop.xlane.xlu2 %956  ;;  %v828_v12 = vld [vmem:[%s3913_s5 + $0x18] sm:$0xff] }
 0x2b5   : > { %v961_v26 = vsub.f32 %v949_v14, %v957_v25  ;;  %v827_v14 = vld [vmem:[%s3913_s5 + $0x10] sm:$0xff]  ;;  %1041 = vmatpush.msrb.mxu3 %v828_v12 }
 0x2b6   : > { %v2593_v27 = vpop.eup %2592  ;;  %v891_v28 = vmul.f32 1.442695, %v888_v24 }
 0x2b7   : > { %v963_v29 = vmul.f32 1.442695, %v961_v26  ;;  %v893_v30 = vsel %vm880_vm8, %v2593_v27, 0.0  ;;  %1042 = vmatpush.msrb.mxu3 %v827_v14 }
 0x2b8   : > { %2594 = vpow2.f32 %v891_v28  ;;  %894 = vadd.xlane.f32.xlu2 %v893_v30  ;;  %v2573_v30 = vld [vmem:[%s3914_s6] ss:$0 sm:$0xff] }
 0x2b9   : > { %2596 = vpow2.f32 %v963_v29  ;;  %1043 = vmatpush.msrb.mxu3 %v826_v15 }
 0x2bb   : > { %1044 = vmatpush.msrb.mxu3 %v825_v20 }
 0x2bc   : > { %v960_v31 = vpop.xlane.xlu1 %959 }
 0x2bd   : > { %v962_v32 = vsub.f32 %v952_v17, %v960_v31 }
 0x2be   : > { %v2985_v33 = vpop.eup %2594 }
 0x2bf   : > { %v2987_v34 = vpop.eup %2596  ;;  %v965_v35 = vmul.f32 1.442695, %v962_v32  ;;  %v896_v13 = vsel %vm880_vm8, %v2985_v33, 0.0 }
 0x2c0   : > { %897 = vadd.xlane.f32.xlu1 %v896_v13  ;;  %v967_v36 = vsel %vm880_vm8, %v2987_v34, 0.0 }
 0x2c1   : > { %2598 = vpow2.f32 %v965_v35  ;;  %968 = vadd.xlane.f32.xlu0 %v967_v36 }
 0x2c7   : > { %v2993_v37 = vpop.eup %2598 }
 0x2c8   : > { %v970_v18 = vsel %vm880_vm8, %v2993_v37, 0.0 }
 0x2c9   : > { %971 = vadd.xlane.f32.xlu2 %v970_v18 }
 0x32b   : > { %v895_v46 = vpop.xlane.xlu2 %894 }
 0x32c   : > { %2600 = vrcp.f32 %v895_v46  ;;  %v1130_v46 = vld [vmem:[%s3917_s9 + $0x70] sm:$0xff] }
 0x32d   : > { %1152 = vmatpush.msrb.mxu0 %v1130_v46  ;;  %v1302_v46 = vld [vmem:[%s3919_s11 + $0x40] sm:$0xff] }
 0x32f   : > { %1153 = vmatpush.msrb.mxu0 %v1128_v48 }
 0x331   : > { %1154 = vmatpush.msrb.mxu0 %v1126_v50 }
 0x332   : > { %v2601_v53 = vpop.eup %2600 }
 0x333   : > { %v901_v55 = vmul.f32 %v2601_v53, %v2593_v27  ;;  %v898_v56 = vpop.xlane.xlu1 %897  ;;  %v1125_v53 = vld [vmem:[%s3917_s9 + $0x48] sm:$0xff]  ;;  %1155 = vmatpush.msrb.mxu0 %v1124_v52  ;;  %v1301_v52 = vld [vmem:[%s3919_s11 + $0x38] sm:$0xff] }
 0x334   : > { %2602 = vrcp.f32 %v898_v56  ;;  %v969_v58 = vpop.xlane.xlu0 %968  ;;  %1178 = vmatpush.msrb.mxu1 %v1125_v53  ;;  %v1120_v56 = vld [vmem:[%s3917_s9 + $0x20] sm:$0xff]  ;;  %v1317_v53 = vld [vmem:[%s3919_s11 + $0xb8] sm:$0xff] }
 0x335   : > { %2384 = vmatmul.msk.f32.vlgmr.msra.gmra.mxu3 %vm880_vm8, %v901_v55  ;;  %2604 = vrcp.f32 %v969_v58  ;;  %v1123_v55 = vld [vmem:[%s3917_s9 + $0x38] sm:$0xff]  ;;  %1156 = vmatpush.msrb.mxu0 %v1122_v54  ;;  %v1118_v58 = vld [vmem:[%s3917_s9 + $0x10] sm:$0xff] }
 0x336   : > { %1179 = vmatpush.msrb.mxu1 %v1123_v55 }
 0x337   : > { %1157 = vmatpush.msrb.mxu0 %v1120_v56  ;;  %v1300_v56 = vld [vmem:[%s3919_s11 + $0x30] sm:$0xff] }
 0x338   : > { %1180 = vmatpush.msrb.mxu1 %v1121_v57  ;;  %v1316_v57 = vld [vmem:[%s3919_s11 + $0xb0] sm:$0xff] }
 0x339   : > { %1158 = vmatpush.msrb.mxu0 %v1118_v58 }
 0x33a   : > { %v2603_v3 = vpop.eup %2602  ;;  %1181 = vmatpush.msrb.mxu1 %v1119_v59 }
 0x33b   : > { %v2605_v5 = vpop.eup %2604  ;;  %v902_v6 = vmul.f32 %v2603_v3, %v2985_v33  ;;  %1159 = vmatpush.msrb.mxu0 %v1116_v60  ;;  %v1299_v60 = vld [vmem:[%s3919_s11 + $0x28] sm:$0xff] }
 0x33c   : > { %v975_v8 = vmul.f32 %v2605_v5, %v2987_v34  ;;  %v972_v9 = vpop.xlane.xlu2 %971  ;;  %1182 = vmatpush.msrb.mxu1 %v1117_v61  ;;  %v1315_v61 = vld [vmem:[%s3919_s11 + $0xa8] sm:$0xff] }
 0x33d   : > { %2606 = vrcp.f32 %v972_v9  ;;  %2385 = vmatmul.msk.f32.gmra.mxu3 %vm880_vm8, %v902_v6 }
 0x33e   : > { %2386 = vmatmul.msk.f32.vlgmr.msra.gmra.mxu1 %vm880_vm8, %v975_v8 }
 0x343   : > { %v2607_v16 = vpop.eup %2606 }
 0x344   : > { %v976_v17 = vmul.f32 %v2607_v16, %v2993_v37  ;;  %v2574_v16 = vld [vmem:[%s3915_s7] ss:$0 sm:$0xff] }
 0x346   : > { %2387 = vmatmul.msk.f32.gmra.mxu1 %vm880_vm8, %v976_v17 }
 0x3b8   : > { %v926_v23 = vpop.f32.mrf.mxu3 }
 0x3b9   : > { %1045 = vmatmul.f32.vlgmr.msrb.gmra.mxu3 %v926_v23 }
 0x3bb   : > { %v1000_v24 = vpop.f32.mrf.mxu1 }
 0x3bc   : > { %1022 = vmatmul.f32.vlgmr.msra.gmra.mxu2 %v1000_v24 }
 0x3c0   : > { %v929_v25 = vpop.f32.mrf.mxu3 }
 0x3c1   : > { %1048 = vmatmul.f32.gmra.mxu3 %v929_v25 }
 0x3c3   : > { %v1003_v26 = vpop.f32.mrf.mxu1 }
 0x3c4   : > { %1025 = vmatmul.f32.gmra.mxu2 %v1003_v26 }
 0x43c   : > { %v1046_v27 = vpop.f32.mrf.mxu3 }
 0x43f   : > { %v1023_v28 = vpop.f32.mrf.mxu2 }
 0x440   : > { %v1047_v29 = vadd.f32 %v1046_v27, %v1023_v28 }
 0x442   : > { %v1052_v31 = vadd.f32 %v1047_v29, %v2787_v0 }
 0x444   : > { %v3104_v32 = vadd.f32 %v2573_v30, %v1052_v31  ;;  %v1049_v34 = vpop.f32.mrf.mxu3  ;;  %v1309_v31 = vld [vmem:[%s3919_s11 + $0x78] sm:$0xff] }
 0x445   : > { %1330 = vmatpush.msra.mxu0 %v1309_v31 }
 0x446   : > { %v1062_v33 = vsel %vm553_vm0, %v3104_v32, 0.0 }
 0x447   : > { %1063 = vadd.xlane.f32.xlu0 %v1062_v33  ;;  %v1026_v35 = vpop.f32.mrf.mxu2  ;;  %v1325_v33 = vld [vmem:[%s3919_s11 + $0xf8] sm:$0xff] }
 0x448   : > { %v1050_v13 = vadd.f32 %v1049_v34, %v1026_v35  ;;  %1353 = vmatpush.msra.mxu1 %v1325_v33  ;;  %v1308_v34 = vld [vmem:[%s3919_s11 + $0x70] sm:$0xff] }
 0x449   : > { %v1324_v35 = vld [vmem:[%s3919_s11 + $0xf0] sm:$0xff]  ;;  %1331 = vmatpush.msra.mxu0 %v1308_v34 }
 0x44a   : > { %v1053_v36 = vadd.f32 %v1050_v13, %v2791_v2  ;;  %1354 = vmatpush.msra.mxu1 %v1324_v35  ;;  %v1307_v13 = vld [vmem:[%s3919_s11 + $0x68] sm:$0xff] }
 0x44b   : > { %1332 = vmatpush.msra.mxu0 %v1307_v13 }
 0x44c   : > { %v3109_v37 = vadd.f32 %v2573_v30, %v1053_v36  ;;  %v1323_v36 = vld [vmem:[%s3919_s11 + $0xe8] sm:$0xff] }
 0x44d   : > { %1355 = vmatpush.msra.mxu1 %v1323_v36 }
 0x44e   : > { %v1065_v18 = vsel %vm553_vm0, %v3109_v37, 0.0 }
 0x44f   : > { %1066 = vadd.xlane.f32.xlu1 %v1065_v18  ;;  %v1306_v18 = vld [vmem:[%s3919_s11 + $0x60] sm:$0xff] }
 0x450   : > { %1333 = vmatpush.msra.mxu0 %v1306_v18 }
 0x4ba   : > { %v1064_v38 = vpop.xlane.xlu0 %1063 }
 0x4bb   : > { %v1068_v0 = vmul.f32 %v1064_v38, %v2795_v10  ;;  %v1322_v38 = vld [vmem:[%s3919_s11 + $0xe0] sm:$0xff] }
 0x4bc   : > { %1356 = vmatpush.msra.mxu1 %v1322_v38 }
 0x4bd   : > { %v3115_v39 = vsub.f32 %v3104_v32, %v1068_v0  ;;  %v1305_v0 = vld [vmem:[%s3919_s11 + $0x58] sm:$0xff] }
 0x4be   : > { %1334 = vmatpush.msra.mxu0 %v1305_v0 }
 0x4bf   : > { %v1072_v40 = vmul.f32 %v3115_v39, %v3115_v39 }
 0x4c1   : > { %v1074_v41 = vsel %vm553_vm0, %v1072_v40, 0.0  ;;  %v1132_v40 = vld [vmem:[%s3918_s10] sm:$0x3] }
 0x4c2   : > { %1075 = vadd.xlane.f32.xlu2 %v1074_v41  ;;  %v1067_v42 = vpop.xlane.xlu1 %1066  ;;  %v1304_v41 = vld [vmem:[%s3919_s11 + $0x50] sm:$0xff] }
 0x4c3   : > { %v1069_v2 = vmul.f32 %v1067_v42, %v2795_v10  ;;  %v1320_v42 = vld [vmem:[%s3919_s11 + $0xd0] sm:$0xff]  ;;  %1335 = vmatpush.msra.mxu0 %v1304_v41 }
 0x4c5   : > { %v3122_v43 = vsub.f32 %v3109_v37, %v1069_v2  ;;  %v1134_v2 = vperm.slane %v1132_v40, 0 }
 0x4c7   : > { %v1073_v44 = vmul.f32 %v3122_v43, %v3122_v43 }
 0x4c9   : > { %v1077_v45 = vsel %vm553_vm0, %v1073_v44, 0.0  ;;  %v1303_v44 = vld [vmem:[%s3919_s11 + $0x48] sm:$0xff] }
 0x4ca   : > { %1078 = vadd.xlane.f32.xlu0 %v1077_v45  ;;  %v1319_v45 = vld [vmem:[%s3919_s11 + $0xc8] sm:$0xff]  ;;  %1336 = vmatpush.msra.mxu0 %v1303_v44 }
 0x4cc   : > { %1337 = vmatpush.msra.mxu0 %v1302_v46 }
 0x4ce   : > { %1338 = vmatpush.msra.mxu0 %v1301_v52 }
 0x4d0   : > { %1339 = vmatpush.msra.mxu0 %v1300_v56 }
 0x4d2   : > { %1340 = vmatpush.msra.mxu0 %v1299_v60 }
 0x535   : > { %v1076_v62 = vpop.xlane.xlu2 %1075 }
 0x536   : > { %v1080_v63 = vmul.f32 %v1076_v62, %v2795_v10 }
 0x538   : > { %v1082_v1 = vadd.f32 1e-05, %v1080_v63 }
 0x53a   : > { %2608 = vrsqrt.f32 %v1082_v1  ;;  %vm1090_vm10 = vweird.f32 %v1082_v1 }
 0x53d   : > { %v1079_v3 = vpop.xlane.xlu0 %1078 }
 0x53e   : > { %v1081_v4 = vmul.f32 %v1079_v3, %v2795_v10 }
 0x540   : > { %v2609_v5 = vpop.eup %2608  ;;  %v1083_v6 = vadd.f32 1e-05, %v1081_v4  ;;  %v1298_v4 = vld [vmem:[%s3919_s11 + $0x20] sm:$0xff] }
 0x541   : > { %v1085_v7 = vmul.f32 %v2609_v5, %v1082_v1  ;;  %vm1091_vm9 = vweird.f32 %v2609_v5  ;;  %1341 = vmatpush.msra.mxu0 %v1298_v4 }
 0x542   : > { %2610 = vrsqrt.f32 %v1083_v6  ;;  %vm1092_vm11 = vmor %vm1090_vm10, %vm1091_vm9  ;;  %vm1100_vm13 = vweird.f32 %v1083_v6 }
 0x543   : > { %v1086_v8 = vmul.f32 %v2609_v5, %v1085_v7 }
 0x545   : > { %v1087_v9 = vmul.f32 0.5, %v1086_v8  ;;  %v1297_v8 = vld [vmem:[%s3919_s11 + $0x18] sm:$0xff] }
 0x546   : > { %1342 = vmatpush.msra.mxu0 %v1297_v8 }
 0x547   : > { %v1088_v11 = vsub.f32 1.5, %v1087_v9  ;;  %v1313_v9 = vld [vmem:[%s3919_s11 + $0x98] sm:$0xff] }
 0x548   : > { %v2611_v12 = vpop.eup %2610 }
 0x549   : > { %v1089_v14 = vmul.f32 %v2609_v5, %v1088_v11  ;;  %v1095_v15 = vmul.f32 %v2611_v12, %v1083_v6  ;;  %vm1101_vm12 = vweird.f32 %v2611_v12 }
 0x54a   : > { %vm1102_vm14 = vmor %vm1100_vm13, %vm1101_vm12 }
 0x54b   : > { %v1093_v17 = vsel %vm1092_vm11, %v2609_v5, %v1089_v14  ;;  %v1096_v19 = vmul.f32 %v2611_v12, %v1095_v15  ;;  %v1314_v5 = vld [vmem:[%s3919_s11 + $0xa0] sm:$0xff]  ;;  %v1296_v14 = vld [vmem:[%s3919_s11 + $0x10] sm:$0xff] }
 0x54c   : > { %v1104_v20 = vmul.f32 %v1093_v17, %v3115_v39  ;;  %v1321_v39 = vld [vmem:[%s3919_s11 + $0xd8] sm:$0xff]  ;;  %v1312_v15 = vld [vmem:[%s3919_s11 + $0x90] sm:$0xff]  ;;  %1343 = vmatpush.msra.mxu0 %v1296_v14 }
 0x54d   : > { %v1097_v22 = vmul.f32 0.5, %v1096_v19  ;;  %1357 = vmatpush.msra.mxu1 %v1321_v39  ;;  %v1295_v19 = vld [vmem:[%s3919_s11 + $0x8] sm:$0xff] }
 0x54e   : > { %v1109_v23 = vmul.f32 %v2574_v16, %v1104_v20  ;;  %v1311_v20 = vld [vmem:[%s3919_s11 + $0x88] sm:$0xff]  ;;  %1344 = vmatpush.msra.mxu0 %v1295_v19 }
 0x54f   : > { %v1098_v24 = vsub.f32 1.5, %v1097_v22  ;;  %1358 = vmatpush.msra.mxu1 %v1320_v42  ;;  %v1294_v22 = vld [vmem:[%s3919_s11] sm:$0xff] }
 0x550   : > { %v1114_v25 = vadd.f32 %v2575_v21, %v1109_v23  ;;  %v1310_v23 = vld [vmem:[%s3919_s11 + $0x80] sm:$0xff]  ;;  %1345 = vmatpush.msra.mxu0 %v1294_v22 }
 0x551   : > { %v1099_v26 = vmul.f32 %v2611_v12, %v1098_v24  ;;  %1359 = vmatpush.msra.mxu1 %v1319_v45 }
 0x552   : > { %2388 = vmatmul.msk.f32.vlgmr.msrb.gmra.mxu0 %vm553_vm0, %v1114_v25  ;;  %2390 = vmatmul.msk.f32.vlgmr.msrb.gmra.mxu1 %vm553_vm0, %v1114_v25 }
 0x553   : > { %v1103_v27 = vsel %vm1102_vm14, %v2611_v12, %v1099_v26  ;;  %1360 = vmatpush.msra.mxu1 %v1318_v47 }
 0x554   : > { %v1105_v28 = vmul.f32 %v1103_v27, %v3122_v43  ;;  %v1135_v43 = vperm.slane %v1132_v40, 1 }
 0x555   : > { %1361 = vmatpush.msra.mxu1 %v1317_v53 }
 0x556   : > { %v1110_v29 = vmul.f32 %v2574_v16, %v1105_v28 }
 0x557   : > { %1362 = vmatpush.msra.mxu1 %v1316_v57 }
 0x558   : > { %v1115_v30 = vadd.f32 %v2575_v21, %v1110_v29 }
 0x559   : > { %1363 = vmatpush.msra.mxu1 %v1315_v61 }
 0x55a   : > { %2389 = vmatmul.msk.f32.gmra.mxu0 %vm553_vm0, %v1115_v30  ;;  %2391 = vmatmul.msk.f32.gmra.mxu1 %vm553_vm0, %v1115_v30 }
 0x55b   : > { %1364 = vmatpush.msra.mxu1 %v1314_v5 }
 0x55d   : > { %1365 = vmatpush.msra.mxu1 %v1313_v9 }
 0x55f   : > { %1366 = vmatpush.msra.mxu1 %v1312_v15 }
 0x561   : > { %1367 = vmatpush.msra.mxu1 %v1311_v20 }
 0x563   : > { %1368 = vmatpush.msra.mxu1 %v1310_v23 }
 0x5cf   : > { %v1161_v48 = vpop.f32.mrf.mxu0  ;;  %v1184_v49 = vpop.f32.mrf.mxu1 }
 0x5d0   : > { %v3240_v50 = vadd.f32 %v1161_v48, %v1134_v2  ;;  %v3242_v51 = vadd.f32 %v1184_v49, %v1135_v43 }
 0x5d2   : > { %v3251_v54 = vmul.f32 0.70710677, %v3240_v50  ;;  %v3254_v55 = vmul.f32 0.70710677, %v3242_v51 }
 0x5d4   : > { %v1198_v58 = vand.u32 2147483647, %v3251_v54  ;;  %v1199_v59 = vand.u32 2147483647, %v3254_v55  ;;  %vm1274_vm15 = vcmp.ge.f32.partialorder %v3251_v54, 0.0  ;;  %vm1275_vm1 = vcmp.ge.f32.partialorder %v3254_v55, 0.0 }
 0x5d6   : > { %v1202_v62 = vmul.f32 0.3275911, %v1198_v58  ;;  %v1203_v63 = vmul.f32 0.3275911, %v1199_v59  ;;  %v1250_v27 = vsub.f32 0.0, %v1198_v58  ;;  %v1251_v31 = vsub.f32 0.0, %v1199_v59 }
 0x5d7   : > { %v1164_v1 = vpop.f32.mrf.mxu0  ;;  %v1187_v3 = vpop.f32.mrf.mxu1 }
 0x5d8   : > { %v1206_v6 = vadd.f32 1.0, %v1202_v62  ;;  %v1207_v7 = vadd.f32 1.0, %v1203_v63  ;;  %v3282_v11 = vadd.f32 %v1164_v1, %v1134_v2  ;;  %v3284_v12 = vadd.f32 %v1187_v3, %v1135_v43 }
 0x5d9   : > { %v1254_v36 = vmul.f32 %v1250_v27, %v1198_v58  ;;  %v1255_v0 = vmul.f32 %v1251_v31, %v1199_v59 }
 0x5da   : > { %2612 = vrcp.f32 %v1206_v6  ;;  %v3293_v16 = vmul.f32 0.70710677, %v3282_v11  ;;  %v3296_v17 = vmul.f32 0.70710677, %v3284_v12 }
 0x5db   : > { %2614 = vrcp.f32 %v1207_v7  ;;  %v1258_v41 = vmul.f32 1.442695, %v1254_v36  ;;  %v1260_v44 = vmul.f32 1.442695, %v1255_v0 }
 0x5dc   : > { %v1200_v21 = vand.u32 2147483647, %v3293_v16  ;;  %v1201_v24 = vand.u32 2147483647, %v3296_v17  ;;  %vm1276_vm2 = vcmp.ge.f32.partialorder %v3293_v16, 0.0  ;;  %vm1277_vm3 = vcmp.ge.f32.partialorder %v3296_v17, 0.0 }
 0x5de   : > { %v1204_v25 = vmul.f32 0.3275911, %v1200_v21  ;;  %v1205_v28 = vmul.f32 0.3275911, %v1201_v24  ;;  %v1252_v45 = vsub.f32 0.0, %v1200_v21  ;;  %v1253_v48 = vsub.f32 0.0, %v1201_v24 }
 0x5e0   : > { %v2613_v26 = vpop.eup %2612  ;;  %v1208_v33 = vadd.f32 1.0, %v1204_v25  ;;  %v1209_v35 = vadd.f32 1.0, %v1205_v28  ;;  %v1256_v59 = vmul.f32 %v1252_v45, %v1200_v21  ;;  %v1257_v62 = vmul.f32 %v1253_v48, %v1201_v24 }
 0x5e1   : > { %v2615_v29 = vpop.eup %2614  ;;  %v1214_v30 = vmul.f32 1.0614054, %v2613_v26 }
 0x5e2   : > { %v1215_v34 = vmul.f32 1.0614054, %v2615_v29  ;;  %2616 = vrcp.f32 %v1208_v33  ;;  %v1262_v7 = vmul.f32 1.442695, %v1256_v59  ;;  %v1264_v15 = vmul.f32 1.442695, %v1257_v62 }
 0x5e3   : > { %v1218_v13 = vadd.f32 -1.4531521, %v1214_v30  ;;  %2618 = vrcp.f32 %v1209_v35 }
 0x5e4   : > { %v1219_v18 = vadd.f32 -1.4531521, %v1215_v34  ;;  %2620 = vpow2.f32 %v1258_v41 }
 0x5e5   : > { %v1222_v38 = vmul.f32 %v2613_v26, %v1218_v13  ;;  %2622 = vpow2.f32 %v1260_v44  ;;  %v1190_v13 = vmul.f32 0.5, %v3240_v50 }
 0x5e6   : > { %v1223_v39 = vmul.f32 %v2615_v29, %v1219_v18  ;;  %2624 = vpow2.f32 %v1262_v7 }
 0x5e7   : > { %v1226_v40 = vadd.f32 1.4214138, %v1222_v38  ;;  %2626 = vpow2.f32 %v1264_v15 }
 0x5e8   : > { %v1227_v42 = vadd.f32 1.4214138, %v1223_v39  ;;  %v2617_v2 = vpop.eup %2616  ;;  %v1191_v39 = vmul.f32 0.5, %v3242_v51  ;;  %v1192_v51 = vmul.f32 0.5, %v3282_v11 }
 0x5e9   : > { %v1230_v43 = vmul.f32 %v2613_v26, %v1226_v40  ;;  %v2619_v46 = vpop.eup %2618  ;;  %v1216_v49 = vmul.f32 1.0614054, %v2617_v2 }
 0x5ea   : > { %v1231_v47 = vmul.f32 %v2615_v29, %v1227_v42  ;;  %v1217_v53 = vmul.f32 1.0614054, %v2619_v46  ;;  %v2621_v9 = vpop.eup %2620 }
 0x5eb   : > { %v1234_v52 = vadd.f32 -0.28449672, %v1230_v43  ;;  %v1220_v57 = vadd.f32 -1.4531521, %v1216_v49  ;;  %v2623_v20 = vpop.eup %2622 }
 0x5ec   : > { %v1235_v56 = vadd.f32 -0.28449672, %v1231_v47  ;;  %v1221_v60 = vadd.f32 -1.4531521, %v1217_v53  ;;  %v2625_v0 = vpop.eup %2624 }
 0x5ed   : > { %v1238_v58 = vmul.f32 %v2613_v26, %v1234_v52  ;;  %v1224_v63 = vmul.f32 %v2617_v2, %v1220_v57  ;;  %v2627_v42 = vpop.eup %2626  ;;  %v1193_v52 = vmul.f32 0.5, %v3284_v12 }
 0x5ee   : > { %v1239_v61 = vmul.f32 %v2615_v29, %v1235_v56  ;;  %v1225_v3 = vmul.f32 %v2619_v46, %v1221_v60 }
 0x5ef   : > { %v1242_v1 = vadd.f32 0.2548296, %v1238_v58  ;;  %v1228_v5 = vadd.f32 1.4214138, %v1224_v63  ;;  %v2576_v58 = vld [vmem:[%s3920_s12] ss:$0 sm:$0xff] }
 0x5f0   : > { %v1243_v4 = vadd.f32 0.2548296, %v1239_v61  ;;  %v1229_v8 = vadd.f32 1.4214138, %v1225_v3 }
 0x5f1   : > { %v1246_v6 = vmul.f32 %v2613_v26, %v1242_v1  ;;  %v1232_v19 = vmul.f32 %v2617_v2, %v1228_v5 }
 0x5f2   : > { %v1247_v14 = vmul.f32 %v2615_v29, %v1243_v4  ;;  %v1233_v23 = vmul.f32 %v2619_v46, %v1229_v8 }
 0x5f3   : > { %v1266_v22 = vmul.f32 %v2621_v9, %v1246_v6  ;;  %v1236_v21 = vadd.f32 -0.28449672, %v1232_v19 }
 0x5f4   : > { %v1267_v25 = vmul.f32 %v2623_v20, %v1247_v14  ;;  %v1237_v24 = vadd.f32 -0.28449672, %v1233_v23  ;;  %v2436_v20 = vld [vmem:[%s3911_s3 + $0x2d0] sm:$0xff] }
 0x5f5   : > { %v1270_v27 = vsub.f32 1.0, %v1266_v22  ;;  %v1240_v30 = vmul.f32 %v2617_v2, %v1236_v21  ;;  %v2437_v22 = vld [vmem:[%s3911_s3 + $0x2d8] sm:$0xff]  ;;  %v2440_v23 = vld [vmem:[%s3911_s3 + $0x2f0] sm:$0xff]  ;;  %1514 = vmatpush.msrb.mxu2 %v2436_v20  ;;  %v2430_v21 = vld [vmem:[%s3911_s3 + $0x2a0] sm:$0xff] }
 0x5f6   : > { %v1271_v28 = vsub.f32 1.0, %v1267_v25  ;;  %v1241_v33 = vmul.f32 %v2619_v46, %v1237_v24  ;;  %1537 = vmatpush.msra.mxu3 %v2437_v22  ;;  %v2441_v25 = vld [vmem:[%s3911_s3 + $0x2f8] sm:$0xff]  ;;  %1606 = vmatpush.msrb.mxu0 %v2440_v23  ;;  %v2434_v24 = vld [vmem:[%s3911_s3 + $0x2c0] sm:$0xff] }
 0x5f7   : > { %v1278_v31 = vsub.f32 0.0, %v1270_v27  ;;  %v1244_v34 = vadd.f32 0.2548296, %v1240_v30  ;;  %1629 = vmatpush.msrb.mxu1 %v2441_v25  ;;  %1515 = vmatpush.msrb.mxu2 %v2430_v21  ;;  %v2424_v30 = vld [vmem:[%s3911_s3 + $0x270] sm:$0xff]  ;;  %v2577_v23 = vld [vmem:[%s3930_s19 + $0x1] ss:$0 sm:$0xff] }
 0x5f8   : > { %v1279_v26 = vsub.f32 0.0, %v1271_v28  ;;  %v1245_v35 = vadd.f32 0.2548296, %v1241_v33  ;;  %1607 = vmatpush.msrb.mxu0 %v2434_v24  ;;  %v2428_v33 = vld [vmem:[%s3911_s3 + $0x290] sm:$0xff] }
 0x5f9   : > { %v1282_v29 = vsel %vm1274_vm15, %v1270_v27, %v1278_v31  ;;  %v1248_v38 = vmul.f32 %v2617_v2, %v1244_v34  ;;  %v2431_v27 = vld [vmem:[%s3911_s3 + $0x2a8] sm:$0xff]  ;;  %v2425_v31 = vld [vmem:[%s3911_s3 + $0x278] sm:$0xff]  ;;  %1516 = vmatpush.msrb.mxu2 %v2424_v30  ;;  %v2418_v34 = vld [vmem:[%s3911_s3 + $0x240] sm:$0xff] }
 0x5fa   : > { %v1286_v36 = vadd.f32 1.0, %v1282_v29  ;;  %v1283_v18 = vsel %vm1275_vm1, %v1271_v28, %v1279_v26  ;;  %v1249_v41 = vmul.f32 %v2619_v46, %v1245_v35  ;;  %1538 = vmatpush.msra.mxu3 %v2431_v27  ;;  %v2435_v28 = vld [vmem:[%s3911_s3 + $0x2c8] sm:$0xff]  ;;  %v2429_v26 = vld [vmem:[%s3911_s3 + $0x298] sm:$0xff]  ;;  %1608 = vmatpush.msrb.mxu0 %v2428_v33  ;;  %v2422_v35 = vld [vmem:[%s3911_s3 + $0x260] sm:$0xff] }
 0x5fb   : > { %v1287_v40 = vadd.f32 1.0, %v1283_v18  ;;  %v1268_v44 = vmul.f32 %v2625_v0, %v1248_v38  ;;  %1630 = vmatpush.msrb.mxu1 %v2435_v28  ;;  %v2419_v29 = vld [vmem:[%s3911_s3 + $0x248] sm:$0xff]  ;;  %1517 = vmatpush.msrb.mxu2 %v2418_v34  ;;  %v2413_v18 = vld [vmem:[%s3911_s3 + $0x218] sm:$0xff]  ;;  %v2416_v38 = vld [vmem:[%s3911_s3 + $0x230] sm:$0xff] }
 0x5fc   : > { %v1290_v43 = vmul.f32 %v1286_v36, %v1190_v13  ;;  %v1269_v45 = vmul.f32 %v2627_v42, %v1249_v41  ;;  %1539 = vmatpush.msra.mxu3 %v2425_v31  ;;  %v2423_v13 = vld [vmem:[%s3911_s3 + $0x268] sm:$0xff]  ;;  %1609 = vmatpush.msrb.mxu0 %v2422_v35  ;;  %v2412_v36 = vld [vmem:[%s3911_s3 + $0x210] sm:$0xff]  ;;  %v2417_v0 = vld [vmem:[%s3911_s3 + $0x238] sm:$0xff] }
 0x5fd   : > { %v1291_v54 = vmul.f32 %v1287_v40, %v1191_v39  ;;  %v1272_v47 = vsub.f32 1.0, %v1268_v44  ;;  %1631 = vmatpush.msrb.mxu1 %v2429_v26  ;;  %1518 = vmatpush.msrb.mxu2 %v2412_v36  ;;  %v2406_v39 = vld [vmem:[%s3911_s3 + $0x1e0] sm:$0xff]  ;;  %v2407_v40 = vld [vmem:[%s3911_s3 + $0x1e8] sm:$0xff]  ;;  %v2401_v44 = vld [vmem:[%s3911_s3 + $0x1b8] sm:$0xff] }
 0x5fe   : > { %1346 = vmatmul.f32.vlgmr.msra.gmra.mxu0 %v1290_v43  ;;  %v1273_v55 = vsub.f32 1.0, %v1269_v45  ;;  %1540 = vmatpush.msra.mxu3 %v2419_v29  ;;  %v2410_v41 = vld [vmem:[%s3911_s3 + $0x200] sm:$0xff]  ;;  %v2411_v42 = vld [vmem:[%s3911_s3 + $0x208] sm:$0xff]  ;;  %v2400_v43 = vld [vmem:[%s3911_s3 + $0x1b0] sm:$0xff] }
 0x5ff   : > { %1369 = vmatmul.f32.vlgmr.msra.gmra.mxu1 %v1291_v54  ;;  %v1280_v48 = vsub.f32 0.0, %v1272_v47  ;;  %1610 = vmatpush.msrb.mxu0 %v2416_v38  ;;  %v2404_v54 = vld [vmem:[%s3911_s3 + $0x1d0] sm:$0xff]  ;;  %v2405_v45 = vld [vmem:[%s3911_s3 + $0x1d8] sm:$0xff]  ;;  %v2578_v27 = vld [vmem:[%s3910_s2 + $0x1] ss:$0 sm:$0xff] }
 0x600   : > { %v1281_v50 = vsub.f32 0.0, %v1273_v55  ;;  %1632 = vmatpush.msrb.mxu1 %v2423_v13  ;;  %1541 = vmatpush.msra.mxu3 %v2413_v18  ;;  %v2442_v18 = vld [vmem:[%s3912_s4 + $0x6] sm:$0x3f] }
 0x601   : > { %v1284_v2 = vsel %vm1276_vm2, %v1272_v47, %v1280_v48  ;;  %1519 = vmatpush.msrb.mxu2 %v2406_v39  ;;  %1611 = vmatpush.msrb.mxu0 %v2410_v41  ;;  %v2394_v47 = vld [vmem:[%s3911_s3 + $0x180] sm:$0xff]  ;;  %v1492_v39 = vperm.slane %v2442_v18, 4 }
 0x602   : > { %v1288_v49 = vadd.f32 1.0, %v1284_v2  ;;  %v1285_v46 = vsel %vm1277_vm3, %v1273_v55, %v1281_v50  ;;  %1633 = vmatpush.msrb.mxu1 %v2417_v0  ;;  %1542 = vmatpush.msra.mxu3 %v2407_v40  ;;  %v2395_v55 = vld [vmem:[%s3911_s3 + $0x188] sm:$0xff]  ;;  %v2398_v48 = vld [vmem:[%s3911_s3 + $0x1a0] sm:$0xff]  ;;  %v1493_v40 = vperm.slane %v2442_v18, 5 }
 0x603   : > { %v1289_v53 = vadd.f32 1.0, %v1285_v46  ;;  %1520 = vmatpush.msrb.mxu2 %v2400_v43  ;;  %1612 = vmatpush.msrb.mxu0 %v2404_v54  ;;  %v2399_v50 = vld [vmem:[%s3911_s3 + $0x1a8] sm:$0xff]  ;;  %v2438_v2 = vld [vmem:[%s3911_s3 + $0x2e0] sm:$0xff] }
 0x604   : > { %v1292_v56 = vmul.f32 %v1288_v49, %v1192_v51  ;;  %1634 = vmatpush.msrb.mxu1 %v2411_v42  ;;  %1543 = vmatpush.msra.mxu3 %v2401_v44  ;;  %v2439_v51 = vld [vmem:[%s3911_s3 + $0x2e8] sm:$0xff] }
 0x605   : > { %v1293_v57 = vmul.f32 %v1289_v53, %v1193_v52  ;;  %1521 = vmatpush.msrb.mxu2 %v2394_v47  ;;  %1613 = vmatpush.msrb.mxu0 %v2398_v48  ;;  %v2432_v52 = vld [vmem:[%s3911_s3 + $0x2b0] sm:$0xff]  ;;  %v2433_v53 = vld [vmem:[%s3911_s3 + $0x2b8] sm:$0xff] }
 0x606   : > { %1349 = vmatmul.f32.gmra.mxu0 %v1292_v56  ;;  %1635 = vmatpush.msrb.mxu1 %v2405_v45 }
 0x607   : > { %1372 = vmatmul.f32.gmra.mxu1 %v1293_v57  ;;  %1544 = vmatpush.msra.mxu3 %v2395_v55  ;;  %v2426_v57 = vld [vmem:[%s3911_s3 + $0x280] sm:$0xff] }
 0x608   : > { %1636 = vmatpush.msrb.mxu1 %v2399_v50  ;;  %1560 = vmatpush.msra.mxu2 %v2438_v2  ;;  %v1490_v2 = vperm.slane %v2442_v18, 2 }
 0x609   : > { %1583 = vmatpush.msrb.mxu3 %v2439_v51  ;;  %v1491_v51 = vperm.slane %v2442_v18, 3 }
 0x60a   : > { %1561 = vmatpush.msra.mxu2 %v2432_v52 }
 0x60b   : > { %1584 = vmatpush.msrb.mxu3 %v2433_v53 }
 0x60c   : > { %1562 = vmatpush.msra.mxu2 %v2426_v57 }
 0x67b   : > { %v1347_v16 = vpop.f32.mrf.mxu0 }
 0x67c   : > { %v1348_v59 = vadd.f32 %v2576_v58, %v1347_v16  ;;  %v1370_v60 = vpop.f32.mrf.mxu1  ;;  %v2420_v16 = vld [vmem:[%s3911_s3 + $0x250] sm:$0xff] }
 0x67d   : > { %1563 = vmatpush.msra.mxu2 %v2420_v16 }
 0x67e   : > { %v1371_v17 = vadd.f32 %v1370_v60, %v1348_v59  ;;  %v2421_v59 = vld [vmem:[%s3911_s3 + $0x258] sm:$0xff]  ;;  %v2414_v60 = vld [vmem:[%s3911_s3 + $0x220] sm:$0xff] }
 0x67f   : > { %1564 = vmatpush.msra.mxu2 %v2414_v60 }
 0x680   : > { %v3324_v61 = vadd.f32 %v1371_v17, %v3104_v32  ;;  %v2415_v17 = vld [vmem:[%s3911_s3 + $0x228] sm:$0xff] }
 0x682   : > { %v1382_v11 = vsel %vm553_vm0, %v3324_v61, 0.0 }
 0x683   : > { %1383 = vadd.xlane.f32.xlu1 %v1382_v11  ;;  %v1350_v12 = vpop.f32.mrf.mxu0  ;;  %v2408_v11 = vld [vmem:[%s3911_s3 + $0x1f0] sm:$0xff] }
 0x684   : > { %v1351_v62 = vadd.f32 %v2576_v58, %v1350_v12  ;;  %v1373_v63 = vpop.f32.mrf.mxu1  ;;  %v2427_v58 = vld [vmem:[%s3911_s3 + $0x288] sm:$0xff]  ;;  %v2409_v12 = vld [vmem:[%s3911_s3 + $0x1f8] sm:$0xff]  ;;  %1565 = vmatpush.msra.mxu2 %v2408_v11 }
 0x685   : > { %1585 = vmatpush.msrb.mxu3 %v2427_v58 }
 0x686   : > { %v1374_v1 = vadd.f32 %v1373_v63, %v1351_v62  ;;  %v2402_v63 = vld [vmem:[%s3911_s3 + $0x1c0] sm:$0xff] }
 0x687   : > { %1586 = vmatpush.msrb.mxu3 %v2421_v59  ;;  %1566 = vmatpush.msra.mxu2 %v2402_v63 }
 0x688   : > { %v3329_v3 = vadd.f32 %v1374_v1, %v3109_v37  ;;  %v2403_v1 = vld [vmem:[%s3911_s3 + $0x1c8] sm:$0xff] }
 0x689   : > { %1587 = vmatpush.msrb.mxu3 %v2415_v17 }
 0x68a   : > { %v1385_v4 = vsel %vm553_vm0, %v3329_v3, 0.0 }
 0x68b   : > { %1386 = vadd.xlane.f32.xlu2 %v1385_v4  ;;  %1588 = vmatpush.msrb.mxu3 %v2409_v12 }
 0x68d   : > { %1589 = vmatpush.msrb.mxu3 %v2403_v1 }
 0x6f6   : > { %v1384_v5 = vpop.xlane.xlu1 %1383 }
 0x6f7   : > { %v1388_v6 = vmul.f32 %v1384_v5, %v2795_v10 }
 0x6f9   : > { %v3335_v32 = vsub.f32 %v3324_v61, %v1388_v6  ;;  %v2396_v6 = vld [vmem:[%s3911_s3 + $0x190] sm:$0xff] }
 0x6fa   : > { %1567 = vmatpush.msra.mxu2 %v2396_v6 }
 0x6fb   : > { %v1392_v7 = vmul.f32 %v3335_v32, %v3335_v32 }
 0x6fd   : > { %v1394_v8 = vsel %vm553_vm0, %v1392_v7, 0.0  ;;  %v2397_v7 = vld [vmem:[%s3911_s3 + $0x198] sm:$0xff] }
 0x6fe   : > { %1395 = vadd.xlane.f32.xlu0 %v1394_v8  ;;  %v1387_v9 = vpop.xlane.xlu2 %1386  ;;  %1590 = vmatpush.msrb.mxu3 %v2397_v7 }
 0x6ff   : > { %v1389_v37 = vmul.f32 %v1387_v9, %v2795_v10 }
 0x701   : > { %v3342_v14 = vsub.f32 %v3329_v3, %v1389_v37 }
 0x703   : > { %v1393_v15 = vmul.f32 %v3342_v14, %v3342_v14 }
 0x705   : > { %v1397_v19 = vsel %vm553_vm0, %v1393_v15, 0.0 }
 0x706   : > { %1398 = vadd.xlane.f32.xlu1 %v1397_v19 }
 0x771   : > { %v1396_v49 = vpop.xlane.xlu0 %1395 }
 0x772   : > { %v1400_v46 = vmul.f32 %v1396_v49, %v2795_v10  ;;  %v1488_v49 = vperm.slane %v2442_v18, 0 }
 0x774   : > { %v1402_v56 = vadd.f32 1e-05, %v1400_v46  ;;  %v1489_v46 = vperm.slane %v2442_v18, 1  ;;  %v2486_v18 = vld [vmem:[%s3913_s5 + $0x1f8] sm:$0xff] }
 0x776   : > { %2628 = vrsqrt.f32 %v1402_v56  ;;  %vm1410_vm5 = vweird.f32 %v1402_v56 }
 0x779   : > { %v1399_v62 = vpop.xlane.xlu1 %1398 }
 0x77a   : > { %v1401_v4 = vmul.f32 %v1399_v62, %v2795_v10 }
 0x77c   : > { %v2629_v5 = vpop.eup %2628  ;;  %v1403_v9 = vadd.f32 1e-05, %v1401_v4 }
 0x77d   : > { %v1405_v8 = vmul.f32 %v2629_v5, %v1402_v56  ;;  %vm1411_vm4 = vweird.f32 %v2629_v5 }
 0x77e   : > { %2630 = vrsqrt.f32 %v1403_v9  ;;  %vm1412_vm6 = vmor %vm1410_vm5, %vm1411_vm4  ;;  %vm1420_vm9 = vweird.f32 %v1403_v9 }
 0x77f   : > { %v1406_v37 = vmul.f32 %v2629_v5, %v1405_v8 }
 0x781   : > { %v1407_v15 = vmul.f32 0.5, %v1406_v37 }
 0x783   : > { %v1408_v19 = vsub.f32 1.5, %v1407_v15 }
 0x784   : > { %v2631_v20 = vpop.eup %2630 }
 0x785   : > { %v1409_v22 = vmul.f32 %v2629_v5, %v1408_v19  ;;  %v1415_v25 = vmul.f32 %v2631_v20, %v1403_v9  ;;  %vm1421_vm7 = vweird.f32 %v2631_v20 }
 0x786   : > { %vm1422_vm10 = vmor %vm1420_vm9, %vm1421_vm7 }
 0x787   : > { %v1413_v21 = vsel %vm1412_vm6, %v2629_v5, %v1409_v22  ;;  %v1416_v28 = vmul.f32 %v2631_v20, %v1415_v25 }
 0x788   : > { %v1424_v24 = vmul.f32 %v1413_v21, %v3335_v32 }
 0x789   : > { %v1417_v31 = vmul.f32 0.5, %v1416_v28 }
 0x78a   : > { %v1429_v30 = vmul.f32 %v2577_v23, %v1424_v24 }
 0x78b   : > { %v1418_v26 = vsub.f32 1.5, %v1417_v31 }
 0x78c   : > { %v1434_v33 = vadd.f32 %v2578_v27, %v1429_v30 }
 0x78d   : > { %v1419_v34 = vmul.f32 %v2631_v20, %v1418_v26 }
 0x78e   : > { %2443 = vmatmul.msk.f32.vlgmr.msrb.gmra.mxu2 %vm553_vm0, %v1434_v33  ;;  %2445 = vmatmul.msk.f32.vlgmr.msra.gmra.mxu3 %vm553_vm0, %v1434_v33 }
 0x78f   : > { %2451 = vmatmul.msk.f32.vlgmr.msrb.gmra.mxu0 %vm553_vm0, %v1434_v33  ;;  %2453 = vmatmul.msk.f32.vlgmr.msrb.gmra.mxu1 %vm553_vm0, %v1434_v33  ;;  %v1423_v29 = vsel %vm1422_vm10, %v2631_v20, %v1419_v34 }
 0x790   : > { %v1425_v32 = vmul.f32 %v1423_v29, %v3342_v14 }
 0x792   : > { %v1430_v35 = vmul.f32 %v2577_v23, %v1425_v32 }
 0x794   : > { %v1435_v13 = vadd.f32 %v2578_v27, %v1430_v35 }
 0x796   : > { %2444 = vmatmul.msk.f32.gmra.mxu2 %vm553_vm0, %v1435_v13  ;;  %2446 = vmatmul.msk.f32.gmra.mxu3 %vm553_vm0, %v1435_v13 }
 0x797   : > { %2452 = vmatmul.msk.f32.gmra.mxu0 %vm553_vm0, %v1435_v13  ;;  %2454 = vmatmul.msk.f32.gmra.mxu1 %vm553_vm0, %v1435_v13 }
 0x79e   : > { %2447 = vmatmul.msk.f32.vlgmr.msra.gmra.mxu2 %vm553_vm0, %v1434_v33  ;;  %2449 = vmatmul.msk.f32.vlgmr.msrb.gmra.mxu3 %vm553_vm0, %v1434_v33 }
 0x7a6   : > { %2448 = vmatmul.msk.f32.gmra.mxu2 %vm553_vm0, %v1435_v13  ;;  %2450 = vmatmul.msk.f32.gmra.mxu3 %vm553_vm0, %v1435_v13 }
 0x80c   : > { %v1615_v36 = vpop.f32.mrf.mxu0  ;;  %v1638_v14 = vpop.f32.mrf.mxu1 }
 0x80d   : > { %v1616_v54 = vadd.f32 %v1615_v36, %v1492_v39  ;;  %v1639_v45 = vadd.f32 %v1638_v14, %v1493_v40 }
 0x811   : > { %v1523_v38 = vpop.f32.mrf.mxu2  ;;  %v1546_v0 = vpop.f32.mrf.mxu3 }
 0x812   : > { %v1524_v58 = vadd.f32 %v1523_v38, %v1488_v49  ;;  %v1547_v16 = vadd.f32 %v1546_v0, %v1489_v46  ;;  %v2485_v38 = vld [vmem:[%s3913_s5 + $0x1f0] sm:$0xff]  ;;  %v2484_v0 = vld [vmem:[%s3913_s5 + $0x1e8] sm:$0xff] }
 0x814   : > { %v1618_v41 = vpop.f32.mrf.mxu0  ;;  %v1641_v42 = vpop.f32.mrf.mxu1  ;;  %v1644_v17 = vmul.f32 0.125, %v1524_v58  ;;  %v1645_v11 = vmul.f32 0.125, %v1547_v16  ;;  %v2476_v58 = vld [vmem:[%s3913_s5 + $0x1a8] sm:$0xff] }
 0x815   : > { %v1619_v43 = vadd.f32 %v1618_v41, %v1492_v39  ;;  %v1642_v44 = vadd.f32 %v1641_v42, %v1493_v40  ;;  %v2470_v39 = vld [vmem:[%s3913_s5 + $0x178] sm:$0xff]  ;;  %v2469_v40 = vld [vmem:[%s3913_s5 + $0x170] sm:$0xff]  ;;  %v2483_v41 = vld [vmem:[%s3913_s5 + $0x1e0] sm:$0xff] }
 0x816   : > { %v2468_v42 = vld [vmem:[%s3913_s5 + $0x168] sm:$0xff] }
 0x817   : > { %1746 = vmatpush.msra.mxu3 %v1619_v43  ;;  %1820 = vmatpush.msra.mxu1 %v1642_v44  ;;  %v2482_v43 = vld [vmem:[%s3913_s5 + $0x1d8] sm:$0xff]  ;;  %v2467_v44 = vld [vmem:[%s3913_s5 + $0x160] sm:$0xff] }
 0x819   : > { %1747 = vmatpush.msra.mxu3 %v1616_v54  ;;  %1821 = vmatpush.msra.mxu1 %v1639_v45  ;;  %v1526_v47 = vpop.f32.mrf.mxu2  ;;  %v1549_v55 = vpop.f32.mrf.mxu3  ;;  %v2481_v45 = vld [vmem:[%s3913_s5 + $0x1d0] sm:$0xff] }
 0x81a   : > { %v1527_v12 = vadd.f32 %v1526_v47, %v1488_v49  ;;  %v1550_v62 = vadd.f32 %v1549_v55, %v1489_v46  ;;  %v2466_v47 = vld [vmem:[%s3913_s5 + $0x158] sm:$0xff]  ;;  %v2480_v55 = vld [vmem:[%s3913_s5 + $0x1c8] sm:$0xff] }
 0x81b   : > { %1852 = vmatpush.msrb.mxu3 %v2470_v39  ;;  %v2478_v46 = vld [vmem:[%s3913_s5 + $0x1b8] sm:$0xff] }
 0x81c   : > { %v1646_v63 = vmul.f32 0.125, %v1527_v12  ;;  %v1647_v1 = vmul.f32 0.125, %v1550_v62  ;;  %v2474_v12 = vld [vmem:[%s3913_s5 + $0x198] sm:$0xff]  ;;  %v2473_v62 = vld [vmem:[%s3913_s5 + $0x190] sm:$0xff] }
 0x81d   : > { %1853 = vmatpush.msrb.mxu3 %v2469_v40 }
 0x81f   : > { %1854 = vmatpush.msrb.mxu3 %v2468_v42 }
 0x821   : > { %v1569_v48 = vpop.f32.mrf.mxu2  ;;  %v1592_v50 = vpop.f32.mrf.mxu3  ;;  %1855 = vmatpush.msrb.mxu3 %v2467_v44  ;;  %v2508_v44 = vld [vmem:[%s3917_s9 + $0xf0] sm:$0xff] }
 0x822   : > { %v1570_v59 = vadd.f32 %v1569_v48, %v1490_v2  ;;  %v1593_v60 = vadd.f32 %v1592_v50, %v1491_v51  ;;  %v2465_v48 = vld [vmem:[%s3913_s5 + $0x150] sm:$0xff]  ;;  %v2479_v50 = vld [vmem:[%s3913_s5 + $0x1c0] sm:$0xff] }
 0x823   : > { %1856 = vmatpush.msrb.mxu3 %v2466_v47  ;;  %v2507_v47 = vld [vmem:[%s3917_s9 + $0xe8] sm:$0xff] }
 0x825   : > { %1857 = vmatpush.msrb.mxu3 %v2465_v48  ;;  %v2505_v48 = vld [vmem:[%s3917_s9 + $0xd8] sm:$0xff] }
 0x829   : > { %v1572_v52 = vpop.f32.mrf.mxu2  ;;  %v1595_v53 = vpop.f32.mrf.mxu3 }
 0x82a   : > { %v1573_v56 = vadd.f32 %v1572_v52, %v1490_v2  ;;  %v1596_v57 = vadd.f32 %v1595_v53, %v1491_v51  ;;  %v2464_v2 = vld [vmem:[%s3913_s5 + $0x148] sm:$0xff]  ;;  %v2463_v53 = vld [vmem:[%s3913_s5 + $0x140] sm:$0xff] }
 0x82b   : > { %1858 = vmatpush.msrb.mxu3 %v2464_v2  ;;  %v2503_v2 = vld [vmem:[%s3917_s9 + $0xc8] sm:$0xff] }
 0x82c   : > { %1695 = vmatpush.xpose.msrb.mxu2 %v1573_v56  ;;  %1769 = vmatpush.xpose.msra.mxu0 %v1596_v57  ;;  %v2477_v56 = vld [vmem:[%s3913_s5 + $0x1b0] sm:$0xff]  ;;  %v2462_v57 = vld [vmem:[%s3913_s5 + $0x138] sm:$0xff] }
 0x82d   : > { %1859 = vmatpush.msrb.mxu3 %v2463_v53  ;;  %v2496_v53 = vld [vmem:[%s3917_s9 + $0x90] sm:$0xff] }
 0x82f   : > { %1860 = vmatpush.msrb.mxu3 %v2462_v57  ;;  %v2494_v57 = vld [vmem:[%s3917_s9 + $0x80] sm:$0xff] }
 0x830   : > { %1696 = vmatpush.xpose.msrb.mxu2 %v1570_v59  ;;  %1770 = vmatpush.xpose.msra.mxu0 %v1593_v60  ;;  %v2475_v59 = vld [vmem:[%s3913_s5 + $0x1a0] sm:$0xff] }
 0x833   : > { %1697 = vmatmul.f32.vlgmr.msrb.gmra.mxu2 %v1644_v17  ;;  %1771 = vmatmul.f32.vlgmr.msra.gmra.mxu0 %v1645_v11 }
 0x834   : > { %1829 = vmatpush.msra.mxu2 %v2486_v18  ;;  %1980 = vmatpush.msrb.mxu0 %v2508_v44  ;;  %v2523_v44 = vld [vmem:[%s3919_s11 + $0x140] sm:$0xff] }
 0x836   : > { %1830 = vmatpush.msra.mxu2 %v2485_v38 }
 0x838   : > { %1831 = vmatpush.msra.mxu2 %v2484_v0 }
 0x83a   : > { %1832 = vmatpush.msra.mxu2 %v2483_v41 }
 0x83b   : > { %1700 = vmatmul.f32.gmra.mxu2 %v1646_v63  ;;  %1774 = vmatmul.f32.gmra.mxu0 %v1647_v1  ;;  %v2472_v63 = vld [vmem:[%s3913_s5 + $0x188] sm:$0xff] }
 0x83c   : > { %1833 = vmatpush.msra.mxu2 %v2482_v43 }
 0x83e   : > { %1834 = vmatpush.msra.mxu2 %v2481_v45  ;;  %v2506_v45 = vld [vmem:[%s3917_s9 + $0xe0] sm:$0xff] }
 0x83f   : > { %1981 = vmatpush.msrb.mxu0 %v2506_v45 }
 0x840   : > { %1835 = vmatpush.msra.mxu2 %v2480_v55  ;;  %v2504_v55 = vld [vmem:[%s3917_s9 + $0xd0] sm:$0xff] }
 0x841   : > { %1982 = vmatpush.msrb.mxu0 %v2504_v55 }
 0x842   : > { %1836 = vmatpush.msra.mxu2 %v2479_v50  ;;  %v2502_v50 = vld [vmem:[%s3917_s9 + $0xc0] sm:$0xff] }
 0x843   : > { %1983 = vmatpush.msrb.mxu0 %v2502_v50  ;;  %v2522_v50 = vld [vmem:[%s3919_s11 + $0x138] sm:$0xff] }
 0x844   : > { %1837 = vmatpush.msra.mxu2 %v2478_v46  ;;  %v2498_v46 = vld [vmem:[%s3917_s9 + $0xa0] sm:$0xff] }
 0x846   : > { %1838 = vmatpush.msra.mxu2 %v2477_v56  ;;  %v2497_v56 = vld [vmem:[%s3917_s9 + $0x98] sm:$0xff] }
 0x848   : > { %1839 = vmatpush.msra.mxu2 %v2476_v58  ;;  %v2495_v58 = vld [vmem:[%s3917_s9 + $0x88] sm:$0xff] }
 0x84a   : > { %1840 = vmatpush.msra.mxu2 %v2475_v59 }
 0x84c   : > { %1841 = vmatpush.msra.mxu2 %v2474_v12 }
 0x84e   : > { %1842 = vmatpush.msra.mxu2 %v2473_v62 }
 0x850   : > { %1843 = vmatpush.msra.mxu2 %v2472_v63 }
 0x8b0   : > { %v1772_v4 = vpop.f32.mrf.mxu0 }
 0x8b1   : > { %v1778_v5 = vsel %vm880_vm8, %v1772_v4, -inf }
 0x8b2   : > { %1779 = vmax.xlane.f32.xlu0 %v1778_v5 }
 0x8b6   : > { %v1698_v6 = vpop.f32.mrf.mxu2 }
 0x8b7   : > { %v1704_v7 = vsel %vm880_vm8, %v1698_v6, -inf }
 0x8b8   : > { %1705 = vmax.xlane.f32.xlu2 %v1704_v7  ;;  %v1775_v8 = vpop.f32.mrf.mxu0  ;;  %v2471_v7 = vld [vmem:[%s3913_s5 + $0x180] sm:$0xff] }
 0x8b9   : > { %v1781_v37 = vsel %vm880_vm8, %v1775_v8, -inf  ;;  %1844 = vmatpush.msra.mxu2 %v2471_v7 }
 0x8be   : > { %v1701_v9 = vpop.f32.mrf.mxu2 }
 0x8bf   : > { %v1707_v15 = vsel %vm880_vm8, %v1701_v9, -inf }
 0x8c0   : > { %1782 = vmax.xlane.f32.xlu2 %v1781_v37  ;;  %1708 = vmax.xlane.f32.xlu1 %v1707_v15  ;;  %v2459_v37 = vld [vmem:[%s3913_s5 + $0x120] sm:$0xff]  ;;  %v2458_v15 = vld [vmem:[%s3913_s5 + $0x118] sm:$0xff] }
 0x925   : > { %v1780_v19 = vpop.xlane.xlu0 %1779 }
 0x926   : > { %v1784_v20 = vsub.f32 %v1772_v4, %v1780_v19  ;;  %v2457_v19 = vld [vmem:[%s3913_s5 + $0x110] sm:$0xff] }
 0x928   : > { %v1786_v22 = vmul.f32 1.442695, %v1784_v20  ;;  %v2456_v20 = vld [vmem:[%s3913_s5 + $0x108] sm:$0xff] }
 0x92a   : > { %2632 = vpow2.f32 %v1786_v22  ;;  %v2455_v22 = vld [vmem:[%s3913_s5 + $0x100] sm:$0xff] }
 0x92b   : > { %v1706_v23 = vpop.xlane.xlu2 %1705 }
 0x92c   : > { %v1710_v25 = vsub.f32 %v1698_v6, %v1706_v23 }
 0x92e   : > { %v1712_v21 = vmul.f32 1.442695, %v1710_v25 }
 0x930   : > { %v2633_v27 = vpop.eup %2632  ;;  %2634 = vpow2.f32 %v1712_v21 }
 0x931   : > { %v1790_v24 = vsel %vm880_vm8, %v2633_v27, 0.0 }
 0x932   : > { %1791 = vadd.xlane.f32.xlu1 %v1790_v24 }
 0x933   : > { %v1783_v28 = vpop.xlane.xlu2 %1782  ;;  %v1709_v30 = vpop.xlane.xlu1 %1708 }
 0x934   : > { %v1785_v31 = vsub.f32 %v1775_v8, %v1783_v28  ;;  %v1711_v33 = vsub.f32 %v1701_v9, %v1709_v30  ;;  %v2461_v8 = vld [vmem:[%s3913_s5 + $0x130] sm:$0xff]  ;;  %v2460_v9 = vld [vmem:[%s3913_s5 + $0x128] sm:$0xff] }
 0x935   : > { %1861 = vmatpush.msrb.mxu3 %v2461_v8  ;;  %v2580_v8 = vld [vmem:[%s3915_s7 + $0x1] ss:$0 sm:$0xff] }
 0x936   : > { %v2635_v26 = vpop.eup %2634  ;;  %v1788_v34 = vmul.f32 1.442695, %v1785_v31  ;;  %v1714_v29 = vmul.f32 1.442695, %v1711_v33  ;;  %v2579_v31 = vld [vmem:[%s3914_s6 + $0x1] ss:$0 sm:$0xff] }
 0x937   : > { %v1716_v32 = vsel %vm880_vm8, %v2635_v26, 0.0  ;;  %1862 = vmatpush.msrb.mxu3 %v2460_v9 }
 0x938   : > { %2636 = vpow2.f32 %v1788_v34  ;;  %1717 = vadd.xlane.f32.xlu0 %v1716_v32 }
 0x939   : > { %2638 = vpow2.f32 %v1714_v29  ;;  %1863 = vmatpush.msrb.mxu3 %v2459_v37 }
 0x93b   : > { %1864 = vmatpush.msrb.mxu3 %v2458_v15 }
 0x93d   : > { %1865 = vmatpush.msrb.mxu3 %v2457_v19 }
 0x93e   : > { %v3522_v35 = vpop.eup %2636 }
 0x93f   : > { %v3524_v13 = vpop.eup %2638  ;;  %v1793_v36 = vsel %vm880_vm8, %v3522_v35, 0.0  ;;  %1866 = vmatpush.msrb.mxu3 %v2456_v20  ;;  %v2581_v20 = vld [vmem:[%s3916_s8 + $0x1] ss:$0 sm:$0xff] }
 0x940   : > { %1794 = vadd.xlane.f32.xlu0 %v1793_v36  ;;  %v1719_v14 = vsel %vm880_vm8, %v3524_v13, 0.0 }
 0x941   : > { %1720 = vadd.xlane.f32.xlu2 %v1719_v14  ;;  %1867 = vmatpush.msrb.mxu3 %v2455_v22 }
 0x9a5   : > { %v1792_v54 = vpop.xlane.xlu1 %1791 }
 0x9a6   : > { %2640 = vrcp.f32 %v1792_v54  ;;  %v2509_v54 = vld [vmem:[%s3917_s9 + $0xf8] sm:$0xff] }
 0x9a7   : > { %2003 = vmatpush.msrb.mxu1 %v2509_v54  ;;  %v2539_v54 = vld [vmem:[%s3919_s11 + $0x1c0] sm:$0xff] }
 0x9a9   : > { %2004 = vmatpush.msrb.mxu1 %v2507_v47 }
 0x9ab   : > { %v1718_v51 = vpop.xlane.xlu0 %1717  ;;  %2005 = vmatpush.msrb.mxu1 %v2505_v48 }
 0x9ac   : > { %v2641_v49 = vpop.eup %2640  ;;  %2642 = vrcp.f32 %v1718_v51  ;;  %v2500_v51 = vld [vmem:[%s3917_s9 + $0xb0] sm:$0xff] }
 0x9ad   : > { %v1798_v52 = vmul.f32 %v2641_v49, %v2633_v27  ;;  %2006 = vmatpush.msrb.mxu1 %v2503_v2  ;;  %v2501_v49 = vld [vmem:[%s3917_s9 + $0xb8] sm:$0xff]  ;;  %1984 = vmatpush.msrb.mxu0 %v2500_v51 }
 0x9ae   : > { %v2538_v2 = vld [vmem:[%s3919_s11 + $0x1b8] sm:$0xff] }
 0x9af   : > { %2489 = vmatmul.msk.f32.vlgmr.msra.gmra.mxu1 %vm880_vm8, %v1798_v52  ;;  %v2499_v52 = vld [vmem:[%s3917_s9 + $0xa8] sm:$0xff]  ;;  %1985 = vmatpush.msrb.mxu0 %v2498_v46  ;;  %v2521_v46 = vld [vmem:[%s3919_s11 + $0x130] sm:$0xff] }
 0x9b0   : > { %2007 = vmatpush.msrb.mxu1 %v2501_v49 }
 0x9b1   : > { %1986 = vmatpush.msrb.mxu0 %v2496_v53 }
 0x9b2   : > { %v2643_v16 = vpop.eup %2642  ;;  %2008 = vmatpush.msrb.mxu1 %v2499_v52  ;;  %v2537_v52 = vld [vmem:[%s3919_s11 + $0x1b0] sm:$0xff] }
 0x9b3   : > { %v1724_v60 = vmul.f32 %v2643_v16, %v2635_v26  ;;  %v1795_v17 = vpop.xlane.xlu0 %1794  ;;  %1987 = vmatpush.msrb.mxu0 %v2494_v57  ;;  %v2520_v57 = vld [vmem:[%s3919_s11 + $0x128] sm:$0xff] }
 0x9b4   : > { %2644 = vrcp.f32 %v1795_v17  ;;  %v1721_v11 = vpop.xlane.xlu2 %1720  ;;  %2009 = vmatpush.msrb.mxu1 %v2497_v56 }
 0x9b5   : > { %2646 = vrcp.f32 %v1721_v11  ;;  %2487 = vmatmul.msk.f32.vlgmr.msra.gmra.mxu3 %vm880_vm8, %v1724_v60 }
 0x9b6   : > { %2010 = vmatpush.msrb.mxu1 %v2495_v58  ;;  %v2536_v58 = vld [vmem:[%s3919_s11 + $0x1a8] sm:$0xff] }
 0x9ba   : > { %v2645_v1 = vpop.eup %2644 }
 0x9bb   : > { %v2647_v4 = vpop.eup %2646  ;;  %v1799_v5 = vmul.f32 %v2645_v1, %v3522_v35 }
 0x9bc   : > { %v1725_v6 = vmul.f32 %v2647_v4, %v3524_v13 }
 0x9bd   : > { %2490 = vmatmul.msk.f32.gmra.mxu1 %vm880_vm8, %v1799_v5 }
 0x9be   : > { %2488 = vmatmul.msk.f32.gmra.mxu3 %vm880_vm8, %v1725_v6 }
 0xa2c   : > { %v1823_v23 = vpop.f32.mrf.mxu1 }
 0xa2d   : > { %1845 = vmatmul.f32.vlgmr.msra.gmra.mxu2 %v1823_v23 }
 0xa38   : > { %v1749_v25 = vpop.f32.mrf.mxu3 }
 0xa39   : > { %1868 = vmatmul.f32.vlgmr.msrb.gmra.mxu3 %v1749_v25 }
 0xa3a   : > { %v1826_v21 = vpop.f32.mrf.mxu1 }
 0xa3b   : > { %1848 = vmatmul.f32.gmra.mxu2 %v1826_v21 }
 0xa41   : > { %v1752_v27 = vpop.f32.mrf.mxu3 }
 0xa42   : > { %1871 = vmatmul.f32.gmra.mxu3 %v1752_v27 }
 0xab0   : > { %v1846_v24 = vpop.f32.mrf.mxu2 }
 0xabc   : > { %v1869_v28 = vpop.f32.mrf.mxu3 }
 0xabd   : > { %v1870_v30 = vadd.f32 %v1869_v28, %v1846_v24 }
 0xabe   : > { %v1849_v29 = vpop.f32.mrf.mxu2 }
 0xabf   : > { %v1875_v33 = vadd.f32 %v1870_v30, %v3324_v61 }
 0xac1   : > { %v3636_v26 = vadd.f32 %v2579_v31, %v1875_v33  ;;  %v2530_v33 = vld [vmem:[%s3919_s11 + $0x178] sm:$0xff] }
 0xac2   : > { %2160 = vmatpush.msra.mxu0 %v2530_v33 }
 0xac3   : > { %v1888_v34 = vsel %vm553_vm0, %v3636_v26, 0.0 }
 0xac4   : > { %1889 = vadd.xlane.f32.xlu1 %v1888_v34  ;;  %v2546_v34 = vld [vmem:[%s3919_s11 + $0x1f8] sm:$0xff] }
 0xac5   : > { %v1872_v32 = vpop.f32.mrf.mxu3  ;;  %2183 = vmatpush.msra.mxu1 %v2546_v34 }
 0xac6   : > { %v1873_v35 = vadd.f32 %v1872_v32, %v1849_v29  ;;  %v2529_v29 = vld [vmem:[%s3919_s11 + $0x170] sm:$0xff] }
 0xac7   : > { %v2545_v32 = vld [vmem:[%s3919_s11 + $0x1f0] sm:$0xff]  ;;  %2161 = vmatpush.msra.mxu0 %v2529_v29 }
 0xac8   : > { %v1876_v13 = vadd.f32 %v1873_v35, %v3329_v3  ;;  %2184 = vmatpush.msra.mxu1 %v2545_v32  ;;  %v2528_v35 = vld [vmem:[%s3919_s11 + $0x168] sm:$0xff] }
 0xac9   : > { %2162 = vmatpush.msra.mxu0 %v2528_v35 }
 0xaca   : > { %v3641_v36 = vadd.f32 %v2579_v31, %v1876_v13  ;;  %v2544_v13 = vld [vmem:[%s3919_s11 + $0x1e8] sm:$0xff] }
 0xacb   : > { %2185 = vmatpush.msra.mxu1 %v2544_v13 }
 0xacc   : > { %v1891_v14 = vsel %vm553_vm0, %v3641_v36, 0.0 }
 0xacd   : > { %1892 = vadd.xlane.f32.xlu2 %v1891_v14  ;;  %v2527_v14 = vld [vmem:[%s3919_s11 + $0x160] sm:$0xff] }
 0xace   : > { %2163 = vmatpush.msra.mxu0 %v2527_v14 }
 0xb37   : > { %v1890_v18 = vpop.xlane.xlu1 %1889 }
 0xb38   : > { %v1894_v61 = vmul.f32 %v1890_v18, %v2795_v10  ;;  %v2543_v18 = vld [vmem:[%s3919_s11 + $0x1e0] sm:$0xff] }
 0xb39   : > { %2186 = vmatpush.msra.mxu1 %v2543_v18 }
 0xb3a   : > { %v3647_v38 = vsub.f32 %v3636_v26, %v1894_v61  ;;  %v2526_v61 = vld [vmem:[%s3919_s11 + $0x158] sm:$0xff] }
 0xb3b   : > { %2164 = vmatpush.msra.mxu0 %v2526_v61 }
 0xb3c   : > { %v1898_v0 = vmul.f32 %v3647_v38, %v3647_v38 }
 0xb3e   : > { %v1900_v39 = vsel %vm553_vm0, %v1898_v0, 0.0  ;;  %v2510_v0 = vld [vmem:[%s3918_s10 + $0x2] sm:$0x3] }
 0xb3f   : > { %1901 = vadd.xlane.f32.xlu0 %v1900_v39  ;;  %v2525_v39 = vld [vmem:[%s3919_s11 + $0x150] sm:$0xff] }
 0xb40   : > { %v1893_v40 = vpop.xlane.xlu2 %1892  ;;  %2165 = vmatpush.msra.mxu0 %v2525_v39 }
 0xb41   : > { %v1895_v3 = vmul.f32 %v1893_v40, %v2795_v10  ;;  %v2541_v40 = vld [vmem:[%s3919_s11 + $0x1d0] sm:$0xff] }
 0xb43   : > { %v3654_v41 = vsub.f32 %v3641_v36, %v1895_v3  ;;  %v1962_v3 = vperm.slane %v2510_v0, 0 }
 0xb45   : > { %v1899_v42 = vmul.f32 %v3654_v41, %v3654_v41 }
 0xb47   : > { %v1903_v43 = vsel %vm553_vm0, %v1899_v42, 0.0  ;;  %v2524_v42 = vld [vmem:[%s3919_s11 + $0x148] sm:$0xff] }
 0xb48   : > { %1904 = vadd.xlane.f32.xlu1 %v1903_v43  ;;  %v2540_v43 = vld [vmem:[%s3919_s11 + $0x1c8] sm:$0xff]  ;;  %2166 = vmatpush.msra.mxu0 %v2524_v42 }
 0xb4a   : > { %2167 = vmatpush.msra.mxu0 %v2523_v44 }
 0xb4c   : > { %2168 = vmatpush.msra.mxu0 %v2522_v50 }
 0xb4e   : > { %2169 = vmatpush.msra.mxu0 %v2521_v46 }
 0xb50   : > { %2170 = vmatpush.msra.mxu0 %v2520_v57 }
 0xbb2   : > { %v1902_v16 = vpop.xlane.xlu0 %1901 }
 0xbb3   : > { %v1906_v59 = vmul.f32 %v1902_v16, %v2795_v10 }
 0xbb5   : > { %v1908_v60 = vadd.f32 1e-05, %v1906_v59 }
 0xbb7   : > { %2648 = vrsqrt.f32 %v1908_v60  ;;  %vm1916_vm11 = vweird.f32 %v1908_v60 }
 0xbbb   : > { %v1905_v17 = vpop.xlane.xlu1 %1904 }
 0xbbc   : > { %v1907_v11 = vmul.f32 %v1905_v17, %v2795_v10  ;;  %v2535_v17 = vld [vmem:[%s3919_s11 + $0x1a0] sm:$0xff] }
 0xbbd   : > { %v2649_v12 = vpop.eup %2648 }
 0xbbe   : > { %v1911_v62 = vmul.f32 %v2649_v12, %v1908_v60  ;;  %v1909_v63 = vadd.f32 1e-05, %v1907_v11  ;;  %vm1917_vm8 = vweird.f32 %v2649_v12  ;;  %v2519_v60 = vld [vmem:[%s3919_s11 + $0x120] sm:$0xff] }
 0xbbf   : > { %vm1918_vm12 = vmor %vm1916_vm11, %vm1917_vm8  ;;  %2171 = vmatpush.msra.mxu0 %v2519_v60  ;;  %vm2305_vm11 = vcmask 261120  }
 0xbc0   : > { %v1912_v1 = vmul.f32 %v2649_v12, %v1911_v62  ;;  %2650 = vrsqrt.f32 %v1909_v63  ;;  %vm1926_vm14 = vweird.f32 %v1909_v63 }
 0xbc2   : > { %v1913_v4 = vmul.f32 0.5, %v1912_v1  ;;  %v2518_v1 = vld [vmem:[%s3919_s11 + $0x118] sm:$0xff] }
 0xbc3   : > { %2172 = vmatpush.msra.mxu0 %v2518_v1 }
 0xbc4   : > { %v1914_v5 = vsub.f32 1.5, %v1913_v4  ;;  %v2534_v4 = vld [vmem:[%s3919_s11 + $0x198] sm:$0xff] }
 0xbc6   : > { %v2651_v6 = vpop.eup %2650  ;;  %v1915_v7 = vmul.f32 %v2649_v12, %v1914_v5 }
 0xbc7   : > { %v1921_v9 = vmul.f32 %v2651_v6, %v1909_v63  ;;  %vm1927_vm13 = vweird.f32 %v2651_v6 }
 0xbc8   : > { %v1919_v37 = vsel %vm1918_vm12, %v2649_v12, %v1915_v7  ;;  %vm1928_vm15 = vmor %vm1926_vm14, %vm1927_vm13  ;;  %v2517_v7 = vld [vmem:[%s3919_s11 + $0x110] sm:$0xff] }
 0xbc9   : > { %v1930_v15 = vmul.f32 %v1919_v37, %v3647_v38  ;;  %v1922_v19 = vmul.f32 %v2651_v6, %v1921_v9  ;;  %v2542_v38 = vld [vmem:[%s3919_s11 + $0x1d8] sm:$0xff]  ;;  %2173 = vmatpush.msra.mxu0 %v2517_v7 }
 0xbca   : > { %2187 = vmatpush.msra.mxu1 %v2542_v38 }
 0xbcb   : > { %v1935_v22 = vmul.f32 %v2580_v8, %v1930_v15  ;;  %v1923_v23 = vmul.f32 0.5, %v1922_v19  ;;  %v2516_v15 = vld [vmem:[%s3919_s11 + $0x108] sm:$0xff] }
 0xbcc   : > { %2188 = vmatpush.msra.mxu1 %v2541_v40  ;;  %v2532_v19 = vld [vmem:[%s3919_s11 + $0x188] sm:$0xff]  ;;  %2174 = vmatpush.msra.mxu0 %v2516_v15 }
 0xbcd   : > { %v1924_v25 = vsub.f32 1.5, %v1923_v23  ;;  %v1940_v21 = vadd.f32 %v2581_v20, %v1935_v22  ;;  %v2515_v22 = vld [vmem:[%s3919_s11 + $0x100] sm:$0xff] }
 0xbce   : > { %2189 = vmatpush.msra.mxu1 %v2540_v43  ;;  %v2531_v23 = vld [vmem:[%s3919_s11 + $0x180] sm:$0xff]  ;;  %2175 = vmatpush.msra.mxu0 %v2515_v22 }
 0xbcf   : > { %v1925_v27 = vmul.f32 %v2651_v6, %v1924_v25  ;;  %2511 = vmatmul.msk.f32.vlgmr.msrb.gmra.mxu0 %vm553_vm0, %v1940_v21  ;;  %2513 = vmatmul.msk.f32.vlgmr.msrb.gmra.mxu1 %vm553_vm0, %v1940_v21 }
 0xbd0   : > { %2190 = vmatpush.msra.mxu1 %v2539_v54 }
 0xbd1   : > { %v1929_v24 = vsel %vm1928_vm15, %v2651_v6, %v1925_v27 }
 0xbd2   : > { %v1931_v28 = vmul.f32 %v1929_v24, %v3654_v41  ;;  %v1963_v41 = vperm.slane %v2510_v0, 1  ;;  %2191 = vmatpush.msra.mxu1 %v2538_v2 }
 0xbd4   : > { %v1936_v30 = vmul.f32 %v2580_v8, %v1931_v28  ;;  %2192 = vmatpush.msra.mxu1 %v2537_v52  ;;  %v2533_v8 = vld [vmem:[%s3919_s11 + $0x190] sm:$0xff] }
 0xbd6   : > { %v1941_v31 = vadd.f32 %v2581_v20, %v1936_v30  ;;  %2193 = vmatpush.msra.mxu1 %v2536_v58 }
 0xbd8   : > { %2512 = vmatmul.msk.f32.gmra.mxu0 %vm553_vm0, %v1941_v31  ;;  %2514 = vmatmul.msk.f32.gmra.mxu1 %vm553_vm0, %v1941_v31 }
 0xbd9   : > { %2194 = vmatpush.msra.mxu1 %v2535_v17 }
 0xbdb   : > { %2195 = vmatpush.msra.mxu1 %v2534_v4 }
 0xbdd   : > { %2196 = vmatpush.msra.mxu1 %v2533_v8 }
 0xbdf   : > { %2197 = vmatpush.msra.mxu1 %v2532_v19 }
 0xbe1   : > { %2198 = vmatpush.msra.mxu1 %v2531_v23 }
 0xc4c   : > { %v1989_v45 = vpop.f32.mrf.mxu0  ;;  %v2012_v47 = vpop.f32.mrf.mxu1 }
 0xc4d   : > { %v3772_v55 = vadd.f32 %v1989_v45, %v1962_v3  ;;  %v3774_v48 = vadd.f32 %v2012_v47, %v1963_v41 }
 0xc4f   : > { %v3783_v51 = vmul.f32 0.70710677, %v3772_v55  ;;  %v3786_v49 = vmul.f32 0.70710677, %v3774_v48 }
 0xc51   : > { %v2026_v53 = vand.u32 2147483647, %v3783_v51  ;;  %v2027_v56 = vand.u32 2147483647, %v3786_v49  ;;  %vm2102_vm1 = vcmp.ge.f32.partialorder %v3783_v51, 0.0  ;;  %vm2103_vm2 = vcmp.ge.f32.partialorder %v3786_v49, 0.0 }
 0xc53   : > { %v2030_v16 = vmul.f32 0.3275911, %v2026_v53  ;;  %v2031_v59 = vmul.f32 0.3275911, %v2027_v56  ;;  %v2078_v24 = vsub.f32 0.0, %v2026_v53  ;;  %v2079_v33 = vsub.f32 0.0, %v2027_v56 }
 0xc55   : > { %v2034_v11 = vadd.f32 1.0, %v2030_v16  ;;  %v2035_v12 = vadd.f32 1.0, %v2031_v59  ;;  %v1992_v62 = vpop.f32.mrf.mxu0  ;;  %v2015_v63 = vpop.f32.mrf.mxu1  ;;  %v2082_v13 = vmul.f32 %v2078_v24, %v2026_v53  ;;  %v2083_v61 = vmul.f32 %v2079_v33, %v2027_v56 }
 0xc56   : > { %v3814_v5 = vadd.f32 %v1992_v62, %v1962_v3  ;;  %v3816_v6 = vadd.f32 %v2015_v63, %v1963_v41 }
 0xc57   : > { %2652 = vrcp.f32 %v2034_v11  ;;  %v2086_v39 = vmul.f32 1.442695, %v2082_v13  ;;  %v2088_v42 = vmul.f32 1.442695, %v2083_v61 }
 0xc58   : > { %2654 = vrcp.f32 %v2035_v12  ;;  %v3825_v9 = vmul.f32 0.70710677, %v3814_v5  ;;  %v3828_v37 = vmul.f32 0.70710677, %v3816_v6 }
 0xc5a   : > { %v2028_v20 = vand.u32 2147483647, %v3825_v9  ;;  %v2029_v25 = vand.u32 2147483647, %v3828_v37  ;;  %vm2104_vm3 = vcmp.ge.f32.partialorder %v3825_v9, 0.0  ;;  %vm2105_vm4 = vcmp.ge.f32.partialorder %v3828_v37, 0.0 }
 0xc5c   : > { %v2032_v21 = vmul.f32 0.3275911, %v2028_v20  ;;  %v2033_v28 = vmul.f32 0.3275911, %v2029_v25  ;;  %v2080_v43 = vsub.f32 0.0, %v2028_v20  ;;  %v2081_v45 = vsub.f32 0.0, %v2029_v25 }
 0xc5d   : > { %v2653_v27 = vpop.eup %2652 }
 0xc5e   : > { %v2655_v30 = vpop.eup %2654  ;;  %v2042_v31 = vmul.f32 1.0614054, %v2653_v27  ;;  %v2036_v34 = vadd.f32 1.0, %v2032_v21  ;;  %v2037_v32 = vadd.f32 1.0, %v2033_v28  ;;  %v2084_v56 = vmul.f32 %v2080_v43, %v2028_v20 }
 0xc5f   : > { %v2043_v29 = vmul.f32 1.0614054, %v2655_v30  ;;  %v2085_v16 = vmul.f32 %v2081_v45, %v2029_v25 }
 0xc60   : > { %v2046_v35 = vadd.f32 -1.4531521, %v2042_v31  ;;  %2656 = vrcp.f32 %v2036_v34  ;;  %v2090_v63 = vmul.f32 1.442695, %v2084_v56 }
 0xc61   : > { %v2047_v14 = vadd.f32 -1.4531521, %v2043_v29  ;;  %2658 = vrcp.f32 %v2037_v32  ;;  %v2092_v8 = vmul.f32 1.442695, %v2085_v16 }
 0xc62   : > { %v2050_v18 = vmul.f32 %v2653_v27, %v2046_v35  ;;  %2660 = vpow2.f32 %v2086_v39  ;;  %v2018_v35 = vmul.f32 0.5, %v3772_v55 }
 0xc63   : > { %v2051_v38 = vmul.f32 %v2655_v30, %v2047_v14  ;;  %2662 = vpow2.f32 %v2088_v42 }
 0xc64   : > { %v2054_v0 = vadd.f32 1.4214138, %v2050_v18  ;;  %2664 = vpow2.f32 %v2090_v63 }
 0xc65   : > { %v2055_v40 = vadd.f32 1.4214138, %v2051_v38  ;;  %2666 = vpow2.f32 %v2092_v8  ;;  %v2019_v38 = vmul.f32 0.5, %v3774_v48  ;;  %v2020_v48 = vmul.f32 0.5, %v3814_v5 }
 0xc66   : > { %v2657_v3 = vpop.eup %2656  ;;  %v2058_v41 = vmul.f32 %v2653_v27, %v2054_v0 }
 0xc67   : > { %v2659_v44 = vpop.eup %2658  ;;  %v2059_v54 = vmul.f32 %v2655_v30, %v2055_v40  ;;  %v2044_v47 = vmul.f32 1.0614054, %v2657_v3 }
 0xc68   : > { %v2062_v50 = vadd.f32 -0.28449672, %v2058_v41  ;;  %v2045_v2 = vmul.f32 1.0614054, %v2659_v44  ;;  %v2661_v4 = vpop.eup %2660 }
 0xc69   : > { %v2063_v46 = vadd.f32 -0.28449672, %v2059_v54  ;;  %v2048_v52 = vadd.f32 -1.4531521, %v2044_v47  ;;  %v2663_v19 = vpop.eup %2662 }
 0xc6a   : > { %v2066_v53 = vmul.f32 %v2653_v27, %v2062_v50  ;;  %v2049_v57 = vadd.f32 -1.4531521, %v2045_v2  ;;  %v2665_v61 = vpop.eup %2664  ;;  %v2021_v50 = vmul.f32 0.5, %v3816_v6 }
 0xc6b   : > { %v2067_v58 = vmul.f32 %v2655_v30, %v2063_v46  ;;  %v2052_v59 = vmul.f32 %v2657_v3, %v2048_v52  ;;  %v2667_v40 = vpop.eup %2666 }
 0xc6c   : > { %v2070_v60 = vadd.f32 0.2548296, %v2066_v53  ;;  %v2053_v17 = vmul.f32 %v2659_v44, %v2049_v57  ;;  %v2582_v53 = vld [vmem:[%s3920_s12 + $0x1] ss:$0 sm:$0xff] }
 0xc6d   : > { %v2071_v11 = vadd.f32 0.2548296, %v2067_v58  ;;  %v2056_v12 = vadd.f32 1.4214138, %v2052_v59 }
 0xc6e   : > { %v2074_v62 = vmul.f32 %v2653_v27, %v2070_v60  ;;  %v2057_v1 = vadd.f32 1.4214138, %v2053_v17 }
 0xc6f   : > { %v2075_v7 = vmul.f32 %v2655_v30, %v2071_v11  ;;  %v2060_v15 = vmul.f32 %v2657_v3, %v2056_v12 }
 0xc70   : > { %v2094_v22 = vmul.f32 %v2661_v4, %v2074_v62  ;;  %v2061_v23 = vmul.f32 %v2659_v44, %v2057_v1 }
 0xc71   : > { %v2095_v21 = vmul.f32 %v2663_v19, %v2075_v7  ;;  %v2064_v20 = vadd.f32 -0.28449672, %v2060_v15 }
 0xc72   : > { %v2098_v24 = vsub.f32 1.0, %v2094_v22  ;;  %v2065_v25 = vadd.f32 -0.28449672, %v2061_v23  ;;  %v2270_v22 = vld [vmem:[%s3923_s15 + $0x30] sm:$0xff]  ;;  %v2269_v23 = vld [vmem:[%s3923_s15 + $0x28] sm:$0xff] }
 0xc73   : > { %v2099_v28 = vsub.f32 1.0, %v2095_v21  ;;  %v2068_v31 = vmul.f32 %v2657_v3, %v2064_v20  ;;  %v2268_v21 = vld [vmem:[%s3923_s15 + $0x20] sm:$0xff]  ;;  %v2267_v20 = vld [vmem:[%s3923_s15 + $0x18] sm:$0xff] }
 0xc74   : > { %v2106_v33 = vsub.f32 0.0, %v2098_v24  ;;  %v2069_v34 = vmul.f32 %v2659_v44, %v2065_v25  ;;  %v2265_v25 = vld [vmem:[%s3923_s15 + $0x8] sm:$0xff] }
 0xc75   : > { %v2107_v27 = vsub.f32 0.0, %v2099_v28  ;;  %v2072_v29 = vadd.f32 0.2548296, %v2068_v31 }
 0xc76   : > { %v2110_v30 = vsel %vm2102_vm1, %v2098_v24, %v2106_v33  ;;  %v2073_v32 = vadd.f32 0.2548296, %v2069_v34  ;;  %v2266_v24 = vld [vmem:[%s3923_s15 + $0x10] sm:$0xff] }
 0xc77   : > { %v2114_v13 = vadd.f32 1.0, %v2110_v30  ;;  %v2111_v14 = vsel %vm2103_vm2, %v2099_v28, %v2107_v27  ;;  %v2076_v18 = vmul.f32 %v2657_v3, %v2072_v29  ;;  %v2264_v28 = vld [vmem:[%s3923_s15] sm:$0xff] }
 0xc78   : > { %v2115_v0 = vadd.f32 1.0, %v2111_v14  ;;  %v2077_v39 = vmul.f32 %v2659_v44, %v2073_v32 }
 0xc79   : > { %v2118_v41 = vmul.f32 %v2114_v13, %v2018_v35  ;;  %v2096_v42 = vmul.f32 %v2665_v61, %v2076_v18 }
 0xc7a   : > { %v2119_v51 = vmul.f32 %v2115_v0, %v2019_v38  ;;  %v2097_v43 = vmul.f32 %v2667_v40, %v2077_v39  ;;  %v2583_v0 = vld [vmem:[%s3921_s13] ss:$0 sm:$0xff] }
 0xc7b   : > { %2176 = vmatmul.f32.vlgmr.msra.gmra.mxu0 %v2118_v41  ;;  %v2100_v54 = vsub.f32 1.0, %v2096_v42  ;;  %v2584_v42 = vld [vmem:[%s3922_s14] ss:$0 sm:$0xff] }
 0xc7c   : > { %2199 = vmatmul.f32.vlgmr.msra.gmra.mxu1 %v2119_v51  ;;  %v2101_v49 = vsub.f32 1.0, %v2097_v43 }
 0xc7d   : > { %v2108_v45 = vsub.f32 0.0, %v2100_v54 }
 0xc7e   : > { %v2109_v55 = vsub.f32 0.0, %v2101_v49 }
 0xc7f   : > { %v2112_v3 = vsel %vm2104_vm3, %v2100_v54, %v2108_v45 }
 0xc80   : > { %v2116_v47 = vadd.f32 1.0, %v2112_v3  ;;  %v2113_v44 = vsel %vm2105_vm4, %v2101_v49, %v2109_v55 }
 0xc81   : > { %v2117_v2 = vadd.f32 1.0, %v2113_v44  ;;  %v2585_v44 = vld [vmem:[%s3924_s16] ss:$0 sm:$0xff] }
 0xc82   : > { %v2120_v46 = vmul.f32 %v2116_v47, %v2020_v48 }
 0xc83   : > { %v2121_v52 = vmul.f32 %v2117_v2, %v2021_v50 }
 0xc84   : > { %2179 = vmatmul.f32.gmra.mxu0 %v2120_v46 }
 0xc85   : > { %2202 = vmatmul.f32.gmra.mxu1 %v2121_v52 }
 0xcf8   : > { %v2177_v9 = vpop.f32.mrf.mxu0 }
 0xcf9   : > { %v2178_v56 = vadd.f32 %v2582_v53, %v2177_v9  ;;  %v2200_v57 = vpop.f32.mrf.mxu1 }
 0xcfb   : > { %v2201_v37 = vadd.f32 %v2200_v57, %v2178_v56 }
 0xcfd   : > { %v2206_v58 = vadd.f32 %v2201_v37, %v3636_v26 }
 0xcff   : > { %v2210_v5 = vsel %vm553_vm0, %v2206_v58, 0.0 }
 0xd00   : > { %2211 = vadd.xlane.f32.xlu2 %v2210_v5 }
 0xd01   : > { %v2180_v16 = vpop.f32.mrf.mxu0 }
 0xd02   : > { %v2181_v6 = vadd.f32 %v2582_v53, %v2180_v16  ;;  %v2203_v59 = vpop.f32.mrf.mxu1 }
 0xd04   : > { %v2204_v60 = vadd.f32 %v2203_v59, %v2181_v6 }
 0xd06   : > { %v2207_v17 = vadd.f32 %v2204_v60, %v3641_v36  ;;  %v2271_v36 = vld [vmem:[%s3923_s15 + $0x38] sm:$0xff] }
 0xd07   : > { %2290 = vmatpush.msrb.mxu2 %v2271_v36 }
 0xd08   : > { %v2213_v11 = vsel %vm553_vm0, %v2207_v17, 0.0 }
 0xd09   : > { %2214 = vadd.xlane.f32.xlu0 %v2213_v11  ;;  %2291 = vmatpush.msrb.mxu2 %v2270_v22 }
 0xd0b   : > { %2292 = vmatpush.msrb.mxu2 %v2269_v23 }
 0xd0d   : > { %2293 = vmatpush.msrb.mxu2 %v2268_v21 }
 0xd0f   : > { %2294 = vmatpush.msrb.mxu2 %v2267_v20 }
 0xd11   : > { %2295 = vmatpush.msrb.mxu2 %v2266_v24 }
 0xd13   : > { %2296 = vmatpush.msrb.mxu2 %v2265_v25 }
 0xd15   : > { %2297 = vmatpush.msrb.mxu2 %v2264_v28 }
 0xd73   : > { %v2212_v12 = vpop.xlane.xlu2 %2211 }
 0xd74   : > { %v2216_v62 = vmul.f32 %v2212_v12, %v2795_v10 }
 0xd76   : > { %v2218_v63 = vsub.f32 %v2206_v58, %v2216_v62 }
 0xd78   : > { %v2220_v1 = vmul.f32 %v2218_v63, %v2218_v63 }
 0xd7a   : > { %v2222_v4 = vsel %vm553_vm0, %v2220_v1, 0.0 }
 0xd7b   : > { %2223 = vadd.xlane.f32.xlu1 %v2222_v4 }
 0xd7c   : > { %v2215_v26 = vpop.xlane.xlu0 %2214 }
 0xd7d   : > { %v2217_v7 = vmul.f32 %v2215_v26, %v2795_v10 }
 0xd7f   : > { %v2219_v8 = vsub.f32 %v2207_v17, %v2217_v7 }
 0xd81   : > { %v2221_v15 = vmul.f32 %v2219_v8, %v2219_v8 }
 0xd83   : > { %v2225_v19 = vsel %vm553_vm0, %v2221_v15, 0.0 }
 0xd84   : > { %2226 = vadd.xlane.f32.xlu2 %v2225_v19 }
 0xdee   : > { %v2224_v31 = vpop.xlane.xlu1 %2223 }
 0xdef   : > { %v2228_v33 = vmul.f32 %v2224_v31, %v2795_v10 }
 0xdf1   : > { %v2230_v34 = vadd.f32 1e-05, %v2228_v33 }
 0xdf3   : > { %2668 = vrsqrt.f32 %v2230_v34  ;;  %vm2238_vm6 = vweird.f32 %v2230_v34 }
 0xdf7   : > { %v2227_v27 = vpop.xlane.xlu2 %2226 }
 0xdf8   : > { %v2229_v29 = vmul.f32 %v2227_v27, %v2795_v10 }
 0xdf9   : > { %v2669_v30 = vpop.eup %2668 }
 0xdfa   : > { %v2233_v32 = vmul.f32 %v2669_v30, %v2230_v34  ;;  %v2231_v35 = vadd.f32 1e-05, %v2229_v29  ;;  %vm2239_vm5 = vweird.f32 %v2669_v30 }
 0xdfb   : > { %vm2240_vm7 = vmor %vm2238_vm6, %vm2239_vm5 }
 0xdfc   : > { %v2234_v13 = vmul.f32 %v2669_v30, %v2233_v32  ;;  %2670 = vrsqrt.f32 %v2231_v35  ;;  %vm2248_vm10 = vweird.f32 %v2231_v35 }
 0xdfe   : > { %v2235_v14 = vmul.f32 0.5, %v2234_v13 }
 0xe00   : > { %v2236_v18 = vsub.f32 1.5, %v2235_v14 }
 0xe02   : > { %v2671_v61 = vpop.eup %2670  ;;  %v2237_v38 = vmul.f32 %v2669_v30, %v2236_v18 }
 0xe03   : > { %v2243_v39 = vmul.f32 %v2671_v61, %v2231_v35  ;;  %vm2249_vm9 = vweird.f32 %v2671_v61 }
 0xe04   : > { %v2241_v40 = vsel %vm2240_vm7, %v2669_v30, %v2237_v38  ;;  %vm2250_vm8 = vmor %vm2248_vm10, %vm2249_vm9 }
 0xe05   : > { %v2252_v41 = vmul.f32 %v2241_v40, %v2218_v63  ;;  %v2244_v10 = vmul.f32 %v2671_v61, %v2243_v39 }
 0xe07   : > { %v2257_v51 = vmul.f32 %v2583_v0, %v2252_v41  ;;  %v2245_v43 = vmul.f32 0.5, %v2244_v10 }
 0xe09   : > { %v2246_v54 = vsub.f32 1.5, %v2245_v43  ;;  %v2262_v49 = vadd.f32 %v2584_v42, %v2257_v51 }
 0xe0b   : > { %v2247_v45 = vmul.f32 %v2671_v61, %v2246_v54  ;;  %2548 = vmatmul.msk.f32.vlgmr.msrb.gmra.mxu2 %vm553_vm0, %v2262_v49 }
 0xe0d   : > { %v2251_v55 = vsel %vm2250_vm8, %v2671_v61, %v2247_v45 }
 0xe0e   : > { %v2253_v3 = vmul.f32 %v2251_v55, %v2219_v8 }
 0xe10   : > { %v2258_v48 = vmul.f32 %v2583_v0, %v2253_v3 }
 0xe12   : > { %v2263_v47 = vadd.f32 %v2584_v42, %v2258_v48 }
 0xe14   : > { %2549 = vmatmul.msk.f32.gmra.mxu2 %vm553_vm0, %v2263_v47 }
 0xe8e   : > { %v2299_v50 = vpop.f32.mrf.mxu2 }
 0xe8f   : > { %v2300_v2 = vadd.f32 %v2585_v44, %v2299_v50 }
 0xe91   : > { %2306 = vst.msk [vmem:[%s548_s0] sm:$0xff] %vm2305_vm11, %v2300_v2 }
 0xe97   : > { %v2302_v46 = vpop.f32.mrf.mxu2 }
 0xe98   : > { %v2303_v52 = vadd.f32 %v2585_v44, %v2302_v46 }
 0xe9a   : > { %2307 = vst.msk [vmem:[%s548_s0 + $0x8] sm:$0xff] %vm2305_vm11, %v2303_v52 }
 0xe9b PF: > { %s27_s24 = sadd.s32 1, %s2678_s24  }
 0xe9c   : > { %p24_p4 = scmp.ge.s32.totalorder %s27_s24, 4  }
 0xe9e   :  { %26 = sbr.rel (!%p24_p4) target bundleno = 3 (0x3), region = 130 }

// kernel: st_mem_forward.5
= control target key start
LH: loop header
LB: loop body
LE: loop exit
PB: predicated region body
PF: predicated region fallthrough
CT: control target
= control target key end

     0   :  { %s2938_s27 = smov 0   ;;  %s4076_s0 = inlined_call_operand.vmem [shape: f32[2,40,32], index: 0, kind: input, shape index: {}]   ;;  %s4077_s1 = inlined_call_operand.vmem [shape: f32[1,1,32], index: 1, kind: input, shape index: {}]   ;;  %s4078_s2 = inlined_call_operand.vmem [shape: f32[1,1,32], index: 2, kind: input, shape index: {}]   ;;  %s4079_s3 = inlined_call_operand.vmem [shape: f32[1,32,768], index: 3, kind: input, shape index: {}]   ;;  %s4080_s4 = inlined_call_operand.vmem [shape: f32[1,1,768], index: 4, kind: input, shape index: {}]   ;;  %s4081_s5 = inlined_call_operand.vmem [shape: f32[1,256,32], index: 5, kind: input, shape index: {}]   ;;  %s4082_s6 = inlined_call_operand.vmem [shape: f32[1,1,32], index: 6, kind: input, shape index: {}]   ;;  %s4083_s7 = inlined_call_operand.vmem [shape: f32[1,1,32], index: 7, kind: input, shape index: {}]   ;;  %s4084_s8 = inlined_call_operand.vmem [shape: f32[1,1,32], index: 8, kind: input, shape index: {}]   ;;  %s4085_s9 = inlined_call_operand.vmem [shape: f32[1,32,128], index: 9, kind: input, shape index: {}]   ;;  %s4086_s10 = inlined_call_operand.vmem [shape: f32[1,1,128], index: 10, kind: input, shape index: {}]   ;;  %s4087_s11 = inlined_call_operand.vmem [shape: f32[1,128,32], index: 11, kind: input, shape index: {}]   ;;  %s4088_s12 = inlined_call_operand.vmem [shape: f32[1,1,32], index: 12, kind: input, shape index: {}]   ;;  %s4089_s13 = inlined_call_operand.vmem [shape: f32[1,1,32], index: 13, kind: input, shape index: {}]   ;;  %s4090_s14 = inlined_call_operand.vmem [shape: f32[1,1,32], index: 14, kind: input, shape index: {}]   ;;  %s4091_s15 = inlined_call_operand.vmem [shape: f32[1,32,32], index: 15, kind: input, shape index: {}]   ;;  %s4092_s16 = inlined_call_operand.vmem [shape: f32[1,1,32], index: 16, kind: input, shape index: {}]   ;;  %s4093_s17 = inlined_call_operand.vmem [shape: f32[2,40,32], index: 17, kind: output, shape index: {0}]   ;;  %s4094_s18 = inlined_call_operand.vmem [shape: f32[2,40,32], index: 18, kind: output, shape index: {1}]  }
   0x1   :  { %4095 = sst [smem:[#allocation2_spill]] %s4076_s0 }
   0x2   :  { %4096 = sst [smem:[#allocation3_spill]] %s4077_s1 }
   0x3   :  { %4097 = sst [smem:[#allocation4_spill]] %s4078_s2 }
   0x4 LB: > { %s2611_s28 = sadd.s32 4294967295, %s2840_s27   ;;  %p2615_p0 = scmp.ge.s32.totalorder %s2840_s27, 1  ;;  %s2840_s27 = sphi %s2938_s27, %s29_s27  }
   0x5   : > { %p515_p1 = scmp.lt.s32.totalorder %s2840_s27, 3 }
   0x7   : > { %p516_p2 = pnand %p2615_p0, %p515_p1 }
   0x8   : > { %p574_p3 = scmp.lt.s32.totalorder (!%p516_p2), %s2611_s28, 1  ;;  %s4098_s19 = sld [smem:[#allocation2_spill]] (!%p516_p2) }
   0x9   : > { %519 = sbr.rel (%p516_p2) target bundleno = 2282 (0x8ea), region = 88  ;;  %s4099_s25 = sld [smem:[#allocation3_spill]] (!%p516_p2) }
   0xa   : > { %s4100_s30 = sld [smem:[#allocation4_spill]] (!%p516_p2) }
   0xe   : > { %s4102_s28 = smov (!%p574_p3, %s2611_s28), 1  ;;  %vm596_vm0 = vcmask 261120   ;;  %v2842_v10 = vmov 32.0   ;;  %v748_v42 = vld [vmem:[%s4079_s3 + $0x90] sm:$0xff]  ;;  %v750_v43 = vld [vmem:[%s4079_s3 + $0xa0] sm:$0xff]  ;;  %v3023_v50 = vld [vmem:[%s4079_s3 + $0xa8] sm:$0xff] }
   0xf   : > { %s2946_s29 = smul.u32 40, %s4102_s28  ;;  %2713 = vrcp.f32 %v2842_v10  ;;  %795 = vmatpush.msra.mxu0 %v748_v42  ;;  %2685 = vmatpush.msra.mxu1 %v748_v42  ;;  %v742_v44 = vld [vmem:[%s4079_s3 + $0x60] sm:$0xff]  ;;  %v744_v45 = vld [vmem:[%s4079_s3 + $0x70] sm:$0xff]  ;;  %v3029_v53 = vld [vmem:[%s4079_s3 + $0x78] sm:$0xff] }
  0x10   : > { %859 = vmatpush.msra.mxu2 %v750_v43  ;;  %v736_v46 = vld [vmem:[%s4079_s3 + $0x30] sm:$0xff]  ;;  %v738_v47 = vld [vmem:[%s4079_s3 + $0x40] sm:$0xff]  ;;  %2689 = vmatpush.msra.mxu3 %v3023_v50  ;;  %v3037_v56 = vld [vmem:[%s4079_s3 + $0x48] sm:$0xff] }
  0x11   : > { %s2952_s1 = scalar_lea.vmem %s4098_s19, %s2946_s29  ;;  %796 = vmatpush.msra.mxu0 %v742_v44  ;;  %2686 = vmatpush.msra.mxu1 %v742_v44  ;;  %v730_v48 = vld [vmem:[%s4079_s3] sm:$0xff]  ;;  %v732_v49 = vld [vmem:[%s4079_s3 + $0x10] sm:$0xff]  ;;  %v3043_v59 = vld [vmem:[%s4079_s3 + $0x18] sm:$0xff]  ;;  %s3953_s20 = scalar_lea.vmem %s4093_s17, %s2946_s29 }
  0x12   : > { %v592_v0 = vld [vmem:[%s2952_s1 + $0x18] sm:$0xff]  ;;  %v589_v1 = vld [vmem:[%s2952_s1] sm:$0xff]  ;;  %v591_v4 = vld [vmem:[%s2952_s1 + $0x10] sm:$0xff]  ;;  %860 = vmatpush.msra.mxu2 %v744_v45  ;;  %2690 = vmatpush.msra.mxu3 %v3029_v53 }
  0x13   : > { %v606_v2 = vsel %vm596_vm0, %v592_v0, 0.0  ;;  %v597_v3 = vsel %vm596_vm0, %v589_v1, 0.0  ;;  %v603_v5 = vsel %vm596_vm0, %v591_v4, 0.0  ;;  %v593_v6 = vld [vmem:[%s2952_s1 + $0x20] sm:$0xff]  ;;  %v590_v7 = vld [vmem:[%s2952_s1 + $0x8] sm:$0xff]  ;;  %797 = vmatpush.msra.mxu0 %v736_v46  ;;  %2687 = vmatpush.msra.mxu1 %v736_v46  ;;  %v749_v60 = vld [vmem:[%s4079_s3 + $0x98] sm:$0xff] }
  0x14   : > { %607 = vadd.xlane.f32.xlu0 %v606_v2  ;;  %598 = vadd.xlane.f32.xlu1 %v597_v3  ;;  %v609_v8 = vsel %vm596_vm0, %v593_v6, 0.0  ;;  %v600_v9 = vsel %vm596_vm0, %v590_v7, 0.0 }
  0x15   : > { %604 = vadd.xlane.f32.xlu2 %v603_v5  ;;  %v2714_v11 = vpop.eup %2713  ;;  %861 = vmatpush.msra.mxu2 %v738_v47  ;;  %v737_v5 = vld [vmem:[%s4079_s3 + $0x38] sm:$0xff] }
  0x16   : > { %v613_v12 = vmul.f32 32.0, %v2714_v11  ;;  %vm617_vm1 = vweird.f32 %v2714_v11  ;;  %798 = vmatpush.msra.mxu0 %v730_v48  ;;  %2688 = vmatpush.msra.mxu1 %v730_v48 }
  0x17   : > { %862 = vmatpush.msra.mxu2 %v732_v49  ;;  %2691 = vmatpush.msra.mxu3 %v3037_v56 }
  0x18   : > { %v614_v13 = vsub.f32 1.0, %v613_v12  ;;  %827 = vmatpush.msrb.mxu1 %v749_v60  ;;  %v752_v12 = vld [vmem:[%s4079_s3 + $0xb0] sm:$0xff] }
  0x19   : > { %2692 = vmatpush.msra.mxu3 %v3043_v59  ;;  %923 = vmatpush.msrb.mxu0 %v752_v12 }
  0x1a   : > { %v615_v14 = vmul.f32 %v2714_v11, %v614_v13  ;;  %v746_v13 = vld [vmem:[%s4079_s3 + $0x80] sm:$0xff] }
  0x1b   : > { %924 = vmatpush.msrb.mxu0 %v746_v13 }
  0x1c   : > { %610 = vadd.xlane.f32.xlu0 %v609_v8  ;;  %601 = vadd.xlane.f32.xlu1 %v600_v9  ;;  %v616_v15 = vadd.f32 %v2714_v11, %v615_v14 }
  0x1e   : > { %v2964_v16 = vsel %vm617_vm1, %v2714_v11, %v616_v15 }
  0x87   : > { %v608_v17 = vpop.xlane.xlu0 %607  ;;  %v599_v18 = vpop.xlane.xlu1 %598 }
  0x88   : > { %v622_v19 = vmul.f32 %v2964_v16, %v608_v17  ;;  %v619_v20 = vmul.f32 %v2964_v16, %v599_v18  ;;  %v605_v25 = vpop.xlane.xlu2 %604 }
  0x89   : > { %v621_v32 = vmul.f32 %v2964_v16, %v605_v25 }
  0x8a   : > { %v2968_v21 = vsub.f32 %v592_v0, %v622_v19  ;;  %v2970_v22 = vsub.f32 %v589_v1, %v619_v20  ;;  %v743_v1 = vld [vmem:[%s4079_s3 + $0x68] sm:$0xff]  ;;  %v740_v19 = vld [vmem:[%s4079_s3 + $0x50] sm:$0xff] }
  0x8b   : > { %v2987_v36 = vsub.f32 %v591_v4, %v621_v32  ;;  %828 = vmatpush.msrb.mxu1 %v743_v1  ;;  %925 = vmatpush.msrb.mxu0 %v740_v19 }
  0x8c   : > { %v632_v23 = vmul.f32 %v2968_v21, %v2968_v21  ;;  %v629_v24 = vmul.f32 %v2970_v22, %v2970_v22 }
  0x8d   : > { %v631_v40 = vmul.f32 %v2987_v36, %v2987_v36  ;;  %829 = vmatpush.msrb.mxu1 %v737_v5  ;;  %v735_v5 = vld [vmem:[%s4079_s3 + $0x28] sm:$0xff] }
  0x8e   : > { %v643_v26 = vsel %vm596_vm0, %v632_v23, 0.0  ;;  %v634_v27 = vsel %vm596_vm0, %v629_v24, 0.0 }
  0x8f   : > { %v611_v28 = vpop.xlane.xlu0 %610  ;;  %644 = vadd.xlane.f32.xlu2 %v643_v26  ;;  %635 = vadd.xlane.f32.xlu1 %v634_v27  ;;  %v602_v29 = vpop.xlane.xlu1 %601  ;;  %v640_v41 = vsel %vm596_vm0, %v631_v40, 0.0  ;;  %v734_v26 = vld [vmem:[%s4079_s3 + $0x20] sm:$0xff] }
  0x90   : > { %v623_v30 = vmul.f32 %v2964_v16, %v611_v28  ;;  %v620_v31 = vmul.f32 %v2964_v16, %v602_v29  ;;  %926 = vmatpush.msrb.mxu0 %v734_v26 }
  0x92   : > { %v2981_v33 = vsub.f32 %v593_v6, %v623_v30  ;;  %v2983_v34 = vsub.f32 %v590_v7, %v620_v31  ;;  %v731_v6 = vld [vmem:[%s4079_s3 + $0x8] sm:$0xff]  ;;  %v2703_v30 = vld [vmem:[%s4099_s25] ss:$0 sm:$0xff] }
  0x93   : > { %830 = vmatpush.msrb.mxu1 %v731_v6  ;;  %v3154_v6 = vld [vmem:[%s4080_s4] sm:$0x3f] }
  0x94   : > { %v633_v35 = vmul.f32 %v2981_v33, %v2981_v33  ;;  %v630_v37 = vmul.f32 %v2983_v34, %v2983_v34 }
  0x96   : > { %v646_v38 = vsel %vm596_vm0, %v633_v35, 0.0  ;;  %v637_v39 = vsel %vm596_vm0, %v630_v37, 0.0 }
  0x97   : > { %647 = vadd.xlane.f32.xlu0 %v646_v38  ;;  %638 = vadd.xlane.f32.xlu2 %v637_v39  ;;  %v2704_v38 = vld [vmem:[%s4100_s30] ss:$0 sm:$0xff] }
  0x9f   : > { %641 = vadd.xlane.f32.xlu0 %v640_v41 }
 0x102   : > { %v645_v51 = vpop.xlane.xlu2 %644  ;;  %v636_v52 = vpop.xlane.xlu1 %635 }
 0x103   : > { %v652_v54 = vmul.f32 %v645_v51, %v2964_v16  ;;  %v649_v55 = vmul.f32 %v636_v52, %v2964_v16 }
 0x105   : > { %v657_v57 = vadd.f32 1e-05, %v652_v54  ;;  %v654_v58 = vadd.f32 1e-05, %v649_v55 }
 0x107   : > { %2715 = vrsqrt.f32 %v657_v57  ;;  %vm665_vm2 = vweird.f32 %v654_v58  ;;  %vm695_vm5 = vweird.f32 %v657_v57 }
 0x108   : > { %2717 = vrsqrt.f32 %v654_v58 }
 0x10a   : > { %v648_v61 = vpop.xlane.xlu0 %647  ;;  %v639_v62 = vpop.xlane.xlu2 %638 }
 0x10b   : > { %v653_v63 = vmul.f32 %v648_v61, %v2964_v16  ;;  %v650_v0 = vmul.f32 %v639_v62, %v2964_v16 }
 0x10d   : > { %v2716_v2 = vpop.eup %2715  ;;  %v3054_v3 = vadd.f32 1e-05, %v653_v63  ;;  %v655_v4 = vadd.f32 1e-05, %v650_v0 }
 0x10e   : > { %v2718_v7 = vpop.eup %2717  ;;  %v690_v8 = vmul.f32 %v2716_v2, %v657_v57  ;;  %vm696_vm4 = vweird.f32 %v2716_v2 }
 0x10f   : > { %v660_v9 = vmul.f32 %v2718_v7, %v654_v58  ;;  %2719 = vrsqrt.f32 %v3054_v3  ;;  %vm666_vm3 = vweird.f32 %v2718_v7  ;;  %vm697_vm7 = vmor %vm695_vm5, %vm696_vm4  ;;  %vm675_vm8 = vweird.f32 %v655_v4 }
 0x110   : > { %v691_v10 = vmul.f32 %v2716_v2, %v690_v8  ;;  %2721 = vrsqrt.f32 %v655_v4  ;;  %vm667_vm6 = vmor %vm665_vm2, %vm666_vm3  ;;  %vm705_vm11 = vweird.f32 %v3054_v3  ;;  %vm1070_vm2 = vcmask 1041408  }
 0x111   : > { %v661_v11 = vmul.f32 %v2718_v7, %v660_v9  ;;  %vm1222_vm3 = vcmask 1045504   ;;  %vm1458_vm4 = vcmask 1043456   ;;  %vm1040_vm5 = vcmask 80896  }
 0x112   : > { %v692_v14 = vmul.f32 0.5, %v691_v10  ;;  %v642_v15 = vpop.xlane.xlu0 %641 }
 0x113   : > { %v662_v17 = vmul.f32 0.5, %v661_v11  ;;  %v651_v18 = vmul.f32 %v642_v15, %v2964_v16 }
 0x114   : > { %v693_v20 = vsub.f32 1.5, %v692_v14 }
 0x115   : > { %v2720_v23 = vpop.eup %2719  ;;  %v663_v24 = vsub.f32 1.5, %v662_v17  ;;  %v656_v25 = vadd.f32 1e-05, %v651_v18 }
 0x116   : > { %v2722_v27 = vpop.eup %2721  ;;  %v694_v28 = vmul.f32 %v2716_v2, %v693_v20  ;;  %v700_v29 = vmul.f32 %v2720_v23, %v3054_v3  ;;  %vm706_vm10 = vweird.f32 %v2720_v23  ;;  %v3168_v20 = vperm.slane %v3154_v6, 2 }
 0x117   : > { %v664_v31 = vmul.f32 %v2718_v7, %v663_v24  ;;  %v670_v32 = vmul.f32 %v2722_v27, %v655_v4  ;;  %2723 = vrsqrt.f32 %v656_v25  ;;  %vm676_vm9 = vweird.f32 %v2722_v27  ;;  %vm707_vm13 = vmor %vm705_vm11, %vm706_vm10 }
 0x118   : > { %v698_v35 = vsel %vm697_vm7, %v2716_v2, %v694_v28  ;;  %v701_v37 = vmul.f32 %v2720_v23, %v700_v29  ;;  %vm677_vm12 = vmor %vm675_vm8, %vm676_vm9  ;;  %vm685_vm14 = vweird.f32 %v656_v25 }
 0x119   : > { %v712_v39 = vmul.f32 %v698_v35, %v2968_v21  ;;  %v668_v40 = vsel %vm667_vm6, %v2718_v7, %v664_v31  ;;  %v671_v41 = vmul.f32 %v2722_v27, %v670_v32  ;;  %v3157_v7 = vperm.slane %v3154_v6, 0 }
 0x11a   : > { %v709_v42 = vmul.f32 %v668_v40, %v2970_v22  ;;  %v702_v43 = vmul.f32 0.5, %v701_v37  ;;  %vm1044_vm6 = vcmask 74752  }
 0x11b   : > { %v720_v44 = vmul.f32 %v2703_v30, %v712_v39  ;;  %v672_v45 = vmul.f32 0.5, %v671_v41  ;;  %v760_v41 = vperm.slane %v3154_v6, 4 }
 0x11c   : > { %v717_v46 = vmul.f32 %v2703_v30, %v709_v42  ;;  %v703_v47 = vsub.f32 1.5, %v702_v43 }
 0x11d   : > { %v2724_v48 = vpop.eup %2723  ;;  %v3085_v49 = vadd.f32 %v2704_v38, %v720_v44  ;;  %v673_v51 = vsub.f32 1.5, %v672_v45 }
 0x11e   : > { %v3087_v52 = vadd.f32 %v2704_v38, %v717_v46  ;;  %v704_v54 = vmul.f32 %v2720_v23, %v703_v47  ;;  %v680_v21 = vmul.f32 %v2724_v48, %v656_v25  ;;  %vm686_vm15 = vweird.f32 %v2724_v48 }
 0x11f   : > { %v674_v22 = vmul.f32 %v2722_v27, %v673_v51  ;;  %2622 = vmatmul.msk.f32.vlgmr.msra.gmra.mxu1 %vm596_vm0, %v3085_v49  ;;  %vm687_vm1 = vmor %vm685_vm14, %vm686_vm15 }
 0x120   : > { %v708_v55 = vsel %vm707_vm13, %v2720_v23, %v704_v54  ;;  %v681_v57 = vmul.f32 %v2724_v48, %v680_v21  ;;  %2619 = vmatmul.msk.f32.vlgmr.msra.gmra.mxu0 %vm596_vm0, %v3087_v52  ;;  %2629 = vmatmul.msk.f32.vlgmr.msra.gmra.mxu2 %vm596_vm0, %v3087_v52 }
 0x121   : > { %v713_v58 = vmul.f32 %v708_v55, %v2981_v33  ;;  %v678_v60 = vsel %vm677_vm12, %v2722_v27, %v674_v22  ;;  %891 = vmatpush.msra.mxu1 %v3023_v50  ;;  %v3179_v27 = vperm.slane %v3154_v6, 3 }
 0x122   : > { %v710_v61 = vmul.f32 %v678_v60, %v2983_v34  ;;  %v682_v62 = vmul.f32 0.5, %v681_v57 }
 0x123   : > { %v721_v63 = vmul.f32 %v2703_v30, %v713_v58  ;;  %892 = vmatpush.msra.mxu1 %v3029_v53 }
 0x124   : > { %v718_v0 = vmul.f32 %v2703_v30, %v710_v61  ;;  %v683_v1 = vsub.f32 1.5, %v682_v62 }
 0x125   : > { %v729_v2 = vadd.f32 %v2704_v38, %v721_v63  ;;  %893 = vmatpush.msra.mxu1 %v3037_v56  ;;  %v747_v56 = vld [vmem:[%s4079_s3 + $0x88] sm:$0xff] }
 0x126   : > { %v726_v3 = vadd.f32 %v2704_v38, %v718_v0  ;;  %v684_v4 = vmul.f32 %v2724_v48, %v683_v1 }
 0x127   : > { %2623 = vmatmul.msk.f32.gmra.mxu1 %vm596_vm0, %v729_v2 }
 0x128   : > { %v688_v33 = vsel %vm687_vm1, %v2724_v48, %v684_v4  ;;  %2620 = vmatmul.msk.f32.gmra.mxu0 %vm596_vm0, %v726_v3  ;;  %2630 = vmatmul.msk.f32.gmra.mxu2 %vm596_vm0, %v726_v3 }
 0x129   : > { %v711_v34 = vmul.f32 %v688_v33, %v2987_v36  ;;  %2635 = vmatmul.msk.f32.vlgmr.msra.gmra.mxu3 %vm596_vm0, %v726_v3  ;;  %894 = vmatpush.msra.mxu1 %v3043_v59  ;;  %v753_v36 = vld [vmem:[%s4079_s3 + $0xb8] sm:$0xff] }
 0x12a   : > { %v741_v59 = vld [vmem:[%s4079_s3 + $0x58] sm:$0xff] }
 0x12b   : > { %v719_v50 = vmul.f32 %v2703_v30, %v711_v34 }
 0x12d   : > { %v727_v53 = vadd.f32 %v2704_v38, %v719_v50 }
 0x12f   : > { %2624 = vmatmul.msk.f32.vlgmr.msrb.gmra.mxu1 %vm596_vm0, %v3087_v52 }
 0x130   : > { %2621 = vmatmul.msk.f32.gmra.mxu0 %vm596_vm0, %v727_v53  ;;  %2631 = vmatmul.msk.f32.gmra.mxu2 %vm596_vm0, %v727_v53 }
 0x131   : > { %2636 = vmatmul.msk.f32.gmra.mxu3 %vm596_vm0, %v727_v53  ;;  %955 = vmatpush.msrb.mxu1 %v753_v36 }
 0x133   : > { %956 = vmatpush.msrb.mxu1 %v747_v56 }
 0x135   : > { %957 = vmatpush.msrb.mxu1 %v741_v59 }
 0x137   : > { %2625 = vmatmul.msk.f32.gmra.mxu1 %vm596_vm0, %v726_v3 }
 0x138   : > { %2632 = vmatmul.msk.f32.gmra.mxu2 %vm596_vm0, %v3085_v49  ;;  %2639 = vmatmul.msk.f32.vlgmr.msrb.gmra.mxu0 %vm596_vm0, %v3087_v52 }
 0x139   : > { %2637 = vmatmul.msk.f32.gmra.mxu3 %vm596_vm0, %v3085_v49  ;;  %958 = vmatpush.msrb.mxu1 %v735_v5 }
 0x13f   : > { %2626 = vmatmul.msk.f32.gmra.mxu1 %vm596_vm0, %v727_v53 }
 0x140   : > { %2633 = vmatmul.msk.f32.gmra.mxu2 %vm596_vm0, %v729_v2  ;;  %2640 = vmatmul.msk.f32.gmra.mxu0 %vm596_vm0, %v726_v3 }
 0x141   : > { %2638 = vmatmul.msk.f32.gmra.mxu3 %vm596_vm0, %v729_v2 }
 0x147   : > { %2627 = vmatmul.msk.f32.gmra.mxu1 %vm596_vm0, %v3085_v49 }
 0x148   : > { %2641 = vmatmul.msk.f32.gmra.mxu0 %vm596_vm0, %v727_v53 }
 0x14f   : > { %2628 = vmatmul.msk.f32.gmra.mxu1 %vm596_vm0, %v729_v2 }
 0x150   : > { %2642 = vmatmul.msk.f32.gmra.mxu0 %vm596_vm0, %v3085_v49 }
 0x157   : > { %2634 = vmatmul.msk.f32.vlgmr.msra.gmra.mxu1 %vm596_vm0, %v3087_v52 }
 0x158   : > { %2643 = vmatmul.msk.f32.gmra.mxu0 %vm596_vm0, %v729_v2 }
 0x15f   : > { %2644 = vmatmul.msk.f32.vlgmr.msrb.gmra.mxu1 %vm596_vm0, %v3087_v52 }
 0x167   : > { %2645 = vmatmul.msk.f32.gmra.mxu1 %vm596_vm0, %v726_v3 }
 0x16f   : > { %2646 = vmatmul.msk.f32.gmra.mxu1 %vm596_vm0, %v727_v53 }
 0x177   : > { %2647 = vmatmul.msk.f32.gmra.mxu1 %vm596_vm0, %v3085_v49  ;;  %v757_v49 = vperm.slane %v3154_v6, 1 }
 0x17f   : > { %2648 = vmatmul.msk.f32.gmra.mxu1 %vm596_vm0, %v729_v2 }
 0x19c   : > { %v809_v8 = vpop.f32.mrf.mxu1 }
 0x19d   : > { %v800_v9 = vpop.f32.mrf.mxu0  ;;  %v810_v10 = vadd.f32 %v809_v8, %v3157_v7 }
 0x19e   : > { %v801_v30 = vadd.f32 %v800_v9, %v3157_v7 }
 0x19f   : > { %v3160_v13 = vmul.f32 0.125, %v810_v10 }
 0x1a0   : > { %v975_v35 = vmul.f32 0.125, %v801_v30 }
 0x1a1   : > { %v1691_v18 = vrot.slane %v3160_v13, 6 }
 0x1a3   : > { %v864_v11 = vpop.f32.mrf.mxu2 }
 0x1a4   : > { %v812_v12 = vpop.f32.mrf.mxu1  ;;  %v865_v31 = vadd.f32 %v864_v11, %v3168_v20 }
 0x1a5   : > { %v803_v14 = vpop.f32.mrf.mxu0  ;;  %v813_v15 = vadd.f32 %v812_v12, %v3157_v7 }
 0x1a6   : > { %v804_v39 = vadd.f32 %v803_v14, %v3157_v7 }
 0x1a7   : > { %v3163_v17 = vmul.f32 0.125, %v813_v15 }
 0x1a8   : > { %v3191_v40 = vmul.f32 0.125, %v804_v39 }
 0x1a9   : > { %v1692_v19 = vrot.slane %v3163_v17, 6 }
 0x1ab   : > { %v867_v23 = vpop.f32.mrf.mxu2  ;;  %v3173_v24 = vsel %vm1070_vm2, %v1691_v18, %v1692_v19 }
 0x1ac   : > { %v832_v25 = vpop.f32.mrf.mxu1  ;;  %v3176_v26 = vadd.f32 %v867_v23, %v3168_v20  ;;  %v899_v29 = vpop.f32.mrf.mxu3 }
 0x1ad   : > { %v3181_v28 = vpop.f32.mrf.mxu0  ;;  %v3187_v32 = vadd.f32 %v899_v29, %v3179_v27  ;;  %v833_v2 = vadd.f32 %v832_v25, %v757_v49 }
 0x1ae   : > { %1031 = vmatpush.xpose.msrb.mxu2 %v3176_v26  ;;  %v1230_v9 = vrot.slane %v3176_v26, 2  ;;  %v807_v18 = vadd.f32 %v3181_v28, %v3157_v7 }
 0x1af   : > { %v976_v59 = vmul.f32 0.125, %v833_v2  ;;  %v1325_v23 = vrot.slane %v3187_v32, 2 }
 0x1b0   : > { %v979_v29 = vmul.f32 0.125, %v807_v18 }
 0x1b2   : > { %1032 = vmatpush.xpose.msrb.mxu2 %v865_v31  ;;  %v761_v31 = vperm.slane %v3154_v6, 5 }
 0x1b3   : > { %v870_v60 = vpop.f32.mrf.mxu2 }
 0x1b4   : > { %v835_v37 = vpop.f32.mrf.mxu1  ;;  %v871_v0 = vadd.f32 %v870_v60, %v3168_v20  ;;  %v902_v3 = vpop.f32.mrf.mxu3 }
 0x1b5   : > { %v928_v38 = vpop.f32.mrf.mxu0  ;;  %1033 = vmatmul.f32.vlgmr.msrb.gmra.mxu2 %v975_v35  ;;  %v3225_v56 = vadd.f32 %v902_v3, %v3179_v27  ;;  %v836_v14 = vadd.f32 %v835_v37, %v757_v49 }
 0x1b6   : > { %1111 = vmatpush.xpose.msra.mxu2 %v3187_v32  ;;  %v929_v45 = vadd.f32 %v928_v38, %v760_v41  ;;  %v1231_v53 = vrot.slane %v871_v0, 2  ;;  %v1224_v38 = vrot.slane %v979_v29, 2 }
 0x1b7   : > { %v1326_v11 = vrot.slane %v3225_v56, 2  ;;  %v978_v25 = vmul.f32 0.125, %v836_v14  ;;  %v1558_v2 = vrot.slane %v3225_v56, 4 }
 0x1b8   : > { %v1232_v12 = vsel %vm1222_vm3, %v1230_v9, %v1231_v53  ;;  %v1459_v9 = vrot.slane %v979_v29, 4 }
 0x1b9   : > { %v1327_v26 = vsel %vm1222_vm3, %v1325_v23, %v1326_v11 }
 0x1bb   : > { %v873_v30 = vpop.f32.mrf.mxu2 }
 0x1bc   : > { %v3194_v42 = vpop.f32.mrf.mxu1  ;;  %v874_v37 = vadd.f32 %v873_v30, %v3168_v20 }
 0x1bd   : > { %v931_v43 = vpop.f32.mrf.mxu0  ;;  %1036 = vmatmul.f32.gmra.mxu2 %v3191_v40  ;;  %v839_v6 = vadd.f32 %v3194_v42, %v757_v49 }
 0x1be   : > { %v932_v44 = vadd.f32 %v931_v43, %v760_v41  ;;  %v1466_v28 = vrot.slane %v874_v37, 4  ;;  %v1465_v43 = vrot.slane %v871_v0, 4 }
 0x1c0   : > { %2649 = vmatpush.msk.msrb.mxu3 %vm1070_vm2, %v932_v44  ;;  %v1281_v51 = vrot.slane %v932_v44, 2 }
 0x1c2   : > { %1089 = vmatpush.msrb.mxu3 %v929_v45 }
 0x1c4   : > { %v841_v46 = vpop.f32.mrf.mxu1 }
 0x1c5   : > { %v934_v47 = vpop.f32.mrf.mxu0  ;;  %v842_v54 = vadd.f32 %v841_v46, %v757_v49  ;;  %v1467_v46 = vsel %vm1458_vm4, %v1465_v43, %v1466_v28 }
 0x1c6   : > { %v3198_v48 = vadd.f32 %v934_v47, %v760_v41 }
 0x1c7   : > { %v3207_v55 = vmul.f32 0.125, %v842_v54 }
 0x1c8   : > { %v1282_v52 = vrot.slane %v3198_v48, 2 }
 0x1c9   : > { %v1784_v62 = vrot.slane %v3207_v55, 6 }
 0x1ca   : > { %v3205_v21 = vsel %vm1222_vm3, %v1281_v51, %v1282_v52  ;;  %v980_v51 = vmul.f32 0.125, %v839_v6 }
 0x1cc   : > { %v844_v22 = vpop.f32.mrf.mxu1  ;;  %v1552_v29 = vrot.slane %v980_v51, 4 }
 0x1cd   : > { %v845_v57 = vadd.f32 %v844_v22, %v757_v49  ;;  %v937_v58 = vpop.f32.mrf.mxu0  ;;  %v905_v22 = vpop.f32.mrf.mxu3  ;;  %v1319_v49 = vrot.slane %v980_v51, 2 }
 0x1ce   : > { %v3219_v4 = vadd.f32 %v937_v58, %v760_v41  ;;  %v906_v42 = vadd.f32 %v905_v22, %v3179_v27  ;;  %v1318_v58 = vrot.slane %v978_v25, 2 }
 0x1cf   : > { %v3209_v61 = vmul.f32 0.125, %v845_v57 }
 0x1d0   : > { %v1748_v5 = vrot.slane %v3219_v4, 6  ;;  %v1559_v60 = vrot.slane %v906_v42, 4 }
 0x1d1   : > { %v1785_v63 = vrot.slane %v3209_v61, 6 }
 0x1d3   : > { %v3217_v1 = vsel %vm1070_vm2, %v1784_v62, %v1785_v63  ;;  %v1320_v62 = vsel %vm1222_vm3, %v1318_v58, %v1319_v49 }
 0x1d4   : > { %v896_v33 = vpop.f32.mrf.mxu1 }
 0x1d5   : > { %v897_v34 = vadd.f32 %v896_v33, %v3179_v27  ;;  %v940_v50 = vpop.f32.mrf.mxu0  ;;  %v908_v23 = vpop.f32.mrf.mxu3 }
 0x1d6   : > { %v3222_v36 = vadd.f32 %v940_v50, %v760_v41  ;;  %v1223_v41 = vrot.slane %v3191_v40, 2 }
 0x1d7   : > { %1112 = vmatpush.xpose.msra.mxu2 %v897_v34  ;;  %v1560_v34 = vsel %vm1458_vm4, %v1558_v2, %v1559_v60 }
 0x1d8   : > { %v1749_v8 = vrot.slane %v3222_v36, 6  ;;  %v1225_v32 = vsel %vm1222_vm3, %v1223_v41, %v1224_v38 }
 0x1da   : > { %1113 = vmatmul.f32.vlgmr.msra.gmra.mxu2 %v976_v59  ;;  %v3233_v10 = vsel %vm1070_vm2, %v1748_v5, %v1749_v8  ;;  %v876_v5 = vpop.f32.mrf.mxu2 }
 0x1db   : > { %1249 = vmatpush.xpose.msrb.mxu2 %v1231_v53  ;;  %v877_v56 = vadd.f32 %v876_v5, %v3168_v20 }
 0x1dc   : > { %v960_v15 = vpop.f32.mrf.mxu1 }
 0x1dd   : > { %v961_v7 = vadd.f32 %v960_v15, %v761_v31  ;;  %v1697_v15 = vrot.slane %v874_v37, 6 }
 0x1df   : > { %1250 = vmatpush.xpose.msrb.mxu2 %v1232_v12  ;;  %v1698_v12 = vrot.slane %v877_v56, 6 }
 0x1e1   : > { %v1699_v18 = vsel %vm1070_vm2, %v1697_v15, %v1698_v12 }
 0x1e2   : > { %1116 = vmatmul.f32.gmra.mxu2 %v978_v25  ;;  %v909_v25 = vadd.f32 %v908_v23, %v3179_v27 }
 0x1e3   : > { %1344 = vmatpush.xpose.msra.mxu2 %v1326_v11  ;;  %v1460_v11 = vrot.slane %v3160_v13, 4  ;;  %v1790_v13 = vrot.slane %v906_v42, 6 }
 0x1e4   : > { %v963_v35 = vpop.f32.mrf.mxu1  ;;  %v1791_v30 = vrot.slane %v909_v25, 6 }
 0x1e5   : > { %v964_v39 = vadd.f32 %v963_v35, %v761_v31  ;;  %v1461_v14 = vsel %vm1458_vm4, %v1459_v9, %v1460_v11 }
 0x1e7   : > { %1345 = vmatpush.xpose.msra.mxu2 %v1327_v26  ;;  %2652 = vmatpush.msk.msra.mxu3 %vm1070_vm2, %v964_v39  ;;  %v1376_v47 = vrot.slane %v964_v39, 2  ;;  %v1553_v26 = vrot.slane %v3207_v55, 4 }
 0x1e9   : > { %1166 = vmatpush.msra.mxu3 %v961_v7  ;;  %v1554_v20 = vsel %vm1458_vm4, %v1552_v29, %v1553_v26 }
 0x1ea   : > { %1251 = vmatmul.f32.vlgmr.msrb.gmra.mxu2 %v1225_v32 }
 0x1eb   : > { %1484 = vmatpush.xpose.msrb.mxu2 %v1466_v28 }
 0x1ec   : > { %v966_v44 = vpop.f32.mrf.mxu1 }
 0x1ed   : > { %v3247_v45 = vadd.f32 %v966_v44, %v761_v31 }
 0x1ef   : > { %v1377_v40 = vrot.slane %v3247_v45, 2  ;;  %1485 = vmatpush.xpose.msrb.mxu2 %v1467_v46 }
 0x1f1   : > { %v3254_v54 = vsel %vm1222_vm3, %v1376_v47, %v1377_v40 }
 0x1f2   : > { %1254 = vmatmul.f32.gmra.mxu2 %v1224_v38 }
 0x1f4   : > { %v969_v57 = vpop.f32.mrf.mxu1 }
 0x1f5   : > { %v3258_v0 = vadd.f32 %v969_v57, %v761_v31 }
 0x1f7   : > { %v1841_v50 = vrot.slane %v3258_v0, 6 }
 0x1fa   : > { %1346 = vmatmul.f32.vlgmr.msra.gmra.mxu2 %v1320_v62 }
 0x1fb   : > { %1577 = vmatpush.xpose.msra.mxu2 %v1559_v60 }
 0x1fc   : > { %v972_v3 = vpop.f32.mrf.mxu1 }
 0x1fd   : > { %v3261_v33 = vadd.f32 %v972_v3, %v761_v31  ;;  %v1792_v31 = vsel %vm1070_vm2, %v1790_v13, %v1791_v30 }
 0x1ff   : > { %v1842_v53 = vrot.slane %v3261_v33, 6  ;;  %1578 = vmatpush.xpose.msra.mxu2 %v1560_v34 }
 0x201   : > { %v3269_v59 = vsel %vm1070_vm2, %v1841_v50, %v1842_v53 }
 0x202   : > { %1349 = vmatmul.f32.gmra.mxu2 %v1319_v49 }
 0x20a   : > { %1486 = vmatmul.f32.vlgmr.msrb.gmra.mxu2 %v1461_v14 }
 0x20b   : > { %1716 = vmatpush.xpose.msrb.mxu2 %v1698_v12 }
 0x20f   : > { %1717 = vmatpush.xpose.msrb.mxu2 %v1699_v18 }
 0x212   : > { %1489 = vmatmul.f32.gmra.mxu2 %v1460_v11 }
 0x21a   : > { %1579 = vmatmul.f32.vlgmr.msra.gmra.mxu2 %v1554_v20 }
 0x21b   : > { %1809 = vmatpush.xpose.msra.mxu2 %v1791_v30 }
 0x21f   : > { %1810 = vmatpush.xpose.msra.mxu2 %v1792_v31 }
 0x222   : > { %1582 = vmatmul.f32.gmra.mxu2 %v1553_v26 }
 0x22a   : > { %1718 = vmatmul.f32.vlgmr.msrb.gmra.mxu2 %v3173_v24 }
 0x232   : > { %1721 = vmatmul.f32.gmra.mxu2 %v1692_v19 }
 0x238   : > { %v1034_v27 = vpop.f32.mrf.mxu2 }
 0x239   : > { %v1041_v55 = vsel %vm1040_vm5, %v1034_v27, -inf }
 0x23a   : > { %1042 = vmax.xlane.f32.xlu1 %v1041_v55  ;;  %1811 = vmatmul.f32.vlgmr.msra.gmra.mxu2 %v3217_v1 }
 0x240   : > { %v1037_v35 = vpop.f32.mrf.mxu2 }
 0x241   : > { %v1045_v38 = vsel %vm1044_vm6, %v1037_v35, -inf }
 0x242   : > { %1046 = vmax.xlane.f32.xlu2 %v1045_v38  ;;  %1814 = vmatmul.f32.gmra.mxu2 %v1785_v63 }
 0x25d   : > { %v1114_v37 = vpop.f32.mrf.mxu2 }
 0x25e   : > { %v1120_v24 = vsel %vm1040_vm5, %v1114_v37, -inf }
 0x25f   : > { %1121 = vmax.xlane.f32.xlu0 %v1120_v24 }
 0x265   : > { %v1117_v17 = vpop.f32.mrf.mxu2 }
 0x266   : > { %v1123_v19 = vsel %vm1044_vm6, %v1117_v17, -inf }
 0x267   : > { %1124 = vmax.xlane.f32.xlu1 %v1123_v19 }
 0x26d   : > { %v1252_v39 = vpop.f32.mrf.mxu2 }
 0x26e   : > { %v1258_v41 = vsel %vm1040_vm5, %v1252_v39, -inf }
 0x26f   : > { %1259 = vmax.xlane.f32.xlu2 %v1258_v41 }
 0x275   : > { %v1255_v1 = vpop.f32.mrf.mxu2 }
 0x276   : > { %v1261_v7 = vsel %vm1044_vm6, %v1255_v1, -inf }
 0x277   : > { %1262 = vmax.xlane.f32.xlu0 %v1261_v7 }
 0x27d   : > { %v1347_v28 = vpop.f32.mrf.mxu2 }
 0x27e   : > { %v1353_v61 = vsel %vm1040_vm5, %v1347_v28, -inf }
 0x27f   : > { %1354 = vmax.xlane.f32.xlu1 %v1353_v61 }
 0x285   : > { %v3292_v63 = vpop.f32.mrf.mxu2 }
 0x286   : > { %v1356_v32 = vsel %vm1044_vm6, %v3292_v63, -inf }
 0x287   : > { %1357 = vmax.xlane.f32.xlu0 %v1356_v32 }
 0x28d   : > { %v3300_v42 = vpop.f32.mrf.mxu2 }
 0x28e   : > { %v1493_v58 = vsel %vm1040_vm5, %v3300_v42, -inf }
 0x295   : > { %v3308_v62 = vpop.f32.mrf.mxu2 }
 0x296   : > { %v1496_v2 = vsel %vm1044_vm6, %v3308_v62, -inf }
 0x29d   : > { %v3312_v5 = vpop.f32.mrf.mxu2 }
 0x29e   : > { %v1586_v29 = vsel %vm1040_vm5, %v3312_v5, -inf }
 0x2a5   : > { %v3318_v18 = vpop.f32.mrf.mxu2 }
 0x2ad   : > { %v1043_v43 = vpop.xlane.xlu1 %1042 }
 0x2ae   : > { %v1048_v44 = vsub.f32 %v1034_v27, %v1043_v43  ;;  %v3328_v27 = vpop.f32.mrf.mxu2 }
 0x2af   : > { %v1725_v41 = vsel %vm1040_vm5, %v3328_v27, -inf }
 0x2b0   : > { %v1050_v6 = vmul.f32 1.442695, %v1048_v44 }
 0x2b2   : > { %2725 = vpow2.f32 %v1050_v6 }
 0x2b5   : > { %v1047_v46 = vpop.xlane.xlu2 %1046 }
 0x2b6   : > { %v1049_v47 = vsub.f32 %v1037_v35, %v1047_v46  ;;  %v1589_v35 = vsel %vm1044_vm6, %v3318_v18, -inf }
 0x2b8   : > { %v3296_v51 = vpop.eup %2725  ;;  %v1052_v22 = vmul.f32 1.442695, %v1049_v47 }
 0x2b9   : > { %v1054_v57 = vsel %vm1040_vm5, %v3296_v51, 0.0 }
 0x2ba   : > { %2727 = vpow2.f32 %v1052_v22  ;;  %1055 = vadd.xlane.f32.xlu2 %v1054_v57 }
 0x2c0   : > { %v3302_v49 = vpop.eup %2727 }
 0x2c1   : > { %v1057_v60 = vsel %vm1044_vm6, %v3302_v49, 0.0 }
 0x2c2   : > { %1494 = vmax.xlane.f32.xlu2 %v1493_v58  ;;  %1058 = vadd.xlane.f32.xlu1 %v1057_v60 }
 0x2ca   : > { %1497 = vmax.xlane.f32.xlu1 %v1496_v2 }
 0x2d2   : > { %v1122_v3 = vpop.xlane.xlu0 %1121 }
 0x2d3   : > { %v1126_v34 = vsub.f32 %v1114_v37, %v1122_v3 }
 0x2d5   : > { %v1128_v50 = vmul.f32 1.442695, %v1126_v34 }
 0x2d7   : > { %2729 = vpow2.f32 %v1128_v50 }
 0x2da   : > { %v1125_v9 = vpop.xlane.xlu1 %1124 }
 0x2db   : > { %v1127_v56 = vsub.f32 %v1117_v17, %v1125_v9 }
 0x2dd   : > { %v3314_v11 = vpop.eup %2729  ;;  %v1130_v12 = vmul.f32 1.442695, %v1127_v56 }
 0x2de   : > { %v1132_v14 = vsel %vm1040_vm5, %v3314_v11, 0.0 }
 0x2df   : > { %2731 = vpow2.f32 %v1130_v12  ;;  %1133 = vadd.xlane.f32.xlu0 %v1132_v14 }
 0x2e2   : > { %v1260_v15 = vpop.xlane.xlu2 %1259 }
 0x2e3   : > { %v1264_v23 = vsub.f32 %v1252_v39, %v1260_v15 }
 0x2e5   : > { %v3320_v25 = vpop.eup %2731  ;;  %v1266_v26 = vmul.f32 1.442695, %v1264_v23 }
 0x2e6   : > { %v1135_v30 = vsel %vm1044_vm6, %v3320_v25, 0.0 }
 0x2e7   : > { %2733 = vpow2.f32 %v1266_v26  ;;  %1587 = vmax.xlane.f32.xlu0 %v1586_v29  ;;  %1136 = vadd.xlane.f32.xlu2 %v1135_v30 }
 0x2ea   : > { %v1263_v20 = vpop.xlane.xlu0 %1262 }
 0x2eb   : > { %v1265_v13 = vsub.f32 %v1255_v1, %v1263_v20  ;;  %v3340_v1 = vpop.f32.mrf.mxu2 }
 0x2ec   : > { %v1728_v43 = vsel %vm1044_vm6, %v3340_v1, -inf }
 0x2ed   : > { %v3326_v31 = vpop.eup %2733  ;;  %v1268_v55 = vmul.f32 1.442695, %v1265_v13 }
 0x2ee   : > { %v1270_v38 = vsel %vm1040_vm5, %v3326_v31, 0.0 }
 0x2ef   : > { %2735 = vpow2.f32 %v1268_v55  ;;  %1590 = vmax.xlane.f32.xlu2 %v1589_v35  ;;  %1271 = vadd.xlane.f32.xlu1 %v1270_v38 }
 0x2f2   : > { %v1355_v37 = vpop.xlane.xlu1 %1354 }
 0x2f3   : > { %v1359_v24 = vsub.f32 %v1347_v28, %v1355_v37  ;;  %v3349_v6 = vpop.f32.mrf.mxu2 }
 0x2f4   : > { %v1818_v47 = vsel %vm1040_vm5, %v3349_v6, -inf }
 0x2f5   : > { %v3334_v17 = vpop.eup %2735  ;;  %v1361_v19 = vmul.f32 1.442695, %v1359_v24 }
 0x2f6   : > { %v1273_v39 = vsel %vm1044_vm6, %v3334_v17, 0.0 }
 0x2f7   : > { %2737 = vpow2.f32 %v1361_v19  ;;  %1274 = vadd.xlane.f32.xlu0 %v1273_v39  ;;  %1726 = vmax.xlane.f32.xlu1 %v1725_v41 }
 0x2fa   : > { %v1358_v7 = vpop.xlane.xlu0 %1357 }
 0x2fb   : > { %v1360_v61 = vsub.f32 %v3292_v63, %v1358_v7  ;;  %v3357_v22 = vpop.f32.mrf.mxu2  ;;  %v1516_v7 = vrot.slane %v3198_v48, 4  ;;  %v3412_v48 = vld [vmem:[%s4081_s5 + $0x70] sm:$0xff] }
 0x2fc   : > { %v1821_v57 = vsel %vm1044_vm6, %v3357_v22, -inf }
 0x2fd   : > { %v3343_v32 = vpop.eup %2737  ;;  %v1363_v28 = vmul.f32 1.442695, %v1360_v61 }
 0x2fe   : > { %v1365_v44 = vsel %vm1040_vm5, %v3343_v32, 0.0 }
 0x2ff   : > { %2739 = vpow2.f32 %v1363_v28  ;;  %1729 = vmax.xlane.f32.xlu0 %v1728_v43  ;;  %1366 = vadd.xlane.f32.xlu2 %v1365_v44  ;;  %v3418_v44 = vld [vmem:[%s4081_s5 + $0x68] sm:$0xff] }
 0x305   : > { %v3351_v46 = vpop.eup %2739 }
 0x306   : > { %v1368_v63 = vsel %vm1044_vm6, %v3351_v46, 0.0 }
 0x307   : > { %1819 = vmax.xlane.f32.xlu2 %v1818_v47  ;;  %1369 = vadd.xlane.f32.xlu1 %v1368_v63 }
 0x30f   : > { %1822 = vmax.xlane.f32.xlu1 %v1821_v57 }
 0x32d   : > { %v1056_v58 = vpop.xlane.xlu2 %1055 }
 0x32e   : > { %2741 = vrcp.f32 %v1056_v58 }
 0x334   : > { %v2742_v60 = vpop.eup %2741 }
 0x335   : > { %v1059_v2 = vpop.xlane.xlu1 %1058  ;;  %v1495_v3 = vpop.xlane.xlu2 %1494  ;;  %v1062_v34 = vmul.f32 %v2742_v60, %v3296_v51  ;;  %v3426_v60 = vld [vmem:[%s4081_s5 + $0x60] sm:$0xff] }
 0x336   : > { %2743 = vrcp.f32 %v1059_v2  ;;  %v1499_v50 = vsub.f32 %v3300_v42, %v1495_v3 }
 0x337   : > { %2650 = vmatmul.msk.f32.vlgmr.msrb.gmra.mxu3 %vm1040_vm5, %v1062_v34  ;;  %v3443_v34 = vld [vmem:[%s4081_s5 + $0x50] sm:$0xff] }
 0x338   : > { %v1501_v9 = vmul.f32 1.442695, %v1499_v50  ;;  %2655 = vmatpush.msk.msrb.mxu3 %vm1070_vm2, %v1282_v52 }
 0x33a   : > { %2745 = vpow2.f32 %v1501_v9  ;;  %1308 = vmatpush.msrb.mxu3 %v3205_v21  ;;  %v3449_v9 = vld [vmem:[%s4081_s5 + $0x48] sm:$0xff] }
 0x33c   : > { %v2744_v56 = vpop.eup %2743 }
 0x33d   : > { %v1498_v12 = vpop.xlane.xlu1 %1497  ;;  %v1063_v14 = vmul.f32 %v2744_v56, %v3302_v49  ;;  %v1610_v56 = vrot.slane %v3258_v0, 4 }
 0x33e   : > { %v1500_v15 = vsub.f32 %v3308_v62, %v1498_v12 }
 0x33f   : > { %2651 = vmatmul.msk.f32.gmra.mxu3 %vm1040_vm5, %v1063_v14 }
 0x340   : > { %v3371_v51 = vpop.eup %2745  ;;  %v1503_v42 = vmul.f32 1.442695, %v1500_v15 }
 0x341   : > { %v1505_v23 = vsel %vm1040_vm5, %v3371_v51, 0.0 }
 0x342   : > { %2747 = vpow2.f32 %v1503_v42  ;;  %1506 = vadd.xlane.f32.xlu0 %v1505_v23  ;;  %v3458_v23 = vld [vmem:[%s4081_s5 + $0x40] sm:$0xff] }
 0x348   : > { %v3375_v52 = vpop.eup %2747 }
 0x349   : > { %v1508_v21 = vsel %vm1044_vm6, %v3375_v52, 0.0 }
 0x34a   : > { %1509 = vadd.xlane.f32.xlu2 %v1508_v21  ;;  %v1609_v21 = vrot.slane %v3247_v45, 4  ;;  %v3478_v45 = vld [vmem:[%s4081_s5 + $0x30] sm:$0xff] }
 0x352   : > { %v1134_v26 = vpop.xlane.xlu0 %1133 }
 0x353   : > { %2749 = vrcp.f32 %v1134_v26  ;;  %v1611_v26 = vsel %vm1458_vm4, %v1609_v21, %v1610_v56 }
 0x359   : > { %v2750_v49 = vpop.eup %2749 }
 0x35a   : > { %v1140_v62 = vmul.f32 %v2750_v49, %v3314_v11  ;;  %v1588_v29 = vpop.xlane.xlu0 %1587  ;;  %v1137_v30 = vpop.xlane.xlu2 %1136 }
 0x35b   : > { %v1592_v20 = vsub.f32 %v3312_v5, %v1588_v29  ;;  %2751 = vrcp.f32 %v1137_v30  ;;  %v3484_v29 = vld [vmem:[%s4081_s5 + $0x28] sm:$0xff] }
 0x35c   : > { %2653 = vmatmul.msk.f32.vlgmr.msra.gmra.mxu3 %vm1040_vm5, %v1140_v62 }
 0x35d   : > { %v1594_v13 = vmul.f32 1.442695, %v1592_v20  ;;  %2658 = vmatpush.msk.msra.mxu3 %vm1070_vm2, %v1377_v40 }
 0x35f   : > { %2753 = vpow2.f32 %v1594_v13  ;;  %1403 = vmatpush.msra.mxu3 %v3254_v54  ;;  %v1517_v54 = vrot.slane %v3219_v4, 4 }
 0x361   : > { %v2752_v55 = vpop.eup %2751  ;;  %v1518_v43 = vsel %vm1458_vm4, %v1516_v7, %v1517_v54  ;;  %v3568_v7 = vld [vmem:[%s4081_s5 + $0xd0] sm:$0xff] }
 0x362   : > { %v1272_v35 = vpop.xlane.xlu1 %1271  ;;  %v1591_v38 = vpop.xlane.xlu2 %1590  ;;  %v1141_v11 = vmul.f32 %v2752_v55, %v3320_v25  ;;  %v3492_v55 = vld [vmem:[%s4081_s5 + $0x20] sm:$0xff] }
 0x363   : > { %2755 = vrcp.f32 %v1272_v35  ;;  %v1593_v37 = vsub.f32 %v3318_v18, %v1591_v38 }
 0x364   : > { %2654 = vmatmul.msk.f32.gmra.mxu3 %vm1040_vm5, %v1141_v11 }
 0x365   : > { %v3389_v5 = vpop.eup %2753  ;;  %v1596_v24 = vmul.f32 1.442695, %v1593_v37 }
 0x366   : > { %v1598_v19 = vsel %vm1040_vm5, %v3389_v5, 0.0 }
 0x367   : > { %2757 = vpow2.f32 %v1596_v24  ;;  %1599 = vadd.xlane.f32.xlu0 %v1598_v19  ;;  %v3514_v24 = vld [vmem:[%s4081_s5 + $0x10] sm:$0xff]  ;;  %v3520_v19 = vld [vmem:[%s4081_s5 + $0x8] sm:$0xff] }
 0x369   : > { %v2756_v40 = vpop.eup %2755 }
 0x36a   : > { %v1278_v39 = vmul.f32 %v2756_v40, %v3326_v31  ;;  %v1275_v41 = vpop.xlane.xlu0 %1274  ;;  %v1727_v25 = vpop.xlane.xlu1 %1726  ;;  %v3407_v31 = vld [vmem:[%s4081_s5 + $0x78] sm:$0xff]  ;;  %v3526_v40 = vld [vmem:[%s4081_s5] sm:$0xff] }
 0x36b   : > { %2759 = vrcp.f32 %v1275_v41  ;;  %v1731_v18 = vsub.f32 %v3328_v27, %v1727_v25  ;;  %1197 = vmatpush.msra.mxu1 %v3407_v31  ;;  %v3547_v41 = vld [vmem:[%s4081_s5 + $0xe8] sm:$0xff]  ;;  %v3556_v25 = vld [vmem:[%s4081_s5 + $0xe0] sm:$0xff] }
 0x36c   : > { %2656 = vmatmul.msk.f32.vlgmr.msrb.gmra.mxu3 %vm1040_vm5, %v1278_v39  ;;  %v3542_v39 = vld [vmem:[%s4081_s5 + $0xf0] sm:$0xff] }
 0x36d   : > { %v3398_v61 = vpop.eup %2757  ;;  %v1733_v28 = vmul.f32 1.442695, %v1731_v18  ;;  %2661 = vmatpush.msk.msrb.mxu3 %vm1070_vm2, %v1517_v54  ;;  %1198 = vmatpush.msra.mxu1 %v3412_v48  ;;  %v3535_v54 = vld [vmem:[%s4081_s5 + $0xf8] sm:$0xff] }
 0x36e   : > { %v1601_v4 = vsel %vm1044_vm6, %v3398_v61, 0.0  ;;  %1174 = vmatpush.msra.mxu0 %v3535_v54  ;;  %v3561_v18 = vld [vmem:[%s4081_s5 + $0xd8] sm:$0xff] }
 0x36f   : > { %2761 = vpow2.f32 %v1733_v28  ;;  %1543 = vmatpush.msrb.mxu3 %v1518_v43  ;;  %1602 = vadd.xlane.f32.xlu1 %v1601_v4  ;;  %v3575_v28 = vld [vmem:[%s4081_s5 + $0xc8] sm:$0xff]  ;;  %v3582_v43 = vld [vmem:[%s4081_s5 + $0xc0] sm:$0xff]  ;;  %v3589_v4 = vld [vmem:[%s4081_s5 + $0xb8] sm:$0xff] }
 0x370   : > { %1199 = vmatpush.msra.mxu1 %v3418_v44  ;;  %1175 = vmatpush.msra.mxu0 %v3542_v39 }
 0x371   : > { %v2760_v27 = vpop.eup %2759 }
 0x372   : > { %v1730_v47 = vpop.xlane.xlu0 %1729  ;;  %v1367_v63 = vpop.xlane.xlu2 %1366  ;;  %v1279_v57 = vmul.f32 %v2760_v27, %v3334_v17  ;;  %v3435_v17 = vld [vmem:[%s4081_s5 + $0x58] sm:$0xff]  ;;  %1200 = vmatpush.msra.mxu1 %v3426_v60  ;;  %1176 = vmatpush.msra.mxu0 %v3547_v41  ;;  %v3596_v27 = vld [vmem:[%s4081_s5 + $0xb0] sm:$0xff] }
 0x373   : > { %v1732_v58 = vsub.f32 %v3340_v1, %v1730_v47  ;;  %2763 = vrcp.f32 %v1367_v63  ;;  %v3603_v47 = vld [vmem:[%s4081_s5 + $0xa8] sm:$0xff] }
 0x374   : > { %2657 = vmatmul.msk.f32.gmra.mxu3 %vm1040_vm5, %v1279_v57  ;;  %1201 = vmatpush.msra.mxu1 %v3435_v17  ;;  %v3610_v57 = vld [vmem:[%s4081_s5 + $0xa0] sm:$0xff] }
 0x375   : > { %v3430_v2 = vpop.eup %2761  ;;  %v1735_v3 = vmul.f32 1.442695, %v1732_v58  ;;  %1177 = vmatpush.msra.mxu0 %v3556_v25  ;;  %v3617_v58 = vld [vmem:[%s4081_s5 + $0x98] sm:$0xff] }
 0x376   : > { %v1737_v1 = vsel %vm1040_vm5, %v3430_v2, 0.0  ;;  %1202 = vmatpush.msra.mxu1 %v3443_v34 }
 0x377   : > { %2765 = vpow2.f32 %v1735_v3  ;;  %1738 = vadd.xlane.f32.xlu2 %v1737_v1  ;;  %1178 = vmatpush.msra.mxu0 %v3561_v18 }
 0x378   : > { %1203 = vmatpush.msra.mxu1 %v3449_v9 }
 0x379   : > { %v2764_v50 = vpop.eup %2763  ;;  %1179 = vmatpush.msra.mxu0 %v3568_v7 }
 0x37a   : > { %v1373_v12 = vmul.f32 %v2764_v50, %v3343_v32  ;;  %v1370_v14 = vpop.xlane.xlu1 %1369  ;;  %v1820_v15 = vpop.xlane.xlu2 %1819  ;;  %1204 = vmatpush.msra.mxu1 %v3458_v23  ;;  %v3626_v50 = vld [vmem:[%s4081_s5 + $0x90] sm:$0xff] }
 0x37b   : > { %2767 = vrcp.f32 %v1370_v14  ;;  %v1824_v42 = vsub.f32 %v3349_v6, %v1820_v15  ;;  %v3469_v6 = vld [vmem:[%s4081_s5 + $0x38] sm:$0xff]  ;;  %1180 = vmatpush.msra.mxu0 %v3575_v28  ;;  %v3634_v14 = vld [vmem:[%s4081_s5 + $0x88] sm:$0xff] }
 0x37c   : > { %2659 = vmatmul.msk.f32.vlgmr.msra.gmra.mxu3 %vm1040_vm5, %v1373_v12  ;;  %1205 = vmatpush.msra.mxu1 %v3469_v6 }
 0x37d   : > { %v3463_v0 = vpop.eup %2765  ;;  %v1826_v32 = vmul.f32 1.442695, %v1824_v42  ;;  %2664 = vmatpush.msk.msra.mxu3 %vm1070_vm2, %v1610_v56  ;;  %1181 = vmatpush.msra.mxu0 %v3582_v43 }
 0x37e   : > { %v1740_v49 = vsel %vm1044_vm6, %v3463_v0, 0.0  ;;  %1206 = vmatpush.msra.mxu1 %v3478_v45 }
 0x37f   : > { %2769 = vpow2.f32 %v1826_v32  ;;  %1636 = vmatpush.msra.mxu3 %v1611_v26  ;;  %1741 = vadd.xlane.f32.xlu0 %v1740_v49 }
 0x380   : > { %1207 = vmatpush.msra.mxu1 %v3484_v29  ;;  %1182 = vmatpush.msra.mxu0 %v3589_v4 }
 0x381   : > { %v2768_v62 = vpop.eup %2767 }
 0x382   : > { %v1823_v30 = vpop.xlane.xlu1 %1822  ;;  %v1374_v20 = vmul.f32 %v2768_v62, %v3351_v46  ;;  %v3501_v46 = vld [vmem:[%s4081_s5 + $0x18] sm:$0xff]  ;;  %1208 = vmatpush.msra.mxu1 %v3492_v55  ;;  %1183 = vmatpush.msra.mxu0 %v3596_v27 }
 0x383   : > { %v1825_v13 = vsub.f32 %v3357_v22, %v1823_v30 }
 0x384   : > { %2660 = vmatmul.msk.f32.gmra.mxu3 %vm1040_vm5, %v1374_v20  ;;  %1209 = vmatpush.msra.mxu1 %v3501_v46 }
 0x385   : > { %v3496_v35 = vpop.eup %2769  ;;  %v1828_v38 = vmul.f32 1.442695, %v1825_v13  ;;  %1184 = vmatpush.msra.mxu0 %v3603_v47 }
 0x386   : > { %v1830_v22 = vsel %vm1040_vm5, %v3496_v35, 0.0  ;;  %1210 = vmatpush.msra.mxu1 %v3514_v24 }
 0x387   : > { %2771 = vpow2.f32 %v1828_v38  ;;  %1831 = vadd.xlane.f32.xlu1 %v1830_v22  ;;  %1185 = vmatpush.msra.mxu0 %v3610_v57 }
 0x388   : > { %1211 = vmatpush.msra.mxu1 %v3520_v19 }
 0x389   : > { %1186 = vmatpush.msra.mxu0 %v3617_v58 }
 0x38a   : > { %1212 = vmatpush.msra.mxu1 %v3526_v40 }
 0x38b   : > { %1187 = vmatpush.msra.mxu0 %v3626_v50 }
 0x38c   : > { %1434 = vmatpush.msrb.mxu1 %v3407_v31 }
 0x38d   : > { %v3507_v11 = vpop.eup %2771  ;;  %1188 = vmatpush.msra.mxu0 %v3634_v14 }
 0x38e   : > { %v1833_v37 = vsel %vm1044_vm6, %v3507_v11, 0.0  ;;  %1435 = vmatpush.msrb.mxu1 %v3412_v48 }
 0x38f   : > { %1834 = vadd.xlane.f32.xlu2 %v1833_v37 }
 0x390   : > { %1436 = vmatpush.msrb.mxu1 %v3418_v44 }
 0x392   : > { %1437 = vmatpush.msrb.mxu1 %v3426_v60 }
 0x394   : > { %1438 = vmatpush.msrb.mxu1 %v3435_v17 }
 0x396   : > { %1439 = vmatpush.msrb.mxu1 %v3443_v34 }
 0x398   : > { %1440 = vmatpush.msrb.mxu1 %v3449_v9 }
 0x39a   : > { %1441 = vmatpush.msrb.mxu1 %v3458_v23 }
 0x39c   : > { %1442 = vmatpush.msrb.mxu1 %v3469_v6 }
 0x39e   : > { %1443 = vmatpush.msrb.mxu1 %v3478_v45 }
 0x3a0   : > { %1444 = vmatpush.msrb.mxu1 %v3484_v29 }
 0x3a2   : > { %1445 = vmatpush.msrb.mxu1 %v3492_v55 }
 0x3a4   : > { %1446 = vmatpush.msrb.mxu1 %v3501_v46 }
 0x3a6   : > { %1447 = vmatpush.msrb.mxu1 %v3514_v24 }
 0x3a8   : > { %1448 = vmatpush.msrb.mxu1 %v3520_v19 }
 0x3aa   : > { %1449 = vmatpush.msrb.mxu1 %v3526_v40 }
 0x3b5   : > { %v1507_v63 = vpop.xlane.xlu0 %1506 }
 0x3b6   : > { %2773 = vrcp.f32 %v1507_v63 }
 0x3ba   : > { %v1091_v3 = vpop.f32.mrf.mxu3 }
 0x3bb   : > { %1213 = vmatmul.f32.vlgmr.msra.gmra.mxu1 %v1091_v3 }
 0x3bc   : > { %v2774_v1 = vpop.eup %2773  ;;  %1667 = vmatpush.msra.mxu1 %v3407_v31 }
 0x3bd   : > { %v1513_v56 = vmul.f32 %v2774_v1, %v3371_v51  ;;  %v1510_v12 = vpop.xlane.xlu2 %1509  ;;  %v3645_v51 = vld [vmem:[%s4081_s5 + $0x80] sm:$0xff] }
 0x3be   : > { %2775 = vrcp.f32 %v1510_v12  ;;  %1668 = vmatpush.msra.mxu1 %v3412_v48  ;;  %1189 = vmatpush.msra.mxu0 %v3645_v51 }
 0x3bf   : > { %2662 = vmatmul.msk.f32.vlgmr.msrb.gmra.mxu3 %vm1040_vm5, %v1513_v56 }
 0x3c0   : > { %2667 = vmatpush.msk.msrb.mxu3 %vm1070_vm2, %v1749_v8  ;;  %1669 = vmatpush.msra.mxu1 %v3418_v44 }
 0x3c1   : > { %1411 = vmatpush.msrb.mxu0 %v3535_v54 }
 0x3c2   : > { %1775 = vmatpush.msrb.mxu3 %v3233_v10  ;;  %v1094_v15 = vpop.f32.mrf.mxu3  ;;  %1670 = vmatpush.msra.mxu1 %v3426_v60 }
 0x3c3   : > { %1216 = vmatmul.f32.gmra.mxu1 %v1094_v15  ;;  %1412 = vmatpush.msrb.mxu0 %v3542_v39 }
 0x3c4   : > { %v2776_v42 = vpop.eup %2775  ;;  %1671 = vmatpush.msra.mxu1 %v3435_v17 }
 0x3c5   : > { %v1514_v36 = vmul.f32 %v2776_v42, %v3375_v52  ;;  %1413 = vmatpush.msrb.mxu0 %v3547_v41 }
 0x3c6   : > { %1672 = vmatpush.msra.mxu1 %v3443_v34 }
 0x3c7   : > { %2663 = vmatmul.msk.f32.gmra.mxu3 %vm1040_vm5, %v1514_v36  ;;  %1414 = vmatpush.msrb.mxu0 %v3556_v25 }
 0x3c8   : > { %1673 = vmatpush.msra.mxu1 %v3449_v9 }
 0x3c9   : > { %1415 = vmatpush.msrb.mxu0 %v3561_v18 }
 0x3ca   : > { %1674 = vmatpush.msra.mxu1 %v3458_v23 }
 0x3cb   : > { %1416 = vmatpush.msrb.mxu0 %v3568_v7 }
 0x3cc   : > { %1675 = vmatpush.msra.mxu1 %v3469_v6 }
 0x3cd   : > { %1417 = vmatpush.msrb.mxu0 %v3575_v28 }
 0x3ce   : > { %1676 = vmatpush.msra.mxu1 %v3478_v45 }
 0x3cf   : > { %1418 = vmatpush.msrb.mxu0 %v3582_v43 }
 0x3d0   : > { %1677 = vmatpush.msra.mxu1 %v3484_v29 }
 0x3d1   : > { %1419 = vmatpush.msrb.mxu0 %v3589_v4 }
 0x3d2   : > { %1678 = vmatpush.msra.mxu1 %v3492_v55 }
 0x3d3   : > { %1420 = vmatpush.msrb.mxu0 %v3596_v27 }
 0x3d4   : > { %1679 = vmatpush.msra.mxu1 %v3501_v46 }
 0x3d5   : > { %1421 = vmatpush.msrb.mxu0 %v3603_v47 }
 0x3d6   : > { %1680 = vmatpush.msra.mxu1 %v3514_v24 }
 0x3d7   : > { %1422 = vmatpush.msrb.mxu0 %v3610_v57 }
 0x3d8   : > { %1681 = vmatpush.msra.mxu1 %v3520_v19 }
 0x3d9   : > { %1423 = vmatpush.msrb.mxu0 %v3617_v58 }
 0x3da   : > { %v1600_v8 = vpop.xlane.xlu0 %1599  ;;  %1682 = vmatpush.msra.mxu1 %v3526_v40 }
 0x3db   : > { %2777 = vrcp.f32 %v1600_v8  ;;  %1424 = vmatpush.msrb.mxu0 %v3626_v50 }
 0x3dd   : > { %1425 = vmatpush.msrb.mxu0 %v3634_v14 }
 0x3df   : > { %v1168_v10 = vpop.f32.mrf.mxu3  ;;  %1426 = vmatpush.msrb.mxu0 %v3645_v51 }
 0x3e0   : > { %1190 = vmatmul.f32.vlgmr.msra.gmra.mxu0 %v1168_v10  ;;  %v2831_v10 = vld [vmem:[%s2952_s1 + $0x10] sm:$0xff] }
 0x3e1   : > { %v2778_v52 = vpop.eup %2777  ;;  %1644 = vmatpush.msra.mxu0 %v3535_v54 }
 0x3e2   : > { %v1606_v21 = vmul.f32 %v2778_v52, %v3389_v5  ;;  %v1603_v32 = vpop.xlane.xlu1 %1602 }
 0x3e3   : > { %2779 = vrcp.f32 %v1603_v32  ;;  %1645 = vmatpush.msra.mxu0 %v3542_v39 }
 0x3e4   : > { %2665 = vmatmul.msk.f32.vlgmr.msra.gmra.mxu3 %vm1040_vm5, %v1606_v21 }
 0x3e5   : > { %2670 = vmatpush.msk.msra.mxu3 %vm1070_vm2, %v1842_v53  ;;  %1646 = vmatpush.msra.mxu0 %v3547_v41 }
 0x3e7   : > { %1868 = vmatpush.msra.mxu3 %v3269_v59  ;;  %v1171_v26 = vpop.f32.mrf.mxu3  ;;  %1647 = vmatpush.msra.mxu0 %v3556_v25 }
 0x3e8   : > { %1193 = vmatmul.f32.gmra.mxu0 %v1171_v26 }
 0x3e9   : > { %v2780_v49 = vpop.eup %2779  ;;  %1648 = vmatpush.msra.mxu0 %v3561_v18 }
 0x3ea   : > { %v1739_v5 = vpop.xlane.xlu2 %1738  ;;  %v1607_v62 = vmul.f32 %v2780_v49, %v3398_v61 }
 0x3eb   : > { %2781 = vrcp.f32 %v1739_v5  ;;  %1649 = vmatpush.msra.mxu0 %v3568_v7 }
 0x3ec   : > { %2666 = vmatmul.msk.f32.gmra.mxu3 %vm1040_vm5, %v1607_v62 }
 0x3ed   : > { %1650 = vmatpush.msra.mxu0 %v3575_v28 }
 0x3ef   : > { %v1310_v33 = vpop.f32.mrf.mxu3  ;;  %1651 = vmatpush.msra.mxu0 %v3582_v43 }
 0x3f0   : > { %1450 = vmatmul.f32.vlgmr.msrb.gmra.mxu1 %v1310_v33 }
 0x3f1   : > { %v2782_v53 = vpop.eup %2781  ;;  %1899 = vmatpush.msrb.mxu1 %v3407_v31  ;;  %1652 = vmatpush.msra.mxu0 %v3589_v4 }
 0x3f2   : > { %v1745_v59 = vmul.f32 %v2782_v53, %v3430_v2  ;;  %v1742_v30 = vpop.xlane.xlu0 %1741 }
 0x3f3   : > { %2783 = vrcp.f32 %v1742_v30  ;;  %1900 = vmatpush.msrb.mxu1 %v3412_v48  ;;  %1653 = vmatpush.msra.mxu0 %v3596_v27 }
 0x3f4   : > { %2668 = vmatmul.msk.f32.vlgmr.msrb.gmra.mxu3 %vm1040_vm5, %v1745_v59 }
 0x3f5   : > { %1901 = vmatpush.msrb.mxu1 %v3418_v44  ;;  %1654 = vmatpush.msra.mxu0 %v3603_v47 }
 0x3f7   : > { %v1313_v61 = vpop.f32.mrf.mxu3  ;;  %1902 = vmatpush.msrb.mxu1 %v3426_v60  ;;  %1655 = vmatpush.msra.mxu0 %v3610_v57 }
 0x3f8   : > { %1453 = vmatmul.f32.gmra.mxu1 %v1313_v61 }
 0x3f9   : > { %v2784_v31 = vpop.eup %2783  ;;  %1903 = vmatpush.msrb.mxu1 %v3435_v17  ;;  %1656 = vmatpush.msra.mxu0 %v3617_v58 }
 0x3fa   : > { %v1832_v2 = vpop.xlane.xlu1 %1831  ;;  %v1746_v48 = vmul.f32 %v2784_v31, %v3463_v0 }
 0x3fb   : > { %2785 = vrcp.f32 %v1832_v2  ;;  %1904 = vmatpush.msrb.mxu1 %v3443_v34  ;;  %1657 = vmatpush.msra.mxu0 %v3626_v50 }
 0x3fc   : > { %2669 = vmatmul.msk.f32.gmra.mxu3 %vm1040_vm5, %v1746_v48 }
 0x3fd   : > { %1905 = vmatpush.msrb.mxu1 %v3449_v9  ;;  %1658 = vmatpush.msra.mxu0 %v3634_v14 }
 0x3ff   : > { %v1405_v44 = vpop.f32.mrf.mxu3  ;;  %1906 = vmatpush.msrb.mxu1 %v3458_v23  ;;  %1659 = vmatpush.msra.mxu0 %v3645_v51 }
 0x400   : > { %1427 = vmatmul.f32.vlgmr.msrb.gmra.mxu0 %v1405_v44 }
 0x401   : > { %v2786_v60 = vpop.eup %2785  ;;  %1907 = vmatpush.msrb.mxu1 %v3469_v6  ;;  %1876 = vmatpush.msrb.mxu0 %v3535_v54 }
 0x402   : > { %v1838_v17 = vmul.f32 %v2786_v60, %v3496_v35  ;;  %v1835_v34 = vpop.xlane.xlu2 %1834  ;;  %v2829_v35 = vld [vmem:[%s2952_s1] sm:$0xff] }
 0x403   : > { %2787 = vrcp.f32 %v1835_v34  ;;  %1908 = vmatpush.msrb.mxu1 %v3478_v45  ;;  %1877 = vmatpush.msrb.mxu0 %v3542_v39  ;;  %v2832_v34 = vld [vmem:[%s2952_s1 + $0x18] sm:$0xff] }
 0x404   : > { %2671 = vmatmul.msk.f32.vlgmr.msra.gmra.mxu3 %vm1040_vm5, %v1838_v17 }
 0x405   : > { %1909 = vmatpush.msrb.mxu1 %v3484_v29  ;;  %1878 = vmatpush.msrb.mxu0 %v3547_v41 }
 0x407   : > { %v1408_v9 = vpop.f32.mrf.mxu3  ;;  %1910 = vmatpush.msrb.mxu1 %v3492_v55  ;;  %1879 = vmatpush.msrb.mxu0 %v3556_v25  ;;  %v3748_v55 = vld [vmem:[%s4082_s6] ss:$0 sm:$0xff] }
 0x408   : > { %1430 = vmatmul.f32.gmra.mxu0 %v1408_v9 }
 0x409   : > { %v2788_v23 = vpop.eup %2787  ;;  %1911 = vmatpush.msrb.mxu1 %v3501_v46  ;;  %1880 = vmatpush.msrb.mxu0 %v3561_v18 }
 0x40a   : > { %v1839_v0 = vmul.f32 %v2788_v23, %v3507_v11 }
 0x40b   : > { %1912 = vmatpush.msrb.mxu1 %v3514_v24  ;;  %1881 = vmatpush.msrb.mxu0 %v3568_v7 }
 0x40c   : > { %2672 = vmatmul.msk.f32.gmra.mxu3 %vm1040_vm5, %v1839_v0 }
 0x40d   : > { %1913 = vmatpush.msrb.mxu1 %v3520_v19  ;;  %1882 = vmatpush.msrb.mxu0 %v3575_v28 }
 0x40f   : > { %1914 = vmatpush.msrb.mxu1 %v3526_v40  ;;  %1883 = vmatpush.msrb.mxu0 %v3582_v43  ;;  %v2830_v43 = vld [vmem:[%s2952_s1 + $0x8] sm:$0xff] }
 0x411   : > { %1884 = vmatpush.msrb.mxu0 %v3589_v4 }
 0x413   : > { %1885 = vmatpush.msrb.mxu0 %v3596_v27 }
 0x415   : > { %1886 = vmatpush.msrb.mxu0 %v3603_v47 }
 0x417   : > { %1887 = vmatpush.msrb.mxu0 %v3610_v57 }
 0x419   : > { %1888 = vmatpush.msrb.mxu0 %v3617_v58 }
 0x41b   : > { %1889 = vmatpush.msrb.mxu0 %v3626_v50 }
 0x41d   : > { %1890 = vmatpush.msrb.mxu0 %v3634_v14 }
 0x41f   : > { %1891 = vmatpush.msrb.mxu0 %v3645_v51 }
 0x438   : > { %v1214_v29 = vpop.f32.mrf.mxu1 }
 0x440   : > { %v1217_v24 = vpop.f32.mrf.mxu1 }
 0x442   : > { %v1545_v6 = vpop.f32.mrf.mxu3 }
 0x443   : > { %1683 = vmatmul.f32.vlgmr.msra.gmra.mxu1 %v1545_v6 }
 0x44a   : > { %v1548_v45 = vpop.f32.mrf.mxu3 }
 0x44b   : > { %1686 = vmatmul.f32.gmra.mxu1 %v1548_v45 }
 0x45d   : > { %v1191_v20 = vpop.f32.mrf.mxu0 }
 0x45e   : > { %v1215_v13 = vadd.f32 %v1214_v29, %v1191_v20 }
 0x460   : > { %v1946_v38 = vadd.f32 %v2829_v35, %v1215_v13 }
 0x462   : > { %v3752_v46 = vadd.f32 %v3748_v55, %v1946_v38  ;;  %v2833_v38 = vld [vmem:[%s2952_s1 + $0x20] sm:$0xff]  ;;  %s4052_s1 = scalar_lea.vmem %s4094_s18, %s2946_s29 }
 0x464   : > { %v1962_v22 = vsel %vm596_vm0, %v3752_v46, 0.0 }
 0x465   : > { %1963 = vadd.xlane.f32.xlu0 %v1962_v22  ;;  %v1194_v19 = vpop.f32.mrf.mxu0 }
 0x466   : > { %v1218_v18 = vadd.f32 %v1217_v24, %v1194_v19 }
 0x467   : > { %v1638_v11 = vpop.f32.mrf.mxu3 }
 0x468   : > { %1660 = vmatmul.f32.vlgmr.msra.gmra.mxu0 %v1638_v11 }
 0x46d   : > { %v1451_v54 = vpop.f32.mrf.mxu1 }
 0x46f   : > { %v1641_v37 = vpop.f32.mrf.mxu3 }
 0x470   : > { %1663 = vmatmul.f32.gmra.mxu0 %v1641_v37 }
 0x475   : > { %v1454_v58 = vpop.f32.mrf.mxu1 }
 0x477   : > { %v1777_v40 = vpop.f32.mrf.mxu3 }
 0x478   : > { %1915 = vmatmul.f32.vlgmr.msrb.gmra.mxu1 %v1777_v40  ;;  %v2091_v40 = vld [vmem:[%s4085_s9 + $0x18] sm:$0xff] }
 0x479   : > { %2123 = vmatpush.msrb.mxu2 %v2091_v40 }
 0x47d   : > { %v1428_v39 = vpop.f32.mrf.mxu0 }
 0x47e   : > { %v1452_v41 = vadd.f32 %v1451_v54, %v1428_v39 }
 0x47f   : > { %v1780_v25 = vpop.f32.mrf.mxu3 }
 0x480   : > { %v1924_v7 = vrot.slane %v1452_v41, 6  ;;  %1918 = vmatmul.f32.gmra.mxu1 %v1780_v25  ;;  %v2089_v25 = vld [vmem:[%s4085_s9 + $0x8] sm:$0xff] }
 0x482   : > { %v1943_v28 = vsel %vm1070_vm2, %v1218_v18, %v1924_v7  ;;  %v2088_v18 = vld [vmem:[%s4085_s9] sm:$0xff] }
 0x483   : > { %v1947_v4 = vadd.f32 %v2830_v43, %v1943_v28 }
 0x485   : > { %v3759_v27 = vadd.f32 %v3748_v55, %v1947_v4  ;;  %v1431_v3 = vpop.f32.mrf.mxu0 }
 0x486   : > { %v1455_v1 = vadd.f32 %v1454_v58, %v1431_v3 }
 0x487   : > { %v1870_v47 = vpop.f32.mrf.mxu3  ;;  %v1965_v63 = vsel %vm596_vm0, %v3759_v27, 0.0 }
 0x488   : > { %1966 = vadd.xlane.f32.xlu1 %v1965_v63  ;;  %1892 = vmatmul.f32.vlgmr.msrb.gmra.mxu0 %v1870_v47  ;;  %v1925_v50 = vrot.slane %v1455_v1, 6 }
 0x48a   : > { %v1926_v42 = vsel %vm1070_vm2, %v1924_v7, %v1925_v50 }
 0x48f   : > { %v1873_v57 = vpop.f32.mrf.mxu3 }
 0x490   : > { %1895 = vmatmul.f32.gmra.mxu0 %v1873_v57 }
 0x4c0   : > { %v1684_v56 = vpop.f32.mrf.mxu1 }
 0x4c8   : > { %v1687_v62 = vpop.f32.mrf.mxu1 }
 0x4d8   : > { %v1964_v51 = vpop.xlane.xlu0 %1963 }
 0x4d9   : > { %v1977_v8 = vmul.f32 %v1964_v51, %v2964_v16  ;;  %v3829_v51 = vld [vmem:[%s4084_s8] ss:$0 sm:$0xff] }
 0x4db   : > { %v3771_v32 = vsub.f32 %v3752_v46, %v1977_v8 }
 0x4dd   : > { %v1987_v49 = vmul.f32 %v3771_v32, %v3771_v32 }
 0x4df   : > { %v1992_v5 = vsel %vm596_vm0, %v1987_v49, 0.0 }
 0x4e5   : > { %v1661_v12 = vpop.f32.mrf.mxu0 }
 0x4e6   : > { %v1685_v14 = vadd.f32 %v1684_v56, %v1661_v12  ;;  %v3823_v56 = vld [vmem:[%s4083_s7] ss:$0 sm:$0xff] }
 0x4e8   : > { %v1931_v15 = vrot.slane %v1685_v14, 4 }
 0x4ea   : > { %v1944_v36 = vsel %vm1458_vm4, %v1926_v42, %v1931_v15 }
 0x4eb   : > { %v1948_v52 = vadd.f32 %v2831_v10, %v1944_v36 }
 0x4ed   : > { %v3768_v21 = vadd.f32 %v3748_v55, %v1948_v52  ;;  %v1664_v33 = vpop.f32.mrf.mxu0 }
 0x4ee   : > { %v1688_v53 = vadd.f32 %v1687_v62, %v1664_v33 }
 0x4ef   : > { %v1968_v26 = vsel %vm596_vm0, %v3768_v21, 0.0 }
 0x4f0   : > { %1969 = vadd.xlane.f32.xlu2 %v1968_v26  ;;  %v1932_v30 = vrot.slane %v1688_v53, 4 }
 0x4f2   : > { %v1933_v44 = vsel %vm1458_vm4, %v1931_v15, %v1932_v30 }
 0x4f5   : > { %v1916_v59 = vpop.f32.mrf.mxu1 }
 0x4f8   : > { %1993 = vadd.xlane.f32.xlu2 %v1992_v5 }
 0x4fb   : > { %v1967_v2 = vpop.xlane.xlu1 %1966 }
 0x4fc   : > { %v1978_v17 = vmul.f32 %v1967_v2, %v2964_v16 }
 0x4fd   : > { %v1919_v23 = vpop.f32.mrf.mxu1 }
 0x4fe   : > { %v3786_v29 = vsub.f32 %v3759_v27, %v1978_v17 }
 0x500   : > { %v1988_v11 = vmul.f32 %v3786_v29, %v3786_v29 }
 0x502   : > { %v1995_v24 = vsel %vm596_vm0, %v1988_v11, 0.0 }
 0x505   : > { %v1893_v61 = vpop.f32.mrf.mxu0 }
 0x506   : > { %v1917_v31 = vadd.f32 %v1916_v59, %v1893_v61 }
 0x508   : > { %v1938_v48 = vrot.slane %v1917_v31, 2 }
 0x50a   : > { %v1945_v60 = vsel %vm1222_vm3, %v1933_v44, %v1938_v48 }
 0x50b   : > { %v1949_v9 = vadd.f32 %v2832_v34, %v1945_v60 }
 0x50d   : > { %v1896_v0 = vpop.f32.mrf.mxu0  ;;  %v3783_v6 = vadd.f32 %v3748_v55, %v1949_v9 }
 0x50e   : > { %v1920_v45 = vadd.f32 %v1919_v23, %v1896_v0 }
 0x50f   : > { %v1971_v20 = vsel %vm596_vm0, %v3783_v6, 0.0 }
 0x510   : > { %v1939_v13 = vrot.slane %v1920_v45, 2  ;;  %1972 = vadd.xlane.f32.xlu0 %v1971_v20 }
 0x512   : > { %v1940_v35 = vsel %vm1222_vm3, %v1938_v48, %v1939_v13 }
 0x513   : > { %v1950_v22 = vadd.f32 %v2833_v38, %v1940_v35 }
 0x515   : > { %v3795_v37 = vadd.f32 %v3748_v55, %v1950_v22  ;;  %v2090_v55 = vld [vmem:[%s4085_s9 + $0x10] sm:$0xff] }
 0x516   : > { %2124 = vmatpush.msrb.mxu2 %v2090_v55 }
 0x517   : > { %v1974_v19 = vsel %vm596_vm0, %v3795_v37, 0.0 }
 0x518   : > { %1996 = vadd.xlane.f32.xlu0 %v1995_v24  ;;  %1975 = vadd.xlane.f32.xlu1 %v1974_v19 }
 0x519   : > { %2125 = vmatpush.msrb.mxu2 %v2089_v25  ;;  %v2287_v25 = vld [vmem:[%s4087_s11 + $0x70] sm:$0xff] }
 0x51b   : > { %2126 = vmatpush.msrb.mxu2 %v2088_v18 }
 0x563   : > { %v1970_v54 = vpop.xlane.xlu2 %1969 }
 0x564   : > { %v1979_v39 = vmul.f32 %v1970_v54, %v2964_v16 }
 0x566   : > { %v3808_v41 = vsub.f32 %v3768_v21, %v1979_v39  ;;  %v2288_v39 = vld [vmem:[%s4087_s11 + $0x78] sm:$0xff] }
 0x567   : > { %2293 = vmatpush.msrb.mxu3 %v2288_v39 }
 0x568   : > { %v1989_v7 = vmul.f32 %v3808_v41, %v3808_v41 }
 0x569   : > { %2294 = vmatpush.msrb.mxu3 %v2287_v25 }
 0x56a   : > { %v1998_v28 = vsel %vm596_vm0, %v1989_v7, 0.0 }
 0x56b   : > { %1999 = vadd.xlane.f32.xlu1 %v1998_v28  ;;  %v1994_v43 = vpop.xlane.xlu2 %1993  ;;  %v2285_v28 = vld [vmem:[%s4087_s11 + $0x60] sm:$0xff] }
 0x56c   : > { %v2007_v4 = vmul.f32 %v1994_v43, %v2964_v16  ;;  %v2284_v43 = vld [vmem:[%s4087_s11 + $0x58] sm:$0xff] }
 0x56e   : > { %v2012_v47 = vadd.f32 1e-05, %v2007_v4 }
 0x570   : > { %2789 = vrsqrt.f32 %v2012_v47  ;;  %vm2023_vm8 = vweird.f32 %v2012_v47 }
 0x576   : > { %v2790_v63 = vpop.eup %2789 }
 0x577   : > { %v2018_v57 = vmul.f32 %v2790_v63, %v2012_v47  ;;  %vm2024_vm7 = vweird.f32 %v2790_v63  ;;  %v2283_v47 = vld [vmem:[%s4087_s11 + $0x50] sm:$0xff] }
 0x578   : > { %vm2025_vm9 = vmor %vm2023_vm8, %vm2024_vm7 }
 0x579   : > { %v2019_v58 = vmul.f32 %v2790_v63, %v2018_v57  ;;  %v3881_v57 = vld [vmem:[%s4086_s10] ss:$0 sm:$0xff] }
 0x57b   : > { %v2020_v3 = vmul.f32 0.5, %v2019_v58  ;;  %v2282_v58 = vld [vmem:[%s4087_s11 + $0x48] sm:$0xff] }
 0x57d   : > { %v2021_v1 = vsub.f32 1.5, %v2020_v3 }
 0x57f   : > { %v2022_v50 = vmul.f32 %v2790_v63, %v2021_v1 }
 0x581   : > { %v2026_v12 = vsel %vm2025_vm9, %v2790_v63, %v2022_v50 }
 0x582   : > { %v2067_v14 = vmul.f32 %v2026_v12, %v3771_v32  ;;  %v2281_v12 = vld [vmem:[%s4087_s11 + $0x40] sm:$0xff] }
 0x583   : > { %v1973_v15 = vpop.xlane.xlu0 %1972 }
 0x584   : > { %v2075_v42 = vmul.f32 %v3823_v56, %v2067_v14  ;;  %v1980_v36 = vmul.f32 %v1973_v15, %v2964_v16 }
 0x586   : > { %v3834_v8 = vsub.f32 %v3783_v6, %v1980_v36  ;;  %v2083_v10 = vadd.f32 %v3829_v51, %v2075_v42  ;;  %v2280_v36 = vld [vmem:[%s4087_s11 + $0x38] sm:$0xff] }
 0x588   : > { %2673 = vmatmul.msk.f32.vlgmr.msrb.gmra.mxu2 %vm596_vm0, %v2083_v10  ;;  %v1990_v52 = vmul.f32 %v3834_v8, %v3834_v8 }
 0x58a   : > { %v2001_v32 = vsel %vm596_vm0, %v1990_v52, 0.0 }
 0x58b   : > { %2002 = vadd.xlane.f32.xlu2 %v2001_v32  ;;  %v1997_v26 = vpop.xlane.xlu0 %1996  ;;  %v1976_v49 = vpop.xlane.xlu1 %1975  ;;  %v2279_v32 = vld [vmem:[%s4087_s11 + $0x30] sm:$0xff] }
 0x58c   : > { %v2008_v5 = vmul.f32 %v1997_v26, %v2964_v16  ;;  %v1981_v62 = vmul.f32 %v1976_v49, %v2964_v16 }
 0x58e   : > { %v2013_v33 = vadd.f32 1e-05, %v2008_v5  ;;  %v3844_v53 = vsub.f32 %v3795_v37, %v1981_v62  ;;  %v2278_v5 = vld [vmem:[%s4087_s11 + $0x28] sm:$0xff] }
 0x590   : > { %2791 = vrsqrt.f32 %v2013_v33  ;;  %v1991_v59 = vmul.f32 %v3844_v53, %v3844_v53  ;;  %vm2033_vm11 = vweird.f32 %v2013_v33 }
 0x592   : > { %v2004_v30 = vsel %vm596_vm0, %v1991_v59, 0.0 }
 0x593   : > { %2005 = vadd.xlane.f32.xlu0 %v2004_v30 }
 0x596   : > { %v2792_v61 = vpop.eup %2791 }
 0x597   : > { %v2028_v31 = vmul.f32 %v2792_v61, %v2013_v33  ;;  %vm2034_vm10 = vweird.f32 %v2792_v61 }
 0x598   : > { %vm2035_vm12 = vmor %vm2033_vm11, %vm2034_vm10 }
 0x599   : > { %v2029_v2 = vmul.f32 %v2792_v61, %v2028_v31 }
 0x59b   : > { %v2030_v48 = vmul.f32 0.5, %v2029_v2 }
 0x59d   : > { %v2031_v44 = vsub.f32 1.5, %v2030_v48 }
 0x59f   : > { %v2032_v60 = vmul.f32 %v2792_v61, %v2031_v44  ;;  %v2276_v44 = vld [vmem:[%s4087_s11 + $0x18] sm:$0xff] }
 0x5a1   : > { %v2036_v17 = vsel %vm2035_vm12, %v2792_v61, %v2032_v60  ;;  %v2277_v61 = vld [vmem:[%s4087_s11 + $0x20] sm:$0xff] }
 0x5a2   : > { %v2068_v34 = vmul.f32 %v2036_v17, %v3786_v29 }
 0x5a4   : > { %v2076_v9 = vmul.f32 %v3823_v56, %v2068_v34  ;;  %v2275_v34 = vld [vmem:[%s4087_s11 + $0x10] sm:$0xff] }
 0x5a6   : > { %v2084_v23 = vadd.f32 %v3829_v51, %v2076_v9 }
 0x5a8   : > { %2674 = vmatmul.msk.f32.gmra.mxu2 %vm596_vm0, %v2084_v23 }
 0x5de   : > { %v2000_v0 = vpop.xlane.xlu1 %1999 }
 0x5df   : > { %v2009_v45 = vmul.f32 %v2000_v0, %v2964_v16  ;;  %v2274_v0 = vld [vmem:[%s4087_s11 + $0x8] sm:$0xff] }
 0x5e1   : > { %v2014_v20 = vadd.f32 1e-05, %v2009_v45 }
 0x5e3   : > { %2793 = vrsqrt.f32 %v2014_v20  ;;  %vm2043_vm14 = vweird.f32 %v2014_v20 }
 0x5e9   : > { %v2794_v13 = vpop.eup %2793 }
 0x5ea   : > { %v2038_v35 = vmul.f32 %v2794_v13, %v2014_v20  ;;  %vm2044_vm13 = vweird.f32 %v2794_v13 }
 0x5eb   : > { %vm2045_vm15 = vmor %vm2043_vm14, %vm2044_vm13 }
 0x5ec   : > { %v2039_v38 = vmul.f32 %v2794_v13, %v2038_v35 }
 0x5ee   : > { %v2040_v22 = vmul.f32 0.5, %v2039_v38 }
 0x5f0   : > { %v2041_v11 = vsub.f32 1.5, %v2040_v22 }
 0x5f2   : > { %v2042_v24 = vmul.f32 %v2794_v13, %v2041_v11 }
 0x5f4   : > { %v2046_v29 = vsel %vm2045_vm15, %v2794_v13, %v2042_v24 }
 0x5f5   : > { %v2069_v19 = vmul.f32 %v2046_v29, %v3808_v41  ;;  %v2286_v41 = vld [vmem:[%s4087_s11 + $0x68] sm:$0xff] }
 0x5f6   : > { %2295 = vmatpush.msrb.mxu3 %v2286_v41 }
 0x5f7   : > { %v2077_v40 = vmul.f32 %v3823_v56, %v2069_v19 }
 0x5f8   : > { %2296 = vmatpush.msrb.mxu3 %v2285_v28 }
 0x5f9   : > { %v2085_v54 = vadd.f32 %v3829_v51, %v2077_v40 }
 0x5fa   : > { %2297 = vmatpush.msrb.mxu3 %v2284_v43 }
 0x5fb   : > { %2675 = vmatmul.msk.f32.gmra.mxu2 %vm596_vm0, %v2085_v54 }
 0x5fc   : > { %2298 = vmatpush.msrb.mxu3 %v2283_v47 }
 0x5fe   : > { %v2003_v55 = vpop.xlane.xlu2 %2002  ;;  %2299 = vmatpush.msrb.mxu3 %v2282_v58 }
 0x5ff   : > { %v2010_v18 = vmul.f32 %v2003_v55, %v2964_v16 }
 0x600   : > { %2300 = vmatpush.msrb.mxu3 %v2281_v12 }
 0x601   : > { %v2015_v7 = vadd.f32 1e-05, %v2010_v18 }
 0x602   : > { %2301 = vmatpush.msrb.mxu3 %v2280_v36 }
 0x603   : > { %2795 = vrsqrt.f32 %v2015_v7  ;;  %vm2053_vm2 = vweird.f32 %v2015_v7 }
 0x604   : > { %2302 = vmatpush.msrb.mxu3 %v2279_v32 }
 0x606   : > { %v2006_v4 = vpop.xlane.xlu0 %2005  ;;  %2303 = vmatpush.msrb.mxu3 %v2278_v5 }
 0x607   : > { %v2011_v63 = vmul.f32 %v2006_v4, %v2964_v16 }
 0x608   : > { %2304 = vmatpush.msrb.mxu3 %v2277_v61 }
 0x609   : > { %v2796_v3 = vpop.eup %2795  ;;  %v2016_v1 = vadd.f32 1e-05, %v2011_v63 }
 0x60a   : > { %v2048_v50 = vmul.f32 %v2796_v3, %v2015_v7  ;;  %vm2054_vm1 = vweird.f32 %v2796_v3  ;;  %2305 = vmatpush.msrb.mxu3 %v2276_v44 }
 0x60b   : > { %2797 = vrsqrt.f32 %v2016_v1  ;;  %v2128_v14 = vpop.f32.mrf.mxu2  ;;  %vm2055_vm3 = vmor %vm2053_vm2, %vm2054_vm1  ;;  %vm2063_vm5 = vweird.f32 %v2016_v1 }
 0x60c   : > { %v2049_v15 = vmul.f32 %v2796_v3, %v2048_v50  ;;  %v3890_v42 = vadd.f32 %v3881_v57, %v2128_v14  ;;  %2306 = vmatpush.msrb.mxu3 %v2275_v34 }
 0x60e   : > { %v2050_v10 = vmul.f32 0.5, %v2049_v15  ;;  %v3896_v52 = vmul.f32 0.70710677, %v3890_v42  ;;  %2307 = vmatpush.msrb.mxu3 %v2274_v0  ;;  %v2143_v12 = vmul.f32 0.5, %v3890_v42 }
 0x610   : > { %v2051_v26 = vsub.f32 1.5, %v2050_v10  ;;  %v2153_v49 = vand.u32 2147483647, %v3896_v52  ;;  %vm2248_vm7 = vcmp.ge.f32.partialorder %v3896_v52, 0.0 }
 0x611   : > { %v2798_v62 = vpop.eup %2797 }
 0x612   : > { %v2052_v33 = vmul.f32 %v2796_v3, %v2051_v26  ;;  %v2058_v59 = vmul.f32 %v2798_v62, %v2016_v1  ;;  %v2158_v30 = vmul.f32 0.3275911, %v2153_v49  ;;  %vm2064_vm4 = vweird.f32 %v2798_v62 }
 0x613   : > { %vm2065_vm6 = vmor %vm2063_vm5, %vm2064_vm4  ;;  %v2218_v38 = vsub.f32 0.0, %v2153_v49 }
 0x614   : > { %v2056_v31 = vsel %vm2055_vm3, %v2796_v3, %v2052_v33  ;;  %v2059_v2 = vmul.f32 %v2798_v62, %v2058_v59  ;;  %v2163_v48 = vadd.f32 1.0, %v2158_v30 }
 0x615   : > { %v2070_v60 = vmul.f32 %v2056_v31, %v3834_v8  ;;  %v2273_v8 = vld [vmem:[%s4087_s11] sm:$0xff]  ;;  %v2223_v19 = vmul.f32 %v2218_v38, %v2153_v49 }
 0x616   : > { %v2060_v17 = vmul.f32 0.5, %v2059_v2  ;;  %2799 = vrcp.f32 %v2163_v48  ;;  %2308 = vmatpush.msrb.mxu3 %v2273_v8 }
 0x617   : > { %v2078_v9 = vmul.f32 %v3823_v56, %v2070_v60  ;;  %v2228_v55 = vmul.f32 1.442695, %v2223_v19 }
 0x618   : > { %v2061_v23 = vsub.f32 1.5, %v2060_v17 }
 0x619   : > { %v2086_v45 = vadd.f32 %v3829_v51, %v2078_v9  ;;  %2801 = vpow2.f32 %v2228_v55 }
 0x61a   : > { %v2062_v20 = vmul.f32 %v2798_v62, %v2061_v23 }
 0x61b   : > { %2676 = vmatmul.msk.f32.gmra.mxu2 %vm596_vm0, %v2086_v45 }
 0x61c   : > { %v2800_v13 = vpop.eup %2799  ;;  %v2066_v35 = vsel %vm2065_vm6, %v2798_v62, %v2062_v20 }
 0x61d   : > { %v2071_v22 = vmul.f32 %v2066_v35, %v3844_v53  ;;  %v2173_v11 = vmul.f32 1.0614054, %v2800_v13 }
 0x61f   : > { %v2178_v24 = vadd.f32 -1.4531521, %v2173_v11  ;;  %v2079_v29 = vmul.f32 %v3823_v56, %v2071_v22  ;;  %v2802_v4 = vpop.eup %2801 }
 0x621   : > { %v2183_v40 = vmul.f32 %v2800_v13, %v2178_v24  ;;  %v2087_v54 = vadd.f32 %v3829_v51, %v2079_v29 }
 0x623   : > { %v2188_v39 = vadd.f32 1.4214138, %v2183_v40  ;;  %2677 = vmatmul.msk.f32.gmra.mxu2 %vm596_vm0, %v2087_v54 }
 0x625   : > { %v2193_v25 = vmul.f32 %v2800_v13, %v2188_v39 }
 0x627   : > { %v2198_v18 = vadd.f32 -0.28449672, %v2193_v25 }
 0x629   : > { %v2203_v41 = vmul.f32 %v2800_v13, %v2198_v18 }
 0x62b   : > { %v2208_v7 = vadd.f32 0.2548296, %v2203_v41  ;;  %v2131_v28 = vpop.f32.mrf.mxu2 }
 0x62c   : > { %v2132_v53 = vadd.f32 %v3881_v57, %v2131_v28 }
 0x62d   : > { %v2213_v43 = vmul.f32 %v2800_v13, %v2208_v7 }
 0x62e   : > { %v2149_v47 = vmul.f32 0.70710677, %v2132_v53  ;;  %v2144_v17 = vmul.f32 0.5, %v2132_v53 }
 0x62f   : > { %v2238_v56 = vmul.f32 %v2802_v4, %v2213_v43 }
 0x630   : > { %v2154_v63 = vand.u32 2147483647, %v2149_v47  ;;  %vm2249_vm8 = vcmp.ge.f32.partialorder %v2149_v47, 0.0 }
 0x631   : > { %v2243_v58 = vsub.f32 1.0, %v2238_v56 }
 0x632   : > { %v2159_v3 = vmul.f32 0.3275911, %v2154_v63  ;;  %v2219_v10 = vsub.f32 0.0, %v2154_v63 }
 0x633   : > { %v2253_v51 = vsub.f32 0.0, %v2243_v58 }
 0x634   : > { %v2164_v1 = vadd.f32 1.0, %v2159_v3  ;;  %v2224_v49 = vmul.f32 %v2219_v10, %v2154_v63 }
 0x635   : > { %v2258_v50 = vsel %vm2248_vm7, %v2243_v58, %v2253_v51 }
 0x636   : > { %v2263_v14 = vadd.f32 1.0, %v2258_v50  ;;  %2803 = vrcp.f32 %v2164_v1  ;;  %v2230_v33 = vmul.f32 1.442695, %v2224_v49 }
 0x638   : > { %v2268_v15 = vmul.f32 %v2263_v14, %v2143_v12  ;;  %2805 = vpow2.f32 %v2230_v33 }
 0x63a   : > { %2309 = vmatmul.f32.vlgmr.msrb.gmra.mxu3 %v2268_v15 }
 0x63c   : > { %v2804_v36 = vpop.eup %2803 }
 0x63d   : > { %v2174_v32 = vmul.f32 1.0614054, %v2804_v36 }
 0x63e   : > { %v2806_v2 = vpop.eup %2805 }
 0x63f   : > { %v2179_v26 = vadd.f32 -1.4531521, %v2174_v32 }
 0x641   : > { %v2184_v5 = vmul.f32 %v2804_v36, %v2179_v26 }
 0x643   : > { %v2189_v62 = vadd.f32 1.4214138, %v2184_v5 }
 0x645   : > { %v2194_v59 = vmul.f32 %v2804_v36, %v2189_v62 }
 0x647   : > { %v2199_v30 = vadd.f32 -0.28449672, %v2194_v59 }
 0x649   : > { %v2204_v52 = vmul.f32 %v2804_v36, %v2199_v30 }
 0x64b   : > { %v2209_v61 = vadd.f32 0.2548296, %v2204_v52 }
 0x64d   : > { %v2214_v31 = vmul.f32 %v2804_v36, %v2209_v61 }
 0x64f   : > { %v2239_v42 = vmul.f32 %v2806_v2, %v2214_v31 }
 0x651   : > { %v2244_v48 = vsub.f32 1.0, %v2239_v42  ;;  %v3946_v42 = vld [vmem:[%s4088_s12] ss:$0 sm:$0xff] }
 0x653   : > { %v2254_v44 = vsub.f32 0.0, %v2244_v48 }
 0x655   : > { %v2259_v60 = vsel %vm2249_vm8, %v2244_v48, %v2254_v44 }
 0x656   : > { %v2264_v34 = vadd.f32 1.0, %v2259_v60 }
 0x658   : > { %v2269_v9 = vmul.f32 %v2264_v34, %v2144_v17 }
 0x65a   : > { %2312 = vmatmul.f32.gmra.mxu3 %v2269_v9 }
 0x67e   : > { %v2134_v23 = vpop.f32.mrf.mxu2 }
 0x67f   : > { %v2135_v0 = vadd.f32 %v3881_v57, %v2134_v23 }
 0x681   : > { %v2150_v8 = vmul.f32 0.70710677, %v2135_v0  ;;  %v2145_v12 = vmul.f32 0.5, %v2135_v0 }
 0x683   : > { %v2155_v45 = vand.u32 2147483647, %v2150_v8  ;;  %vm2250_vm9 = vcmp.ge.f32.partialorder %v2150_v8, 0.0 }
 0x685   : > { %v2160_v20 = vmul.f32 0.3275911, %v2155_v45  ;;  %v2220_v38 = vsub.f32 0.0, %v2155_v45 }
 0x687   : > { %v2165_v13 = vadd.f32 1.0, %v2160_v20  ;;  %v2225_v24 = vmul.f32 %v2220_v38, %v2155_v45 }
 0x689   : > { %2807 = vrcp.f32 %v2165_v13  ;;  %v2232_v40 = vmul.f32 1.442695, %v2225_v24 }
 0x68b   : > { %2809 = vpow2.f32 %v2232_v40 }
 0x68f   : > { %v2808_v35 = vpop.eup %2807 }
 0x690   : > { %v2175_v22 = vmul.f32 1.0614054, %v2808_v35 }
 0x691   : > { %v2810_v28 = vpop.eup %2809 }
 0x692   : > { %v2180_v11 = vadd.f32 -1.4531521, %v2175_v22 }
 0x694   : > { %v2185_v29 = vmul.f32 %v2808_v35, %v2180_v11 }
 0x696   : > { %v2190_v19 = vadd.f32 1.4214138, %v2185_v29 }
 0x698   : > { %v2195_v54 = vmul.f32 %v2808_v35, %v2190_v19 }
 0x69a   : > { %v2200_v39 = vadd.f32 -0.28449672, %v2195_v54 }
 0x69c   : > { %v2205_v55 = vmul.f32 %v2808_v35, %v2200_v39 }
 0x69e   : > { %v2137_v25 = vpop.f32.mrf.mxu2  ;;  %v2210_v18 = vadd.f32 0.2548296, %v2205_v55 }
 0x69f   : > { %v3933_v41 = vadd.f32 %v3881_v57, %v2137_v25 }
 0x6a0   : > { %v2215_v7 = vmul.f32 %v2808_v35, %v2210_v18 }
 0x6a1   : > { %v3936_v53 = vmul.f32 0.70710677, %v3933_v41  ;;  %v2146_v25 = vmul.f32 0.5, %v3933_v41 }
 0x6a2   : > { %v2240_v43 = vmul.f32 %v2810_v28, %v2215_v7 }
 0x6a3   : > { %v2156_v4 = vand.u32 2147483647, %v3936_v53  ;;  %vm2251_vm10 = vcmp.ge.f32.partialorder %v3936_v53, 0.0 }
 0x6a4   : > { %v2245_v47 = vsub.f32 1.0, %v2240_v43 }
 0x6a5   : > { %v2161_v56 = vmul.f32 0.3275911, %v2156_v4  ;;  %v2221_v26 = vsub.f32 0.0, %v2156_v4 }
 0x6a6   : > { %v2140_v63 = vpop.f32.mrf.mxu2  ;;  %v2255_v58 = vsub.f32 0.0, %v2245_v47 }
 0x6a7   : > { %v2166_v3 = vadd.f32 1.0, %v2161_v56  ;;  %v3940_v51 = vadd.f32 %v3881_v57, %v2140_v63  ;;  %v2226_v33 = vmul.f32 %v2221_v26, %v2156_v4 }
 0x6a8   : > { %v2260_v1 = vsel %vm2250_vm9, %v2245_v47, %v2255_v58 }
 0x6a9   : > { %2811 = vrcp.f32 %v2166_v3  ;;  %v2152_v50 = vmul.f32 0.70710677, %v3940_v51  ;;  %v2265_v14 = vadd.f32 1.0, %v2260_v1  ;;  %v2234_v52 = vmul.f32 1.442695, %v2226_v33 }
 0x6aa   : > { %v2147_v56 = vmul.f32 0.5, %v3940_v51 }
 0x6ab   : > { %v2157_v15 = vand.u32 2147483647, %v2152_v50  ;;  %v2270_v36 = vmul.f32 %v2265_v14, %v2145_v12  ;;  %vm2252_vm11 = vcmp.ge.f32.partialorder %v2152_v50, 0.0 }
 0x6ad   : > { %v2162_v10 = vmul.f32 0.3275911, %v2157_v15  ;;  %2315 = vmatmul.f32.gmra.mxu3 %v2270_v36  ;;  %v2222_v61 = vsub.f32 0.0, %v2157_v15 }
 0x6af   : > { %v2812_v32 = vpop.eup %2811  ;;  %v2167_v49 = vadd.f32 1.0, %v2162_v10  ;;  %v2227_v60 = vmul.f32 %v2222_v61, %v2157_v15 }
 0x6b0   : > { %v2176_v5 = vmul.f32 1.0614054, %v2812_v32 }
 0x6b1   : > { %2813 = vrcp.f32 %v2167_v49  ;;  %v2236_v45 = vmul.f32 1.442695, %v2227_v60  ;;  %v2463_v60 = vld [vmem:[%s4091_s15] sm:$0xff] }
 0x6b2   : > { %v2181_v62 = vadd.f32 -1.4531521, %v2176_v5  ;;  %2815 = vpow2.f32 %v2234_v52 }
 0x6b3   : > { %2817 = vpow2.f32 %v2236_v45 }
 0x6b4   : > { %v2186_v59 = vmul.f32 %v2812_v32, %v2181_v62 }
 0x6b6   : > { %v2191_v57 = vadd.f32 1.4214138, %v2186_v59 }
 0x6b7   : > { %v2814_v30 = vpop.eup %2813 }
 0x6b8   : > { %v2196_v31 = vmul.f32 %v2812_v32, %v2191_v57  ;;  %v2177_v2 = vmul.f32 1.0614054, %v2814_v30  ;;  %v2816_v38 = vpop.eup %2815 }
 0x6ba   : > { %v2201_v48 = vadd.f32 -0.28449672, %v2196_v31  ;;  %v2182_v44 = vadd.f32 -1.4531521, %v2177_v2  ;;  %v2466_v2 = vld [vmem:[%s4091_s15 + $0x18] sm:$0xff] }
 0x6bb   : > { %2498 = vmatpush.msra.mxu0 %v2466_v2  ;;  %v2712_v2 = vld [vmem:[%s4092_s16] ss:$0 sm:$0xff] }
 0x6bc   : > { %v2206_v17 = vmul.f32 %v2812_v32, %v2201_v48  ;;  %v2187_v34 = vmul.f32 %v2814_v30, %v2182_v44  ;;  %v2464_v44 = vld [vmem:[%s4091_s15 + $0x8] sm:$0xff] }
 0x6bd   : > { %v2310_v9 = vpop.f32.mrf.mxu3 }
 0x6be   : > { %v2311_v23 = vadd.f32 %v3946_v42, %v2310_v9  ;;  %v2211_v0 = vadd.f32 0.2548296, %v2206_v17  ;;  %v2192_v8 = vadd.f32 1.4214138, %v2187_v34 }
 0x6c0   : > { %v2325_v20 = vadd.f32 %v2311_v23, %v3752_v46  ;;  %v2216_v13 = vmul.f32 %v2812_v32, %v2211_v0  ;;  %v2197_v35 = vmul.f32 %v2814_v30, %v2192_v8  ;;  %v2818_v46 = vpop.eup %2817 }
 0x6c2   : > { %2330 = vst.msk [vmem:[%s3953_s20] sm:$0xff] %vm596_vm0, %v2325_v20  ;;  %v2337_v22 = vsel %vm596_vm0, %v2325_v20, 0.0  ;;  %v2241_v11 = vmul.f32 %v2816_v38, %v2216_v13  ;;  %v2202_v24 = vadd.f32 -0.28449672, %v2197_v35 }
 0x6c3   : > { %2338 = vadd.xlane.f32.xlu1 %v2337_v22 }
 0x6c4   : > { %v2246_v29 = vsub.f32 1.0, %v2241_v11  ;;  %v2207_v19 = vmul.f32 %v2814_v30, %v2202_v24  ;;  %v4012_v11 = vld [vmem:[%s4089_s13] ss:$0 sm:$0xff] }
 0x6c6   : > { %v2256_v40 = vsub.f32 0.0, %v2246_v29  ;;  %v2212_v54 = vadd.f32 0.2548296, %v2207_v19 }
 0x6c8   : > { %v2261_v39 = vsel %vm2251_vm10, %v2246_v29, %v2256_v40  ;;  %v2217_v55 = vmul.f32 %v2814_v30, %v2212_v54  ;;  %v4017_v40 = vld [vmem:[%s4090_s14] ss:$0 sm:$0xff] }
 0x6c9   : > { %v2266_v18 = vadd.f32 1.0, %v2261_v39 }
 0x6ca   : > { %v2242_v7 = vmul.f32 %v2818_v46, %v2217_v55 }
 0x6cb   : > { %v2271_v28 = vmul.f32 %v2266_v18, %v2146_v25 }
 0x6cc   : > { %v2247_v43 = vsub.f32 1.0, %v2242_v7 }
 0x6cd   : > { %2318 = vmatmul.f32.gmra.mxu3 %v2271_v28 }
 0x6ce   : > { %v2257_v4 = vsub.f32 0.0, %v2247_v43 }
 0x6d0   : > { %v2262_v47 = vsel %vm2252_vm11, %v2247_v43, %v2257_v4 }
 0x6d1   : > { %v2267_v63 = vadd.f32 1.0, %v2262_v47 }
 0x6d3   : > { %v2272_v58 = vmul.f32 %v2267_v63, %v2147_v56 }
 0x6d5   : > { %2321 = vmatmul.f32.gmra.mxu3 %v2272_v58 }
 0x6dd   : > { %v2313_v53 = vpop.f32.mrf.mxu3 }
 0x6de   : > { %v2314_v3 = vadd.f32 %v3946_v42, %v2313_v53 }
 0x6e0   : > { %v2326_v41 = vadd.f32 %v2314_v3, %v3759_v27 }
 0x6e2   : > { %2331 = vst.msk [vmem:[%s3953_s20 + $0x8] sm:$0xff] %vm596_vm0, %v2326_v41  ;;  %v2340_v1 = vsel %vm596_vm0, %v2326_v41, 0.0 }
 0x6e3   : > { %2341 = vadd.xlane.f32.xlu2 %v2340_v1 }
 0x730   : > { %v2316_v12 = vpop.f32.mrf.mxu3 }
 0x731   : > { %v2317_v50 = vadd.f32 %v3946_v42, %v2316_v12 }
 0x733   : > { %v2327_v14 = vadd.f32 %v2317_v50, %v3768_v21 }
 0x735   : > { %2332 = vst.msk [vmem:[%s3953_s20 + $0x10] sm:$0xff] %vm596_vm0, %v2327_v14  ;;  %v2343_v51 = vsel %vm596_vm0, %v2327_v14, 0.0 }
 0x736   : > { %v2339_v15 = vpop.xlane.xlu1 %2338  ;;  %2344 = vadd.xlane.f32.xlu0 %v2343_v51 }
 0x737   : > { %v2352_v36 = vmul.f32 %v2339_v15, %v2964_v16 }
 0x739   : > { %v2357_v27 = vsub.f32 %v2325_v20, %v2352_v36 }
 0x73b   : > { %v2362_v10 = vmul.f32 %v2357_v27, %v2357_v27 }
 0x73d   : > { %v2367_v32 = vsel %vm596_vm0, %v2362_v10, 0.0 }
 0x73e   : > { %2368 = vadd.xlane.f32.xlu0 %v2367_v32 }
 0x750   : > { %v2319_v26 = vpop.f32.mrf.mxu3 }
 0x751   : > { %v2320_v49 = vadd.f32 %v3946_v42, %v2319_v26 }
 0x753   : > { %v2328_v5 = vadd.f32 %v2320_v49, %v3783_v6 }
 0x755   : > { %2333 = vst.msk [vmem:[%s3953_s20 + $0x18] sm:$0xff] %vm596_vm0, %v2328_v5  ;;  %v2346_v21 = vsel %vm596_vm0, %v2328_v5, 0.0 }
 0x756   : > { %2347 = vadd.xlane.f32.xlu1 %v2346_v21  ;;  %v2342_v62 = vpop.xlane.xlu2 %2341 }
 0x757   : > { %v2353_v33 = vmul.f32 %v2342_v62, %v2964_v16 }
 0x758   : > { %v2322_v59 = vpop.f32.mrf.mxu3 }
 0x759   : > { %v3980_v57 = vsub.f32 %v2326_v41, %v2353_v33  ;;  %v2323_v30 = vadd.f32 %v3946_v42, %v2322_v59 }
 0x75b   : > { %v2329_v52 = vadd.f32 %v2323_v30, %v3795_v37  ;;  %v2363_v61 = vmul.f32 %v3980_v57, %v3980_v57  ;;  %v2465_v37 = vld [vmem:[%s4091_s15 + $0x10] sm:$0xff] }
 0x75c   : > { %2499 = vmatpush.msra.mxu0 %v2465_v37 }
 0x75d   : > { %2334 = vst.msk [vmem:[%s3953_s20 + $0x20] sm:$0xff] %vm596_vm0, %v2329_v52  ;;  %v2349_v6 = vsel %vm596_vm0, %v2329_v52, 0.0  ;;  %v2370_v31 = vsel %vm596_vm0, %v2363_v61, 0.0 }
 0x75e   : > { %2350 = vadd.xlane.f32.xlu2 %v2349_v6  ;;  %2371 = vadd.xlane.f32.xlu1 %v2370_v31 }
 0x75f   : > { %2500 = vmatpush.msra.mxu0 %v2464_v44 }
 0x761   : > { %2501 = vmatpush.msra.mxu0 %v2463_v60 }
 0x7a9   : > { %v2345_v48 = vpop.xlane.xlu0 %2344 }
 0x7aa   : > { %v2354_v42 = vmul.f32 %v2345_v48, %v2964_v16 }
 0x7ac   : > { %v4003_v17 = vsub.f32 %v2327_v14, %v2354_v42 }
 0x7ae   : > { %v2364_v34 = vmul.f32 %v4003_v17, %v4003_v17 }
 0x7b0   : > { %v2373_v9 = vsel %vm596_vm0, %v2364_v34, 0.0 }
 0x7b1   : > { %v2369_v23 = vpop.xlane.xlu0 %2368  ;;  %2374 = vadd.xlane.f32.xlu2 %v2373_v9 }
 0x7b2   : > { %v2382_v0 = vmul.f32 %v2369_v23, %v2964_v16 }
 0x7b4   : > { %v2387_v8 = vadd.f32 1e-05, %v2382_v0 }
 0x7b6   : > { %2819 = vrsqrt.f32 %v2387_v8  ;;  %vm2398_vm13 = vweird.f32 %v2387_v8 }
 0x7bc   : > { %v2820_v45 = vpop.eup %2819 }
 0x7bd   : > { %v2393_v20 = vmul.f32 %v2820_v45, %v2387_v8  ;;  %vm2399_vm12 = vweird.f32 %v2820_v45 }
 0x7be   : > { %vm2400_vm14 = vmor %vm2398_vm13, %vm2399_vm12 }
 0x7bf   : > { %v2394_v13 = vmul.f32 %v2820_v45, %v2393_v20 }
 0x7c1   : > { %v2395_v35 = vmul.f32 0.5, %v2394_v13 }
 0x7c3   : > { %v2396_v38 = vsub.f32 1.5, %v2395_v35 }
 0x7c5   : > { %v2397_v22 = vmul.f32 %v2820_v45, %v2396_v38 }
 0x7c7   : > { %v2401_v24 = vsel %vm2400_vm14, %v2820_v45, %v2397_v22 }
 0x7c8   : > { %v2442_v29 = vmul.f32 %v2401_v24, %v2357_v27 }
 0x7c9   : > { %v2348_v19 = vpop.xlane.xlu1 %2347 }
 0x7ca   : > { %v2355_v54 = vmul.f32 %v2348_v19, %v2964_v16  ;;  %v2450_v39 = vmul.f32 %v4012_v11, %v2442_v29 }
 0x7cc   : > { %v4021_v55 = vsub.f32 %v2328_v5, %v2355_v54  ;;  %v2458_v46 = vadd.f32 %v4017_v40, %v2450_v39 }
 0x7ce   : > { %v2365_v25 = vmul.f32 %v4021_v55, %v4021_v55  ;;  %2678 = vmatmul.msk.f32.vlgmr.msra.gmra.mxu0 %vm596_vm0, %v2458_v46 }
 0x7d0   : > { %v2376_v18 = vsel %vm596_vm0, %v2365_v25, 0.0 }
 0x7d1   : > { %2377 = vadd.xlane.f32.xlu0 %v2376_v18  ;;  %v2372_v7 = vpop.xlane.xlu1 %2371  ;;  %v2351_v28 = vpop.xlane.xlu2 %2350 }
 0x7d2   : > { %v2383_v43 = vmul.f32 %v2372_v7, %v2964_v16  ;;  %v2356_v4 = vmul.f32 %v2351_v28, %v2964_v16 }
 0x7d4   : > { %v2388_v47 = vadd.f32 1e-05, %v2383_v43  ;;  %v4030_v56 = vsub.f32 %v2329_v52, %v2356_v4 }
 0x7d6   : > { %2821 = vrsqrt.f32 %v2388_v47  ;;  %v2366_v63 = vmul.f32 %v4030_v56, %v4030_v56  ;;  %vm2408_vm1 = vweird.f32 %v2388_v47 }
 0x7d8   : > { %v2379_v58 = vsel %vm596_vm0, %v2366_v63, 0.0 }
 0x7d9   : > { %2380 = vadd.xlane.f32.xlu1 %v2379_v58 }
 0x7dc   : > { %v2822_v53 = vpop.eup %2821 }
 0x7dd   : > { %v2403_v3 = vmul.f32 %v2822_v53, %v2388_v47  ;;  %vm2409_vm15 = vweird.f32 %v2822_v53 }
 0x7de   : > { %vm2410_vm2 = vmor %vm2408_vm1, %vm2409_vm15 }
 0x7df   : > { %v2404_v41 = vmul.f32 %v2822_v53, %v2403_v3 }
 0x7e1   : > { %v2405_v1 = vmul.f32 0.5, %v2404_v41 }
 0x7e3   : > { %v2406_v12 = vsub.f32 1.5, %v2405_v1 }
 0x7e5   : > { %v2407_v50 = vmul.f32 %v2822_v53, %v2406_v12 }
 0x7e7   : > { %v2411_v14 = vsel %vm2410_vm2, %v2822_v53, %v2407_v50 }
 0x7e8   : > { %v2443_v51 = vmul.f32 %v2411_v14, %v3980_v57 }
 0x7ea   : > { %v2451_v15 = vmul.f32 %v4012_v11, %v2443_v51 }
 0x7ec   : > { %v2459_v36 = vadd.f32 %v4017_v40, %v2451_v15 }
 0x7ee   : > { %2679 = vmatmul.msk.f32.gmra.mxu0 %vm596_vm0, %v2459_v36 }
 0x824   : > { %v2375_v27 = vpop.xlane.xlu2 %2374 }
 0x825   : > { %v2384_v10 = vmul.f32 %v2375_v27, %v2964_v16 }
 0x827   : > { %v2389_v32 = vadd.f32 1e-05, %v2384_v10 }
 0x829   : > { %2823 = vrsqrt.f32 %v2389_v32  ;;  %vm2418_vm4 = vweird.f32 %v2389_v32 }
 0x82f   : > { %v2824_v26 = vpop.eup %2823 }
 0x830   : > { %v2413_v49 = vmul.f32 %v2824_v26, %v2389_v32  ;;  %vm2419_vm3 = vweird.f32 %v2824_v26 }
 0x831   : > { %vm2420_vm5 = vmor %vm2418_vm4, %vm2419_vm3 }
 0x832   : > { %v2414_v5 = vmul.f32 %v2824_v26, %v2413_v49 }
 0x834   : > { %v2415_v21 = vmul.f32 0.5, %v2414_v5 }
 0x836   : > { %v2416_v62 = vsub.f32 1.5, %v2415_v21 }
 0x838   : > { %v2417_v33 = vmul.f32 %v2824_v26, %v2416_v62 }
 0x83a   : > { %v2421_v59 = vsel %vm2420_vm5, %v2824_v26, %v2417_v33 }
 0x83b   : > { %v2444_v57 = vmul.f32 %v2421_v59, %v4003_v17 }
 0x83d   : > { %v2452_v30 = vmul.f32 %v4012_v11, %v2444_v57 }
 0x83f   : > { %v2460_v52 = vadd.f32 %v4017_v40, %v2452_v30 }
 0x841   : > { %2680 = vmatmul.msk.f32.gmra.mxu0 %vm596_vm0, %v2460_v52 }
 0x844   : > { %v2378_v61 = vpop.xlane.xlu0 %2377 }
 0x845   : > { %v2385_v6 = vmul.f32 %v2378_v61, %v2964_v16 }
 0x847   : > { %v2390_v31 = vadd.f32 1e-05, %v2385_v6 }
 0x849   : > { %2825 = vrsqrt.f32 %v2390_v31  ;;  %vm2428_vm7 = vweird.f32 %v2390_v31 }
 0x84b   : > { %v2503_v48 = vpop.f32.mrf.mxu0 }
 0x84c   : > { %v2381_v37 = vpop.xlane.xlu1 %2380  ;;  %v2504_v42 = vadd.f32 %v2712_v2, %v2503_v48 }
 0x84d   : > { %v2386_v44 = vmul.f32 %v2381_v37, %v2964_v16 }
 0x84e   : > { %2518 = vst.msk [vmem:[%s4052_s1] sm:$0xff] %vm596_vm0, %v2504_v42 }
 0x84f   : > { %v2826_v60 = vpop.eup %2825  ;;  %v2391_v17 = vadd.f32 1e-05, %v2386_v44 }
 0x850   : > { %v2423_v34 = vmul.f32 %v2826_v60, %v2390_v31  ;;  %vm2429_vm6 = vweird.f32 %v2826_v60 }
 0x851   : > { %2827 = vrsqrt.f32 %v2391_v17  ;;  %vm2430_vm8 = vmor %vm2428_vm7, %vm2429_vm6  ;;  %vm2438_vm10 = vweird.f32 %v2391_v17 }
 0x852   : > { %v2424_v9 = vmul.f32 %v2826_v60, %v2423_v34 }
 0x854   : > { %v2425_v23 = vmul.f32 0.5, %v2424_v9 }
 0x856   : > { %v2426_v0 = vsub.f32 1.5, %v2425_v23 }
 0x857   : > { %v2828_v8 = vpop.eup %2827 }
 0x858   : > { %v2427_v45 = vmul.f32 %v2826_v60, %v2426_v0  ;;  %v2433_v20 = vmul.f32 %v2828_v8, %v2391_v17  ;;  %vm2439_vm9 = vweird.f32 %v2828_v8 }
 0x859   : > { %vm2440_vm11 = vmor %vm2438_vm10, %vm2439_vm9 }
 0x85a   : > { %v2431_v13 = vsel %vm2430_vm8, %v2826_v60, %v2427_v45  ;;  %v2434_v35 = vmul.f32 %v2828_v8, %v2433_v20 }
 0x85b   : > { %v2445_v38 = vmul.f32 %v2431_v13, %v4021_v55 }
 0x85c   : > { %v2435_v16 = vmul.f32 0.5, %v2434_v35 }
 0x85d   : > { %v2453_v22 = vmul.f32 %v4012_v11, %v2445_v38 }
 0x85e   : > { %v2436_v24 = vsub.f32 1.5, %v2435_v16 }
 0x85f   : > { %v2461_v29 = vadd.f32 %v4017_v40, %v2453_v22 }
 0x860   : > { %v2437_v19 = vmul.f32 %v2828_v8, %v2436_v24 }
 0x861   : > { %2681 = vmatmul.msk.f32.gmra.mxu0 %vm596_vm0, %v2461_v29 }
 0x862   : > { %v2441_v54 = vsel %vm2440_vm11, %v2828_v8, %v2437_v19 }
 0x863   : > { %v2446_v39 = vmul.f32 %v2441_v54, %v4030_v56 }
 0x865   : > { %v2454_v55 = vmul.f32 %v4012_v11, %v2446_v39 }
 0x867   : > { %v2462_v46 = vadd.f32 %v4017_v40, %v2454_v55 }
 0x869   : > { %2682 = vmatmul.msk.f32.gmra.mxu0 %vm596_vm0, %v2462_v46 }
 0x86b   : > { %v2506_v25 = vpop.f32.mrf.mxu0 }
 0x86c   : > { %v2507_v18 = vadd.f32 %v2712_v2, %v2506_v25 }
 0x86e   : > { %2519 = vst.msk [vmem:[%s4052_s1 + $0x8] sm:$0xff] %vm596_vm0, %v2507_v18 }
 0x8be   : > { %v2509_v7 = vpop.f32.mrf.mxu0 }
 0x8bf   : > { %v2510_v28 = vadd.f32 %v2712_v2, %v2509_v7 }
 0x8c1   : > { %2520 = vst.msk [vmem:[%s4052_s1 + $0x10] sm:$0xff] %vm596_vm0, %v2510_v28 }
 0x8de   : > { %v2512_v43 = vpop.f32.mrf.mxu0 }
 0x8df   : > { %v2513_v4 = vadd.f32 %v2712_v2, %v2512_v43 }
 0x8e1   : > { %2521 = vst.msk [vmem:[%s4052_s1 + $0x18] sm:$0xff] %vm596_vm0, %v2513_v4 }
 0x8e6   : > { %v2515_v47 = vpop.f32.mrf.mxu0 }
 0x8e7   : > { %v2516_v56 = vadd.f32 %v2712_v2, %v2515_v47 }
 0x8e9   : > { %2522 = vst.msk [vmem:[%s4052_s1 + $0x20] sm:$0xff] %vm596_vm0, %v2516_v56 }
 0x8ea PF: > { %s29_s27 = sadd.s32 1, %s2840_s27  }
 0x8eb   : > { %p26_p4 = scmp.ge.s32.totalorder %s29_s27, 4  }
 0x8ed   :  { %28 = sbr.rel (!%p26_p4) target bundleno = 4 (0x4), region = 130 }

</bundles_post_ra>
